<compile_context>
chip_gen: v7x
topology: tpu7x:2x2x1
jax: 0.10.0
libtpu: 0.0.40
codegen_flags: <defaults>
</compile_context>

<pallas_src>
import math

import jax
import jax.numpy as jnp
import numpy as np
from jax import lax
from jax.experimental import pallas as pl
from jax.experimental.pallas import tpu as pltpu

CPAD = 128  # lane-dense padded width of the classifier output
_SQRT_2_OVER_PI = 0.7978845608028654

# Deliberate precision choice: default (single bf16 MXU pass per f32 dot) is
# plenty for this net (validated vs a float64 reference below); switch to
# lax.Precision.HIGHEST on these dots if tighter parity is required.
_DOT_PRECISION = None


def _gelu_tanh(x):
    # tanh-approximate GELU (see TODO above); runs on the EUP.
    return 0.5 * x * (1.0 + jnp.tanh(_SQRT_2_OVER_PI * (x + 0.044715 * (x * x * x))))


def _imu_convnet_kernel(x_ref, w1_ref, b1_ref, w2_ref, b2_ref, wf_ref, bf_ref,
                        o_ref):
    """TB samples per grid step.  Flat activation layout: row r = b*S + t."""
    f32 = jnp.float32
    TB, S, F = x_ref.shape
    M = TB * S

    # (TB, S, F) -> (TB*S, F): leading-dim merge, layout no-op (S % 8 == 0).
    x = x_ref[...].reshape(M, F)

    def t_idx(width):  # per-sample time index, materialized `width` lanes wide
        return lax.broadcasted_iota(jnp.int32, (M, width), 0) % S

    # ---- conv1 (k=3, pad=1) + folded BN1: one im2col dot -------------------
    tf = t_idx(F)
    xm = jnp.where(tf == 0, 0.0, pltpu.roll(x, 1, 0))           # x[t-1], 0 at t==0
    xp = jnp.where(tf == S - 1, 0.0, pltpu.roll(x, M - 1, 0))   # x[t+1], 0 at t==S-1
    xc = jnp.concatenate([xm, x, xp], axis=-1)                  # (M, 3F)
    h = jnp.dot(xc, w1_ref[...], precision=_DOT_PRECISION,
                preferred_element_type=f32) + b1_ref[...]       # (M, C1)
    h = _gelu_tanh(h)

    # ---- maxpool1 (k=2, s=2), kept dilated: valid pooled value at even t ---
    p1 = jnp.maximum(h, pltpu.roll(h, M - 1, 0))                # max(h[t], h[t+1])

    # ---- conv2 (k=3, pad=1) + folded BN2 on the pooled (even-row) signal ---
    # Pooled neighbours sit +-2 rows away; odd rows hold harmless finite
    # garbage that the final masked reduction never reads.
    C1 = p1.shape[-1]
    tc = t_idx(C1)
    pm = jnp.where(tc < 2, 0.0, pltpu.roll(p1, 2, 0))           # p1[t-2]
    pp = jnp.where(tc >= S - 2, 0.0, pltpu.roll(p1, M - 2, 0))  # p1[t+2]
    pc = jnp.concatenate([pm, p1, pp], axis=-1)                 # (M, 3*C1)
    h2 = jnp.dot(pc, w2_ref[...], precision=_DOT_PRECISION,
                 preferred_element_type=f32) + b2_ref[...]      # (M, C2)
    h2 = _gelu_tanh(h2)

    # ---- maxpool2: valid pooled value at t % 4 == 0 -------------------------
    p2 = jnp.maximum(h2, pltpu.roll(h2, M - 2, 0))              # max(h2[t], h2[t+2])

    # ---- global average pool (1/(S/4) folded into wf) + fc ------------------
    C2 = p2.shape[-1]
    keep = (t_idx(C2) % 4 == 0).astype(f32)                     # select pooled rows
    g = jnp.sum((p2 * keep).reshape(TB, S, C2), axis=1)         # (TB, C2)
    out = jnp.dot(g, wf_ref[...], precision=_DOT_PRECISION,
                  preferred_element_type=f32) + bf_ref[...]     # (TB, CPAD)
    o_ref[0] = out.astype(o_ref.dtype)


def fold_params(p, seq_len, num_classes, eps=1e-5, cpad=CPAD):
    """Init-time prep: fold BN into im2col conv weights, fold GAP scale into a
    lane-dense padded fc weight."""
    assert seq_len % 4 == 0, "seq_len must be divisible by 4 (two MaxPool(2))"
    assert seq_len % 8 == 0, "seq_len must be a multiple of 8 (sublane tiling)"
    f32 = jnp.float32

    def fold_conv_bn(w, b, gamma, beta, mean, var):
        # w: (Cout, Cin, 3);  bn(conv(x)) == im2col(x) @ Wcat + bias
        scale = gamma / jnp.sqrt(var + eps)                         # (Cout,)
        taps = [(w[:, :, k] * scale[:, None]).T for k in range(3)]  # (Cin, Cout) each
        wcat = jnp.concatenate(taps, axis=0).astype(f32)            # (3*Cin, Cout)
        bias = ((b - mean) * scale + beta).reshape(1, -1).astype(f32)
        return wcat, bias

    w1, b1 = fold_conv_bn(p["conv1_w"], p["conv1_b"],
                          p["bn1_g"], p["bn1_b"], p["bn1_m"], p["bn1_v"])
    w2, b2 = fold_conv_bn(p["conv2_w"], p["conv2_b"],
                          p["bn2_g"], p["bn2_b"], p["bn2_m"], p["bn2_v"])

    c2 = p["fc_w"].shape[1]
    gap_scale = 4.0 / seq_len                                       # 1 / (S/4)
    wf = jnp.zeros((c2, cpad), f32).at[:, :num_classes].set(p["fc_w"].T * gap_scale)
    bf = jnp.zeros((1, cpad), f32).at[0, :num_classes].set(p["fc_b"])

    return dict(w1=w1, b1=b1, w2=w2, b2=b2, wf=wf, bf=bf,
                num_classes=num_classes, seq_len=seq_len)


def imu_convnet_forward(x, kp, *, tile_b=8):
    """x: (B, S, F) float32 -> logits (B, num_classes)."""
    B, S, F = x.shape
    assert S == kp["seq_len"]
    num_classes = kp["num_classes"]

    TB = max(1, min(tile_b, B))
    Bp = pl.cdiv(B, TB) * TB
    if Bp != B:
        x = jnp.concatenate([x, jnp.zeros((Bp - B, S, F), x.dtype)], axis=0)
    nt = Bp // TB

    out = pl.pallas_call(
        _imu_convnet_kernel,
        out_shape=jax.ShapeDtypeStruct((nt, TB, CPAD), jnp.float32),
        grid_spec=pltpu.PrefetchScalarGridSpec(
            num_scalar_prefetch=0,
            grid=(nt,),
            in_specs=[
                pl.BlockSpec((TB, S, F), lambda b: (b, 0, 0)),        # batch tile
                pl.BlockSpec(kp["w1"].shape, lambda b: (0, 0)),       # VMEM-resident
                pl.BlockSpec(kp["b1"].shape, lambda b: (0, 0)),
                pl.BlockSpec(kp["w2"].shape, lambda b: (0, 0)),
                pl.BlockSpec(kp["b2"].shape, lambda b: (0, 0)),
                pl.BlockSpec(kp["wf"].shape, lambda b: (0, 0)),
                pl.BlockSpec(kp["bf"].shape, lambda b: (0, 0)),
            ],
            out_specs=pl.BlockSpec((1, TB, CPAD), lambda b: (b, 0, 0)),  # lane-dense
        ),
        compiler_params=pltpu.CompilerParams(
            dimension_semantics=("parallel",),   # >=2 steps -> both TCs on v7x
        ),
    )(x, kp["w1"], kp["b1"], kp["w2"], kp["b2"], kp["wf"], kp["bf"])

    return out.reshape(Bp, CPAD)[:B, :num_classes]


# ---------------------------------------------------------------------------
# Independent float64 numpy reference of the PyTorch forward (tanh-GELU).
# ---------------------------------------------------------------------------
def reference_forward_np(x, p, eps=1e-5):
    def gelu(v):
        c = math.sqrt(2.0 / math.pi)
        return 0.5 * v * (1.0 + np.tanh(c * (v + 0.044715 * v ** 3)))

    def conv1d_same3(h, w, b):
        B, Cin, L = h.shape
        hp = np.pad(h, ((0, 0), (0, 0), (1, 1)))
        out = np.zeros((B, w.shape[0], L), dtype=h.dtype)
        for k in range(3):
            out += np.einsum("bcl,oc->bol", hp[:, :, k:k + L], w[:, :, k])
        return out + b[None, :, None]

    def bn(h, g, be, m, v):
        return (g[None, :, None] * (h - m[None, :, None])
                / np.sqrt(v[None, :, None] + eps) + be[None, :, None])

    def maxpool2(h):
        B, C, L = h.shape
        return h.reshape(B, C, L // 2, 2).max(axis=-1)

    h = np.transpose(x, (0, 2, 1))                     # (B, F, S)
    h = conv1d_same3(h, p["conv1_w"], p["conv1_b"])
    h = gelu(bn(h, p["bn1_g"], p["bn1_b"], p["bn1_m"], p["bn1_v"]))
    h = maxpool2(h)
    h = conv1d_same3(h, p["conv2_w"], p["conv2_b"])
    h = gelu(bn(h, p["bn2_g"], p["bn2_b"], p["bn2_m"], p["bn2_v"]))
    h = maxpool2(h)
    g = h.mean(axis=2)                                 # AdaptiveAvgPool1d(1)
    return g @ p["fc_w"].T + p["fc_b"]


if __name__ == "__main__":
    num_classes = 4
    window_size = 64      # seq_len (module default 60; 64 keeps both pools exact)
    feature_dim = 2
    batch = 16            # 2 grid steps of 8 samples each
    eps = 1e-5
    c1, c2 = 32, 64

    key = jax.random.PRNGKey(0)
    keys = jax.random.split(key, 16)

    def u(k, shape, bound):
        return jax.random.uniform(k, shape, minval=-bound, maxval=bound,
                                  dtype=jnp.float32)

    p = dict(
        conv1_w=u(keys[0], (c1, feature_dim, 3), 1.0 / math.sqrt(feature_dim * 3)),
        conv1_b=u(keys[1], (c1,), 1.0 / math.sqrt(feature_dim * 3)),
        bn1_g=1.0 + 0.1 * jax.random.normal(keys[2], (c1,), dtype=jnp.float32),
        bn1_b=0.1 * jax.random.normal(keys[3], (c1,), dtype=jnp.float32),
        bn1_m=0.1 * jax.random.normal(keys[4], (c1,), dtype=jnp.float32),
        bn1_v=jax.random.uniform(keys[5], (c1,), minval=0.5, maxval=1.5,
                                 dtype=jnp.float32),
        conv2_w=u(keys[6], (c2, c1, 3), 1.0 / math.sqrt(c1 * 3)),
        conv2_b=u(keys[7], (c2,), 1.0 / math.sqrt(c1 * 3)),
        bn2_g=1.0 + 0.1 * jax.random.normal(keys[8], (c2,), dtype=jnp.float32),
        bn2_b=0.1 * jax.random.normal(keys[9], (c2,), dtype=jnp.float32),
        bn2_m=0.1 * jax.random.normal(keys[10], (c2,), dtype=jnp.float32),
        bn2_v=jax.random.uniform(keys[11], (c2,), minval=0.5, maxval=1.5,
                                 dtype=jnp.float32),
        fc_w=u(keys[12], (num_classes, c2), 1.0 / math.sqrt(c2)),
        fc_b=u(keys[13], (num_classes,), 1.0 / math.sqrt(c2)),
    )

    x = jax.random.normal(keys[14], (batch, window_size, feature_dim),
                          dtype=jnp.float32)

    # Init-time folding / padding (done once, NOT per forward call).
    kp = fold_params(p, seq_len=window_size, num_classes=num_classes, eps=eps)

    out = imu_convnet_forward(x, kp, tile_b=8)
    out = jax.block_until_ready(out)
    assert out.shape == (batch, num_classes)

    ref = reference_forward_np(
        np.asarray(x, np.float64),
        {k: np.asarray(v, np.float64) for k, v in p.items()},
        eps=eps)
    err = float(np.max(np.abs(np.asarray(out, np.float64) - ref)))
    # Tolerance covers possible bf16-pass MXU rounding of f32 matmuls; any
    # structural/logic error (wrong tap, shift, pooling, BN fold) is >> 1e-1.
    assert err < 2e-2, f"mismatch vs reference: max abs err {err}"

    print("KERNEL_OK")
</pallas_src>

<mosaic_0001>
module attributes {stable_mosaic.version = 11 : i64} {
  func.func @_imu_convnet_kernel(%arg0: i32, %arg1: memref<8x64x2xf32, #tpu.memory_space<vmem>>, %arg2: memref<6x32xf32, #tpu.memory_space<vmem>>, %arg3: memref<1x32xf32, #tpu.memory_space<vmem>>, %arg4: memref<96x64xf32, #tpu.memory_space<vmem>>, %arg5: memref<1x64xf32, #tpu.memory_space<vmem>>, %arg6: memref<64x128xf32, #tpu.memory_space<vmem>>, %arg7: memref<1x128xf32, #tpu.memory_space<vmem>>, %arg8: memref<1x8x128xf32, #tpu.memory_space<vmem>>) attributes {dimension_semantics = [#tpu.dimension_semantics<parallel>], iteration_bounds = array<i64: 2>, scalar_prefetch = 0 : i64, scratch_operands = 0 : i64, tpu.core_type = #tpu.core_type<tc>, window_params = [{transform_indices = @transform_0, window_bounds = array<i64: 8, 64, 2>}, {pipeline_mode = #tpu.pipeline_mode<synchronous>, transform_indices = @transform_1, window_bounds = array<i64: 6, 32>}, {pipeline_mode = #tpu.pipeline_mode<synchronous>, transform_indices = @transform_2, window_bounds = array<i64: 1, 32>}, {pipeline_mode = #tpu.pipeline_mode<synchronous>, transform_indices = @transform_3, window_bounds = array<i64: 96, 64>}, {pipeline_mode = #tpu.pipeline_mode<synchronous>, transform_indices = @transform_4, window_bounds = array<i64: 1, 64>}, {pipeline_mode = #tpu.pipeline_mode<synchronous>, transform_indices = @transform_5, window_bounds = array<i64: 64, 128>}, {pipeline_mode = #tpu.pipeline_mode<synchronous>, transform_indices = @transform_6, window_bounds = array<i64: 1, 128>}, {transform_indices = @transform_7, window_bounds = array<i64: 1, 8, 128>}]} {
    %c0 = arith.constant 0 : index
    %c0_0 = arith.constant 0 : index
    %c0_1 = arith.constant 0 : index
    %0 = vector.load %arg1[%c0, %c0_0, %c0_1] : memref<8x64x2xf32, #tpu.memory_space<vmem>>, vector<8x64x2xf32>
    %1 = vector.shape_cast %0 : vector<8x64x2xf32> to vector<512x2xf32>
    %2 = tpu.iota {dimensions = array<i32: 0>} : vector<512x2xi32>
    %c64_i32 = arith.constant 64 : i32
    %c0_i32 = arith.constant 0 : i32
    %3 = arith.cmpi eq, %c64_i32, %c0_i32 : i32
    %c1_i32 = arith.constant 1 : i32
    %4 = arith.select %3, %c1_i32, %c64_i32 : i32
    %5 = vector.broadcast %4 : i32 to vector<512x2xi32>
    %6 = arith.remsi %2, %5 : vector<512x2xi32>
    %c0_i32_2 = arith.constant 0 : i32
    %7 = vector.broadcast %c0_i32_2 : i32 to vector<512x2xi32>
    %8 = arith.cmpi ne, %6, %7 : vector<512x2xi32>
    %c0_i32_3 = arith.constant 0 : i32
    %9 = vector.broadcast %c0_i32_3 : i32 to vector<512x2xi32>
    %10 = arith.cmpi slt, %6, %9 : vector<512x2xi32>
    %c0_i32_4 = arith.constant 0 : i32
    %11 = arith.cmpi slt, %4, %c0_i32_4 : i32
    %12 = vector.broadcast %11 : i1 to vector<512x2xi1>
    %13 = vector.broadcast %12 : vector<512x2xi1> to vector<512x2xi1>
    %14 = arith.xori %10, %13 : vector<512x2xi1>
    %15 = arith.andi %14, %8 : vector<512x2xi1>
    %16 = vector.broadcast %4 : i32 to vector<512x2xi32>
    %17 = arith.addi %6, %16 : vector<512x2xi32>
    %18 = arith.select %15, %17, %6 : vector<512x2xi1>, vector<512x2xi32>
    %c0_i32_5 = arith.constant 0 : i32
    %19 = vector.broadcast %c0_i32_5 : i32 to vector<512x2xi32>
    %20 = arith.cmpi eq, %18, %19 : vector<512x2xi32>
    %c1_i32_6 = arith.constant 1 : i32
    %21 = tpu.dynamic_rotate %1 by %c1_i32_6 dim 0 : vector<512x2xf32>, i32 -> vector<512x2xf32>
    %cst = arith.constant 0.000000e+00 : f32
    %22 = vector.broadcast %cst : f32 to vector<512x2xf32>
    %23 = arith.select %20, %22, %21 : vector<512x2xi1>, vector<512x2xf32>
    %c63_i32 = arith.constant 63 : i32
    %24 = vector.broadcast %c63_i32 : i32 to vector<512x2xi32>
    %25 = arith.cmpi eq, %18, %24 : vector<512x2xi32>
    %c511_i32 = arith.constant 511 : i32
    %26 = tpu.dynamic_rotate %1 by %c511_i32 dim 0 : vector<512x2xf32>, i32 -> vector<512x2xf32>
    %cst_7 = arith.constant 0.000000e+00 : f32
    %27 = vector.broadcast %cst_7 : f32 to vector<512x2xf32>
    %28 = arith.select %25, %27, %26 : vector<512x2xi1>, vector<512x2xf32>
    %29 = tpu.concatenate %23, %1, %28 in 1 : vector<512x2xf32>, vector<512x2xf32>, vector<512x2xf32> -> vector<512x6xf32>
    %c0_8 = arith.constant 0 : index
    %c0_9 = arith.constant 0 : index
    %30 = vector.load %arg2[%c0_8, %c0_9] : memref<6x32xf32, #tpu.memory_space<vmem>>, vector<6x32xf32>
    %cst_10 = arith.constant dense<0.000000e+00> : vector<512x32xf32>
    %31 = tpu.matmul %29, %30, %cst_10 {dimension_numbers = #tpu.dot_dimension_numbers<[1], [0], [0], [1], [0, 0, 1, 1], [], []>} : vector<512x6xf32>, vector<6x32xf32>, vector<512x32xf32> -> vector<512x32xf32>
    %c0_11 = arith.constant 0 : index
    %c0_12 = arith.constant 0 : index
    %32 = vector.load %arg3[%c0_11, %c0_12] : memref<1x32xf32, #tpu.memory_space<vmem>>, vector<1x32xf32>
    %33 = vector.broadcast %32 : vector<1x32xf32> to vector<512x32xf32>
    %34 = arith.addf %31, %33 : vector<512x32xf32>
    %cst_13 = arith.constant 5.000000e-01 : f32
    %35 = vector.broadcast %cst_13 : f32 to vector<512x32xf32>
    %36 = arith.mulf %35, %34 : vector<512x32xf32>
    %37 = arith.mulf %34, %34 : vector<512x32xf32>
    %38 = arith.mulf %37, %34 : vector<512x32xf32>
    %cst_14 = arith.constant 4.471500e-02 : f32
    %39 = vector.broadcast %cst_14 : f32 to vector<512x32xf32>
    %40 = arith.mulf %39, %38 : vector<512x32xf32>
    %41 = arith.addf %34, %40 : vector<512x32xf32>
    %cst_15 = arith.constant 0.797884583 : f32
    %42 = vector.broadcast %cst_15 : f32 to vector<512x32xf32>
    %43 = arith.mulf %42, %41 : vector<512x32xf32>
    %44 = math.tanh %43 : vector<512x32xf32>
    %cst_16 = arith.constant 1.000000e+00 : f32
    %45 = vector.broadcast %cst_16 : f32 to vector<512x32xf32>
    %46 = arith.addf %45, %44 : vector<512x32xf32>
    %47 = arith.mulf %36, %46 : vector<512x32xf32>
    %c511_i32_17 = arith.constant 511 : i32
    %48 = tpu.dynamic_rotate %47 by %c511_i32_17 dim 0 : vector<512x32xf32>, i32 -> vector<512x32xf32>
    %49 = arith.maximumf %47, %48 : vector<512x32xf32>
    %50 = tpu.iota {dimensions = array<i32: 0>} : vector<512x32xi32>
    %c64_i32_18 = arith.constant 64 : i32
    %c0_i32_19 = arith.constant 0 : i32
    %51 = arith.cmpi eq, %c64_i32_18, %c0_i32_19 : i32
    %c1_i32_20 = arith.constant 1 : i32
    %52 = arith.select %51, %c1_i32_20, %c64_i32_18 : i32
    %53 = vector.broadcast %52 : i32 to vector<512x32xi32>
    %54 = arith.remsi %50, %53 : vector<512x32xi32>
    %c0_i32_21 = arith.constant 0 : i32
    %55 = vector.broadcast %c0_i32_21 : i32 to vector<512x32xi32>
    %56 = arith.cmpi ne, %54, %55 : vector<512x32xi32>
    %c0_i32_22 = arith.constant 0 : i32
    %57 = vector.broadcast %c0_i32_22 : i32 to vector<512x32xi32>
    %58 = arith.cmpi slt, %54, %57 : vector<512x32xi32>
    %c0_i32_23 = arith.constant 0 : i32
    %59 = arith.cmpi slt, %52, %c0_i32_23 : i32
    %60 = vector.broadcast %59 : i1 to vector<512x32xi1>
    %61 = vector.broadcast %60 : vector<512x32xi1> to vector<512x32xi1>
    %62 = arith.xori %58, %61 : vector<512x32xi1>
    %63 = arith.andi %62, %56 : vector<512x32xi1>
    %64 = vector.broadcast %52 : i32 to vector<512x32xi32>
    %65 = arith.addi %54, %64 : vector<512x32xi32>
    %66 = arith.select %63, %65, %54 : vector<512x32xi1>, vector<512x32xi32>
    %c2_i32 = arith.constant 2 : i32
    %67 = vector.broadcast %c2_i32 : i32 to vector<512x32xi32>
    %68 = arith.cmpi slt, %66, %67 : vector<512x32xi32>
    %c2_i32_24 = arith.constant 2 : i32
    %69 = tpu.dynamic_rotate %49 by %c2_i32_24 dim 0 : vector<512x32xf32>, i32 -> vector<512x32xf32>
    %cst_25 = arith.constant 0.000000e+00 : f32
    %70 = vector.broadcast %cst_25 : f32 to vector<512x32xf32>
    %71 = arith.select %68, %70, %69 : vector<512x32xi1>, vector<512x32xf32>
    %c62_i32 = arith.constant 62 : i32
    %72 = vector.broadcast %c62_i32 : i32 to vector<512x32xi32>
    %73 = arith.cmpi sge, %66, %72 : vector<512x32xi32>
    %c510_i32 = arith.constant 510 : i32
    %74 = tpu.dynamic_rotate %49 by %c510_i32 dim 0 : vector<512x32xf32>, i32 -> vector<512x32xf32>
    %cst_26 = arith.constant 0.000000e+00 : f32
    %75 = vector.broadcast %cst_26 : f32 to vector<512x32xf32>
    %76 = arith.select %73, %75, %74 : vector<512x32xi1>, vector<512x32xf32>
    %77 = tpu.concatenate %71, %49, %76 in 1 : vector<512x32xf32>, vector<512x32xf32>, vector<512x32xf32> -> vector<512x96xf32>
    %c0_27 = arith.constant 0 : index
    %c0_28 = arith.constant 0 : index
    %78 = vector.load %arg4[%c0_27, %c0_28] : memref<96x64xf32, #tpu.memory_space<vmem>>, vector<96x64xf32>
    %cst_29 = arith.constant dense<0.000000e+00> : vector<512x64xf32>
    %79 = tpu.matmul %77, %78, %cst_29 {dimension_numbers = #tpu.dot_dimension_numbers<[1], [0], [0], [1], [0, 0, 1, 1], [], []>} : vector<512x96xf32>, vector<96x64xf32>, vector<512x64xf32> -> vector<512x64xf32>
    %c0_30 = arith.constant 0 : index
    %c0_31 = arith.constant 0 : index
    %80 = vector.load %arg5[%c0_30, %c0_31] : memref<1x64xf32, #tpu.memory_space<vmem>>, vector<1x64xf32>
    %81 = vector.broadcast %80 : vector<1x64xf32> to vector<512x64xf32>
    %82 = arith.addf %79, %81 : vector<512x64xf32>
    %cst_32 = arith.constant 5.000000e-01 : f32
    %83 = vector.broadcast %cst_32 : f32 to vector<512x64xf32>
    %84 = arith.mulf %83, %82 : vector<512x64xf32>
    %85 = arith.mulf %82, %82 : vector<512x64xf32>
    %86 = arith.mulf %85, %82 : vector<512x64xf32>
    %cst_33 = arith.constant 4.471500e-02 : f32
    %87 = vector.broadcast %cst_33 : f32 to vector<512x64xf32>
    %88 = arith.mulf %87, %86 : vector<512x64xf32>
    %89 = arith.addf %82, %88 : vector<512x64xf32>
    %cst_34 = arith.constant 0.797884583 : f32
    %90 = vector.broadcast %cst_34 : f32 to vector<512x64xf32>
    %91 = arith.mulf %90, %89 : vector<512x64xf32>
    %92 = math.tanh %91 : vector<512x64xf32>
    %cst_35 = arith.constant 1.000000e+00 : f32
    %93 = vector.broadcast %cst_35 : f32 to vector<512x64xf32>
    %94 = arith.addf %93, %92 : vector<512x64xf32>
    %95 = arith.mulf %84, %94 : vector<512x64xf32>
    %c510_i32_36 = arith.constant 510 : i32
    %96 = tpu.dynamic_rotate %95 by %c510_i32_36 dim 0 : vector<512x64xf32>, i32 -> vector<512x64xf32>
    %97 = arith.maximumf %95, %96 : vector<512x64xf32>
    %98 = tpu.iota {dimensions = array<i32: 0>} : vector<512x64xi32>
    %c64_i32_37 = arith.constant 64 : i32
    %c0_i32_38 = arith.constant 0 : i32
    %99 = arith.cmpi eq, %c64_i32_37, %c0_i32_38 : i32
    %c1_i32_39 = arith.constant 1 : i32
    %100 = arith.select %99, %c1_i32_39, %c64_i32_37 : i32
    %101 = vector.broadcast %100 : i32 to vector<512x64xi32>
    %102 = arith.remsi %98, %101 : vector<512x64xi32>
    %c0_i32_40 = arith.constant 0 : i32
    %103 = vector.broadcast %c0_i32_40 : i32 to vector<512x64xi32>
    %104 = arith.cmpi ne, %102, %103 : vector<512x64xi32>
    %c0_i32_41 = arith.constant 0 : i32
    %105 = vector.broadcast %c0_i32_41 : i32 to vector<512x64xi32>
    %106 = arith.cmpi slt, %102, %105 : vector<512x64xi32>
    %c0_i32_42 = arith.constant 0 : i32
    %107 = arith.cmpi slt, %100, %c0_i32_42 : i32
    %108 = vector.broadcast %107 : i1 to vector<512x64xi1>
    %109 = vector.broadcast %108 : vector<512x64xi1> to vector<512x64xi1>
    %110 = arith.xori %106, %109 : vector<512x64xi1>
    %111 = arith.andi %110, %104 : vector<512x64xi1>
    %112 = vector.broadcast %100 : i32 to vector<512x64xi32>
    %113 = arith.addi %102, %112 : vector<512x64xi32>
    %114 = arith.select %111, %113, %102 : vector<512x64xi1>, vector<512x64xi32>
    %c4_i32 = arith.constant 4 : i32
    %c0_i32_43 = arith.constant 0 : i32
    %115 = arith.cmpi eq, %c4_i32, %c0_i32_43 : i32
    %c1_i32_44 = arith.constant 1 : i32
    %116 = arith.select %115, %c1_i32_44, %c4_i32 : i32
    %117 = vector.broadcast %116 : i32 to vector<512x64xi32>
    %118 = arith.remsi %114, %117 : vector<512x64xi32>
    %c0_i32_45 = arith.constant 0 : i32
    %119 = vector.broadcast %c0_i32_45 : i32 to vector<512x64xi32>
    %120 = arith.cmpi ne, %118, %119 : vector<512x64xi32>
    %c0_i32_46 = arith.constant 0 : i32
    %121 = vector.broadcast %c0_i32_46 : i32 to vector<512x64xi32>
    %122 = arith.cmpi slt, %118, %121 : vector<512x64xi32>
    %c0_i32_47 = arith.constant 0 : i32
    %123 = arith.cmpi slt, %116, %c0_i32_47 : i32
    %124 = vector.broadcast %123 : i1 to vector<512x64xi1>
    %125 = vector.broadcast %124 : vector<512x64xi1> to vector<512x64xi1>
    %126 = arith.xori %122, %125 : vector<512x64xi1>
    %127 = arith.andi %126, %120 : vector<512x64xi1>
    %128 = vector.broadcast %116 : i32 to vector<512x64xi32>
    %129 = arith.addi %118, %128 : vector<512x64xi32>
    %130 = arith.select %127, %129, %118 : vector<512x64xi1>, vector<512x64xi32>
    %c0_i32_48 = arith.constant 0 : i32
    %131 = vector.broadcast %c0_i32_48 : i32 to vector<512x64xi32>
    %132 = arith.cmpi eq, %130, %131 : vector<512x64xi32>
    %133 = arith.extui %132 : vector<512x64xi1> to vector<512x64xi32>
    %134 = arith.sitofp %133 : vector<512x64xi32> to vector<512x64xf32>
    %135 = arith.mulf %97, %134 : vector<512x64xf32>
    %136 = vector.shape_cast %135 : vector<512x64xf32> to vector<8x64x64xf32>
    %cst_49 = arith.constant dense<0.000000e+00> : vector<8x64xf32>
    %137 = vector.multi_reduction <add>, %136, %cst_49 [1] : vector<8x64x64xf32> to vector<8x64xf32>
    %c0_50 = arith.constant 0 : index
    %c0_51 = arith.constant 0 : index
    %138 = vector.load %arg6[%c0_50, %c0_51] : memref<64x128xf32, #tpu.memory_space<vmem>>, vector<64x128xf32>
    %cst_52 = arith.constant dense<0.000000e+00> : vector<8x128xf32>
    %139 = tpu.matmul %137, %138, %cst_52 {dimension_numbers = #tpu.dot_dimension_numbers<[1], [0], [0], [1], [0, 0, 1, 1], [], []>} : vector<8x64xf32>, vector<64x128xf32>, vector<8x128xf32> -> vector<8x128xf32>
    %c0_53 = arith.constant 0 : index
    %c0_54 = arith.constant 0 : index
    %140 = vector.load %arg7[%c0_53, %c0_54] : memref<1x128xf32, #tpu.memory_space<vmem>>, vector<1x128xf32>
    %141 = vector.broadcast %140 : vector<1x128xf32> to vector<8x128xf32>
    %142 = arith.addf %139, %141 : vector<8x128xf32>
    %c0_55 = arith.constant 0 : index
    %c0_56 = arith.constant 0 : index
    %c0_57 = arith.constant 0 : index
    %143 = vector.load %arg8[%c0_55, %c0_56, %c0_57] : memref<1x8x128xf32, #tpu.memory_space<vmem>>, vector<1x8x128xf32>
    %144 = vector.shape_cast %143 : vector<1x8x128xf32> to vector<8x128xf32>
    %145 = vector.shape_cast %142 : vector<8x128xf32> to vector<1x8x128xf32>
    tpu.vector_store %arg8[%c0_55, %c0_56, %c0_57], %145 {strides = array<i32>} : memref<1x8x128xf32, #tpu.memory_space<vmem>>, vector<1x8x128xf32>,
    return
  }
  func.func @transform_0(%arg0: i32) -> (i32, i32, i32) {
    %c0_i32 = arith.constant 0 : i32
    %c0_i32_0 = arith.constant 0 : i32
    %c0_i32_1 = arith.constant 0 : i32
    return %arg0, %c0_i32, %c0_i32_0 : i32, i32, i32
  }
  func.func @transform_1(%arg0: i32) -> (i32, i32) {
    %c0_i32 = arith.constant 0 : i32
    %c0_i32_0 = arith.constant 0 : i32
    %c0_i32_1 = arith.constant 0 : i32
    return %c0_i32, %c0_i32_0 : i32, i32
  }
  func.func @transform_2(%arg0: i32) -> (i32, i32) {
    %c0_i32 = arith.constant 0 : i32
    %c0_i32_0 = arith.constant 0 : i32
    %c0_i32_1 = arith.constant 0 : i32
    return %c0_i32, %c0_i32_0 : i32, i32
  }
  func.func @transform_3(%arg0: i32) -> (i32, i32) {
    %c0_i32 = arith.constant 0 : i32
    %c0_i32_0 = arith.constant 0 : i32
    %c0_i32_1 = arith.constant 0 : i32
    return %c0_i32, %c0_i32_0 : i32, i32
  }
  func.func @transform_4(%arg0: i32) -> (i32, i32) {
    %c0_i32 = arith.constant 0 : i32
    %c0_i32_0 = arith.constant 0 : i32
    %c0_i32_1 = arith.constant 0 : i32
    return %c0_i32, %c0_i32_0 : i32, i32
  }
  func.func @transform_5(%arg0: i32) -> (i32, i32) {
    %c0_i32 = arith.constant 0 : i32
    %c0_i32_0 = arith.constant 0 : i32
    %c0_i32_1 = arith.constant 0 : i32
    return %c0_i32, %c0_i32_0 : i32, i32
  }
  func.func @transform_6(%arg0: i32) -> (i32, i32) {
    %c0_i32 = arith.constant 0 : i32
    %c0_i32_0 = arith.constant 0 : i32
    %c0_i32_1 = arith.constant 0 : i32
    return %c0_i32, %c0_i32_0 : i32, i32
  }
  func.func @transform_7(%arg0: i32) -> (i32, i32, i32) {
    %c0_i32 = arith.constant 0 : i32
    %c0_i32_0 = arith.constant 0 : i32
    %c0_i32_1 = arith.constant 0 : i32
    return %arg0, %c0_i32, %c0_i32_0 : i32, i32, i32
  }
}

</mosaic_0001>

<bundles_post_ra>
// kernel: tpu_custom_call.1
= control target key start
LH: loop header
LB: loop body
LE: loop exit
PB: predicated region body
PF: predicated region fallthrough
CT: control target
= control target key end

     0   :  { %12 = vsyncpa [#allocation3], 0  ;;  %s13364_s0 = inlined_call_operand.vmem [shape: f32[16,64,2], index: 0, kind: input, shape index: {}]   ;;  %s13365_s1 = inlined_call_operand.vmem [shape: f32[6,32], index: 1, kind: input, shape index: {}]   ;;  %s13366_s2 = inlined_call_operand.vmem [shape: f32[1,32], index: 2, kind: input, shape index: {}]   ;;  %s13367_s3 = inlined_call_operand.vmem [shape: f32[96,64], index: 3, kind: input, shape index: {}]   ;;  %s13368_s4 = inlined_call_operand.vmem [shape: f32[1,64], index: 4, kind: input, shape index: {}]   ;;  %s13369_s5 = inlined_call_operand.vmem [shape: f32[64,128], index: 5, kind: input, shape index: {}]   ;;  %s13370_s6 = inlined_call_operand.vmem [shape: f32[1,128], index: 6, kind: input, shape index: {}]   ;;  %s13371_s7 = inlined_call_operand.hbm [shape: f32[2,8,128], index: 7, kind: output, shape index: {}]  }
   0x1   :  { %14 = vsyncpa [#allocation3 + $0x1], 0  ;;  %s8640_s24 = smov 0   ;;  %s8642_s25 = smov 0  }
   0x2   :  { %s8644_s26 = smov 0   ;;  %s8646_s27 = smov 0  }
   0x3 LB: > { %s8661_s28 = sadd.s32 4294967295, %s8590_s27   ;;  %s7589_s29 = sadd.s32 4294967294, %s8590_s27   ;;  %s8590_s27 = sphi %s8646_s27, %s13749_s27   ;;  %s8586_s26 = sphi %s8644_s26, %s13748_s26   ;;  %s8582_s25 = sphi %s8642_s25, %s13747_s25   ;;  %s8578_s24 = sphi %s8640_s24, %s13746_s24  }
   0x4   : > { %s8665_s30 = sadd.s32 1, %s8590_s27   ;;  %s179_s8 = sadd.s32 1, %s8586_s26 }
   0x5   : > { %s176_s9 = ssub.s32 %s8590_s27, %s8665_s30  ;;  %p189_p0 = scmp.ne.s32.totalorder %s8586_s26, %s8582_s25 }
   0x6   : > { %p177_p1 = scmp.eq.s32.totalorder %s176_s9, 0  ;;  %p190_p2 = scmp.eq.s32.totalorder %s8661_s28, 1 }
   0x7   : > { %p195_p3 = scmp.ne.s32.totalorder %s8582_s25, %s8578_s24  ;;  %p196_p4 = scmp.eq.s32.totalorder %s7589_s29, 1 }
   0x8   : > { %s8676_s10 = scalar_select %p177_p1, %s8586_s26, %s179_s8  }
   0x9   : > { %p8678_p5 = por %p190_p2, %p189_p0  ;;  %p8682_p6 = por %p196_p4, %p195_p3 }
   0xa   : > { %p7592_p7 = scmp.ge.s32.totalorder %s8590_s27, 1  ;;  %p242_p8 = scmp.lt.s32.totalorder %s8590_s27, 3 }
   0xc   : > { %p243_p9 = pnand %p7592_p7, %p242_p8 }
   0xe   : > { %246 = sbr.rel (%p243_p9) target bundleno = 1441 (0x5a1), region = 48 }
  0x15   : > { %s7594_s13 = sshll.u32 %s8661_s28, 3  ;;  %v346_v0 = vlaneseq  ;;  %v2335_v1 = vld [vmem:[%s13365_s1] sm:$0x3f]  ;;  %vm2536_vm0 = vcmask 1045504   ;;  %s8592_s20 = smov 2   ;;  %vm2205_vm7 = vcmask 15360  }
  0x16   : > { %p276_p10 = scmp.lt.s32.totalorder %s7594_s13, 15  ;;  %7949 = vmatprep.subr.msk.mxu0 %vm2536_vm0, %v2335_v1  ;;  %s8593_s21 = smov 4   ;;  %vm2270_vm8 = vcmask 31744   ;;  %vm2343_vm9 = vcmask 48128  }
  0x17   : > { %7950 = vmatpush3.msk.msra.mxu0 %vm2536_vm0, %v2335_v1  ;;  %v8692_v2 = vshrl.u32 %v346_v0, 7  ;;  %s8594_s29 = smov 32   ;;  %s8595_s8 = smov 64  }
  0x18   : > { %s13751_s13 = smov (!%p276_p10, %s7594_s13), 15  ;;  %s272_s22 = sand.u32 1, %s8582_s25  }
  0x19   : > { %s7798_s16 = sshll.u32 %s13751_s13, 6  ;;  %vm1564_vm1 = vcmp.lt.s32.totalorder %v8692_v2, 7  ;;  %v354_v21 = vadd.s32 56, %v8692_v2  ;;  %vm1307_vm2 = vcmp.lt.s32.totalorder %v8692_v2, 1  ;;  %s7593_s23 = sshll.u32 %s272_s22, 3 }
  0x1a   : > { %s8697_s19 = scalar_lea.vmem %s13364_s0, %s7798_s16  ;;  %s7795_s14 = sshll.u32 %s8661_s28, 7 }
  0x1b   : > { %v8700_v3 = vld [vmem:[%s8697_s19 + $0x18] sm:$0xff]  ;;  %v8703_v4 = vld [vmem:[%s8697_s19] sm:$0xff]  ;;  %v283_v5 = vld [vmem:[%s8697_s19 + $0x8] sm:$0xff]  ;;  %v8742_v26 = vand.u32 63, %v354_v21  ;;  %s274_s15 = scalar_lea.vmem [#allocation2], %s7593_s23  ;;  %s13322_s17 = scalar_lea.hbm %s13371_s7, %s7795_s14 }
  0x1c   : > { %1763 = vrot.lane.b32.xlu1 %v8700_v3, %s8592_s20  ;;  %1757 = vrot.lane.b32.xlu0 %v8703_v4, %s8592_s20  ;;  %v1500_v6 = vrot.slane %v8703_v4, 1  ;;  %v284_v7 = vld [vmem:[%s8697_s19 + $0x10] sm:$0xff]  ;;  %v1501_v8 = vrot.slane %v283_v5, 1  ;;  %v286_v10 = vld [vmem:[%s8697_s19 + $0x20] sm:$0xff]  ;;  %v1503_v12 = vrot.slane %v8700_v3, 1  ;;  %v1246_v27 = vrot.slane %v8700_v3, 7 }
  0x1d   : > { %v1502_v9 = vrot.slane %v284_v7, 1  ;;  %v1504_v14 = vrot.slane %v286_v10, 1  ;;  %v287_v17 = vld [vmem:[%s8697_s19 + $0x28] sm:$0xff]  ;;  %v288_v18 = vld [vmem:[%s8697_s19 + $0x30] sm:$0xff]  ;;  %v289_v22 = vld [vmem:[%s8697_s19 + $0x38] sm:$0xff]  ;;  %13461 = vst [vmem:[#allocation5_spill] sm:$0xff] %v8742_v26 }
  0x1e   : > { %v1627_v11 = vsel %vm1564_vm1, %v1500_v6, %v1501_v8  ;;  %v1505_v19 = vrot.slane %v287_v17, 1  ;;  %v1506_v20 = vrot.slane %v288_v18, 1  ;;  %v290_v23 = vld [vmem:[%s8697_s19 + $0x40] sm:$0xff]  ;;  %v1245_v28 = vrot.slane %v284_v7, 7  ;;  %v291_v40 = vld [vmem:[%s8697_s19 + $0x48] sm:$0xff]  ;;  %v292_v41 = vld [vmem:[%s8697_s19 + $0x50] sm:$0xff] }
  0x1f   : > { %v1626_v13 = vsel %vm1564_vm1, %v1501_v8, %v1502_v9  ;;  %v1625_v15 = vsel %vm1564_vm1, %v1502_v9, %v1503_v12  ;;  %v1624_v16 = vsel %vm1564_vm1, %v1503_v12, %v1504_v14  ;;  %v1507_v29 = vrot.slane %v289_v22, 1  ;;  %v293_v50 = vld [vmem:[%s8697_s19 + $0x58] sm:$0xff]  ;;  %v294_v59 = vld [vmem:[%s8697_s19 + $0x60] sm:$0xff]  ;;  %v295_v61 = vld [vmem:[%s8697_s19 + $0x68] sm:$0xff]  ;;  %s7517_s18 = scalar_lea.sflag [#allocation3], %s272_s22  ;;  %s8599_s28 = smov [#allocation2]  }
  0x20   : > { %1759 = vrot.lane.b32.xlu0 %v283_v5, %s8592_s20  ;;  %2013 = vrot.lane.b32.xlu1 %v1627_v11, %s8593_s21  ;;  %v1623_v24 = vsel %vm1564_vm1, %v1504_v14, %v1505_v19  ;;  %v1622_v25 = vsel %vm1564_vm1, %v1505_v19, %v1506_v20  ;;  %v1508_v30 = vrot.slane %v290_v23, 1  ;;  %v1244_v31 = vrot.slane %v283_v5, 7  ;;  %v297_v5 = vld [vmem:[%s8697_s19 + $0x78] sm:$0xff]  ;;  %v296_v9 = vld [vmem:[%s8697_s19 + $0x70] sm:$0xff] }
  0x21   : > { %v1243_v32 = vrot.slane %v8703_v4, 7  ;;  %vm1443_vm3 = vcmp.eq.s32.totalorder %v8742_v26, 63  ;;  %v8754_v34 = vsel %vm1307_vm2, %v1245_v28, %v1246_v27  ;;  %v1248_v37 = vrot.slane %v287_v17, 7  ;;  %v298_v21 = vld [vmem:[%s8697_s19 + $0x80] sm:$0xff] }
  0x22   : > { %v1620_v33 = vsel %vm1564_vm1, %v1507_v29, %v1508_v30  ;;  %v8766_v36 = vsel %vm1307_vm2, %v1244_v31, %v1245_v28  ;;  %v1621_v38 = vsel %vm1564_vm1, %v1506_v20, %v1507_v29  ;;  %v1247_v42 = vrot.slane %v286_v10, 7  ;;  %v299_v20 = vld [vmem:[%s8697_s19 + $0x88] sm:$0xff] }
  0x23   : > { %v8760_v35 = vsel %vm1307_vm2, %v1243_v32, %v1244_v31  ;;  %v1636_v39 = vsel %vm1443_vm3, 0.0, %v1620_v33  ;;  %v1250_v43 = vrot.slane %v289_v22, 7  ;;  %v1252_v44 = vrot.slane %v291_v40, 7 }
  0x24   : > { %1761 = vrot.lane.b32.xlu0 %v284_v7, %s8592_s20  ;;  %2015 = vrot.lane.b32.xlu1 %v1626_v13, %s8593_s21  ;;  %v1509_v45 = vrot.slane %v291_v40, 1  ;;  %v1510_v46 = vrot.slane %v292_v41, 1  ;;  %v8776_v47 = vsel %vm1307_vm2, %v1246_v27, %v1247_v42  ;;  %v8780_v48 = vsel %vm1307_vm2, %v1247_v42, %v1248_v37 }
  0x25   : > { %v1249_v49 = vrot.slane %v288_v18, 7  ;;  %v1251_v51 = vrot.slane %v290_v23, 7  ;;  %v1254_v52 = vrot.slane %v293_v50, 7  ;;  %v1253_v60 = vrot.slane %v292_v41, 7 }
  0x26   : > { %v1619_v55 = vsel %vm1564_vm1, %v1508_v30, %v1509_v45  ;;  %v1618_v56 = vsel %vm1564_vm1, %v1509_v45, %v1510_v46  ;;  %v1256_v62 = vrot.slane %v295_v61, 7  ;;  %v1511_v1 = vrot.slane %v293_v50, 1 }
  0x27   : > { %v8787_v53 = vsel %vm1307_vm2, %v1248_v37, %v1249_v49  ;;  %v8791_v54 = vsel %vm1307_vm2, %v1249_v49, %v1250_v43  ;;  %v8799_v57 = vsel %vm1307_vm2, %v1250_v43, %v1251_v51  ;;  %v8803_v58 = vsel %vm1307_vm2, %v1251_v51, %v1252_v44  ;;  %v8868_v37 = vld [vmem:[%s8697_s19 + $0x98] sm:$0xff]  ;;  %v8895_v51 = vld [vmem:[%s8697_s19 + $0xa0] sm:$0xff] }
  0x28   : > { %2017 = vrot.lane.b32.xlu0 %v1625_v15, %s8593_s21  ;;  %2019 = vrot.lane.b32.xlu1 %v1624_v16, %s8593_s21  ;;  %v8811_v63 = vsel %vm1307_vm2, %v1252_v44, %v1253_v60  ;;  %v8815_v0 = vsel %vm1307_vm2, %v1253_v60, %v1254_v52  ;;  %v1512_v3 = vrot.slane %v294_v59, 1  ;;  %v1255_v7 = vrot.slane %v294_v59, 7  ;;  %v8909_v60 = vld [vmem:[%s8697_s19 + $0xa8] sm:$0xff] }
  0x29   : > { %v1258_v8 = vrot.slane %v297_v5, 7  ;;  %v1617_v12 = vsel %vm1564_vm1, %v1510_v46, %v1511_v1  ;;  %v1257_v14 = vrot.slane %v296_v9, 7  ;;  %v362_v19 = vadd.s32 120, %v8692_v2 }
  0x2a   : > { %v8827_v11 = vsel %vm1307_vm2, %v1255_v7, %v1256_v62  ;;  %v1616_v13 = vsel %vm1564_vm1, %v1511_v1, %v1512_v3  ;;  %v1515_v27 = vrot.slane %v297_v5, 1  ;;  %v1516_v29 = vrot.slane %v298_v21, 1 }
  0x2b   : > { %v8835_v15 = vsel %vm1307_vm2, %v1256_v62, %v1257_v14  ;;  %v8839_v16 = vsel %vm1307_vm2, %v1257_v14, %v1258_v8  ;;  %v8852_v28 = vand.u32 63, %v362_v19  ;;  %v1517_v45 = vrot.slane %v299_v20, 1 }
  0x2c   : > { %1765 = vrot.lane.b32.xlu0 %v286_v10, %s8592_s20  ;;  %1767 = vrot.lane.b32.xlu1 %v287_v17, %s8592_s20  ;;  %v8823_v10 = vsel %vm1307_vm2, %v1254_v52, %v1255_v7  ;;  %v1513_v17 = vrot.slane %v295_v61, 1  ;;  %v1612_v33 = vsel %vm1564_vm1, %v1515_v27, %v1516_v29  ;;  %v1519_v52 = vrot.slane %v8868_v37, 1  ;;  %v8923_v7 = vld [vmem:[%s8697_s19 + $0xc0] sm:$0xff] }
  0x2d   : > { %13462 = vst [vmem:[#allocation6_spill] sm:$0xff] %v8852_v28  ;;  %vm1451_vm4 = vcmp.eq.s32.totalorder %v8852_v28, 63  ;;  %v1611_v49 = vsel %vm1564_vm1, %v1516_v29, %v1517_v45  ;;  %v1521_v62 = vrot.slane %v8909_v60, 1  ;;  %v1524_v14 = vrot.slane %v8923_v7, 1  ;;  %v8970_v29 = vld [vmem:[%s8697_s19 + $0xe0] sm:$0xff] }
  0x30   : > { %2021 = vrot.lane.b32.xlu0 %v1623_v24, %s8593_s21  ;;  %2023 = vrot.lane.b32.xlu1 %v1622_v25, %s8593_s21  ;;  %v1615_v24 = vsel %vm1564_vm1, %v1512_v3, %v1513_v17  ;;  %v370_v3 = vadd.s32 184, %v8692_v2 }
  0x34   : > { %1769 = vrot.lane.b32.xlu0 %v288_v18, %s8592_s20  ;;  %1771 = vrot.lane.b32.xlu1 %v289_v22, %s8592_s20  ;;  %v1514_v18 = vrot.slane %v296_v9, 1  ;;  %v1260_v22 = vrot.slane %v299_v20, 7 }
  0x36   : > { %v1614_v25 = vsel %vm1564_vm1, %v1513_v17, %v1514_v18 }
  0x38   : > { %2025 = vrot.lane.b32.xlu0 %v1621_v38, %s8593_s21  ;;  %2027 = vrot.lane.b32.xlu1 %v1636_v39, %s8593_s21  ;;  %v1262_v38 = vrot.slane %v8868_v37, 7  ;;  %v300_v39 = vld [vmem:[%s8697_s19 + $0x90] sm:$0xff] }
  0x39   : > { %v1261_v42 = vrot.slane %v300_v39, 7  ;;  %v1518_v46 = vrot.slane %v300_v39, 1 }
  0x3b   : > { %v8878_v43 = vsel %vm1307_vm2, %v1260_v22, %v1261_v42  ;;  %v8884_v44 = vsel %vm1307_vm2, %v1261_v42, %v1262_v38  ;;  %v8985_v42 = vld [vmem:[%s8697_s19 + $0x1f8] sm:$0xff] }
  0x3c   : > { %1773 = vrot.lane.b32.xlu0 %v290_v23, %s8592_s20  ;;  %1775 = vrot.lane.b32.xlu1 %v291_v40, %s8592_s20  ;;  %v1259_v23 = vrot.slane %v298_v21, 7  ;;  %v1613_v40 = vsel %vm1564_vm1, %v1514_v18, %v1515_v27  ;;  %v8967_v27 = vld [vmem:[%s8697_s19 + $0xd8] sm:$0xff] }
  0x3e   : > { %v8856_v30 = vsel %vm1307_vm2, %v1258_v8, %v1259_v23  ;;  %v8860_v31 = vsel %vm1307_vm2, %v1259_v23, %v1260_v22 }
  0x40   : > { %2029 = vrot.lane.b32.xlu0 %v1619_v55, %s8593_s21  ;;  %2031 = vrot.lane.b32.xlu1 %v1618_v56, %s8593_s21  ;;  %v1520_v55 = vrot.slane %v8895_v51, 1  ;;  %v1609_v56 = vsel %vm1564_vm1, %v1518_v46, %v1519_v52 }
  0x42   : > { %v1607_v8 = vsel %vm1564_vm1, %v1520_v55, %v1521_v62 }
  0x44   : > { %1777 = vrot.lane.b32.xlu0 %v292_v41, %s8592_s20  ;;  %1779 = vrot.lane.b32.xlu1 %v293_v50, %s8592_s20  ;;  %v1644_v41 = vsel %vm1451_vm4, 0.0, %v1612_v33  ;;  %v1610_v50 = vsel %vm1564_vm1, %v1517_v45, %v1518_v46  ;;  %v1527_v33 = vrot.slane %v8967_v27, 1  ;;  %v8988_v45 = vld [vmem:[%s8697_s19 + $0xe8] sm:$0xff]  ;;  %v8991_v46 = vld [vmem:[%s8697_s19 + $0xf0] sm:$0xff] }
  0x48   : > { %2033 = vrot.lane.b32.xlu0 %v1617_v12, %s8593_s21  ;;  %2035 = vrot.lane.b32.xlu1 %v1616_v13, %s8593_s21  ;;  %v8934_v13 = vand.u32 63, %v370_v3 }
  0x4a   : > { %13463 = vst [vmem:[#allocation7_spill] sm:$0xff] %v8934_v13  ;;  %vm1459_vm5 = vcmp.eq.s32.totalorder %v8934_v13, 63 }
  0x4c   : > { %1781 = vrot.lane.b32.xlu0 %v294_v59, %s8592_s20  ;;  %1783 = vrot.lane.b32.xlu1 %v295_v61, %s8592_s20  ;;  %v1608_v59 = vsel %vm1564_vm1, %v1519_v52, %v1520_v55  ;;  %v8912_v61 = vld [vmem:[%s8697_s19 + $0xb0] sm:$0xff]  ;;  %v1529_v52 = vrot.slane %v8988_v45, 1  ;;  %v1530_v55 = vrot.slane %v8991_v46, 1 }
  0x4d   : > { %v1522_v1 = vrot.slane %v8912_v61, 1 }
  0x50   : > { %2037 = vrot.lane.b32.xlu0 %v1615_v24, %s8593_s21  ;;  %2039 = vrot.lane.b32.xlu1 %v1614_v25, %s8593_s21 }
  0x54   : > { %1785 = vrot.lane.b32.xlu0 %v296_v9, %s8592_s20  ;;  %1787 = vrot.lane.b32.xlu1 %v297_v5, %s8592_s20  ;;  %v8920_v5 = vld [vmem:[%s8697_s19 + $0xb8] sm:$0xff]  ;;  %v1606_v9 = vsel %vm1564_vm1, %v1521_v62, %v1522_v1  ;;  %v9006_v62 = vld [vmem:[%s8697_s19 + $0x100] sm:$0xff] }
  0x55   : > { %v1523_v12 = vrot.slane %v8920_v5, 1 }
  0x57   : > { %v1604_v17 = vsel %vm1564_vm1, %v1523_v12, %v1524_v14  ;;  %v1605_v18 = vsel %vm1564_vm1, %v1522_v1, %v1523_v12 }
  0x58   : > { %2041 = vrot.lane.b32.xlu0 %v1613_v40, %s8593_s21  ;;  %2043 = vrot.lane.b32.xlu1 %v1644_v41, %s8593_s21  ;;  %v1652_v19 = vsel %vm1459_vm5, 0.0, %v1604_v17 }
  0x5c   : > { %1789 = vrot.lane.b32.xlu0 %v298_v21, %s8592_s20  ;;  %1791 = vrot.lane.b32.xlu1 %v299_v20, %s8592_s20  ;;  %v8949_v20 = vld [vmem:[%s8697_s19 + $0xc8] sm:$0xff]  ;;  %v8952_v21 = vld [vmem:[%s8697_s19 + $0xd0] sm:$0xff] }
  0x5d   : > { %v1525_v22 = vrot.slane %v8949_v20, 1  ;;  %v1526_v23 = vrot.slane %v8952_v21, 1 }
  0x5f   : > { %v1603_v24 = vsel %vm1564_vm1, %v1524_v14, %v1525_v22  ;;  %v1602_v25 = vsel %vm1564_vm1, %v1525_v22, %v1526_v23  ;;  %v1601_v40 = vsel %vm1564_vm1, %v1526_v23, %v1527_v33 }
  0x60   : > { %2045 = vrot.lane.b32.xlu0 %v1611_v49, %s8593_s21  ;;  %2047 = vrot.lane.b32.xlu1 %v1610_v50, %s8593_s21  ;;  %v8996_v49 = vand.u32 63, %v8692_v2  ;;  %v13372_v50 = vrot.slane %v8985_v42, 7 }
  0x62   : > { %13464 = vst [vmem:[#allocation8_spill] sm:$0xff] %v8996_v49  ;;  %vm1179_vm6 = vcmp.eq.s32.totalorder %v8996_v49, 0  ;;  %v1371_v1 = vsel %vm1307_vm2, %v13372_v50, %v1243_v32 }
  0x64   : > { %1793 = vrot.lane.b32.xlu0 %v300_v39, %s8592_s20  ;;  %1795 = vrot.lane.b32.xlu1 %v8868_v37, %s8592_s20  ;;  %v1528_v39 = vrot.slane %v8970_v29, 1 }
  0x66   : > { %v1600_v41 = vsel %vm1564_vm1, %v1527_v33, %v1528_v39  ;;  %v1599_v3 = vsel %vm1564_vm1, %v1528_v39, %v1529_v52 }
  0x68   : > { %2049 = vrot.lane.b32.xlu0 %v1609_v56, %s8593_s21  ;;  %2051 = vrot.lane.b32.xlu1 %v1608_v59, %s8593_s21  ;;  %v378_v56 = vadd.s32 248, %v8692_v2  ;;  %v9003_v59 = vld [vmem:[%s8697_s19 + $0xf8] sm:$0xff] }
  0x69   : > { %v1531_v14 = vrot.slane %v9003_v59, 1 }
  0x6a   : > { %v9024_v17 = vand.u32 63, %v378_v56  ;;  %v9044_v56 = vld [vmem:[%s8697_s19 + $0x108] sm:$0xff] }
  0x6b   : > { %v1597_v33 = vsel %vm1564_vm1, %v1530_v55, %v1531_v14 }
  0x6c   : > { %1797 = vrot.lane.b32.xlu0 %v8895_v51, %s8592_s20  ;;  %1799 = vrot.lane.b32.xlu1 %v8909_v60, %s8592_s20  ;;  %13465 = vst [vmem:[#allocation9_spill] sm:$0xff] %v9024_v17  ;;  %vm1467_vm10 = vcmp.eq.s32.totalorder %v9024_v17, 63 }
  0x70   : > { %2053 = vrot.lane.b32.xlu0 %v1607_v8, %s8593_s21  ;;  %2055 = vrot.lane.b32.xlu1 %v1606_v9, %s8593_s21  ;;  %v1598_v8 = vsel %vm1564_vm1, %v1529_v52, %v1530_v55  ;;  %v1533_v55 = vrot.slane %v9044_v56, 1 }
  0x74   : > { %1801 = vrot.lane.b32.xlu0 %v8912_v61, %s8592_s20  ;;  %1803 = vrot.lane.b32.xlu1 %v8920_v5, %s8592_s20 }
  0x78   : > { %2057 = vrot.lane.b32.xlu0 %v1605_v18, %s8593_s21  ;;  %2059 = vrot.lane.b32.xlu1 %v1652_v19, %s8593_s21  ;;  %v1532_v18 = vrot.slane %v9006_v62, 1  ;;  %v1372_v19 = vsel %vm1179_vm6, 0.0, %v1371_v1  ;;  %v9047_v1 = vld [vmem:[%s8697_s19 + $0x110] sm:$0xff] }
  0x7c   : > { %1805 = vrot.lane.b32.xlu0 %v8923_v7, %s8592_s20  ;;  %1807 = vrot.lane.b32.xlu1 %v8949_v20, %s8592_s20 }
  0x80   : > { %2061 = vrot.lane.b32.xlu0 %v1603_v24, %s8593_s21  ;;  %2063 = vrot.lane.b32.xlu1 %v1602_v25, %s8593_s21  ;;  %v1596_v24 = vsel %vm1564_vm1, %v1531_v14, %v1532_v18 }
  0x81   : > { %v1660_v39 = vsel %vm1467_vm10, 0.0, %v1596_v24  ;;  %v9072_v24 = vld [vmem:[%s8697_s19 + $0x118] sm:$0xff] }
  0x84   : > { %1809 = vrot.lane.b32.xlu0 %v8952_v21, %s8592_s20  ;;  %1811 = vrot.lane.b32.xlu1 %v8967_v27, %s8592_s20 }
  0x88   : > { %2065 = vrot.lane.b32.xlu0 %v1601_v40, %s8593_s21  ;;  %2067 = vrot.lane.b32.xlu1 %v1600_v41, %s8593_s21 }
  0x8c   : > { %1813 = vrot.lane.b32.xlu0 %v8970_v29, %s8592_s20  ;;  %1815 = vrot.lane.b32.xlu1 %v8988_v45, %s8592_s20 }
  0x8e   : > { %v1764_v9 = vpop.permute.xlu1 %1763  ;;  %v1758_v12 = vpop.permute.xlu0 %1757 }
  0x8f   : > { %v2206_v32 = vsel %vm2205_vm7, %v1372_v19, %v1758_v12 }
  0x90   : > { %2069 = vrot.lane.b32.xlu0 %v1599_v3, %s8593_s21  ;;  %2071 = vrot.lane.b32.xlu1 %v1598_v8, %s8593_s21  ;;  %v1534_v8 = vrot.slane %v9047_v1, 1 }
  0x92   : > { %v1760_v22 = vpop.permute.xlu0 %1759  ;;  %v2014_v23 = vpop.permute.xlu1 %2013 }
  0x93   : > { %v2271_v25 = vsel %vm2270_vm8, %v2206_v32, %v2014_v23  ;;  %v2207_v40 = vsel %vm2205_vm7, %v8760_v35, %v1760_v22  ;;  %v2209_v35 = vsel %vm2205_vm7, %v8754_v34, %v1764_v9  ;;  %v1595_v34 = vsel %vm1564_vm1, %v1532_v18, %v1533_v55 }
  0x94   : > { %1817 = vrot.lane.b32.xlu0 %v8991_v46, %s8592_s20  ;;  %1819 = vrot.lane.b32.xlu1 %v9003_v59, %s8592_s20 }
  0x95   : > { %7951 = vmatprep.mubr.msk.f32.mxu0 %vm2343_vm9, %v2271_v25  ;;  %v9075_v25 = vld [vmem:[%s8697_s19 + $0x120] sm:$0xff] }
  0x96   : > { %v1762_v41 = vpop.permute.xlu0 %1761  ;;  %v2016_v52 = vpop.permute.xlu1 %2015 }
  0x97   : > { %v2272_v3 = vsel %vm2270_vm8, %v2207_v40, %v2016_v52  ;;  %v2208_v12 = vsel %vm2205_vm7, %v8766_v36, %v1762_v41  ;;  %v1594_v36 = vsel %vm1564_vm1, %v1533_v55, %v1534_v8 }
  0x98   : > { %2073 = vrot.lane.b32.xlu0 %v1597_v33, %s8593_s21  ;;  %2075 = vrot.lane.b32.xlu1 %v1660_v39, %s8593_s21  ;;  %v1535_v33 = vrot.slane %v9072_v24, 1  ;;  %v1536_v39 = vrot.slane %v9075_v25, 1 }
  0x99   : > { %7952 = vmatmul.mubr.msk.f32.vlgmr.msra.gmra.mrb[0].mxu0 %vm2343_vm9, %v2272_v3 }
  0x9a   : > { %v2018_v14 = vpop.permute.xlu0 %2017  ;;  %v2020_v19 = vpop.permute.xlu1 %2019 }
  0x9b   : > { %v2273_v32 = vsel %vm2270_vm8, %v2208_v12, %v2018_v14  ;;  %v2274_v22 = vsel %vm2270_vm8, %v2209_v35, %v2020_v19  ;;  %v355_v35 = vadd.s32 64, %v8692_v2  ;;  %v9099_v19 = vld [vmem:[%s8697_s19 + $0x128] sm:$0xff] }
  0x9c   : > { %1821 = vrot.lane.b32.xlu0 %v9006_v62, %s8592_s20  ;;  %1823 = vrot.lane.b32.xlu1 %v9044_v56, %s8592_s20 }
  0x9d   : > { %7954 = vmatprep.mubr.msk.f32.mxu0 %vm2343_vm9, %v2273_v32  ;;  %v9102_v32 = vld [vmem:[%s8697_s19 + $0x130] sm:$0xff] }
  0x9e   : > { %7955 = vmatmul.mubr.msk.f32.gmra.mrb[2].mxu0 %vm2343_vm9, %v2274_v22  ;;  %v1766_v9 = vpop.permute.xlu0 %1765  ;;  %v1768_v23 = vpop.permute.xlu1 %1767  ;;  %v9106_v22 = vand.u32 63, %v355_v35 }
  0x9f   : > { %v2210_v18 = vsel %vm2205_vm7, %v8776_v47, %v1766_v9  ;;  %v2211_v40 = vsel %vm2205_vm7, %v8780_v48, %v1768_v23  ;;  %v1593_v47 = vsel %vm1564_vm1, %v1534_v8, %v1535_v33  ;;  %v1592_v48 = vsel %vm1564_vm1, %v1535_v33, %v1536_v39 }
  0xa0   : > { %2077 = vrot.lane.b32.xlu0 %v1595_v34, %s8593_s21  ;;  %2079 = vrot.lane.b32.xlu1 %v1594_v36, %s8593_s21  ;;  %13466 = vst [vmem:[#allocation10_spill] sm:$0xff] %v9106_v22  ;;  %v1537_v8 = vrot.slane %v9099_v19, 1  ;;  %v1538_v34 = vrot.slane %v9102_v32, 1  ;;  %vm1187_vm11 = vcmp.eq.s32.totalorder %v9106_v22, 0 }
  0xa2   : > { %v2022_v41 = vpop.permute.xlu0 %2021  ;;  %v2024_v52 = vpop.permute.xlu1 %2023 }
  0xa3   : > { %v2275_v3 = vsel %vm2270_vm8, %v2210_v18, %v2022_v41  ;;  %v2276_v55 = vsel %vm2270_vm8, %v2211_v40, %v2024_v52  ;;  %v386_v18 = vadd.s32 312, %v8692_v2  ;;  %v9118_v52 = vld [vmem:[%s8697_s19 + $0x138] sm:$0xff] }
  0xa4   : > { %1825 = vrot.lane.b32.xlu0 %v9047_v1, %s8592_s20  ;;  %1827 = vrot.lane.b32.xlu1 %v9072_v24, %s8592_s20 }
  0xa5   : > { %7957 = vmatprep.mubr.msk.f32.mxu0 %vm2343_vm9, %v2275_v3  ;;  %v9121_v3 = vld [vmem:[%s8697_s19 + $0x140] sm:$0xff] }
  0xa6   : > { %7958 = vmatmul.mubr.msk.f32.gmra.mrb[4].mxu0 %vm2343_vm9, %v2276_v55  ;;  %v1770_v12 = vpop.permute.xlu0 %1769  ;;  %v1772_v14 = vpop.permute.xlu1 %1771 }
  0xa7   : > { %v2212_v36 = vsel %vm2205_vm7, %v8787_v53, %v1770_v12  ;;  %v2213_v9 = vsel %vm2205_vm7, %v8791_v54, %v1772_v14  ;;  %v1591_v53 = vsel %vm1564_vm1, %v1536_v39, %v1537_v8  ;;  %v1590_v54 = vsel %vm1564_vm1, %v1537_v8, %v1538_v34 }
  0xa8   : > { %2081 = vrot.lane.b32.xlu0 %v1593_v47, %s8593_s21  ;;  %2083 = vrot.lane.b32.xlu1 %v1592_v48, %s8593_s21  ;;  %v1539_v47 = vrot.slane %v9118_v52, 1  ;;  %v9135_v48 = vand.u32 63, %v386_v18  ;;  %v1540_v12 = vrot.slane %v9121_v3, 1  ;;  %v1380_v14 = vsel %vm1187_vm11, 0.0, %v8799_v57 }
  0xa9   : > { %vm3973_vm11 = vcmp.ge.s32.totalorder %v8934_v13, 62 }
  0xaa   : > { %v2026_v23 = vpop.permute.xlu0 %2025  ;;  %v2028_v33 = vpop.permute.xlu1 %2027  ;;  %13467 = vst [vmem:[#allocation11_spill] sm:$0xff] %v9135_v48  ;;  %vm1475_vm12 = vcmp.eq.s32.totalorder %v9135_v48, 63 }
  0xab   : > { %v2277_v40 = vsel %vm2270_vm8, %v2212_v36, %v2026_v23  ;;  %v2278_v41 = vsel %vm2270_vm8, %v2213_v9, %v2028_v33  ;;  %v1588_v23 = vsel %vm1564_vm1, %v1539_v47, %v1540_v12 }
  0xac   : > { %1829 = vrot.lane.b32.xlu0 %v9075_v25, %s8592_s20  ;;  %1831 = vrot.lane.b32.xlu1 %v9099_v19, %s8592_s20  ;;  %v1668_v18 = vsel %vm1475_vm12, 0.0, %v1588_v23  ;;  %vm3981_vm12 = vcmp.ge.s32.totalorder %v9024_v17, 62 }
  0xad   : > { %7960 = vmatprep.mubr.msk.f32.mxu0 %vm2343_vm9, %v2277_v40 }
  0xae   : > { %7961 = vmatmul.mubr.msk.f32.gmra.mrb[6].mxu0 %vm2343_vm9, %v2278_v41  ;;  %v1774_v55 = vpop.permute.xlu0 %1773  ;;  %v1776_v35 = vpop.permute.xlu1 %1775 }
  0xaf   : > { %v2214_v39 = vsel %vm2205_vm7, %v1380_v14, %v1774_v55  ;;  %v2215_v8 = vsel %vm2205_vm7, %v8803_v58, %v1776_v35  ;;  %v1589_v58 = vsel %vm1564_vm1, %v1538_v34, %v1539_v47 }
  0xb0   : > { %2085 = vrot.lane.b32.xlu0 %v1591_v53, %s8593_s21  ;;  %2087 = vrot.lane.b32.xlu1 %v1590_v54, %s8593_s21  ;;  %v9158_v53 = vld [vmem:[%s8697_s19 + $0x148] sm:$0xff]  ;;  %v9161_v54 = vld [vmem:[%s8697_s19 + $0x150] sm:$0xff] }
  0xb1   : > { %v1541_v55 = vrot.slane %v9158_v53, 1  ;;  %v1542_v35 = vrot.slane %v9161_v54, 1 }
  0xb2   : > { %v2030_v36 = vpop.permute.xlu0 %2029  ;;  %v2032_v9 = vpop.permute.xlu1 %2031 }
  0xb3   : > { %v2279_v57 = vsel %vm2270_vm8, %v2214_v39, %v2030_v36  ;;  %v2280_v33 = vsel %vm2270_vm8, %v2215_v8, %v2032_v9 }
  0xb4   : > { %1833 = vrot.lane.b32.xlu0 %v9102_v32, %s8592_s20  ;;  %1835 = vrot.lane.b32.xlu1 %v9118_v52, %s8592_s20 }
  0xb5   : > { %7963 = vmatprep.mubr.msk.f32.mxu0 %vm2343_vm9, %v2279_v57  ;;  %v9184_v57 = vld [vmem:[%s8697_s19 + $0x158] sm:$0xff] }
  0xb6   : > { %7964 = vmatmul.mubr.msk.f32.gmra.mrb[8].mxu0 %vm2343_vm9, %v2280_v33  ;;  %v1778_v40 = vpop.permute.xlu0 %1777  ;;  %v1780_v41 = vpop.permute.xlu1 %1779  ;;  %v9187_v33 = vld [vmem:[%s8697_s19 + $0x160] sm:$0xff] }
  0xb7   : > { %v2216_v34 = vsel %vm2205_vm7, %v8811_v63, %v1778_v40  ;;  %v2217_v47 = vsel %vm2205_vm7, %v8815_v0, %v1780_v41  ;;  %v1587_v63 = vsel %vm1564_vm1, %v1540_v12, %v1541_v55  ;;  %v1586_v0 = vsel %vm1564_vm1, %v1541_v55, %v1542_v35 }
  0xb8   : > { %2089 = vrot.lane.b32.xlu0 %v1589_v58, %s8593_s21  ;;  %2091 = vrot.lane.b32.xlu1 %v1668_v18, %s8593_s21  ;;  %v1543_v58 = vrot.slane %v9184_v57, 1  ;;  %v1544_v18 = vrot.slane %v9187_v33, 1 }
  0xba   : > { %v2034_v14 = vpop.permute.xlu0 %2033  ;;  %v2036_v39 = vpop.permute.xlu1 %2035 }
  0xbb   : > { %v2281_v8 = vsel %vm2270_vm8, %v2216_v34, %v2034_v14  ;;  %v2282_v36 = vsel %vm2270_vm8, %v2217_v47, %v2036_v39  ;;  %v363_v14 = vadd.s32 128, %v8692_v2 }
  0xbc   : > { %1837 = vrot.lane.b32.xlu0 %v9121_v3, %s8592_s20  ;;  %1839 = vrot.lane.b32.xlu1 %v9158_v53, %s8592_s20 }
  0xbd   : > { %7966 = vmatprep.mubr.msk.f32.mxu0 %vm2343_vm9, %v2281_v8 }
  0xbe   : > { %7967 = vmatmul.mubr.msk.f32.gmra.mrb[10].mxu0 %vm2343_vm9, %v2282_v36  ;;  %v1782_v9 = vpop.permute.xlu0 %1781  ;;  %v1784_v23 = vpop.permute.xlu1 %1783  ;;  %v9211_v36 = vld [vmem:[%s8697_s19 + $0x168] sm:$0xff] }
  0xbf   : > { %v2218_v12 = vsel %vm2205_vm7, %v8823_v10, %v1782_v9  ;;  %v2219_v40 = vsel %vm2205_vm7, %v8827_v11, %v1784_v23  ;;  %v1585_v10 = vsel %vm1564_vm1, %v1542_v35, %v1543_v58  ;;  %v1584_v11 = vsel %vm1564_vm1, %v1543_v58, %v1544_v18 }
  0xc0   : > { %2093 = vrot.lane.b32.xlu0 %v1587_v63, %s8593_s21  ;;  %2095 = vrot.lane.b32.xlu1 %v1586_v0, %s8593_s21  ;;  %v9214_v63 = vld [vmem:[%s8697_s19 + $0x170] sm:$0xff]  ;;  %v9218_v0 = vand.u32 63, %v363_v14  ;;  %v1545_v35 = vrot.slane %v9211_v36, 1  ;;  %v9233_v14 = vld [vmem:[%s8697_s19 + $0x180] sm:$0xff] }
  0xc1   : > { %v1546_v9 = vrot.slane %v9214_v63, 1 }
  0xc2   : > { %v2038_v41 = vpop.permute.xlu0 %2037  ;;  %v2040_v55 = vpop.permute.xlu1 %2039  ;;  %13468 = vst [vmem:[#allocation12_spill] sm:$0xff] %v9218_v0  ;;  %vm1195_vm13 = vcmp.eq.s32.totalorder %v9218_v0, 0 }
  0xc3   : > { %v2283_v34 = vsel %vm2270_vm8, %v2218_v12, %v2038_v41  ;;  %v2284_v47 = vsel %vm2270_vm8, %v2219_v40, %v2040_v55  ;;  %v394_v41 = vadd.s32 376, %v8692_v2 }
  0xc4   : > { %1841 = vrot.lane.b32.xlu0 %v9161_v54, %s8592_s20  ;;  %1843 = vrot.lane.b32.xlu1 %v9184_v57, %s8592_s20 }
  0xc5   : > { %7969 = vmatprep.mubr.msk.f32.mxu0 %vm2343_vm9, %v2283_v34 }
  0xc6   : > { %7970 = vmatmul.mubr.msk.f32.gmra.mrb[12].mxu0 %vm2343_vm9, %v2284_v47  ;;  %v1786_v39 = vpop.permute.xlu0 %1785  ;;  %v1788_v8 = vpop.permute.xlu1 %1787  ;;  %v9230_v47 = vld [vmem:[%s8697_s19 + $0x178] sm:$0xff] }
  0xc7   : > { %v2220_v23 = vsel %vm2205_vm7, %v8835_v15, %v1786_v39  ;;  %v2221_v58 = vsel %vm2205_vm7, %v8839_v16, %v1788_v8  ;;  %v1583_v15 = vsel %vm1564_vm1, %v1544_v18, %v1545_v35  ;;  %v1582_v16 = vsel %vm1564_vm1, %v1545_v35, %v1546_v9 }
  0xc8   : > { %2097 = vrot.lane.b32.xlu0 %v1585_v10, %s8593_s21  ;;  %2099 = vrot.lane.b32.xlu1 %v1584_v11, %s8593_s21  ;;  %v1547_v39 = vrot.slane %v9230_v47, 1  ;;  %v9247_v8 = vand.u32 63, %v394_v41 }
  0xca   : > { %v2042_v12 = vpop.permute.xlu0 %2041  ;;  %v2044_v40 = vpop.permute.xlu1 %2043  ;;  %13469 = vst [vmem:[#allocation13_spill] sm:$0xff] %v9247_v8  ;;  %vm1483_vm14 = vcmp.eq.s32.totalorder %v9247_v8, 63 }
  0xcb   : > { %v2285_v55 = vsel %vm2270_vm8, %v2220_v23, %v2042_v12  ;;  %v2286_v34 = vsel %vm2270_vm8, %v2221_v58, %v2044_v40  ;;  %v1548_v23 = vrot.slane %v9233_v14, 1  ;;  %v1388_v58 = vsel %vm1195_vm13, 0.0, %v8856_v30 }
  0xcc   : > { %1845 = vrot.lane.b32.xlu0 %v9187_v33, %s8592_s20  ;;  %1847 = vrot.lane.b32.xlu1 %v9211_v36, %s8592_s20  ;;  %vm3989_vm13 = vcmp.ge.s32.totalorder %v9135_v48, 62 }
  0xcd   : > { %7972 = vmatprep.mubr.msk.f32.mxu0 %vm2343_vm9, %v2285_v55  ;;  %v1580_v41 = vsel %vm1564_vm1, %v1547_v39, %v1548_v23 }
  0xce   : > { %7973 = vmatmul.mubr.msk.f32.gmra.mrb[14].mxu0 %vm2343_vm9, %v2286_v34  ;;  %v1790_v10 = vpop.permute.xlu0 %1789  ;;  %v1792_v11 = vpop.permute.xlu1 %1791  ;;  %v1676_v34 = vsel %vm1483_vm14, 0.0, %v1580_v41  ;;  %vm4719_vm14 = vcmask 261120  }
  0xcf   : > { %v2222_v18 = vsel %vm2205_vm7, %v1388_v58, %v1790_v10  ;;  %v2223_v35 = vsel %vm2205_vm7, %v8860_v31, %v1792_v11  ;;  %v1581_v31 = vsel %vm1564_vm1, %v1546_v9, %v1547_v39  ;;  %v9270_v10 = vld [vmem:[%s8697_s19 + $0x188] sm:$0xff]  ;;  %v9273_v11 = vld [vmem:[%s8697_s19 + $0x190] sm:$0xff] }
  0xd0   : > { %2101 = vrot.lane.b32.xlu0 %v1583_v15, %s8593_s21  ;;  %2103 = vrot.lane.b32.xlu1 %v1582_v16, %s8593_s21  ;;  %v1549_v58 = vrot.slane %v9270_v10, 1 }
  0xd2   : > { %v2046_v12 = vpop.permute.xlu0 %2045  ;;  %v2048_v40 = vpop.permute.xlu1 %2047 }
  0xd3   : > { %v2287_v30 = vsel %vm2270_vm8, %v2222_v18, %v2046_v12  ;;  %v2288_v55 = vsel %vm2270_vm8, %v2223_v35, %v2048_v40  ;;  %v1550_v18 = vrot.slane %v9273_v11, 1  ;;  %v1264_v40 = vrot.slane %v8909_v60, 7 }
  0xd4   : > { %1849 = vrot.lane.b32.xlu0 %v9214_v63, %s8592_s20  ;;  %1851 = vrot.lane.b32.xlu1 %v9230_v47, %s8592_s20 }
  0xd5   : > { %7975 = vmatprep.mubr.msk.f32.mxu0 %vm2343_vm9, %v2287_v30 }
  0xd6   : > { %7976 = vmatmul.mubr.msk.f32.gmra.mrb[16].mxu0 %vm2343_vm9, %v2288_v55  ;;  %v1794_v15 = vpop.permute.xlu0 %1793  ;;  %v1796_v16 = vpop.permute.xlu1 %1795  ;;  %v1263_v55 = vrot.slane %v8895_v51, 7  ;;  %v9301_v51 = vld [vmem:[%s8697_s19 + $0x1a0] sm:$0xff] }
  0xd7   : > { %v2224_v9 = vsel %vm2205_vm7, %v8878_v43, %v1794_v15  ;;  %v2225_v39 = vsel %vm2205_vm7, %v8884_v44, %v1796_v16  ;;  %v1579_v43 = vsel %vm1564_vm1, %v1548_v23, %v1549_v58  ;;  %v1578_v44 = vsel %vm1564_vm1, %v1549_v58, %v1550_v18 }
  0xd8   : > { %2105 = vrot.lane.b32.xlu0 %v1581_v31, %s8593_s21  ;;  %2107 = vrot.lane.b32.xlu1 %v1676_v34, %s8593_s21  ;;  %v9298_v34 = vld [vmem:[%s8697_s19 + $0x198] sm:$0xff]  ;;  %v1351_v15 = vsel %vm1307_vm2, %v1262_v38, %v1263_v55  ;;  %v1350_v16 = vsel %vm1307_vm2, %v1263_v55, %v1264_v40  ;;  %v1552_v58 = vrot.slane %v9301_v51, 1  ;;  %v1266_v38 = vrot.slane %v8920_v5, 7 }
  0xd9   : > { %v1551_v23 = vrot.slane %v9298_v34, 1  ;;  %v371_v55 = vadd.s32 192, %v8692_v2 }
  0xda   : > { %v2050_v35 = vpop.permute.xlu0 %2049  ;;  %v2052_v12 = vpop.permute.xlu1 %2051 }
  0xdb   : > { %v2289_v41 = vsel %vm2270_vm8, %v2224_v9, %v2050_v35  ;;  %v2290_v30 = vsel %vm2270_vm8, %v2225_v39, %v2052_v12  ;;  %v1576_v5 = vsel %vm1564_vm1, %v1551_v23, %v1552_v58 }
  0xdc   : > { %1853 = vrot.lane.b32.xlu0 %v9233_v14, %s8592_s20  ;;  %1855 = vrot.lane.b32.xlu1 %v9270_v10, %s8592_s20 }
  0xdd   : > { %7978 = vmatprep.mubr.msk.f32.mxu0 %vm2343_vm9, %v2289_v41 }
  0xde   : > { %7979 = vmatmul.mubr.msk.f32.gmra.mrb[18].mxu0 %vm2343_vm9, %v2290_v30  ;;  %v1798_v60 = vpop.permute.xlu0 %1797  ;;  %v1800_v31 = vpop.permute.xlu1 %1799  ;;  %v1265_v30 = vrot.slane %v8912_v61, 7 }
  0xdf   : > { %v2226_v9 = vsel %vm2205_vm7, %v1351_v15, %v1798_v60  ;;  %v2227_v39 = vsel %vm2205_vm7, %v1350_v16, %v1800_v31  ;;  %v9331_v60 = vld [vmem:[%s8697_s19 + $0x1a8] sm:$0xff]  ;;  %v9334_v31 = vld [vmem:[%s8697_s19 + $0x1b0] sm:$0xff] }
  0xe0   : > { %2109 = vrot.lane.b32.xlu0 %v1579_v43, %s8593_s21  ;;  %2111 = vrot.lane.b32.xlu1 %v1578_v44, %s8593_s21  ;;  %v1577_v43 = vsel %vm1564_vm1, %v1550_v18, %v1551_v23  ;;  %v1349_v15 = vsel %vm1307_vm2, %v1264_v40, %v1265_v30  ;;  %v1348_v16 = vsel %vm1307_vm2, %v1265_v30, %v1266_v38  ;;  %v9342_v18 = vand.u32 63, %v371_v55 }
  0xe1   : > { %v1267_v23 = vrot.slane %v8923_v7, 7  ;;  %v1268_v30 = vrot.slane %v8949_v20, 7  ;;  %v9357_v7 = vld [vmem:[%s8697_s19 + $0x1c0] sm:$0xff] }
  0xe2   : > { %v2054_v37 = vpop.permute.xlu0 %2053  ;;  %v2056_v35 = vpop.permute.xlu1 %2055  ;;  %13470 = vst [vmem:[#allocation14_spill] sm:$0xff] %v9342_v18  ;;  %vm1203_vm15 = vcmp.eq.s32.totalorder %v9342_v18, 0 }
  0xe3   : > { %v2291_v12 = vsel %vm2270_vm8, %v2226_v9, %v2054_v37  ;;  %v2292_v41 = vsel %vm2270_vm8, %v2227_v39, %v2056_v35  ;;  %v1553_v9 = vrot.slane %v9331_v60, 1  ;;  %v1554_v39 = vrot.slane %v9334_v31, 1 }
  0xe4   : > { %1857 = vrot.lane.b32.xlu0 %v9273_v11, %s8592_s20  ;;  %1859 = vrot.lane.b32.xlu1 %v9298_v34, %s8592_s20 }
  0xe5   : > { %7981 = vmatprep.mubr.msk.f32.mxu0 %vm2343_vm9, %v2291_v12  ;;  %v1575_v20 = vsel %vm1564_vm1, %v1552_v58, %v1553_v9 }
  0xe6   : > { %7982 = vmatmul.mubr.msk.f32.gmra.mrb[20].mxu0 %vm2343_vm9, %v2292_v41  ;;  %v1802_v44 = vpop.permute.xlu0 %1801  ;;  %v1804_v61 = vpop.permute.xlu1 %1803  ;;  %v402_v41 = vadd.s32 440, %v8692_v2 }
  0xe7   : > { %v2228_v37 = vsel %vm2205_vm7, %v1349_v15, %v1802_v44  ;;  %v2229_v40 = vsel %vm2205_vm7, %v1348_v16, %v1804_v61  ;;  %v1347_v44 = vsel %vm1307_vm2, %v1266_v38, %v1267_v23  ;;  %v1574_v61 = vsel %vm1564_vm1, %v1553_v9, %v1554_v39 }
  0xe8   : > { %2113 = vrot.lane.b32.xlu0 %v1577_v43, %s8593_s21  ;;  %2115 = vrot.lane.b32.xlu1 %v1576_v5, %s8593_s21  ;;  %v9354_v5 = vld [vmem:[%s8697_s19 + $0x1b8] sm:$0xff]  ;;  %v1346_v38 = vsel %vm1307_vm2, %v1267_v23, %v1268_v30 }
  0xea   : > { %v2058_v35 = vpop.permute.xlu0 %2057  ;;  %v2060_v12 = vpop.permute.xlu1 %2059 }
  0xeb   : > { %v2293_v43 = vsel %vm2270_vm8, %v2228_v37, %v2058_v35  ;;  %v2294_v55 = vsel %vm2270_vm8, %v2229_v40, %v2060_v12  ;;  %v1555_v37 = vrot.slane %v9354_v5, 1  ;;  %v9373_v40 = vand.u32 63, %v402_v41 }
  0xec   : > { %1861 = vrot.lane.b32.xlu0 %v9301_v51, %s8592_s20  ;;  %1863 = vrot.lane.b32.xlu1 %v9331_v60, %s8592_s20  ;;  %v1556_v35 = vrot.slane %v9357_v7, 1  ;;  %v1396_v12 = vsel %vm1203_vm15, 0.0, %v1347_v44  ;;  %v1270_v44 = vrot.slane %v8967_v27, 7  ;;  %vm4784_vm15 = vcmask 523264  }
  0xed   : > { %7984 = vmatprep.mubr.msk.f32.mxu0 %vm2343_vm9, %v2293_v43  ;;  %13471 = vst [vmem:[#allocation15_spill] sm:$0xff] %v9373_v40  ;;  %vm1491_vm0 = vcmp.eq.s32.totalorder %v9373_v40, 63 }
  0xee   : > { %7985 = vmatmul.mubr.msk.f32.gmra.mrb[22].mxu0 %vm2343_vm9, %v2294_v55  ;;  %v1806_v15 = vpop.permute.xlu0 %1805  ;;  %v1808_v16 = vpop.permute.xlu1 %1807  ;;  %v1572_v41 = vsel %vm1564_vm1, %v1555_v37, %v1556_v35 }
  0xef   : > { %v2230_v58 = vsel %vm2205_vm7, %v1396_v12, %v1806_v15  ;;  %v2231_v9 = vsel %vm2205_vm7, %v1346_v38, %v1808_v16  ;;  %v1573_v15 = vsel %vm1564_vm1, %v1554_v39, %v1555_v37  ;;  %v1684_v16 = vsel %vm1491_vm0, 0.0, %v1572_v41  ;;  %v9398_v38 = vld [vmem:[%s8697_s19 + $0x1c8] sm:$0xff] }
  0xf0   : > { %2117 = vrot.lane.b32.xlu0 %v1575_v20, %s8593_s21  ;;  %2119 = vrot.lane.b32.xlu1 %v1574_v61, %s8593_s21  ;;  %v1269_v61 = vrot.slane %v8952_v21, 7  ;;  %v1557_v39 = vrot.slane %v9398_v38, 1  ;;  %vm3709_vm0 = vcmp.lt.s32.totalorder %v9218_v0, 2 }
  0xf2   : > { %v2062_v43 = vpop.permute.xlu0 %2061  ;;  %v2064_v55 = vpop.permute.xlu1 %2063  ;;  %v1345_v21 = vsel %vm1307_vm2, %v1268_v30, %v1269_v61  ;;  %v1272_v30 = vrot.slane %v8988_v45, 7 }
  0xf3   : > { %v2295_v23 = vsel %vm2270_vm8, %v2230_v58, %v2062_v43  ;;  %v2296_v20 = vsel %vm2270_vm8, %v2231_v9, %v2064_v55  ;;  %v9401_v58 = vld [vmem:[%s8697_s19 + $0x1d0] sm:$0xff]  ;;  %v1344_v9 = vsel %vm1307_vm2, %v1269_v61, %v1270_v44 }
  0xf4   : > { %1865 = vrot.lane.b32.xlu0 %v9334_v31, %s8592_s20  ;;  %1867 = vrot.lane.b32.xlu1 %v9354_v5, %s8592_s20  ;;  %v1558_v37 = vrot.slane %v9401_v58, 1 }
  0xf5   : > { %7987 = vmatprep.mubr.msk.f32.mxu0 %vm2343_vm9, %v2295_v23 }
  0xf6   : > { %7988 = vmatmul.mubr.msk.f32.gmra.mrb[24].mxu0 %vm2343_vm9, %v2296_v20  ;;  %v1810_v27 = vpop.permute.xlu0 %1809  ;;  %v1812_v12 = vpop.permute.xlu1 %1811  ;;  %v1570_v45 = vsel %vm1564_vm1, %v1557_v39, %v1558_v37 }
  0xf7   : > { %v2232_v43 = vsel %vm2205_vm7, %v1345_v21, %v1810_v27  ;;  %v2233_v55 = vsel %vm2205_vm7, %v1344_v9, %v1812_v12  ;;  %v9428_v21 = vld [vmem:[%s8697_s19 + $0x1d8] sm:$0xff] }
  0xf8   : > { %2121 = vrot.lane.b32.xlu0 %v1573_v15, %s8593_s21  ;;  %2123 = vrot.lane.b32.xlu1 %v1684_v16, %s8593_s21  ;;  %v1271_v15 = vrot.slane %v8970_v29, 7  ;;  %v1571_v16 = vsel %vm1564_vm1, %v1556_v35, %v1557_v39  ;;  %v9431_v29 = vld [vmem:[%s8697_s19 + $0x1e0] sm:$0xff]  ;;  %v1559_v35 = vrot.slane %v9428_v21, 1 }
  0xf9   : > { %v1560_v39 = vrot.slane %v9431_v29, 1 }
  0xfa   : > { %v2066_v41 = vpop.permute.xlu0 %2065  ;;  %v2068_v23 = vpop.permute.xlu1 %2067  ;;  %v1343_v9 = vsel %vm1307_vm2, %v1270_v44, %v1271_v15  ;;  %v1274_v44 = vrot.slane %v9003_v59, 7 }
  0xfb   : > { %v2297_v20 = vsel %vm2270_vm8, %v2232_v43, %v2066_v41  ;;  %v2298_v61 = vsel %vm2270_vm8, %v2233_v55, %v2068_v23  ;;  %v1342_v43 = vsel %vm1307_vm2, %v1271_v15, %v1272_v30  ;;  %v1568_v59 = vsel %vm1564_vm1, %v1559_v35, %v1560_v39 }
  0xfc   : > { %1869 = vrot.lane.b32.xlu0 %v9357_v7, %s8592_s20  ;;  %1871 = vrot.lane.b32.xlu1 %v9398_v38, %s8592_s20 }
  0xfd   : > { %7990 = vmatprep.mubr.msk.f32.mxu0 %vm2343_vm9, %v2297_v20 }
  0xfe   : > { %7991 = vmatmul.mubr.msk.f32.gmra.mrb[26].mxu0 %vm2343_vm9, %v2298_v61  ;;  %v1814_v27 = vpop.permute.xlu0 %1813  ;;  %v1816_v12 = vpop.permute.xlu1 %1815 }
  0xff   : > { %v2234_v55 = vsel %vm2205_vm7, %v1343_v9, %v1814_v27  ;;  %v2235_v41 = vsel %vm2205_vm7, %v1342_v43, %v1816_v12  ;;  %v1569_v27 = vsel %vm1564_vm1, %v1558_v37, %v1559_v35  ;;  %v9459_v9 = vld [vmem:[%s8697_s19 + $0x1e8] sm:$0xff]  ;;  %v9462_v43 = vld [vmem:[%s8697_s19 + $0x1f0] sm:$0xff]  ;;  %v1275_v35 = vrot.slane %v9006_v62, 7 }
 0x100   : > { %2125 = vrot.lane.b32.xlu0 %v1571_v16, %s8593_s21  ;;  %2127 = vrot.lane.b32.xlu1 %v1570_v45, %s8593_s21  ;;  %v1273_v16 = vrot.slane %v8991_v46, 7  ;;  %v379_v45 = vadd.s32 256, %v8692_v2 }
 0x101   : > { %v1339_v62 = vsel %vm1307_vm2, %v1274_v44, %v1275_v35 }
 0x102   : > { %v2070_v23 = vpop.permute.xlu0 %2069  ;;  %v2072_v20 = vpop.permute.xlu1 %2071  ;;  %v9470_v37 = vand.u32 63, %v379_v45 }
 0x103   : > { %v2299_v61 = vsel %vm2270_vm8, %v2234_v55, %v2070_v23  ;;  %v2300_v15 = vsel %vm2270_vm8, %v2235_v41, %v2072_v20  ;;  %v1341_v55 = vsel %vm1307_vm2, %v1272_v30, %v1273_v16  ;;  %v1340_v41 = vsel %vm1307_vm2, %v1273_v16, %v1274_v44 }
 0x104   : > { %1873 = vrot.lane.b32.xlu0 %v9401_v58, %s8592_s20  ;;  %1875 = vrot.lane.b32.xlu1 %v9428_v21, %s8592_s20  ;;  %13472 = vst [vmem:[#allocation16_spill] sm:$0xff] %v9470_v37  ;;  %v1561_v23 = vrot.slane %v9459_v9, 1  ;;  %v1562_v20 = vrot.slane %v9462_v43, 1  ;;  %v410_v16 = vadd.s32 504, %v8692_v2  ;;  %vm1211_vm3 = vcmp.eq.s32.totalorder %v9470_v37, 0 }
 0x105   : > { %7993 = vmatprep.mubr.msk.f32.mxu0 %vm2343_vm9, %v2299_v61 }
 0x106   : > { %7994 = vmatmul.mubr.msk.f32.gmra.mrb[28].mxu0 %vm2343_vm9, %v2300_v15  ;;  %v1818_v12 = vpop.permute.xlu0 %1817  ;;  %v1820_v46 = vpop.permute.xlu1 %1819 }
 0x107   : > { %v2236_v61 = vsel %vm2205_vm7, %v1341_v55, %v1818_v12  ;;  %v2237_v15 = vsel %vm2205_vm7, %v1340_v41, %v1820_v46  ;;  %v1566_v12 = vsel %vm1564_vm1, %v1561_v23, %v1562_v20  ;;  %v1563_v55 = vrot.slane %v8985_v42, 1 }
 0x108   : > { %2129 = vrot.lane.b32.xlu0 %v1569_v27, %s8593_s21  ;;  %2131 = vrot.lane.b32.xlu1 %v1568_v59, %s8593_s21  ;;  %v1276_v27 = vrot.slane %v9044_v56, 7  ;;  %v1567_v56 = vsel %vm1564_vm1, %v1560_v39, %v1561_v23  ;;  %v9495_v41 = vand.u32 63, %v410_v16 }
 0x109   : > { %v1628_v16 = vsel %vm1564_vm1, %v1563_v55, %v1500_v6  ;;  %v1565_v4 = vsel %vm1564_vm1, %v1562_v20, %v1563_v55 }
 0x10a   : > { %v2074_v30 = vpop.permute.xlu0 %2073  ;;  %v2076_v50 = vpop.permute.xlu1 %2075  ;;  %13473 = vst [vmem:[#allocation17_spill] sm:$0xff] %v9495_v41  ;;  %v1338_v44 = vsel %vm1307_vm2, %v1275_v35, %v1276_v27  ;;  %vm1499_vm4 = vcmp.eq.s32.totalorder %v9495_v41, 63 }
 0x10b   : > { %v2301_v59 = vsel %vm2270_vm8, %v2236_v61, %v2074_v30  ;;  %v2302_v45 = vsel %vm2270_vm8, %v2237_v15, %v2076_v50  ;;  %v1404_v61 = vsel %vm1211_vm3, 0.0, %v1339_v62  ;;  %v1277_v62 = vrot.slane %v9047_v1, 7 }
 0x10c   : > { %1877 = vrot.lane.b32.xlu0 %v9431_v29, %s8592_s20  ;;  %1879 = vrot.lane.b32.xlu1 %v9459_v9, %s8592_s20  ;;  %v1692_v6 = vsel %vm1499_vm4, 0.0, %v1628_v16  ;;  %vm3997_vm3 = vcmp.ge.s32.totalorder %v9247_v8, 62  ;;  %vm3717_vm4 = vcmp.lt.s32.totalorder %v9342_v18, 2 }
 0x10d   : > { %7996 = vmatprep.mubr.msk.f32.mxu0 %vm2343_vm9, %v2301_v59  ;;  %v1278_v59 = vrot.slane %v9072_v24, 7 }
 0x10e   : > { %7997 = vmatmul.mubr.msk.f32.gmra.mrb[30].mxu0 %vm2343_vm9, %v2302_v45  ;;  %v1822_v50 = vpop.permute.xlu0 %1821  ;;  %v1824_v46 = vpop.permute.xlu1 %1823 }
 0x10f   : > { %v2238_v39 = vsel %vm2205_vm7, %v1404_v61, %v1822_v50  ;;  %v2239_v23 = vsel %vm2205_vm7, %v1338_v44, %v1824_v46  ;;  %v1336_v1 = vsel %vm1307_vm2, %v1277_v62, %v1278_v59  ;;  %v1280_v61 = vrot.slane %v9099_v19, 7 }
 0x110   : > { %2133 = vrot.lane.b32.xlu0 %v1567_v56, %s8593_s21  ;;  %2135 = vrot.lane.b32.xlu1 %v1566_v12, %s8593_s21  ;;  %v1337_v12 = vsel %vm1307_vm2, %v1276_v27, %v1277_v62  ;;  %v1279_v27 = vrot.slane %v9075_v25, 7  ;;  %v1282_v25 = vrot.slane %v9118_v52, 7 }
 0x112   : > { %v2078_v15 = vpop.permute.xlu0 %2077  ;;  %v2080_v30 = vpop.permute.xlu1 %2079  ;;  %v1334_v16 = vsel %vm1307_vm2, %v1279_v27, %v1280_v61 }
 0x113   : > { %v2303_v35 = vsel %vm2270_vm8, %v2238_v39, %v2078_v15  ;;  %v2304_v45 = vsel %vm2270_vm8, %v2239_v23, %v2080_v30  ;;  %v1335_v30 = vsel %vm1307_vm2, %v1278_v59, %v1279_v27  ;;  %v387_v59 = vadd.s32 320, %v8692_v2 }
 0x114   : > { %1881 = vrot.lane.b32.xlu0 %v9462_v43, %s8592_s20  ;;  %1883 = vrot.lane.b32.xlu1 %v8985_v42, %s8592_s20  ;;  %s8532_s20 = sshll.u32 %s8599_s28, 4  ;;  %s8533_s20 = int_to_ptr.vmem [resolvable:$false] %s8532_s20 }
 0x115   : > { %7999 = vmatprep.mubr.msk.f32.mxu0 %vm2343_vm9, %v2303_v35 }
 0x116   : > { %8000 = vmatmul.mubr.msk.f32.gmra.mrb[32].mxu0 %vm2343_vm9, %v2304_v45  ;;  %v1826_v24 = vpop.permute.xlu0 %1825  ;;  %v1828_v56 = vpop.permute.xlu1 %1827 }
 0x117   : > { %v2240_v50 = vsel %vm2205_vm7, %v1337_v12, %v1826_v24  ;;  %v2241_v46 = vsel %vm2205_vm7, %v1336_v1, %v1828_v56  ;;  %v1281_v24 = vrot.slane %v9102_v32, 7 }
 0x118   : > { %2137 = vrot.lane.b32.xlu0 %v1565_v4, %s8593_s21  ;;  %2139 = vrot.lane.b32.xlu1 %v1692_v6, %s8593_s21  ;;  %s8534_s21 = scalar_lea.vmem %s8533_s20, 256 }
 0x119   : > { %v1333_v1 = vsel %vm1307_vm2, %v1280_v61, %v1281_v24  ;;  %v1332_v52 = vsel %vm1307_vm2, %v1281_v24, %v1282_v25 }
 0x11a   : > { %v2082_v20 = vpop.permute.xlu0 %2081  ;;  %v2084_v55 = vpop.permute.xlu1 %2083 }
 0x11b   : > { %v2305_v44 = vsel %vm2270_vm8, %v2240_v50, %v2082_v20  ;;  %v2306_v39 = vsel %vm2270_vm8, %v2241_v46, %v2084_v55  ;;  %v9551_v50 = vand.u32 63, %v387_v59  ;;  %v1283_v46 = vrot.slane %v9121_v3, 7 }
 0x11c   : > { %8002 = vmatprep.mubr.msk.f32.mxu0 %vm2343_vm9, %v2305_v44 }
 0x11d   : > { %8003 = vmatmul.mubr.msk.f32.gmra.mrb[34].mxu0 %vm2343_vm9, %v2306_v39  ;;  %13474 = vst [vmem:[#allocation18_spill] sm:$0xff] %v9551_v50  ;;  %v1284_v39 = vrot.slane %v9158_v53, 7  ;;  %vm1219_vm5 = vcmp.eq.s32.totalorder %v9551_v50, 0  ;;  %v1331_v61 = vsel %vm1307_vm2, %v1282_v25, %v1283_v46 }
 0x11e   : > { %v1830_v23 = vpop.permute.xlu0 %1829  ;;  %v1832_v15 = vpop.permute.xlu1 %1831 }
 0x11f   : > { %v2242_v19 = vsel %vm2205_vm7, %v1335_v30, %v1830_v23  ;;  %v2243_v35 = vsel %vm2205_vm7, %v1334_v16, %v1832_v15  ;;  %v1412_v30 = vsel %vm1219_vm5, 0.0, %v1331_v61  ;;  %v1330_v16 = vsel %vm1307_vm2, %v1283_v46, %v1284_v39 }
 0x120   : > { %vm4005_vm5 = vcmp.ge.s32.totalorder %v9373_v40, 62 }
 0x122   : > { %v2086_v45 = vpop.permute.xlu0 %2085  ;;  %v2088_v62 = vpop.permute.xlu1 %2087 }
 0x123   : > { %v2307_v4 = vsel %vm2270_vm8, %v2242_v19, %v2086_v45  ;;  %v2308_v6 = vsel %vm2270_vm8, %v2243_v35, %v2088_v62  ;;  %v1286_v62 = vrot.slane %v9184_v57, 7 }
 0x124   : > { %8005 = vmatprep.mubr.msk.f32.mxu0 %vm2343_vm9, %v2307_v4 }
 0x125   : > { %8006 = vmatmul.mubr.msk.f32.gmra.mrb[36].mxu0 %vm2343_vm9, %v2308_v6  ;;  %v1285_v6 = vrot.slane %v9161_v54, 7  ;;  %v1288_v54 = vrot.slane %v9211_v36, 7 }
 0x126   : > { %v1834_v56 = vpop.permute.xlu0 %1833  ;;  %v1836_v12 = vpop.permute.xlu1 %1835 }
 0x127   : > { %v2244_v32 = vsel %vm2205_vm7, %v1333_v1, %v1834_v56  ;;  %v2245_v20 = vsel %vm2205_vm7, %v1332_v52, %v1836_v12  ;;  %v1329_v56 = vsel %vm1307_vm2, %v1284_v39, %v1285_v6  ;;  %v1328_v12 = vsel %vm1307_vm2, %v1285_v6, %v1286_v62 }
 0x12a   : > { %v2090_v55 = vpop.permute.xlu0 %2089  ;;  %v2092_v44 = vpop.permute.xlu1 %2091 }
 0x12b   : > { %v2309_v27 = vsel %vm2270_vm8, %v2244_v32, %v2090_v55  ;;  %v2310_v23 = vsel %vm2270_vm8, %v2245_v20, %v2092_v44  ;;  %v1287_v55 = vrot.slane %v9187_v33, 7  ;;  %v1290_v33 = vrot.slane %v9230_v47, 7 }
 0x12c   : > { %8008 = vmatprep.mubr.msk.f32.mxu0 %vm2343_vm9, %v2309_v27 }
 0x12d   : > { %8009 = vmatmul.mubr.msk.f32.gmra.mrb[38].mxu0 %vm2343_vm9, %v2310_v23  ;;  %v1327_v27 = vsel %vm1307_vm2, %v1286_v62, %v1287_v55  ;;  %v1326_v23 = vsel %vm1307_vm2, %v1287_v55, %v1288_v54 }
 0x12e   : > { %v1838_v3 = vpop.permute.xlu0 %1837  ;;  %v1840_v15 = vpop.permute.xlu1 %1839 }
 0x12f   : > { %v2246_v53 = vsel %vm2205_vm7, %v1412_v30, %v1838_v3  ;;  %v2247_v19 = vsel %vm2205_vm7, %v1330_v16, %v1840_v15 }
 0x132   : > { %v2094_v35 = vpop.permute.xlu0 %2093  ;;  %v2096_v45 = vpop.permute.xlu1 %2095 }
 0x133   : > { %v2311_v4 = vsel %vm2270_vm8, %v2246_v53, %v2094_v35  ;;  %v2312_v25 = vsel %vm2270_vm8, %v2247_v19, %v2096_v45  ;;  %v1289_v53 = vrot.slane %v9214_v63, 7  ;;  %v395_v19 = vadd.s32 384, %v8692_v2 }
 0x134   : > { %8011 = vmatprep.mubr.msk.f32.mxu0 %vm2343_vm9, %v2311_v4 }
 0x135   : > { %8012 = vmatmul.mubr.msk.f32.gmra.mrb[40].mxu0 %vm2343_vm9, %v2312_v25  ;;  %v1325_v62 = vsel %vm1307_vm2, %v1288_v54, %v1289_v53  ;;  %v1324_v47 = vsel %vm1307_vm2, %v1289_v53, %v1290_v33  ;;  %v9603_v4 = vand.u32 63, %v395_v19  ;;  %v1291_v25 = vrot.slane %v9233_v14, 7 }
 0x136   : > { %v1842_v24 = vpop.permute.xlu0 %1841  ;;  %v1844_v59 = vpop.permute.xlu1 %1843 }
 0x137   : > { %v2248_v57 = vsel %vm2205_vm7, %v1329_v56, %v1842_v24  ;;  %v2249_v1 = vsel %vm2205_vm7, %v1328_v12, %v1844_v59  ;;  %13475 = vst [vmem:[#allocation19_spill] sm:$0xff] %v9603_v4  ;;  %v1292_v56 = vrot.slane %v9270_v10, 7  ;;  %vm1227_vm6 = vcmp.eq.s32.totalorder %v9603_v4, 0 }
 0x139   : > { %v1322_v54 = vsel %vm1307_vm2, %v1291_v25, %v1292_v56 }
 0x13a   : > { %v2098_v52 = vpop.permute.xlu0 %2097  ;;  %v2100_v46 = vpop.permute.xlu1 %2099 }
 0x13b   : > { %v2313_v32 = vsel %vm2270_vm8, %v2248_v57, %v2098_v52  ;;  %v2314_v20 = vsel %vm2270_vm8, %v2249_v1, %v2100_v46  ;;  %v1323_v1 = vsel %vm1307_vm2, %v1290_v33, %v1291_v25 }
 0x13c   : > { %8014 = vmatprep.mubr.msk.f32.mxu0 %vm2343_vm9, %v2313_v32  ;;  %v1420_v46 = vsel %vm1227_vm6, 0.0, %v1323_v1  ;;  %vm3693_vm6 = vcmp.lt.s32.totalorder %v8996_v49, 2 }
 0x13d   : > { %8015 = vmatmul.mubr.msk.f32.gmra.mrb[42].mxu0 %vm2343_vm9, %v2314_v20 }
 0x13e   : > { %v1846_v44 = vpop.permute.xlu0 %1845  ;;  %v1848_v39 = vpop.permute.xlu1 %1847 }
 0x13f   : > { %v2250_v36 = vsel %vm2205_vm7, %v1327_v27, %v1846_v44  ;;  %v2251_v61 = vsel %vm2205_vm7, %v1326_v23, %v1848_v39  ;;  %v1294_v44 = vrot.slane %v9298_v34, 7  ;;  %v1293_v23 = vrot.slane %v9273_v11, 7 }
 0x140   : > { %v1296_v11 = vrot.slane %v9331_v60, 7 }
 0x142   : > { %v2102_v3 = vpop.permute.xlu0 %2101  ;;  %v2104_v15 = vpop.permute.xlu1 %2103 }
 0x143   : > { %v2315_v30 = vsel %vm2270_vm8, %v2250_v36, %v2102_v3  ;;  %v2316_v16 = vsel %vm2270_vm8, %v2251_v61, %v2104_v15  ;;  %v1321_v3 = vsel %vm1307_vm2, %v1292_v56, %v1293_v23  ;;  %v1320_v15 = vsel %vm1307_vm2, %v1293_v23, %v1294_v44 }
 0x144   : > { %8017 = vmatprep.mubr.msk.f32.mxu0 %vm2343_vm9, %v2315_v30 }
 0x145   : > { %8018 = vmatmul.mubr.msk.f32.gmra.mrb[44].mxu0 %vm2343_vm9, %v2316_v16 }
 0x146   : > { %v1850_v35 = vpop.permute.xlu0 %1849  ;;  %v1852_v45 = vpop.permute.xlu1 %1851 }
 0x147   : > { %v2252_v63 = vsel %vm2205_vm7, %v1325_v62, %v1850_v35  ;;  %v2253_v6 = vsel %vm2205_vm7, %v1324_v47, %v1852_v45  ;;  %v1295_v35 = vrot.slane %v9301_v51, 7  ;;  %v1298_v51 = vrot.slane %v9354_v5, 7 }
 0x149   : > { %v1319_v47 = vsel %vm1307_vm2, %v1294_v44, %v1295_v35  ;;  %v1318_v25 = vsel %vm1307_vm2, %v1295_v35, %v1296_v11 }
 0x14a   : > { %v2106_v24 = vpop.permute.xlu0 %2105  ;;  %v2108_v59 = vpop.permute.xlu1 %2107 }
 0x14b   : > { %v2317_v12 = vsel %vm2270_vm8, %v2252_v63, %v2106_v24  ;;  %v2318_v57 = vsel %vm2270_vm8, %v2253_v6, %v2108_v59 }
 0x14c   : > { %8020 = vmatprep.mubr.msk.f32.mxu0 %vm2343_vm9, %v2317_v12  ;;  %v1297_v12 = vrot.slane %v9334_v31, 7 }
 0x14d   : > { %8021 = vmatmul.mubr.msk.f32.gmra.mrb[46].mxu0 %vm2343_vm9, %v2318_v57  ;;  %v403_v57 = vadd.s32 448, %v8692_v2 }
 0x14e   : > { %v1854_v14 = vpop.permute.xlu0 %1853  ;;  %v1856_v52 = vpop.permute.xlu1 %1855  ;;  %v1316_v5 = vsel %vm1307_vm2, %v1297_v12, %v1298_v51 }
 0x14f   : > { %v2254_v10 = vsel %vm2205_vm7, %v1420_v46, %v1854_v14  ;;  %v2255_v32 = vsel %vm2205_vm7, %v1322_v54, %v1856_v52  ;;  %v1317_v52 = vsel %vm1307_vm2, %v1296_v11, %v1297_v12  ;;  %v9655_v46 = vand.u32 63, %v403_v57 }
 0x150   : > { %v1299_v54 = vrot.slane %v9357_v7, 7 }
 0x151   : > { %13476 = vst [vmem:[#allocation20_spill] sm:$0xff] %v9655_v46  ;;  %vm1235_vm10 = vcmp.eq.s32.totalorder %v9655_v46, 0 }
 0x152   : > { %v2110_v20 = vpop.permute.xlu0 %2109  ;;  %v2112_v55 = vpop.permute.xlu1 %2111  ;;  %v1315_v7 = vsel %vm1307_vm2, %v1298_v51, %v1299_v54 }
 0x153   : > { %v2319_v39 = vsel %vm2270_vm8, %v2254_v10, %v2110_v20  ;;  %v2320_v27 = vsel %vm2270_vm8, %v2255_v32, %v2112_v55  ;;  %v9663_v55 = vld [vmem:[%s13366_s2] ss:$0 sm:$0xff] }
 0x154   : > { %8023 = vmatprep.mubr.msk.f32.mxu0 %vm2343_vm9, %v2319_v39 }
 0x155   : > { %8024 = vmatmul.mubr.msk.f32.gmra.mrb[48].mxu0 %vm2343_vm9, %v2320_v27  ;;  %v1300_v27 = vrot.slane %v9398_v38, 7 }
 0x156   : > { %v1858_v36 = vpop.permute.xlu0 %1857  ;;  %v1860_v61 = vpop.permute.xlu1 %1859 }
 0x157   : > { %v2256_v34 = vsel %vm2205_vm7, %v1321_v3, %v1858_v36  ;;  %v2257_v33 = vsel %vm2205_vm7, %v1320_v15, %v1860_v61 }
 0x15a   : > { %v2114_v30 = vpop.permute.xlu0 %2113  ;;  %v2116_v16 = vpop.permute.xlu1 %2115 }
 0x15b   : > { %v2321_v53 = vsel %vm2270_vm8, %v2256_v34, %v2114_v30  ;;  %v2322_v19 = vsel %vm2270_vm8, %v2257_v33, %v2116_v16  ;;  %v1428_v33 = vsel %vm1235_vm10, 0.0, %v1315_v7  ;;  %v1314_v16 = vsel %vm1307_vm2, %v1299_v54, %v1300_v27 }
 0x15c   : > { %8026 = vmatprep.mubr.msk.f32.mxu0 %vm2343_vm9, %v2321_v53  ;;  %v1303_v7 = vrot.slane %v9431_v29, 7 }
 0x15d   : > { %8027 = vmatmul.mubr.msk.f32.gmra.mrb[50].mxu0 %vm2343_vm9, %v2322_v19 }
 0x15e   : > { %v1862_v45 = vpop.permute.xlu0 %1861  ;;  %v1864_v62 = vpop.permute.xlu1 %1863 }
 0x15f   : > { %v2258_v60 = vsel %vm2205_vm7, %v1319_v47, %v1862_v45  ;;  %v2259_v63 = vsel %vm2205_vm7, %v1318_v25, %v1864_v62  ;;  %v1301_v25 = vrot.slane %v9401_v58, 7 }
 0x162   : > { %v2118_v6 = vpop.permute.xlu0 %2117  ;;  %v2120_v24 = vpop.permute.xlu1 %2119 }
 0x163   : > { %v2323_v59 = vsel %vm2270_vm8, %v2258_v60, %v2118_v6  ;;  %v2324_v56 = vsel %vm2270_vm8, %v2259_v63, %v2120_v24 }
 0x164   : > { %8029 = vmatprep.mubr.msk.f32.mxu0 %vm2343_vm9, %v2323_v59  ;;  %v1302_v59 = vrot.slane %v9428_v21, 7 }
 0x165   : > { %8030 = vmatmul.mubr.msk.f32.gmra.mrb[52].mxu0 %vm2343_vm9, %v2324_v56 }
 0x166   : > { %v1866_v1 = vpop.permute.xlu0 %1865  ;;  %v1868_v14 = vpop.permute.xlu1 %1867 }
 0x167   : > { %v2260_v31 = vsel %vm2205_vm7, %v1317_v52, %v1866_v1  ;;  %v2261_v10 = vsel %vm2205_vm7, %v1316_v5, %v1868_v14 }
 0x16a   : > { %v2122_v32 = vpop.permute.xlu0 %2121  ;;  %v2124_v20 = vpop.permute.xlu1 %2123 }
 0x16b   : > { %v2325_v44 = vsel %vm2270_vm8, %v2260_v31, %v2122_v32  ;;  %v2326_v39 = vsel %vm2270_vm8, %v2261_v10, %v2124_v20  ;;  %v1313_v31 = vsel %vm1307_vm2, %v1300_v27, %v1301_v25 }
 0x16c   : > { %v7953_v23 = vpop.f32.mrb[0].mxu0  ;;  %8032 = vmatprep.mubr.msk.f32.mxu0 %vm2343_vm9, %v2325_v44  ;;  %v1312_v44 = vsel %vm1307_vm2, %v1301_v25, %v1302_v59 }
 0x16d   : > { %v9673_v36 = vadd.f32 %v7953_v23, %v9663_v55  ;;  %v2606_v61 = vpop.f32.mrb[1].mxu0  ;;  %8033 = vmatmul.mubr.msk.f32.gmra.mrb[54].mxu0 %vm2343_vm9, %v2326_v39 }
 0x16e   : > { %v9677_v3 = vadd.f32 %v9663_v55, %v2606_v61  ;;  %v1870_v15 = vpop.permute.xlu0 %1869  ;;  %v1872_v34 = vpop.permute.xlu1 %1871 }
 0x16f   : > { %v2990_v38 = vmul.f32 %v9673_v36, %v9673_v36  ;;  %v2262_v35 = vsel %vm2205_vm7, %v1428_v33, %v1870_v15  ;;  %v2263_v63 = vsel %vm2205_vm7, %v1314_v16, %v1872_v34 }
 0x170   : > { %v2989_v30 = vmul.f32 %v9677_v3, %v9677_v3 }
 0x171   : > { %v3054_v11 = vmul.f32 %v2990_v38, %v9673_v36  ;;  %v7956_v53 = vpop.f32.mrb[2].mxu0 }
 0x172   : > { %v3053_v19 = vmul.f32 %v2989_v30, %v9677_v3  ;;  %v9689_v45 = vadd.f32 %v7956_v53, %v9663_v55  ;;  %v2616_v62 = vpop.f32.mrb[3].mxu0  ;;  %v2126_v47 = vpop.permute.xlu0 %2125 }
 0x173   : > { %v3118_v60 = vmul.f32 0.044715, %v3054_v11  ;;  %v9694_v6 = vadd.f32 %v9663_v55, %v2616_v62  ;;  %v2327_v24 = vsel %vm2270_vm8, %v2262_v35, %v2126_v47  ;;  %v2128_v51 = vpop.permute.xlu1 %2127  ;;  %v1304_v62 = vrot.slane %v9459_v9, 7 }
 0x174   : > { %v3117_v56 = vmul.f32 0.044715, %v3053_v19  ;;  %v2992_v12 = vmul.f32 %v9689_v45, %v9689_v45  ;;  %v2328_v57 = vsel %vm2270_vm8, %v2263_v63, %v2128_v51  ;;  %8035 = vmatprep.mubr.msk.f32.mxu0 %vm2343_vm9, %v2327_v24  ;;  %v1305_v24 = vrot.slane %v9462_v43, 7 }
 0x175   : > { %v3182_v58 = vadd.f32 %v3118_v60, %v9673_v36  ;;  %v2991_v1 = vmul.f32 %v9694_v6, %v9694_v6  ;;  %8036 = vmatmul.mubr.msk.f32.gmra.mrb[56].mxu0 %vm2343_vm9, %v2328_v57 }
 0x176   : > { %v3181_v14 = vadd.f32 %v3117_v56, %v9677_v3  ;;  %v3056_v52 = vmul.f32 %v2992_v12, %v9689_v45  ;;  %v1874_v21 = vpop.permute.xlu0 %1873  ;;  %v1311_v56 = vsel %vm1307_vm2, %v1302_v59, %v1303_v7 }
 0x177   : > { %v3246_v5 = vmul.f32 0.7978846, %v3182_v58  ;;  %v3055_v54 = vmul.f32 %v2991_v1, %v9694_v6  ;;  %v1876_v10 = vpop.permute.xlu1 %1875  ;;  %v2264_v15 = vsel %vm2205_vm7, %v1313_v31, %v1874_v21  ;;  %v1310_v58 = vsel %vm1307_vm2, %v1303_v7, %v1304_v62 }
 0x178   : > { %v3245_v32 = vmul.f32 0.7978846, %v3181_v14  ;;  %v3120_v20 = vmul.f32 0.044715, %v3056_v52  ;;  %v2265_v30 = vsel %vm2205_vm7, %v1312_v44, %v1876_v10  ;;  %v2926_v31 = vmul.f32 0.5, %v9673_v36 }
 0x179   : > { %8268 = vtanh.f32 %v3246_v5  ;;  %v3119_v39 = vmul.f32 0.044715, %v3055_v54  ;;  %v7959_v23 = vpop.f32.mrb[4].mxu0  ;;  %v1309_v54 = vsel %vm1307_vm2, %v1304_v62, %v1305_v24  ;;  %v2925_v36 = vmul.f32 0.5, %v9677_v3 }
 0x17a   : > { %8270 = vtanh.f32 %v3245_v32  ;;  %v3184_v61 = vadd.f32 %v3120_v20, %v9689_v45  ;;  %v9717_v34 = vadd.f32 %v7959_v23, %v9663_v55  ;;  %v2626_v27 = vpop.f32.mrb[5].mxu0  ;;  %v2130_v38 = vpop.permute.xlu0 %2129 }
 0x17b   : > { %v3183_v33 = vadd.f32 %v3119_v39, %v9694_v6  ;;  %v9722_v16 = vadd.f32 %v9663_v55, %v2626_v27  ;;  %v2329_v11 = vsel %vm2270_vm8, %v2264_v15, %v2130_v38  ;;  %v2132_v29 = vpop.permute.xlu1 %2131 }
 0x17c   : > { %v3248_v53 = vmul.f32 0.7978846, %v3184_v61  ;;  %v2994_v19 = vmul.f32 %v9717_v34, %v9717_v34  ;;  %v2330_v35 = vsel %vm2270_vm8, %v2265_v30, %v2132_v29  ;;  %8038 = vmatprep.mubr.msk.f32.mxu0 %vm2343_vm9, %v2329_v11 }
 0x17d   : > { %v3247_v47 = vmul.f32 0.7978846, %v3183_v33  ;;  %v2993_v25 = vmul.f32 %v9722_v16, %v9722_v16  ;;  %8039 = vmatmul.mubr.msk.f32.gmra.mrb[58].mxu0 %vm2343_vm9, %v2330_v35  ;;  %v13477_v35 = vrot.slane %v8985_v42, 7 }
 0x17e   : > { %8272 = vtanh.f32 %v3248_v53  ;;  %v3058_v60 = vmul.f32 %v2994_v19, %v9717_v34  ;;  %v1878_v63 = vpop.permute.xlu0 %1877 }
 0x17f   : > { %8274 = vtanh.f32 %v3247_v47  ;;  %v3057_v51 = vmul.f32 %v2993_v25, %v9722_v16  ;;  %v1880_v12 = vpop.permute.xlu1 %1879  ;;  %v2266_v52 = vsel %vm2205_vm7, %v1311_v56, %v1878_v63  ;;  %v1308_v3 = vsel %vm1307_vm2, %v1305_v24, %v13477_v35 }
 0x180   : > { %v3122_v9 = vmul.f32 0.044715, %v3058_v60  ;;  %v2267_v61 = vsel %vm2205_vm7, %v1310_v58, %v1880_v12  ;;  %v2928_v25 = vmul.f32 0.5, %v9689_v45  ;;  %v2927_v60 = vmul.f32 0.5, %v9694_v6 }
 0x181   : > { %v3121_v57 = vmul.f32 0.044715, %v3057_v51  ;;  %v7962_v1 = vpop.f32.mrb[6].mxu0  ;;  %vm4078_vm2 = vcmp.lt.s32.totalorder %v8692_v2, 6 }
 0x182   : > { %v3186_v14 = vadd.f32 %v3122_v9, %v9717_v34  ;;  %v9743_v21 = vadd.f32 %v7962_v1, %v9663_v55  ;;  %v2636_v43 = vpop.f32.mrb[7].mxu0  ;;  %v2134_v5 = vpop.permute.xlu0 %2133 }
 0x183   : > { %v8269_v59 = vpop.eup %8268  ;;  %v3185_v10 = vadd.f32 %v3121_v57, %v9722_v16  ;;  %v9750_v32 = vadd.f32 %v9663_v55, %v2636_v43  ;;  %v2331_v20 = vsel %vm2270_vm8, %v2266_v52, %v2134_v5  ;;  %v2136_v44 = vpop.permute.xlu1 %2135 }
 0x184   : > { %v8271_v39 = vpop.eup %8270  ;;  %v3374_v23 = vadd.f32 1.0, %v8269_v59  ;;  %v3250_v7 = vmul.f32 0.7978846, %v3186_v14  ;;  %v2996_v15 = vmul.f32 %v9743_v21, %v9743_v21  ;;  %8041 = vmatprep.mubr.msk.f32.mxu0 %vm2343_vm9, %v2331_v20  ;;  %v2332_v33 = vsel %vm2270_vm8, %v2267_v61, %v2136_v44 }
 0x185   : > { %v3249_v27 = vmul.f32 0.7978846, %v3185_v10  ;;  %v2995_v38 = vmul.f32 %v9750_v32, %v9750_v32  ;;  %8042 = vmatmul.mubr.msk.f32.gmra.mrb[60].mxu0 %vm2343_vm9, %v2332_v33  ;;  %v3373_v53 = vadd.f32 1.0, %v8271_v39  ;;  %v2930_v20 = vmul.f32 0.5, %v9717_v34 }
 0x186   : > { %v3438_v30 = vmul.f32 %v3374_v23, %v2926_v31  ;;  %8276 = vtanh.f32 %v3250_v7  ;;  %v3060_v11 = vmul.f32 %v2996_v15, %v9743_v21  ;;  %v1882_v29 = vpop.permute.xlu0 %1881 }
 0x187   : > { %8278 = vtanh.f32 %v3249_v27  ;;  %v3059_v19 = vmul.f32 %v2995_v38, %v9750_v32  ;;  %v1884_v62 = vpop.permute.xlu1 %1883  ;;  %v9770_v51 = vmul.f32 %v3373_v53, %v2925_v36  ;;  %v2268_v58 = vsel %vm2205_vm7, %v1309_v54, %v1882_v29 }
 0x188   : > { %v8273_v47 = vpop.eup %8272  ;;  %v3124_v63 = vmul.f32 0.044715, %v3060_v11  ;;  %v3502_v12 = vrot.slane %v3438_v30, 1  ;;  %v2269_v61 = vsel %vm2205_vm7, %v1308_v3, %v1884_v62  ;;  %v2929_v38 = vmul.f32 0.5, %v9722_v16 }
 0x189   : > { %v8275_v56 = vpop.eup %8274  ;;  %v3376_v9 = vadd.f32 1.0, %v8273_v47  ;;  %v3123_v57 = vmul.f32 0.044715, %v3059_v19  ;;  %v7965_v1 = vpop.f32.mrb[8].mxu0  ;;  %v13375_v6 = vrot.slane %v9770_v51, 1  ;;  %vm3821_vm7 = vcmp.lt.s32.totalorder %v8692_v2, 2 }
 0x18a   : > { %v3375_v42 = vadd.f32 1.0, %v8275_v56  ;;  %v3188_v14 = vadd.f32 %v3124_v63, %v9743_v21  ;;  %v9775_v24 = vadd.f32 %v7965_v1, %v9663_v55  ;;  %v2646_v52 = vpop.f32.mrb[9].mxu0  ;;  %v2138_v45 = vpop.permute.xlu0 %2137 }
 0x18b   : > { %v9778_v43 = vmul.f32 %v3376_v9, %v2928_v25  ;;  %v3187_v5 = vadd.f32 %v3123_v57, %v9750_v32  ;;  %v9782_v59 = vadd.f32 %v9663_v55, %v2646_v52  ;;  %v2333_v54 = vsel %vm2270_vm8, %v2268_v58, %v2138_v45  ;;  %v2140_v31 = vpop.permute.xlu1 %2139 }
 0x18c   : > { %v3439_v10 = vmul.f32 %v3375_v42, %v2927_v60  ;;  %v3252_v44 = vmul.f32 0.7978846, %v3188_v14  ;;  %v2998_v39 = vmul.f32 %v9775_v24, %v9775_v24  ;;  %8044 = vmatprep.mubr.msk.f32.mxu0 %vm2343_vm9, %v2333_v54  ;;  %v2334_v27 = vsel %vm2270_vm8, %v2269_v61, %v2140_v31 }
 0x18d   : > { %v3504_v23 = vrot.slane %v9778_v43, 1  ;;  %v3251_v7 = vmul.f32 0.7978846, %v3187_v5  ;;  %v2997_v15 = vmul.f32 %v9782_v59, %v9782_v59  ;;  %8045 = vmatmul.mubr.msk.f32.gmra.mrb[62].mxu0 %vm2343_vm9, %v2334_v27  ;;  %v3627_v11 = vsel %vm1564_vm1, %v13375_v6, %v3502_v12 }
 0x18e   : > { %v3503_v36 = vrot.slane %v3439_v10, 1  ;;  %8280 = vtanh.f32 %v3252_v44  ;;  %v3062_v34 = vmul.f32 %v2998_v39, %v9775_v24  ;;  %v9804_v19 = vmax.f32 %v9770_v51, %v3627_v11 }
 0x18f   : > { %8282 = vtanh.f32 %v3251_v7  ;;  %v3061_v33 = vmul.f32 %v2997_v15, %v9782_v59  ;;  %v2932_v9 = vmul.f32 0.5, %v9743_v21  ;;  %v2931_v52 = vmul.f32 0.5, %v9750_v32 }
 0x190   : > { %v8277_v29 = vpop.eup %8276  ;;  %v3126_v53 = vmul.f32 0.044715, %v3062_v34  ;;  %v3626_v35 = vsel %vm1564_vm1, %v3502_v12, %v3503_v36  ;;  %v3625_v16 = vsel %vm1564_vm1, %v3503_v36, %v3504_v23  ;;  %4271 = vrot.lane.b32.xlu0 %v9804_v19, %s8594_s29  ;;  %v9843_v7 = vmul.f32 0.5, %v9775_v24 }
 0x191   : > { %v8279_v3 = vpop.eup %8278  ;;  %v3378_v62 = vadd.f32 1.0, %v8277_v29  ;;  %v3125_v47 = vmul.f32 0.044715, %v3061_v33  ;;  %v7968_v25 = vpop.f32.mrb[10].mxu0  ;;  %v9810_v60 = vmax.f32 %v3438_v30, %v3626_v35  ;;  %v9812_v63 = vmax.f32 %v3439_v10, %v3625_v16 }
 0x192   : > { %v3377_v56 = vadd.f32 1.0, %v8279_v3  ;;  %v3190_v57 = vadd.f32 %v3126_v53, %v9775_v24  ;;  %v9819_v12 = vadd.f32 %v7968_v25, %v9663_v55  ;;  %v2656_v58 = vpop.f32.mrb[11].mxu0  ;;  %vm3957_vm8 = vcmp.ge.s32.totalorder %v8742_v26, 62 }
 0x193   : > { %v9821_v1 = vmul.f32 %v3378_v62, %v2930_v20  ;;  %v3189_v30 = vadd.f32 %v3125_v47, %v9782_v59  ;;  %v9825_v42 = vadd.f32 %v9663_v55, %v2656_v58  ;;  %4273 = vrot.lane.b32.xlu1 %v9810_v60, %s8594_s29  ;;  %v4015_v21 = vrot.slane %v9810_v60, 2 }
 0x194   : > { %v3441_v14 = vmul.f32 %v3377_v56, %v2929_v38  ;;  %v3254_v45 = vmul.f32 0.7978846, %v3190_v57  ;;  %v3000_v5 = vmul.f32 %v9819_v12, %v9819_v12  ;;  %v13373_v20 = vrot.slane %v9804_v19, 2  ;;  %4275 = vrot.lane.b32.xlu0 %v9812_v63, %s8594_s29 }
 0x195   : > { %v3506_v54 = vrot.slane %v9821_v1, 1  ;;  %v3253_v31 = vmul.f32 0.7978846, %v3189_v30  ;;  %v2999_v10 = vmul.f32 %v9825_v42, %v9825_v42  ;;  %v4016_v32 = vrot.slane %v9812_v63, 2 }
 0x196   : > { %v3505_v44 = vrot.slane %v3441_v14, 1  ;;  %8284 = vtanh.f32 %v3254_v45  ;;  %v3064_v39 = vmul.f32 %v3000_v5, %v9819_v12  ;;  %v4141_v15 = vsel %vm4078_vm2, %v13373_v20, %v4015_v21 }
 0x197   : > { %8286 = vtanh.f32 %v3253_v31  ;;  %v3063_v61 = vmul.f32 %v2999_v10, %v9825_v42  ;;  %v4140_v27 = vsel %vm4078_vm2, %v4015_v21, %v4016_v32  ;;  %v3758_v25 = vrot.slane %v9810_v60, 6 }
 0x198   : > { %v8281_v36 = vpop.eup %8280  ;;  %v3128_v34 = vmul.f32 0.044715, %v3064_v39  ;;  %v3624_v38 = vsel %vm1564_vm1, %v3504_v23, %v3505_v44  ;;  %v3623_v24 = vsel %vm1564_vm1, %v3505_v44, %v3506_v54  ;;  %4529 = vrot.lane.b32.xlu1 %v4140_v27, %s8595_s8  ;;  %4527 = vrot.lane.b32.xlu0 %v4141_v15, %s8595_s8  ;;  %v2933_v21 = vmul.f32 0.5, %v9782_v59 }
 0x199   : > { %v8283_v33 = vpop.eup %8282  ;;  %v3380_v11 = vadd.f32 1.0, %v8281_v36  ;;  %v3127_v29 = vmul.f32 0.044715, %v3063_v61  ;;  %v7971_v53 = vpop.f32.mrb[12].mxu0  ;;  %v9858_v35 = vmax.f32 %v9778_v43, %v3624_v38  ;;  %v9860_v16 = vmax.f32 %v3441_v14, %v3623_v24 }
 0x19a   : > { %v3379_v3 = vadd.f32 1.0, %v8283_v33  ;;  %v3192_v62 = vadd.f32 %v3128_v34, %v9819_v12  ;;  %v9865_v23 = vadd.f32 %v7971_v53, %v9663_v55  ;;  %v2666_v47 = vpop.f32.mrb[13].mxu0  ;;  %v13374_v10 = vrot.slane %v9804_v19, 6 }
 0x19b   : > { %v9868_v56 = vmul.f32 %v3380_v11, %v2932_v9  ;;  %v3191_v57 = vadd.f32 %v3127_v29, %v9825_v42  ;;  %v9872_v43 = vadd.f32 %v9663_v55, %v2666_v47  ;;  %v4017_v58 = vrot.slane %v9858_v35, 2 }
 0x19c   : > { %v3443_v30 = vmul.f32 %v3379_v3, %v2931_v52  ;;  %v3256_v14 = vmul.f32 0.7978846, %v3192_v62  ;;  %v3002_v45 = vmul.f32 %v9865_v23, %v9865_v23  ;;  %4277 = vrot.lane.b32.xlu1 %v9858_v35, %s8594_s29  ;;  %4279 = vrot.lane.b32.xlu0 %v9860_v16, %s8594_s29  ;;  %v4018_v59 = vrot.slane %v9860_v16, 2 }
 0x19d   : > { %v3508_v5 = vrot.slane %v9868_v56, 1  ;;  %v3255_v31 = vmul.f32 0.7978846, %v3191_v57  ;;  %v3001_v9 = vmul.f32 %v9872_v43, %v9872_v43  ;;  %v4139_v61 = vsel %vm4078_vm2, %v4016_v32, %v4017_v58 }
 0x19e   : > { %v3507_v44 = vrot.slane %v3443_v30, 1  ;;  %8288 = vtanh.f32 %v3256_v14  ;;  %v3066_v52 = vmul.f32 %v3002_v45, %v9865_v23  ;;  %v9897_v15 = vsel %vm3821_vm7, %v13374_v10, %v3758_v25 }
 0x19f   : > { %8290 = vtanh.f32 %v3255_v31  ;;  %v3065_v39 = vmul.f32 %v3001_v9, %v9872_v43  ;;  %v4138_v27 = vsel %vm4078_vm2, %v4017_v58, %v4018_v59  ;;  %v3759_v58 = vrot.slane %v9812_v63, 6 }
 0x1a0   : > { %v8285_v36 = vpop.eup %8284  ;;  %v3130_v34 = vmul.f32 0.044715, %v3066_v52  ;;  %v3622_v38 = vsel %vm1564_vm1, %v3506_v54, %v3507_v44  ;;  %v3621_v24 = vsel %vm1564_vm1, %v3507_v44, %v3508_v5  ;;  %4533 = vrot.lane.b32.xlu1 %v4138_v27, %s8595_s8  ;;  %4531 = vrot.lane.b32.xlu0 %v4139_v61, %s8595_s8  ;;  %vm3965_vm9 = vcmp.ge.s32.totalorder %v8852_v28, 62 }
 0x1a1   : > { %v8287_v32 = vpop.eup %8286  ;;  %v3382_v33 = vadd.f32 1.0, %v8285_v36  ;;  %v3129_v11 = vmul.f32 0.044715, %v3065_v39  ;;  %v7974_v29 = vpop.f32.mrb[14].mxu0  ;;  %v9907_v53 = vmax.f32 %v9821_v1, %v3622_v38  ;;  %v9909_v3 = vmax.f32 %v3443_v30, %v3621_v24 }
 0x1a2   : > { %v3381_v62 = vadd.f32 1.0, %v8287_v32  ;;  %v3194_v47 = vadd.f32 %v3130_v34, %v9865_v23  ;;  %v9914_v54 = vadd.f32 %v7974_v29, %v9663_v55  ;;  %v2676_v57 = vpop.f32.mrb[15].mxu0  ;;  %v2936_v39 = vmul.f32 0.5, %v9819_v12 }
 0x1a3   : > { %v9918_v14 = vmul.f32 %v3382_v33, %v9843_v7  ;;  %v3193_v45 = vadd.f32 %v3129_v11, %v9872_v43  ;;  %v9922_v1 = vadd.f32 %v9663_v55, %v2676_v57  ;;  %v4019_v30 = vrot.slane %v9907_v53, 2 }
 0x1a4   : > { %v3445_v31 = vmul.f32 %v3381_v62, %v2933_v21  ;;  %v3258_v9 = vmul.f32 0.7978846, %v3194_v47  ;;  %v3004_v44 = vmul.f32 %v9914_v54, %v9914_v54  ;;  %4281 = vrot.lane.b32.xlu1 %v9907_v53, %s8594_s29  ;;  %4283 = vrot.lane.b32.xlu0 %v9909_v3, %s8594_s29  ;;  %v4020_v21 = vrot.slane %v9909_v3, 2 }
 0x1a5   : > { %v3510_v52 = vrot.slane %v9918_v14, 1  ;;  %v3257_v61 = vmul.f32 0.7978846, %v3193_v45  ;;  %v3003_v7 = vmul.f32 %v9922_v1, %v9922_v1  ;;  %v4137_v27 = vsel %vm4078_vm2, %v4018_v59, %v4019_v30 }
 0x1a6   : > { %v3509_v36 = vrot.slane %v3445_v31, 1  ;;  %8292 = vtanh.f32 %v3258_v9  ;;  %v3068_v34 = vmul.f32 %v3004_v44, %v9914_v54  ;;  %v9947_v38 = vsel %vm3821_vm7, %v3758_v25, %v3759_v58 }
 0x1a7   : > { %8294 = vtanh.f32 %v3257_v61  ;;  %v3067_v12 = vmul.f32 %v3003_v7, %v9922_v1  ;;  %13478 = vst [vmem:[#allocation21_spill] sm:$0xff] %v9947_v38  ;;  %v4136_v33 = vsel %vm4078_vm2, %v4019_v30, %v4020_v21  ;;  %v2935_v45 = vmul.f32 0.5, %v9825_v42 }
 0x1a8   : > { %v8289_v24 = vpop.eup %8288  ;;  %v3132_v32 = vmul.f32 0.044715, %v3068_v34  ;;  %v3620_v11 = vsel %vm1564_vm1, %v3508_v5, %v3509_v36  ;;  %v3619_v29 = vsel %vm1564_vm1, %v3509_v36, %v3510_v52  ;;  %4537 = vrot.lane.b32.xlu1 %v4136_v33, %s8595_s8  ;;  %4535 = vrot.lane.b32.xlu0 %v4137_v27, %s8595_s8  ;;  %v2938_v42 = vmul.f32 0.5, %v9865_v23 }
 0x1a9   : > { %v8291_v59 = vpop.eup %8290  ;;  %v3384_v62 = vadd.f32 1.0, %v8289_v24  ;;  %v3131_v47 = vmul.f32 0.044715, %v3067_v12  ;;  %v7977_v60 = vpop.f32.mrb[16].mxu0  ;;  %v9957_v25 = vmax.f32 %v9868_v56, %v3620_v11  ;;  %v9959_v57 = vmax.f32 %v3445_v31, %v3619_v29 }
 0x1aa   : > { %v3383_v30 = vadd.f32 1.0, %v8291_v59  ;;  %v3196_v9 = vadd.f32 %v3132_v32, %v9914_v54  ;;  %v9965_v5 = vadd.f32 %v7977_v60, %v9663_v55  ;;  %v2686_v44 = vpop.f32.mrb[17].mxu0  ;;  %v2937_v24 = vmul.f32 0.5, %v9872_v43 }
 0x1ab   : > { %v9967_v61 = vmul.f32 %v3384_v62, %v2936_v39  ;;  %v3195_v7 = vadd.f32 %v3131_v47, %v9922_v1  ;;  %v9971_v56 = vadd.f32 %v9663_v55, %v2686_v44  ;;  %v4021_v31 = vrot.slane %v9957_v25, 2 }
 0x1ac   : > { %v3447_v36 = vmul.f32 %v3383_v30, %v2935_v45  ;;  %v3260_v34 = vmul.f32 0.7978846, %v3196_v9  ;;  %v3006_v12 = vmul.f32 %v9965_v5, %v9965_v5  ;;  %4285 = vrot.lane.b32.xlu1 %v9957_v25, %s8594_s29  ;;  %4287 = vrot.lane.b32.xlu0 %v9959_v57, %s8594_s29  ;;  %v4022_v23 = vrot.slane %v9959_v57, 2 }
 0x1ad   : > { %v3512_v27 = vrot.slane %v9967_v61, 1  ;;  %v3259_v39 = vmul.f32 0.7978846, %v3195_v7  ;;  %v3005_v32 = vmul.f32 %v9971_v56, %v9971_v56  ;;  %v4135_v43 = vsel %vm4078_vm2, %v4020_v21, %v4021_v31 }
 0x1ae   : > { %v3511_v33 = vrot.slane %v3447_v36, 1  ;;  %8296 = vtanh.f32 %v3260_v34  ;;  %v3070_v11 = vmul.f32 %v3006_v12, %v9965_v5  ;;  %v3760_v59 = vrot.slane %v9858_v35, 6 }
 0x1af   : > { %8298 = vtanh.f32 %v3259_v39  ;;  %v3069_v29 = vmul.f32 %v3005_v32, %v9971_v56  ;;  %v4134_v60 = vsel %vm4078_vm2, %v4021_v31, %v4022_v23 }
 0x1b0   : > { %v8293_v62 = vpop.eup %8292  ;;  %v3134_v47 = vmul.f32 0.044715, %v3070_v11  ;;  %v3618_v45 = vsel %vm1564_vm1, %v3510_v52, %v3511_v33  ;;  %v3617_v30 = vsel %vm1564_vm1, %v3511_v33, %v3512_v27  ;;  %v4150_v34 = vsel %vm3957_vm8, 0.0, %v4134_v60  ;;  %4539 = vrot.lane.b32.xlu0 %v4135_v43, %s8595_s8 }
 0x1b1   : > { %v8295_v9 = vpop.eup %8294  ;;  %v3386_v44 = vadd.f32 1.0, %v8293_v62  ;;  %v3133_v7 = vmul.f32 0.044715, %v3069_v29  ;;  %v7980_v21 = vpop.f32.mrb[18].mxu0  ;;  %v10000_v12 = vmax.f32 %v9918_v14, %v3618_v45  ;;  %4541 = vrot.lane.b32.xlu1 %v4150_v34, %s8595_s8  ;;  %v10008_v33 = vmax.f32 %v3447_v36, %v3617_v30 }
 0x1b2   : > { %v3385_v39 = vadd.f32 1.0, %v8295_v9  ;;  %v3198_v32 = vadd.f32 %v3134_v47, %v9965_v5  ;;  %v10006_v52 = vadd.f32 %v7980_v21, %v9663_v55  ;;  %v2696_v31 = vpop.f32.mrb[19].mxu0  ;;  %v2940_v60 = vmul.f32 0.5, %v9914_v54 }
 0x1b3   : > { %13479 = vst [vmem:[#allocation22_spill] sm:$0xff] %v10000_v12  ;;  %13480 = vst [vmem:[#allocation23_spill] sm:$0xff] %v10008_v33  ;;  %v10010_v11 = vmul.f32 %v3386_v44, %v2938_v42  ;;  %v3197_v29 = vadd.f32 %v3133_v7, %v9971_v56  ;;  %v10014_v14 = vadd.f32 %v9663_v55, %v2696_v31  ;;  %v4023_v62 = vrot.slane %v10000_v12, 2 }
 0x1b4   : > { %v3449_v47 = vmul.f32 %v3385_v39, %v2937_v24  ;;  %v3262_v45 = vmul.f32 0.7978846, %v3198_v32  ;;  %v3008_v43 = vmul.f32 %v10006_v52, %v10006_v52  ;;  %v2939_v36 = vmul.f32 0.5, %v9922_v1  ;;  %4291 = vrot.lane.b32.xlu0 %v10008_v33, %s8594_s29 }
 0x1b5   : > { %v3514_v9 = vrot.slane %v10010_v11, 1  ;;  %v3261_v42 = vmul.f32 0.7978846, %v3197_v29  ;;  %v3007_v30 = vmul.f32 %v10014_v14, %v10014_v14  ;;  %4289 = vrot.lane.b32.xlu1 %v10000_v12, %s8594_s29  ;;  %v4024_v54 = vrot.slane %v10008_v33, 2 }
 0x1b6   : > { %v3513_v44 = vrot.slane %v3449_v47, 1  ;;  %8300 = vtanh.f32 %v3262_v45  ;;  %v3072_v7 = vmul.f32 %v3008_v43, %v10006_v52  ;;  %v4133_v1 = vsel %vm4078_vm2, %v4022_v23, %v4023_v62 }
 0x1b7   : > { %8302 = vtanh.f32 %v3261_v42  ;;  %v3071_v24 = vmul.f32 %v3007_v30, %v10014_v14  ;;  %v10039_v34 = vsel %vm3821_vm7, %v3759_v58, %v3760_v59  ;;  %v4132_v32 = vsel %vm4078_vm2, %v4023_v62, %v4024_v54 }
 0x1b8   : > { %13481 = vst [vmem:[#allocation24_spill] sm:$0xff] %v10039_v34  ;;  %v8297_v21 = vpop.eup %8296  ;;  %v3136_v39 = vmul.f32 0.044715, %v3072_v7  ;;  %v3616_v31 = vsel %vm1564_vm1, %v3512_v27, %v3513_v44  ;;  %v3615_v29 = vsel %vm1564_vm1, %v3513_v44, %v3514_v9  ;;  %4543 = vrot.lane.b32.xlu0 %v4133_v1, %s8595_s8  ;;  %v13376_v44 = vrot.slane %v9860_v16, 6 }
 0x1b9   : > { %v8299_v23 = vpop.eup %8298  ;;  %v3388_v45 = vadd.f32 1.0, %v8297_v21  ;;  %v3135_v43 = vmul.f32 0.044715, %v3071_v24  ;;  %v7983_v42 = vpop.f32.mrb[20].mxu0  ;;  %v10048_v63 = vmax.f32 %v9967_v61, %v3616_v31  ;;  %v10050_v58 = vmax.f32 %v3449_v47, %v3615_v29  ;;  %4545 = vrot.lane.b32.xlu1 %v4132_v32, %s8595_s8 }
 0x1ba   : > { %v3387_v30 = vadd.f32 1.0, %v8299_v23  ;;  %v3200_v7 = vadd.f32 %v3136_v39, %v10006_v52  ;;  %v10056_v27 = vadd.f32 %v7983_v42, %v9663_v55  ;;  %v2706_v62 = vpop.f32.mrb[21].mxu0  ;;  %v2942_v29 = vmul.f32 0.5, %v9965_v5  ;;  %v13587_v18 = vld [vmem:[#allocation23_spill] sm:$0xff] }
 0x1bb   : > { %13482 = vst [vmem:[#allocation25_spill] sm:$0xff] %v10048_v63  ;;  %13483 = vst [vmem:[#allocation26_spill] sm:$0xff] %v10050_v58  ;;  %v10059_v24 = vmul.f32 %v3388_v45, %v2940_v60  ;;  %v3199_v61 = vadd.f32 %v3135_v43, %v10014_v14  ;;  %v10063_v47 = vadd.f32 %v9663_v55, %v2706_v62  ;;  %v4025_v21 = vrot.slane %v10048_v63, 2 }
 0x1bc   : > { %v3451_v39 = vmul.f32 %v3387_v30, %v2939_v36  ;;  %v3264_v31 = vmul.f32 0.7978846, %v3200_v7  ;;  %v3010_v1 = vmul.f32 %v10056_v27, %v10056_v27  ;;  %4295 = vrot.lane.b32.xlu0 %v10050_v58, %s8594_s29  ;;  %v4026_v36 = vrot.slane %v10050_v58, 2 }
 0x1bd   : > { %v3516_v32 = vrot.slane %v10059_v24, 1  ;;  %v3263_v23 = vmul.f32 0.7978846, %v3199_v61  ;;  %v3009_v60 = vmul.f32 %v10063_v47, %v10063_v47  ;;  %4293 = vrot.lane.b32.xlu1 %v10048_v63, %s8594_s29  ;;  %v4131_v5 = vsel %vm4078_vm2, %v4024_v54, %v4025_v21 }
 0x1be   : > { %v3515_v45 = vrot.slane %v3451_v39, 1  ;;  %8304 = vtanh.f32 %v3264_v31  ;;  %v3074_v43 = vmul.f32 %v3010_v1, %v10056_v27  ;;  %v10087_v30 = vsel %vm3821_vm7, %v3760_v59, %v13376_v44 }
 0x1bf   : > { %8306 = vtanh.f32 %v3263_v23  ;;  %v3073_v42 = vmul.f32 %v3009_v60, %v10063_v47  ;;  %13484 = vst [vmem:[#allocation27_spill] sm:$0xff] %v10087_v30  ;;  %v4130_v61 = vsel %vm4078_vm2, %v4025_v21, %v4026_v36 }
 0x1c0   : > { %v8301_v7 = vpop.eup %8300  ;;  %v3138_v62 = vmul.f32 0.044715, %v3074_v43  ;;  %v3614_v31 = vsel %vm1564_vm1, %v3514_v9, %v3515_v45  ;;  %v3613_v1 = vsel %vm1564_vm1, %v3515_v45, %v3516_v32  ;;  %v2941_v43 = vmul.f32 0.5, %v9971_v56  ;;  %4547 = vrot.lane.b32.xlu0 %v4131_v5, %s8595_s8 }
 0x1c1   : > { %v8303_v54 = vpop.eup %8302  ;;  %v3390_v23 = vadd.f32 1.0, %v8301_v7  ;;  %v3137_v60 = vmul.f32 0.044715, %v3073_v42  ;;  %v7986_v20 = vpop.f32.mrb[22].mxu0  ;;  %v10096_v35 = vmax.f32 %v10010_v11, %v3614_v31  ;;  %v10098_v59 = vmax.f32 %v3451_v39, %v3613_v1  ;;  %4549 = vrot.lane.b32.xlu1 %v4130_v61, %s8595_s8 }
 0x1c2   : > { %v3389_v10 = vadd.f32 1.0, %v8303_v54  ;;  %v3202_v21 = vadd.f32 %v3138_v62, %v10056_v27  ;;  %v10105_v9 = vadd.f32 %v7986_v20, %v9663_v55  ;;  %v2716_v45 = vpop.f32.mrb[23].mxu0  ;;  %v2944_v62 = vmul.f32 0.5, %v10006_v52 }
 0x1c3   : > { %13485 = vst [vmem:[#allocation28_spill] sm:$0xff] %v10096_v35  ;;  %13486 = vst [vmem:[#allocation29_spill] sm:$0xff] %v10098_v59  ;;  %v10107_v42 = vmul.f32 %v3390_v23, %v2942_v29  ;;  %v3201_v11 = vadd.f32 %v3137_v60, %v10063_v47  ;;  %v10111_v39 = vadd.f32 %v9663_v55, %v2716_v45  ;;  %v4027_v56 = vrot.slane %v10096_v35, 2 }
 0x1c4   : > { %v3453_v7 = vmul.f32 %v3389_v10, %v2941_v43  ;;  %v3266_v31 = vmul.f32 0.7978846, %v3202_v21  ;;  %v3012_v5 = vmul.f32 %v10105_v9, %v10105_v9  ;;  %v2943_v61 = vmul.f32 0.5, %v10014_v14  ;;  %4299 = vrot.lane.b32.xlu0 %v10098_v59, %s8594_s29 }
 0x1c5   : > { %v3518_v20 = vrot.slane %v10107_v42, 1  ;;  %v3265_v29 = vmul.f32 0.7978846, %v3201_v11  ;;  %v3011_v1 = vmul.f32 %v10111_v39, %v10111_v39  ;;  %4297 = vrot.lane.b32.xlu1 %v10096_v35, %s8594_s29  ;;  %v4028_v10 = vrot.slane %v10098_v59, 2 }
 0x1c6   : > { %v3517_v54 = vrot.slane %v3453_v7, 1  ;;  %8308 = vtanh.f32 %v3266_v31  ;;  %v3076_v23 = vmul.f32 %v3012_v5, %v10105_v9  ;;  %v4129_v14 = vsel %vm4078_vm2, %v4026_v36, %v4027_v56 }
 0x1c7   : > { %8310 = vtanh.f32 %v3265_v29  ;;  %v3075_v52 = vmul.f32 %v3011_v1, %v10111_v39  ;;  %v4128_v45 = vsel %vm4078_vm2, %v4027_v56, %v4028_v10 }
 0x1c8   : > { %v8305_v43 = vpop.eup %8304  ;;  %v3140_v21 = vmul.f32 0.044715, %v3076_v23  ;;  %v3612_v11 = vsel %vm1564_vm1, %v3516_v32, %v3517_v54  ;;  %v3611_v31 = vsel %vm1564_vm1, %v3517_v54, %v3518_v20  ;;  %4551 = vrot.lane.b32.xlu0 %v4129_v14, %s8595_s8  ;;  %v13488_v54 = vrot.slane %v9907_v53, 6 }
 0x1c9   : > { %v8307_v5 = vpop.eup %8306  ;;  %v3392_v29 = vadd.f32 1.0, %v8305_v43  ;;  %v3139_v6 = vmul.f32 0.044715, %v3075_v52  ;;  %v7989_v1 = vpop.f32.mrb[24].mxu0  ;;  %v10139_v44 = vmax.f32 %v10059_v24, %v3612_v11  ;;  %v10141_v36 = vmax.f32 %v3453_v7, %v3611_v31  ;;  %4553 = vrot.lane.b32.xlu1 %v4128_v45, %s8595_s8 }
 0x1ca   : > { %v3391_v60 = vadd.f32 1.0, %v8307_v5  ;;  %v3204_v23 = vadd.f32 %v3140_v21, %v10105_v9  ;;  %v10147_v32 = vadd.f32 %v7989_v1, %v9663_v55  ;;  %v2726_v56 = vpop.f32.mrb[25].mxu0  ;;  %v13489_v52 = vrot.slane %v9860_v16, 6 }
 0x1cb   : > { %13487 = vst [vmem:[#allocation30_spill] sm:$0xff] %v10139_v44  ;;  %v10157_v7 = vmul.f32 %v3392_v29, %v2944_v62  ;;  %v3203_v43 = vadd.f32 %v3139_v6, %v10111_v39  ;;  %v10161_v21 = vadd.f32 %v9663_v55, %v2726_v56  ;;  %v4029_v14 = vrot.slane %v10139_v44, 2 }
 0x1cc   : > { %v10155_v24 = vsel %vm3821_vm7, %v13489_v52, %v13488_v54  ;;  %v3455_v45 = vmul.f32 %v3391_v60, %v2943_v61  ;;  %v2946_v11 = vmul.f32 0.5, %v10056_v27  ;;  %v3268_v31 = vmul.f32 0.7978846, %v3204_v23  ;;  %4303 = vrot.lane.b32.xlu0 %v10141_v36, %s8594_s29 }
 0x1cd   : > { %13490 = vst [vmem:[#allocation31_spill] sm:$0xff] %v10155_v24  ;;  %v3014_v16 = vmul.f32 %v10147_v32, %v10147_v32  ;;  %v3520_v5 = vrot.slane %v10157_v7, 1  ;;  %v2945_v1 = vmul.f32 0.5, %v10063_v47  ;;  %v3267_v62 = vmul.f32 0.7978846, %v3203_v43  ;;  %4301 = vrot.lane.b32.xlu1 %v10139_v44, %s8594_s29 }
 0x1ce   : > { %v3013_v6 = vmul.f32 %v10161_v21, %v10161_v21  ;;  %v3519_v29 = vrot.slane %v3455_v45, 1  ;;  %8312 = vtanh.f32 %v3268_v31  ;;  %v4030_v27 = vrot.slane %v10141_v36, 2 }
 0x1cf   : > { %v3078_v56 = vmul.f32 %v3014_v16, %v10147_v32  ;;  %8314 = vtanh.f32 %v3267_v62  ;;  %v4127_v47 = vsel %vm4078_vm2, %v4028_v10, %v4029_v14 }
 0x1d0   : > { %v3077_v61 = vmul.f32 %v3013_v6, %v10161_v21  ;;  %v8309_v23 = vpop.eup %8308  ;;  %v4126_v52 = vsel %vm4078_vm2, %v4029_v14, %v4030_v27  ;;  %v3610_v43 = vsel %vm1564_vm1, %v3518_v20, %v3519_v29  ;;  %v3609_v31 = vsel %vm1564_vm1, %v3519_v29, %v3520_v5  ;;  %4555 = vrot.lane.b32.xlu0 %v4127_v47, %s8595_s8 }
 0x1d1   : > { %v3142_v54 = vmul.f32 0.044715, %v3078_v56  ;;  %v8311_v16 = vpop.eup %8310  ;;  %v3394_v62 = vadd.f32 1.0, %v8309_v23  ;;  %v4158_v6 = vsel %vm3965_vm9, 0.0, %v4126_v52  ;;  %v7992_v10 = vpop.f32.mrb[26].mxu0  ;;  %v10190_v60 = vmax.f32 %v10107_v42, %v3610_v43 }
 0x1d2   : > { %v3141_v26 = vmul.f32 0.044715, %v3077_v61  ;;  %v3393_v56 = vadd.f32 1.0, %v8311_v16  ;;  %4557 = vrot.lane.b32.xlu1 %v4158_v6, %s8595_s8  ;;  %v10196_v20 = vadd.f32 %v7992_v10, %v9663_v55  ;;  %v2736_v14 = vpop.f32.mrb[27].mxu0  ;;  %v10198_v29 = vmax.f32 %v3455_v45, %v3609_v31 }
 0x1d3   : > { %v3206_v46 = vadd.f32 %v3142_v54, %v10147_v32  ;;  %v10200_v61 = vmul.f32 %v3394_v62, %v2946_v11  ;;  %v10204_v42 = vadd.f32 %v9663_v55, %v2736_v14  ;;  %v4031_v52 = vrot.slane %v10190_v60, 2 }
 0x1d4   : > { %v3205_v23 = vadd.f32 %v3141_v26, %v10161_v21  ;;  %v3457_v54 = vmul.f32 %v3393_v56, %v2945_v1  ;;  %v2948_v43 = vmul.f32 0.5, %v10105_v9  ;;  %v3016_v47 = vmul.f32 %v10196_v20, %v10196_v20  ;;  %4307 = vrot.lane.b32.xlu0 %v10198_v29, %s8594_s29 }
 0x1d5   : > { %v3270_v16 = vmul.f32 0.7978846, %v3206_v46  ;;  %v3522_v6 = vrot.slane %v10200_v61, 1  ;;  %v2947_v45 = vmul.f32 0.5, %v10111_v39  ;;  %v3015_v26 = vmul.f32 %v10204_v42, %v10204_v42 }
 0x1d6   : > { %v3269_v11 = vmul.f32 0.7978846, %v3205_v23  ;;  %v3521_v31 = vrot.slane %v3457_v54, 1  ;;  %v3080_v55 = vmul.f32 %v3016_v47, %v10196_v20  ;;  %4305 = vrot.lane.b32.xlu1 %v10190_v60, %s8594_s29  ;;  %v4032_v46 = vrot.slane %v10198_v29, 2 }
 0x1d7   : > { %8316 = vtanh.f32 %v3270_v16  ;;  %v3079_v9 = vmul.f32 %v3015_v26, %v10204_v42  ;;  %v4125_v39 = vsel %vm4078_vm2, %v4030_v27, %v4031_v52  ;;  %v13491_v1 = vrot.slane %v9909_v3, 6 }
 0x1d8   : > { %8318 = vtanh.f32 %v3269_v11  ;;  %v13492_v62 = vrot.slane %v9907_v53, 6  ;;  %v8313_v56 = vpop.eup %8312  ;;  %v3144_v14 = vmul.f32 0.044715, %v3080_v55  ;;  %v4124_v23 = vsel %vm4078_vm2, %v4031_v52, %v4032_v46  ;;  %4559 = vrot.lane.b32.xlu0 %v4125_v39, %s8595_s8 }
 0x1d9   : > { %v3608_v16 = vsel %vm1564_vm1, %v3520_v5, %v3521_v31  ;;  %v3607_v47 = vsel %vm1564_vm1, %v3521_v31, %v3522_v6  ;;  %v8315_v27 = vpop.eup %8314  ;;  %v3396_v11 = vadd.f32 1.0, %v8313_v56  ;;  %v3143_v26 = vmul.f32 0.044715, %v3079_v9  ;;  %v7995_v28 = vpop.f32.mrb[28].mxu0  ;;  %v10248_v5 = vld [vmem:[%s13366_s2] ss:$0 sm:$0xff] }
 0x1da   : > { %v10229_v10 = vsel %vm3821_vm7, %v13492_v62, %v13491_v1  ;;  %v10238_v53 = vmax.f32 %v10157_v7, %v3608_v16  ;;  %v10240_v1 = vmax.f32 %v3457_v54, %v3607_v47  ;;  %v3395_v62 = vadd.f32 1.0, %v8315_v27  ;;  %4561 = vrot.lane.b32.xlu1 %v4124_v23, %s8595_s8  ;;  %v2746_v31 = vpop.f32.mrb[29].mxu0 }
 0x1db   : > { %13493 = vst [vmem:[#allocation32_spill] sm:$0xff] %v10229_v10  ;;  %v3208_v55 = vadd.f32 %v3144_v14, %v10196_v20  ;;  %v10251_v52 = vadd.f32 %v10248_v5, %v7995_v28  ;;  %v13387_v7 = vrot.slane %v9957_v25, 6  ;;  %v10254_v54 = vmul.f32 %v3396_v11, %v2948_v43 }
 0x1dc   : > { %v3207_v9 = vadd.f32 %v3143_v26, %v10204_v42  ;;  %v10258_v56 = vadd.f32 %v10248_v5, %v2746_v31  ;;  %v4033_v39 = vrot.slane %v10238_v53, 2  ;;  %v3459_v14 = vmul.f32 %v3395_v62, %v2947_v45  ;;  %4311 = vrot.lane.b32.xlu0 %v10240_v1, %s8594_s29 }
 0x1dd   : > { %v2950_v23 = vmul.f32 0.5, %v10147_v32  ;;  %v3272_v16 = vmul.f32 0.7978846, %v3208_v55  ;;  %v3018_v28 = vmul.f32 %v10251_v52, %v10251_v52  ;;  %v3524_v47 = vrot.slane %v10254_v54, 1 }
 0x1de   : > { %v2949_v27 = vmul.f32 0.5, %v10161_v21  ;;  %v3271_v43 = vmul.f32 0.7978846, %v3207_v9  ;;  %v3017_v11 = vmul.f32 %v10258_v56, %v10258_v56  ;;  %v3523_v26 = vrot.slane %v3459_v14, 1  ;;  %4309 = vrot.lane.b32.xlu1 %v10238_v53, %s8594_s29 }
 0x1df   : > { %8320 = vtanh.f32 %v3272_v16  ;;  %v3082_v31 = vmul.f32 %v3018_v28, %v10251_v52  ;;  %v4034_v32 = vrot.slane %v10240_v1, 2  ;;  %v4123_v21 = vsel %vm4078_vm2, %v4032_v46, %v4033_v39 }
 0x1e0   : > { %8322 = vtanh.f32 %v3271_v43  ;;  %v3081_v45 = vmul.f32 %v3017_v11, %v10258_v56  ;;  %v13494_v62 = vrot.slane %v9909_v3, 6  ;;  %v3606_v43 = vsel %vm1564_vm1, %v3522_v6, %v3523_v26  ;;  %4563 = vrot.lane.b32.xlu0 %v4123_v21, %s8595_s8 }
 0x1e1   : > { %v8317_v9 = vpop.eup %8316  ;;  %v3146_v16 = vmul.f32 0.044715, %v3082_v31  ;;  %v4122_v28 = vsel %vm4078_vm2, %v4033_v39, %v4034_v32  ;;  %v3605_v11 = vsel %vm1564_vm1, %v3523_v26, %v3524_v47  ;;  %v7998_v37 = vpop.f32.mrb[30].mxu0  ;;  %v10292_v3 = vmax.f32 %v10200_v61, %v3606_v43 }
 0x1e2   : > { %v10283_v55 = vsel %vm3821_vm7, %v13494_v62, %v13387_v7  ;;  %v8319_v46 = vpop.eup %8318  ;;  %v3398_v4 = vadd.f32 1.0, %v8317_v9  ;;  %v3145_v50 = vmul.f32 0.044715, %v3081_v45  ;;  %v10294_v62 = vmax.f32 %v3459_v14, %v3605_v11  ;;  %4565 = vrot.lane.b32.xlu1 %v4122_v28, %s8595_s8  ;;  %v2756_v39 = vpop.f32.mrb[31].mxu0  ;;  %v13592_v40 = vld [vmem:[#allocation32_spill] sm:$0xff] }
 0x1e3   : > { %13495 = vst [vmem:[#allocation33_spill] sm:$0xff] %v10283_v55  ;;  %v3397_v7 = vadd.f32 1.0, %v8319_v46  ;;  %v3210_v31 = vadd.f32 %v3146_v16, %v10251_v52  ;;  %v2762_v6 = vadd.f32 %v10248_v5, %v7998_v37  ;;  %v13390_v26 = vrot.slane %v9959_v57, 6 }
 0x1e4   : > { %v10301_v9 = vmul.f32 %v3398_v4, %v2950_v23  ;;  %v3209_v45 = vadd.f32 %v3145_v50, %v10258_v56  ;;  %v10305_v61 = vadd.f32 %v10248_v5, %v2756_v39  ;;  %v4035_v14 = vrot.slane %v10292_v3, 2  ;;  %4315 = vrot.lane.b32.xlu0 %v10294_v62, %s8594_s29 }
 0x1e5   : > { %v3461_v43 = vmul.f32 %v3397_v7, %v2949_v27  ;;  %v3274_v16 = vmul.f32 0.7978846, %v3210_v31  ;;  %v3020_v11 = vmul.f32 %v2762_v6, %v2762_v6  ;;  %v2952_v21 = vmul.f32 0.5, %v10196_v20 }
 0x1e6   : > { %v3526_v28 = vrot.slane %v10301_v9, 1  ;;  %v3273_v37 = vmul.f32 0.7978846, %v3209_v45  ;;  %v3019_v46 = vmul.f32 %v10305_v61, %v10305_v61  ;;  %4313 = vrot.lane.b32.xlu1 %v10292_v3, %s8594_s29  ;;  %v4036_v50 = vrot.slane %v10294_v62, 2 }
 0x1e7   : > { %v3525_v4 = vrot.slane %v3461_v43, 1  ;;  %8324 = vtanh.f32 %v3274_v16  ;;  %v3084_v23 = vmul.f32 %v3020_v11, %v2762_v6  ;;  %v4121_v7 = vsel %vm4078_vm2, %v4034_v32, %v4035_v14 }
 0x1e8   : > { %8326 = vtanh.f32 %v3273_v37  ;;  %v3083_v20 = vmul.f32 %v3019_v46, %v10305_v61  ;;  %v13496_v27 = vrot.slane %v9957_v25, 6  ;;  %v4120_v16 = vsel %vm4078_vm2, %v4035_v14, %v4036_v50  ;;  %4567 = vrot.lane.b32.xlu0 %v4121_v7, %s8595_s8 }
 0x1e9   : > { %v8321_v39 = vpop.eup %8320  ;;  %v3148_v45 = vmul.f32 0.044715, %v3084_v23  ;;  %v3604_v11 = vsel %vm1564_vm1, %v3524_v47, %v3525_v4  ;;  %v3603_v37 = vsel %vm1564_vm1, %v3525_v4, %v3526_v28  ;;  %v8001_v35 = vpop.f32.mrb[32].mxu0  ;;  %v2951_v23 = vmul.f32 0.5, %v10204_v42 }
 0x1ea   : > { %v10327_v31 = vsel %vm3821_vm7, %v13496_v27, %v13390_v26  ;;  %v8323_v32 = vpop.eup %8322  ;;  %v3400_v46 = vadd.f32 1.0, %v8321_v39  ;;  %v3147_v59 = vmul.f32 0.044715, %v3083_v20  ;;  %v10336_v25 = vmax.f32 %v10254_v54, %v3604_v11  ;;  %4569 = vrot.lane.b32.xlu1 %v4120_v16, %s8595_s8  ;;  %v2766_v14 = vpop.f32.mrb[33].mxu0 }
 0x1eb   : > { %13497 = vst [vmem:[#allocation34_spill] sm:$0xff] %v10327_v31  ;;  %v10338_v27 = vmax.f32 %v3461_v43, %v3603_v37  ;;  %v3399_v26 = vadd.f32 1.0, %v8323_v32  ;;  %v3212_v58 = vadd.f32 %v3148_v45, %v2762_v6  ;;  %v10344_v47 = vadd.f32 %v10248_v5, %v8001_v35 }
 0x1ec   : > { %v10346_v4 = vmul.f32 %v3400_v46, %v2952_v21  ;;  %v3211_v20 = vadd.f32 %v3147_v59, %v10305_v61  ;;  %v10350_v54 = vadd.f32 %v10248_v5, %v2766_v14  ;;  %v4037_v43 = vrot.slane %v10336_v25, 2 }
 0x1ed   : > { %v3463_v42 = vmul.f32 %v3399_v26, %v2951_v23  ;;  %v2954_v39 = vmul.f32 0.5, %v10251_v52  ;;  %v3276_v45 = vmul.f32 0.7978846, %v3212_v58  ;;  %v3022_v7 = vmul.f32 %v10344_v47, %v10344_v47  ;;  %4319 = vrot.lane.b32.xlu0 %v10338_v27, %s8594_s29 }
 0x1ee   : > { %v3528_v35 = vrot.slane %v10346_v4, 1  ;;  %v2953_v16 = vmul.f32 0.5, %v10258_v56  ;;  %v3275_v21 = vmul.f32 0.7978846, %v3211_v20  ;;  %v3021_v59 = vmul.f32 %v10350_v54, %v10350_v54  ;;  %4317 = vrot.lane.b32.xlu1 %v10336_v25, %s8594_s29 }
 0x1ef   : > { %v3527_v11 = vrot.slane %v3463_v42, 1  ;;  %8328 = vtanh.f32 %v3276_v45  ;;  %v3086_v37 = vmul.f32 %v3022_v7, %v10344_v47  ;;  %v4038_v58 = vrot.slane %v10338_v27, 2 }
 0x1f0   : > { %v2956_v52 = vmul.f32 0.5, %v2762_v6  ;;  %8330 = vtanh.f32 %v3275_v21  ;;  %v3085_v56 = vmul.f32 %v3021_v59, %v10350_v54  ;;  %v4119_v26 = vsel %vm4078_vm2, %v4036_v50, %v4037_v43  ;;  %v8004_v14 = vpop.f32.mrb[34].mxu0 }
 0x1f1   : > { %v8325_v32 = vpop.eup %8324  ;;  %v3150_v46 = vmul.f32 0.044715, %v3086_v37  ;;  %v4118_v23 = vsel %vm4078_vm2, %v4037_v43, %v4038_v58  ;;  %v3602_v20 = vsel %vm1564_vm1, %v3526_v28, %v3527_v11  ;;  %v3601_v45 = vsel %vm1564_vm1, %v3527_v11, %v3528_v35  ;;  %v2776_v37 = vpop.f32.mrb[35].mxu0  ;;  %4571 = vrot.lane.b32.xlu0 %v4119_v26, %s8595_s8 }
 0x1f2   : > { %v8327_v7 = vpop.eup %8326  ;;  %v3402_v6 = vadd.f32 1.0, %v8325_v32  ;;  %v3149_v21 = vmul.f32 0.044715, %v3085_v56  ;;  %v4166_v59 = vsel %vm3973_vm11, 0.0, %v4118_v23  ;;  %v10378_v50 = vadd.f32 %v10248_v5, %v8004_v14 }
 0x1f3   : > { %v3401_v63 = vadd.f32 1.0, %v8327_v7  ;;  %v3214_v43 = vadd.f32 %v3150_v46, %v10344_v47  ;;  %4573 = vrot.lane.b32.xlu1 %v4166_v59, %s8595_s8  ;;  %v10384_v28 = vadd.f32 %v10248_v5, %v2776_v37  ;;  %v10387_v11 = vmax.f32 %v10301_v9, %v3602_v20 }
 0x1f4   : > { %v10389_v56 = vmul.f32 %v3402_v6, %v2954_v39  ;;  %v3213_v32 = vadd.f32 %v3149_v21, %v10350_v54  ;;  %v3024_v23 = vmul.f32 %v10378_v50, %v10378_v50  ;;  %v13394_v14 = vrot.slane %v10000_v12, 6 }
 0x1f5   : > { %v3465_v46 = vmul.f32 %v3401_v63, %v2953_v16  ;;  %v2955_v7 = vmul.f32 0.5, %v10305_v61  ;;  %v3278_v59 = vmul.f32 0.7978846, %v3214_v43  ;;  %v3023_v26 = vmul.f32 %v10384_v28, %v10384_v28 }
 0x1f6   : > { %v3530_v37 = vrot.slane %v10389_v56, 1  ;;  %v3277_v9 = vmul.f32 0.7978846, %v3213_v32  ;;  %v3088_v39 = vmul.f32 %v3024_v23, %v10378_v50  ;;  %v10400_v20 = vmax.f32 %v3463_v42, %v3601_v45 }
 0x1f7   : > { %v3529_v6 = vrot.slane %v3465_v46, 1  ;;  %8332 = vtanh.f32 %v3278_v59  ;;  %v3087_v21 = vmul.f32 %v3023_v26, %v10384_v28  ;;  %4321 = vrot.lane.b32.xlu1 %v10387_v11, %s8594_s29  ;;  %v4039_v63 = vrot.slane %v10387_v11, 2 }
 0x1f8   : > { %8334 = vtanh.f32 %v3277_v9  ;;  %v3152_v61 = vmul.f32 0.044715, %v3088_v39  ;;  %4323 = vrot.lane.b32.xlu0 %v10400_v20, %s8594_s29  ;;  %v4040_v16 = vrot.slane %v10400_v20, 2  ;;  %v13498_v42 = vrot.slane %v9959_v57, 6  ;;  %v8007_v59 = vpop.f32.mrb[36].mxu0 }
 0x1f9   : > { %v8329_v43 = vpop.eup %8328  ;;  %v3151_v32 = vmul.f32 0.044715, %v3087_v21  ;;  %v4117_v23 = vsel %vm4078_vm2, %v4038_v58, %v4039_v63  ;;  %v3600_v26 = vsel %vm1564_vm1, %v3528_v35, %v3529_v6  ;;  %v3599_v9 = vsel %vm1564_vm1, %v3529_v6, %v3530_v37  ;;  %v2786_v21 = vpop.f32.mrb[37].mxu0 }
 0x1fa   : > { %v10415_v45 = vsel %vm3821_vm7, %v13498_v42, %v13394_v14  ;;  %v8331_v39 = vpop.eup %8330  ;;  %v3404_v13 = vadd.f32 1.0, %v8329_v43  ;;  %v3216_v57 = vadd.f32 %v3152_v61, %v10378_v50  ;;  %v4116_v42 = vsel %vm4078_vm2, %v4039_v63, %v4040_v16 }
 0x1fb   : > { %13499 = vst [vmem:[#allocation35_spill] sm:$0xff] %v10415_v45  ;;  %v10427_v14 = vadd.f32 %v10248_v5, %v8007_v59  ;;  %v3403_v45 = vadd.f32 1.0, %v8331_v39  ;;  %v3215_v58 = vadd.f32 %v3151_v32, %v10384_v28  ;;  %4577 = vrot.lane.b32.xlu1 %v4116_v42, %s8595_s8  ;;  %v10432_v35 = vadd.f32 %v10248_v5, %v2786_v21 }
 0x1fc   : > { %v10435_v6 = vmax.f32 %v10346_v4, %v3600_v26  ;;  %v10437_v43 = vmul.f32 %v3404_v13, %v2956_v52  ;;  %v3280_v61 = vmul.f32 0.7978846, %v3216_v57  ;;  %4575 = vrot.lane.b32.xlu0 %v4117_v23, %s8595_s8  ;;  %v10446_v4 = vmax.f32 %v3465_v46, %v3599_v9 }
 0x1fd   : > { %v3026_v63 = vmul.f32 %v10427_v14, %v10427_v14  ;;  %v3467_v59 = vmul.f32 %v3403_v45, %v2955_v7  ;;  %v3279_v39 = vmul.f32 0.7978846, %v3215_v58  ;;  %v3025_v32 = vmul.f32 %v10432_v35, %v10432_v35 }
 0x1fe   : > { %v3532_v42 = vrot.slane %v10437_v43, 1  ;;  %8336 = vtanh.f32 %v3280_v61  ;;  %v4041_v7 = vrot.slane %v10435_v6, 2  ;;  %v2958_v45 = vmul.f32 0.5, %v10344_v47 }
 0x1ff   : > { %v3090_v21 = vmul.f32 %v3026_v63, %v10427_v14  ;;  %v3531_v13 = vrot.slane %v3467_v59, 1  ;;  %8338 = vtanh.f32 %v3279_v39  ;;  %v3089_v52 = vmul.f32 %v3025_v32, %v10432_v35  ;;  %4325 = vrot.lane.b32.xlu1 %v10435_v6, %s8594_s29 }
 0x200   : > { %v2957_v23 = vmul.f32 0.5, %v10350_v54  ;;  %4327 = vrot.lane.b32.xlu0 %v10446_v4, %s8594_s29  ;;  %v4042_v46 = vrot.slane %v10446_v4, 2  ;;  %v4115_v58 = vsel %vm4078_vm2, %v4040_v16, %v4041_v7  ;;  %v8010_v61 = vpop.f32.mrb[38].mxu0 }
 0x201   : > { %v3154_v26 = vmul.f32 0.044715, %v3090_v21  ;;  %v8333_v9 = vpop.eup %8332  ;;  %v3153_v57 = vmul.f32 0.044715, %v3089_v52  ;;  %v3598_v63 = vsel %vm1564_vm1, %v3530_v37, %v3531_v13  ;;  %v3597_v47 = vsel %vm1564_vm1, %v3531_v13, %v3532_v42  ;;  %v2796_v52 = vpop.f32.mrb[39].mxu0 }
 0x202   : > { %v8335_v39 = vpop.eup %8334  ;;  %v3406_v54 = vadd.f32 1.0, %v8333_v9  ;;  %v4114_v21 = vsel %vm4078_vm2, %v4041_v7, %v4042_v46  ;;  %v10467_v12 = vadd.f32 %v10248_v5, %v8010_v61  ;;  %v10472_v37 = vadd.f32 %v10248_v5, %v2796_v52  ;;  %v10482_v55 = vpop.permute.xlu0 %4271 }
 0x203   : > { %v3218_v32 = vadd.f32 %v3154_v26, %v10427_v14  ;;  %v3405_v41 = vadd.f32 1.0, %v8335_v39  ;;  %v3217_v16 = vadd.f32 %v3153_v57, %v10432_v35  ;;  %4581 = vrot.lane.b32.xlu1 %v4114_v21, %s8595_s8  ;;  %v10475_v13 = vmax.f32 %v10389_v56, %v3598_v63 }
 0x204   : > { %v10477_v9 = vmul.f32 %v3406_v54, %v2958_v45  ;;  %4579 = vrot.lane.b32.xlu0 %v4115_v58, %s8595_s8  ;;  %v3028_v7 = vmul.f32 %v10467_v12, %v10467_v12  ;;  %v3027_v57 = vmul.f32 %v10472_v37, %v10472_v37  ;;  %v10488_v45 = vmax.f32 %v3467_v59, %v3597_v47 }
 0x205   : > { %v3282_v26 = vmul.f32 0.7978846, %v3218_v32  ;;  %v3469_v61 = vmul.f32 %v3405_v41, %v2957_v23  ;;  %v3281_v39 = vmul.f32 0.7978846, %v3217_v16  ;;  %v10490_v63 = vpop.permute.xlu1 %4273  ;;  %v2960_v23 = vmul.f32 0.5, %v10378_v50 }
 0x206   : > { %v3534_v21 = vrot.slane %v10477_v9, 1  ;;  %v3092_v56 = vmul.f32 %v3028_v7, %v10467_v12  ;;  %13500 = vst [vmem:[#allocation36_spill] sm:$0xff] %v10488_v45  ;;  %v3091_v54 = vmul.f32 %v3027_v57, %v10472_v37  ;;  %v4043_v52 = vrot.slane %v10475_v13, 2  ;;  %v10500_v7 = vpop.permute.xlu0 %4275 }
 0x207   : > { %8340 = vtanh.f32 %v3282_v26  ;;  %v3533_v58 = vrot.slane %v3469_v61, 1  ;;  %4329 = vrot.lane.b32.xlu1 %v10475_v13, %s8594_s29  ;;  %v4044_v59 = vrot.slane %v10488_v45, 2  ;;  %13501 = vst [vmem:[#allocation37_spill] sm:$0xff] %v10500_v7 }
 0x208   : > { %8342 = vtanh.f32 %v3281_v39  ;;  %v8337_v41 = vpop.eup %8336  ;;  %v3156_v32 = vmul.f32 0.044715, %v3092_v56  ;;  %4331 = vrot.lane.b32.xlu0 %v10488_v45, %s8594_s29  ;;  %v3155_v26 = vmul.f32 0.044715, %v3091_v54  ;;  %v8013_v39 = vpop.f32.mrb[40].mxu0  ;;  %v2959_v56 = vmul.f32 0.5, %v10384_v28 }
 0x209   : > { %v8339_v47 = vpop.eup %8338  ;;  %v3408_v16 = vadd.f32 1.0, %v8337_v41  ;;  %v3596_v57 = vsel %vm1564_vm1, %v3532_v42, %v3533_v58  ;;  %v3595_v50 = vsel %vm1564_vm1, %v3533_v58, %v3534_v21  ;;  %v4112_v45 = vsel %vm4078_vm2, %v4043_v52, %v4044_v59  ;;  %v2806_v33 = vpop.f32.mrb[41].mxu0 }
 0x20a   : > { %v3407_v10 = vadd.f32 1.0, %v8339_v47  ;;  %v3220_v24 = vadd.f32 %v3156_v32, %v10467_v12  ;;  %v3219_v54 = vadd.f32 %v3155_v26, %v10472_v37  ;;  %v4113_v42 = vsel %vm4078_vm2, %v4042_v46, %v4043_v52  ;;  %v10520_v32 = vpop.permute.xlu1 %4529  ;;  %v10531_v52 = vpop.permute.xlu0 %4527 }
 0x20b   : > { %v10510_v41 = vmul.f32 %v3408_v16, %v2960_v23  ;;  %4585 = vrot.lane.b32.xlu1 %v4112_v45, %s8595_s8  ;;  %v10517_v58 = vadd.f32 %v10248_v5, %v8013_v39  ;;  %13502 = vst [vmem:[#allocation38_spill] sm:$0xff] %v10520_v32  ;;  %v10523_v31 = vadd.f32 %v10248_v5, %v2806_v33 }
 0x20c   : > { %v3471_v28 = vmul.f32 %v3407_v10, %v2959_v56  ;;  %v3284_v47 = vmul.f32 0.7978846, %v3220_v24  ;;  %4583 = vrot.lane.b32.xlu0 %v4113_v42, %s8595_s8  ;;  %v10526_v23 = vmax.f32 %v10437_v43, %v3596_v57  ;;  %v3283_v16 = vmul.f32 0.7978846, %v3219_v54 }
 0x20d   : > { %v3536_v45 = vrot.slane %v10510_v41, 1  ;;  %v3030_v46 = vmul.f32 %v10517_v58, %v10517_v58  ;;  %v3029_v33 = vmul.f32 %v10523_v31, %v10523_v31  ;;  %v10538_v43 = vmax.f32 %v3469_v61, %v3595_v50 }
 0x20e   : > { %13503 = vst [vmem:[#allocation39_spill] sm:$0xff] %v10526_v23  ;;  %v3535_v10 = vrot.slane %v3471_v28, 1  ;;  %8344 = vtanh.f32 %v3284_v47  ;;  %v10540_v39 = vpop.permute.xlu1 %4277  ;;  %v4045_v57 = vrot.slane %v10526_v23, 2  ;;  %v10550_v61 = vpop.permute.xlu0 %4279 }
 0x20f   : > { %8346 = vtanh.f32 %v3283_v16  ;;  %v3094_v24 = vmul.f32 %v3030_v46, %v10517_v58  ;;  %4333 = vrot.lane.b32.xlu1 %v10526_v23, %s8594_s29  ;;  %13504 = vst [vmem:[#allocation40_spill] sm:$0xff] %v10538_v43  ;;  %13505 = vst [vmem:[#allocation41_spill] sm:$0xff] %v10540_v39  ;;  %v3093_v16 = vmul.f32 %v3029_v33, %v10523_v31  ;;  %v2961_v46 = vmul.f32 0.5, %v10432_v35 }
 0x210   : > { %v3594_v56 = vsel %vm1564_vm1, %v3534_v21, %v3535_v10  ;;  %v3593_v54 = vsel %vm1564_vm1, %v3535_v10, %v3536_v45  ;;  %4335 = vrot.lane.b32.xlu0 %v10538_v43, %s8594_s29  ;;  %13506 = vst [vmem:[#allocation42_spill] sm:$0xff] %v10550_v61  ;;  %v8016_v50 = vpop.f32.mrb[42].mxu0  ;;  %v4046_v21 = vrot.slane %v10538_v43, 2  ;;  %v4111_v10 = vsel %vm4078_vm2, %v4044_v59, %v4045_v57 }
 0x211   : > { %v8341_v26 = vpop.eup %8340  ;;  %v3158_v47 = vmul.f32 0.044715, %v3094_v24  ;;  %v2816_v30 = vpop.f32.mrb[43].mxu0  ;;  %v3157_v34 = vmul.f32 0.044715, %v3093_v16  ;;  %v10559_v39 = vadd.f32 %v10248_v5, %v8016_v50  ;;  %v10571_v59 = vmax.f32 %v10477_v9, %v3594_v56 }
 0x212   : > { %v8343_v42 = vpop.eup %8342  ;;  %v3410_v24 = vadd.f32 1.0, %v8341_v26  ;;  %v4110_v22 = vsel %vm4078_vm2, %v4045_v57, %v4046_v21  ;;  %v10565_v35 = vpop.permute.xlu1 %4533  ;;  %v2962_v26 = vmul.f32 0.5, %v10427_v14 }
 0x213   : > { %v3409_v23 = vadd.f32 1.0, %v8343_v42  ;;  %v3222_v33 = vadd.f32 %v3158_v47, %v10517_v58  ;;  %13507 = vst [vmem:[#allocation43_spill] sm:$0xff] %v10565_v35  ;;  %v10568_v42 = vadd.f32 %v10248_v5, %v2816_v30  ;;  %13508 = vst [vmem:[#allocation44_spill] sm:$0xff] %v10571_v59  ;;  %v3221_v16 = vadd.f32 %v3157_v34, %v10523_v31  ;;  %v10578_v50 = vpop.permute.xlu0 %4531 }
 0x214   : > { %4587 = vrot.lane.b32.xlu0 %v4111_v10, %s8595_s8  ;;  %13509 = vst [vmem:[#allocation45_spill] sm:$0xff] %v10578_v50  ;;  %v3032_v30 = vmul.f32 %v10559_v39, %v10559_v39  ;;  %v10584_v9 = vmul.f32 %v3410_v24, %v2962_v26 }
 0x215   : > { %v10561_v61 = vmul.f32 %v3409_v23, %v2961_v46  ;;  %v3286_v47 = vmul.f32 0.7978846, %v3222_v33  ;;  %v4174_v23 = vsel %vm3981_vm12, 0.0, %v4110_v22  ;;  %v3285_v14 = vmul.f32 0.7978846, %v3221_v16 }
 0x216   : > { %4589 = vrot.lane.b32.xlu1 %v4174_v23, %s8595_s8  ;;  %v3096_v34 = vmul.f32 %v3032_v30, %v10559_v39  ;;  %v3031_v22 = vmul.f32 %v10568_v42, %v10568_v42  ;;  %v10589_v46 = vmax.f32 %v3471_v28, %v3593_v54  ;;  %v10591_v10 = vpop.permute.xlu1 %4281  ;;  %v4047_v33 = vrot.slane %v10571_v59, 2 }
 0x217   : > { %v3537_v57 = vrot.slane %v10561_v61, 1  ;;  %8348 = vtanh.f32 %v3286_v47  ;;  %13511 = vst [vmem:[#allocation47_spill] sm:$0xff] %v10591_v10  ;;  %v10594_v17 = vpop.permute.xlu0 %4283 }
 0x218   : > { %v8345_v56 = vpop.eup %8344  ;;  %13510 = vst [vmem:[#allocation46_spill] sm:$0xff] %v10589_v46  ;;  %8350 = vtanh.f32 %v3285_v14  ;;  %13512 = vst [vmem:[#allocation48_spill] sm:$0xff] %v10594_v17  ;;  %v8019_v24 = vpop.f32.mrb[44].mxu0  ;;  %v3160_v16 = vmul.f32 0.044715, %v3096_v34  ;;  %v3095_v30 = vmul.f32 %v3031_v22, %v10568_v42  ;;  %4339 = vrot.lane.b32.xlu0 %v10589_v46, %s8594_s29  ;;  %v4048_v14 = vrot.slane %v10589_v46, 2 }
 0x219   : > { %v8347_v23 = vpop.eup %8346  ;;  %v3592_v26 = vsel %vm1564_vm1, %v3536_v45, %v3537_v57  ;;  %v3412_v47 = vadd.f32 1.0, %v8345_v56  ;;  %v2826_v28 = vpop.f32.mrb[45].mxu0  ;;  %v4109_v43 = vsel %vm4078_vm2, %v4046_v21, %v4047_v33  ;;  %v10607_v17 = vadd.f32 %v10248_v5, %v8019_v24 }
 0x21a   : > { %4337 = vrot.lane.b32.xlu1 %v10571_v59, %s8594_s29  ;;  %v3411_v54 = vadd.f32 1.0, %v8347_v23  ;;  %v3538_v45 = vrot.slane %v10584_v9, 1  ;;  %v3224_v56 = vadd.f32 %v3160_v16, %v10559_v39  ;;  %v3159_v34 = vmul.f32 0.044715, %v3095_v30  ;;  %v10611_v22 = vpop.permute.xlu1 %4537 }
 0x21b   : > { %13513 = vst [vmem:[#allocation49_spill] sm:$0xff] %v10611_v22  ;;  %v10614_v59 = vadd.f32 %v10248_v5, %v2826_v28  ;;  %v2964_v23 = vmul.f32 0.5, %v10467_v12  ;;  %v2963_v46 = vmul.f32 0.5, %v10472_v37  ;;  %v4108_v21 = vsel %vm4078_vm2, %v4047_v33, %v4048_v14  ;;  %v10622_v10 = vpop.permute.xlu0 %4535 }
 0x21c   : > { %v3034_v24 = vmul.f32 %v10607_v17, %v10607_v17  ;;  %13514 = vst [vmem:[#allocation50_spill] sm:$0xff] %v10622_v10  ;;  %v3288_v35 = vmul.f32 0.7978846, %v3224_v56  ;;  %v3223_v16 = vadd.f32 %v3159_v34, %v10568_v42  ;;  %4591 = vrot.lane.b32.xlu0 %v4109_v43, %s8595_s8  ;;  %v10633_v22 = vmax.f32 %v10510_v41, %v3592_v26 }
 0x21d   : > { %v10627_v30 = vmul.f32 %v3412_v47, %v2964_v23  ;;  %v3475_v12 = vmul.f32 %v3411_v54, %v2963_v46  ;;  %v3033_v33 = vmul.f32 %v10614_v59, %v10614_v59  ;;  %v3591_v56 = vsel %vm1564_vm1, %v3537_v57, %v3538_v45 }
 0x21e   : > { %4593 = vrot.lane.b32.xlu1 %v4108_v21, %s8595_s8  ;;  %v3098_v37 = vmul.f32 %v3034_v24, %v10607_v17  ;;  %8352 = vtanh.f32 %v3288_v35  ;;  %v3287_v28 = vmul.f32 0.7978846, %v3223_v16  ;;  %13515 = vst [vmem:[#allocation51_spill] sm:$0xff] %v10633_v22  ;;  %v10637_v34 = vpop.permute.xlu1 %4285  ;;  %v10641_v46 = vmax.f32 %v10561_v61, %v3591_v56 }
 0x21f   : > { %13516 = vst [vmem:[#allocation52_spill] sm:$0xff] %v10637_v34  ;;  %v3097_v47 = vmul.f32 %v3033_v33, %v10614_v59  ;;  %v10643_v54 = vpop.permute.xlu0 %4287  ;;  %v2966_v35 = vmul.f32 0.5, %v10517_v58  ;;  %v4049_v41 = vrot.slane %v10633_v22, 2  ;;  %v3540_v58 = vrot.slane %v10627_v30, 1 }
 0x220   : > { %v3162_v43 = vmul.f32 0.044715, %v3098_v37  ;;  %13517 = vst [vmem:[#allocation53_spill] sm:$0xff] %v10641_v46  ;;  %13518 = vst [vmem:[#allocation54_spill] sm:$0xff] %v10643_v54  ;;  %v8022_v23 = vpop.f32.mrb[46].mxu0  ;;  %8354 = vtanh.f32 %v3287_v28  ;;  %4343 = vrot.lane.b32.xlu0 %v10641_v46, %s8594_s29  ;;  %v4050_v61 = vrot.slane %v10641_v46, 2 }
 0x221   : > { %v8349_v21 = vpop.eup %8348  ;;  %v2836_v57 = vpop.f32.mrb[47].mxu0  ;;  %v3161_v37 = vmul.f32 0.044715, %v3097_v47  ;;  %v10654_v33 = vadd.f32 %v10248_v5, %v8022_v23  ;;  %v3539_v28 = vrot.slane %v3475_v12, 1  ;;  %v4107_v56 = vsel %vm4078_vm2, %v4048_v14, %v4049_v41 }
 0x222   : > { %v3414_v24 = vadd.f32 1.0, %v8349_v21  ;;  %4341 = vrot.lane.b32.xlu1 %v10633_v22, %s8594_s29  ;;  %v8351_v26 = vpop.eup %8350  ;;  %v3226_v16 = vadd.f32 %v3162_v43, %v10607_v17  ;;  %v10660_v21 = vadd.f32 %v10248_v5, %v2836_v57  ;;  %v4106_v54 = vsel %vm4078_vm2, %v4049_v41, %v4050_v61 }
 0x223   : > { %v3413_v22 = vadd.f32 1.0, %v8351_v26  ;;  %v3225_v47 = vadd.f32 %v3161_v37, %v10614_v59  ;;  %v10665_v46 = vpop.permute.xlu1 %4541  ;;  %v10667_v23 = vpop.permute.xlu0 %4539  ;;  %v3036_v34 = vmul.f32 %v10654_v33, %v10654_v33  ;;  %v2965_v57 = vmul.f32 0.5, %v10523_v31 }
 0x224   : > { %v3290_v43 = vmul.f32 0.7978846, %v3226_v16  ;;  %13519 = vst [vmem:[#allocation55_spill] sm:$0xff] %v10665_v46  ;;  %13520 = vst [vmem:[#allocation56_spill] sm:$0xff] %v10667_v23  ;;  %v10672_v14 = vmul.f32 %v3414_v24, %v2966_v35  ;;  %4595 = vrot.lane.b32.xlu0 %v4107_v56, %s8595_s8  ;;  %v3035_v41 = vmul.f32 %v10660_v21, %v10660_v21 }
 0x225   : > { %v3289_v26 = vmul.f32 0.7978846, %v3225_v47  ;;  %v3100_v16 = vmul.f32 %v3036_v34, %v10654_v33  ;;  %v3590_v37 = vsel %vm1564_vm1, %v3538_v45, %v3539_v28  ;;  %v3477_v23 = vmul.f32 %v3413_v22, %v2965_v57 }
 0x226   : > { %4597 = vrot.lane.b32.xlu1 %v4106_v54, %s8595_s8  ;;  %8356 = vtanh.f32 %v3290_v43  ;;  %v10682_v54 = vmax.f32 %v10584_v9, %v3590_v37  ;;  %v3589_v35 = vsel %vm1564_vm1, %v3539_v28, %v3540_v58  ;;  %v3099_v47 = vmul.f32 %v3035_v41, %v10660_v21 }
 0x227   : > { %v10686_v31 = vpop.permute.xlu1 %4289  ;;  %v10688_v24 = vpop.permute.xlu0 %4291  ;;  %8358 = vtanh.f32 %v3289_v26  ;;  %v3164_v34 = vmul.f32 0.044715, %v3100_v16  ;;  %v10691_v46 = vmax.f32 %v3475_v12, %v3589_v35  ;;  %v2968_v9 = vmul.f32 0.5, %v10559_v39 }
 0x228   : > { %13521 = vst [vmem:[#allocation57_spill] sm:$0xff] %v10682_v54  ;;  %13522 = vst [vmem:[#allocation58_spill] sm:$0xff] %v10686_v31  ;;  %v8353_v56 = vpop.eup %8352  ;;  %v8025_v45 = vpop.f32.mrb[48].mxu0  ;;  %v4051_v28 = vrot.slane %v10682_v54, 2  ;;  %v3163_v12 = vmul.f32 0.044715, %v3099_v47 }
 0x229   : > { %13523 = vst [vmem:[#allocation59_spill] sm:$0xff] %v10688_v24  ;;  %13524 = vst [vmem:[#allocation60_spill] sm:$0xff] %v10691_v46  ;;  %v10699_v43 = vadd.f32 %v10248_v5, %v8025_v45  ;;  %v2846_v57 = vpop.f32.mrb[49].mxu0  ;;  %v3416_v16 = vadd.f32 1.0, %v8353_v56  ;;  %v3228_v41 = vadd.f32 %v3164_v34, %v10654_v33  ;;  %4347 = vrot.lane.b32.xlu0 %v10691_v46, %s8594_s29  ;;  %v4052_v37 = vrot.slane %v10691_v46, 2 }
 0x22a   : > { %4345 = vrot.lane.b32.xlu1 %v10682_v54, %s8594_s29  ;;  %v8355_v26 = vpop.eup %8354  ;;  %v3541_v39 = vrot.slane %v3477_v23, 1  ;;  %v4105_v22 = vsel %vm4078_vm2, %v4050_v61, %v4051_v28  ;;  %v10712_v24 = vadd.f32 %v10248_v5, %v2846_v57  ;;  %v3227_v34 = vadd.f32 %v3163_v12, %v10660_v21 }
 0x22b   : > { %v3415_v35 = vadd.f32 1.0, %v8355_v26  ;;  %v10707_v54 = vpop.permute.xlu1 %4545  ;;  %v10709_v45 = vpop.permute.xlu0 %4543  ;;  %v3292_v56 = vmul.f32 0.7978846, %v3228_v41  ;;  %v4104_v47 = vsel %vm4078_vm2, %v4051_v28, %v4052_v37  ;;  %v3038_v46 = vmul.f32 %v10699_v43, %v10699_v43 }
 0x22c   : > { %13525 = vst [vmem:[#allocation61_spill] sm:$0xff] %v10707_v54  ;;  %13526 = vst [vmem:[#allocation62_spill] sm:$0xff] %v10709_v45  ;;  %v2967_v26 = vmul.f32 0.5, %v10568_v42  ;;  %v10721_v61 = vmul.f32 %v3416_v16, %v2968_v9  ;;  %v3291_v54 = vmul.f32 0.7978846, %v3227_v34  ;;  %v3037_v41 = vmul.f32 %v10712_v24, %v10712_v24 }
 0x22d   : > { %8360 = vtanh.f32 %v3292_v56  ;;  %4599 = vrot.lane.b32.xlu0 %v4105_v22, %s8595_s8  ;;  %v3102_v57 = vmul.f32 %v3038_v46, %v10699_v43  ;;  %v3588_v28 = vsel %vm1564_vm1, %v3540_v58, %v3541_v39  ;;  %v13527_v12 = vrot.slane %v10672_v14, 1 }
 0x22e   : > { %4601 = vrot.lane.b32.xlu1 %v4104_v47, %s8595_s8  ;;  %v3479_v16 = vmul.f32 %v3415_v35, %v2967_v26  ;;  %8362 = vtanh.f32 %v3291_v54  ;;  %v10738_v46 = vmax.f32 %v10627_v30, %v3588_v28  ;;  %v3101_v31 = vmul.f32 %v3037_v41, %v10712_v24 }
 0x22f   : > { %v3587_v42 = vsel %vm1564_vm1, %v3541_v39, %v13527_v12  ;;  %v10733_v47 = vpop.permute.xlu1 %4293  ;;  %v10735_v9 = vpop.permute.xlu0 %4295  ;;  %v3166_v22 = vmul.f32 0.044715, %v3102_v57 }
 0x230   : > { %13528 = vst [vmem:[#allocation63_spill] sm:$0xff] %v10733_v47  ;;  %13529 = vst [vmem:[#allocation64_spill] sm:$0xff] %v10735_v9  ;;  %v8028_v56 = vpop.f32.mrb[50].mxu0  ;;  %v8357_v34 = vpop.eup %8356  ;;  %v10741_v58 = vmax.f32 %v3477_v23, %v3587_v42  ;;  %v3165_v54 = vmul.f32 0.044715, %v3101_v31  ;;  %v4053_v30 = vrot.slane %v10738_v46, 2 }
 0x231   : > { %13530 = vst [vmem:[#allocation65_spill] sm:$0xff] %v10738_v46  ;;  %v2856_v45 = vpop.f32.mrb[51].mxu0  ;;  %v8359_v10 = vpop.eup %8358  ;;  %v3230_v12 = vadd.f32 %v3166_v22, %v10699_v43  ;;  %v3543_v57 = vrot.slane %v3479_v16, 1  ;;  %v3418_v41 = vadd.f32 1.0, %v8357_v34  ;;  %v10757_v42 = vadd.f32 %v10248_v5, %v8028_v56 }
 0x232   : > { %13531 = vst [vmem:[#allocation66_spill] sm:$0xff] %v10741_v58  ;;  %4349 = vrot.lane.b32.xlu1 %v10738_v46, %s8594_s29  ;;  %4351 = vrot.lane.b32.xlu0 %v10741_v58, %s8594_s29  ;;  %v4054_v23 = vrot.slane %v10741_v58, 2  ;;  %v3417_v31 = vadd.f32 1.0, %v8359_v10  ;;  %v3229_v22 = vadd.f32 %v3165_v54, %v10712_v24  ;;  %v4103_v48 = vsel %vm4078_vm2, %v4052_v37, %v4053_v30 }
 0x233   : > { %v10752_v35 = vpop.permute.xlu1 %4549  ;;  %v10754_v26 = vpop.permute.xlu0 %4547  ;;  %v3294_v28 = vmul.f32 0.7978846, %v3230_v12  ;;  %v2970_v58 = vmul.f32 0.5, %v10607_v17  ;;  %v3040_v10 = vmul.f32 %v10757_v42, %v10757_v42  ;;  %v10771_v56 = vadd.f32 %v10248_v5, %v2856_v45 }
 0x234   : > { %13532 = vst [vmem:[#allocation67_spill] sm:$0xff] %v10752_v35  ;;  %13533 = vst [vmem:[#allocation68_spill] sm:$0xff] %v10754_v26  ;;  %v4102_v39 = vsel %vm4078_vm2, %v4053_v30, %v4054_v23  ;;  %v2969_v35 = vmul.f32 0.5, %v10614_v59  ;;  %v3293_v9 = vmul.f32 0.7978846, %v3229_v22  ;;  %v13536_v17 = vrot.slane %v10672_v14, 1 }
 0x235   : > { %v4182_v46 = vsel %vm3989_vm13, 0.0, %v4102_v39  ;;  %8364 = vtanh.f32 %v3294_v28  ;;  %v10785_v54 = vmul.f32 %v3418_v41, %v2970_v58  ;;  %v3104_v30 = vmul.f32 %v3040_v10, %v10757_v42 }
 0x236   : > { %4605 = vrot.lane.b32.xlu1 %v4182_v46, %s8595_s8  ;;  %4603 = vrot.lane.b32.xlu0 %v4103_v48, %s8595_s8  ;;  %v3586_v59 = vsel %vm1564_vm1, %v13536_v17, %v3543_v57  ;;  %v13537_v46 = vrot.slane %v10721_v61, 1  ;;  %v3481_v45 = vmul.f32 %v3417_v31, %v2969_v35  ;;  %8366 = vtanh.f32 %v3293_v9 }
 0x237   : > { %v10773_v34 = vpop.permute.xlu1 %4297  ;;  %v10775_v12 = vpop.permute.xlu0 %4299  ;;  %v3039_v28 = vmul.f32 %v10771_v56, %v10771_v56  ;;  %v3168_v26 = vmul.f32 0.044715, %v3104_v30  ;;  %v2972_v9 = vmul.f32 0.5, %v10654_v33 }
 0x238   : > { %13534 = vst [vmem:[#allocation69_spill] sm:$0xff] %v10773_v34  ;;  %13535 = vst [vmem:[#allocation70_spill] sm:$0xff] %v10775_v12  ;;  %v8361_v37 = vpop.eup %8360  ;;  %v3585_v48 = vsel %vm1564_vm1, %v3543_v57, %v13537_v46  ;;  %v8031_v39 = vpop.f32.mrb[52].mxu0  ;;  %v10791_v34 = vmax.f32 %v10672_v14, %v3586_v59  ;;  %v3545_v31 = vrot.slane %v3481_v45, 1 }
 0x239   : > { %v2866_v22 = vpop.f32.mrb[53].mxu0  ;;  %v8363_v12 = vpop.eup %8362  ;;  %v10793_v17 = vmax.f32 %v3479_v16, %v3585_v48  ;;  %v3420_v47 = vadd.f32 1.0, %v8361_v37  ;;  %v3103_v35 = vmul.f32 %v3039_v28, %v10771_v56  ;;  %v3232_v37 = vadd.f32 %v3168_v26, %v10757_v42 }
 0x23a   : > { %13538 = vst [vmem:[#allocation71_spill] sm:$0xff] %v10791_v34  ;;  %4353 = vrot.lane.b32.xlu1 %v10791_v34, %s8594_s29  ;;  %v4055_v14 = vrot.slane %v10791_v34, 2  ;;  %v3419_v10 = vadd.f32 1.0, %v8363_v12  ;;  %v2872_v48 = vadd.f32 %v10248_v5, %v8031_v39  ;;  %v2971_v28 = vmul.f32 0.5, %v10660_v21 }
 0x23b   : > { %13539 = vst [vmem:[#allocation72_spill] sm:$0xff] %v10793_v17  ;;  %v10795_v57 = vpop.permute.xlu1 %4553  ;;  %v10797_v58 = vpop.permute.xlu0 %4551  ;;  %4355 = vrot.lane.b32.xlu0 %v10793_v17, %s8594_s29  ;;  %v13416_v16 = vrot.slane %v10793_v17, 2  ;;  %v3167_v59 = vmul.f32 0.044715, %v3103_v35  ;;  %v10816_v30 = vmul.f32 %v3420_v47, %v2972_v9  ;;  %v3296_v41 = vmul.f32 0.7978846, %v3232_v37 }
 0x23c   : > { %13540 = vst [vmem:[#allocation73_spill] sm:$0xff] %v10795_v57  ;;  %13541 = vst [vmem:[#allocation74_spill] sm:$0xff] %v10797_v58  ;;  %v4101_v46 = vsel %vm4078_vm2, %v4054_v23, %v4055_v14  ;;  %v3042_v35 = vmul.f32 %v2872_v48, %v2872_v48  ;;  %v2867_v23 = vadd.f32 %v10248_v5, %v2866_v22  ;;  %v13543_v21 = vrot.slane %v10721_v61, 1 }
 0x23d   : > { %v4100_v33 = vsel %vm4078_vm2, %v4055_v14, %v13416_v16  ;;  %v3231_v26 = vadd.f32 %v3167_v59, %v10771_v56  ;;  %v10827_v39 = vmul.f32 %v3419_v10, %v2971_v28  ;;  %8368 = vtanh.f32 %v3296_v41 }
 0x23e   : > { %4609 = vrot.lane.b32.xlu1 %v4100_v33, %s8595_s8  ;;  %v3584_v47 = vsel %vm1564_vm1, %v13543_v21, %v3545_v31  ;;  %v13544_v9 = vrot.slane %v10785_v54, 1  ;;  %v3106_v16 = vmul.f32 %v3042_v35, %v2872_v48  ;;  %v2974_v22 = vmul.f32 0.5, %v10699_v43 }
 0x23f   : > { %v10819_v34 = vpop.permute.xlu1 %4301  ;;  %v10821_v12 = vpop.permute.xlu0 %4303  ;;  %4607 = vrot.lane.b32.xlu0 %v4101_v46, %s8595_s8  ;;  %v3295_v46 = vmul.f32 0.7978846, %v3231_v26  ;;  %v2973_v41 = vmul.f32 0.5, %v10712_v24  ;;  %v10840_v10 = vmax.f32 %v10721_v61, %v3584_v47  ;;  %v3547_v43 = vrot.slane %v10827_v39, 1 }
 0x240   : > { %13542 = vst [vmem:[#allocation75_spill] sm:$0xff] %v10819_v34  ;;  %v8034_v14 = vpop.f32.mrb[54].mxu0  ;;  %v3583_v37 = vsel %vm1564_vm1, %v3545_v31, %v13544_v9  ;;  %v8365_v33 = vpop.eup %8364  ;;  %v3041_v34 = vmul.f32 %v2867_v23, %v2867_v23  ;;  %v10849_v31 = vmul.f32 0.5, %v10757_v42  ;;  %v3170_v26 = vmul.f32 0.044715, %v3106_v16 }
 0x241   : > { %v2876_v59 = vpop.f32.mrb[55].mxu0  ;;  %v8367_v5 = vpop.eup %8366  ;;  %13545 = vst [vmem:[#allocation76_spill] sm:$0xff] %v10840_v10  ;;  %v10842_v28 = vmax.f32 %v3481_v45, %v3583_v37  ;;  %8370 = vtanh.f32 %v3295_v46  ;;  %v3422_v24 = vadd.f32 1.0, %v8365_v33  ;;  %v10854_v61 = vmul.f32 0.5, %v10771_v56  ;;  %v10867_v56 = vld [vmem:[%s13366_s2] ss:$0 sm:$0xff] }
 0x242   : > { %v3105_v35 = vmul.f32 %v3041_v34, %v2867_v23  ;;  %4357 = vrot.lane.b32.xlu1 %v10840_v10, %s8594_s29  ;;  %v3421_v42 = vadd.f32 1.0, %v8367_v5  ;;  %v3234_v45 = vadd.f32 %v3170_v26, %v2872_v48  ;;  %v3773_v16 = vrot.slane %v10141_v36, 6 }
 0x243   : > { %13546 = vst [vmem:[#allocation77_spill] sm:$0xff] %v10842_v28  ;;  %v10846_v57 = vpop.permute.xlu0 %4555  ;;  %4359 = vrot.lane.b32.xlu0 %v10842_v28, %s8594_s29  ;;  %v4057_v37 = vrot.slane %v10840_v10, 2  ;;  %v13418_v33 = vrot.slane %v10842_v28, 2  ;;  %v2882_v46 = vadd.f32 %v10867_v56, %v8034_v14  ;;  %v10872_v5 = vmul.f32 0.5, %v2872_v48 }
 0x244   : > { %v10844_v21 = vpop.permute.xlu1 %4557  ;;  %13548 = vst [vmem:[#allocation79_spill] sm:$0xff] %v10846_v57  ;;  %v3169_v47 = vmul.f32 0.044715, %v3105_v35  ;;  %v3298_v26 = vmul.f32 0.7978846, %v3234_v45  ;;  %v10874_v35 = vmul.f32 0.5, %v2867_v23  ;;  %v10876_v10 = vmul.f32 %v3422_v24, %v2974_v22 }
 0x245   : > { %13547 = vst [vmem:[#allocation78_spill] sm:$0xff] %v10844_v21  ;;  %v4098_v14 = vsel %vm4078_vm2, %v4057_v37, %v13418_v33  ;;  %v13549_v57 = vrot.slane %v10793_v17, 2  ;;  %v10887_v58 = vmul.f32 %v3421_v42, %v2973_v41  ;;  %v3044_v22 = vmul.f32 %v2882_v46, %v2882_v46 }
 0x246   : > { %v3233_v36 = vadd.f32 %v3169_v47, %v2867_v23  ;;  %8372 = vtanh.f32 %v3298_v26  ;;  %4613 = vrot.lane.b32.xlu1 %v4098_v14, %s8595_s8  ;;  %v13550_v47 = vrot.slane %v10139_v44, 6  ;;  %v2877_v17 = vadd.f32 %v10867_v56, %v2876_v59 }
 0x247   : > { %v10870_v21 = vpop.permute.xlu0 %4307  ;;  %v4099_v48 = vsel %vm4078_vm2, %v13549_v57, %v4057_v37  ;;  %v8369_v24 = vpop.eup %8368  ;;  %v13551_v57 = vrot.slane %v10785_v54, 1  ;;  %v13552_v42 = vrot.slane %v10816_v30, 1  ;;  %v3549_v38 = vrot.slane %v10887_v58, 1 }
 0x248   : > { %v4306_v9 = vpop.permute.xlu1 %4305  ;;  %v8037_v34 = vpop.f32.mrb[56].mxu0  ;;  %v3297_v23 = vmul.f32 0.7978846, %v3233_v36  ;;  %4611 = vrot.lane.b32.xlu0 %v4099_v48, %s8595_s8  ;;  %v3869_v33 = vsel %vm3821_vm7, %v13550_v47, %v3773_v16  ;;  %v3424_v14 = vadd.f32 1.0, %v8369_v24  ;;  %v3108_v48 = vmul.f32 %v3044_v22, %v2882_v46 }
 0x249   : > { %v2886_v45 = vpop.f32.mrb[57].mxu0  ;;  %v3582_v41 = vsel %vm1564_vm1, %v13551_v57, %v3547_v43  ;;  %v3581_v37 = vsel %vm1564_vm1, %v3547_v43, %v13552_v42  ;;  %v3043_v47 = vmul.f32 %v2877_v17, %v2877_v17  ;;  %v3774_v57 = vrot.slane %v10190_v60, 6 }
 0x24a   : > { %8374 = vtanh.f32 %v3297_v23  ;;  %v10905_v44 = vmax.f32 %v10785_v54, %v3582_v41  ;;  %v10909_v50 = vmax.f32 %v10827_v39, %v3581_v37  ;;  %v3902_v43 = vsel %vm3709_vm0, 0.0, %v3869_v33 }
 0x24b   : > { %v4560_v36 = vpop.permute.xlu0 %4559  ;;  %v8371_v32 = vpop.eup %8370  ;;  %v3172_v24 = vmul.f32 0.044715, %v3108_v48  ;;  %v4736_v23 = vsel %vm4719_vm14, %v3902_v43, %v10821_v12  ;;  %v10920_v22 = vmul.f32 0.5, %v2882_v46  ;;  %v3107_v39 = vmul.f32 %v3043_v47, %v2877_v17 }
 0x24c   : > { %v4562_v26 = vpop.permute.xlu1 %4561  ;;  %13553 = vst [vmem:[#allocation80_spill] sm:$0xff] %v10905_v44  ;;  %13554 = vst [vmem:[#allocation81_spill] sm:$0xff] %v10909_v50  ;;  %4361 = vrot.lane.b32.xlu1 %v10905_v44, %s8594_s29  ;;  %v4059_v54 = vrot.slane %v10905_v44, 2  ;;  %4363 = vrot.lane.b32.xlu0 %v10909_v50, %s8594_s29  ;;  %v13423_v60 = vrot.slane %v10909_v50, 2  ;;  %v10928_v33 = vmul.f32 %v3424_v14, %v10849_v31  ;;  %v3423_v37 = vadd.f32 1.0, %v8371_v32 }
 0x24d   : > { %v3236_v48 = vadd.f32 %v3172_v24, %v2882_v46  ;;  %v3868_v59 = vsel %vm3821_vm7, %v3773_v16, %v3774_v57  ;;  %v10934_v43 = vmul.f32 0.5, %v2877_v17  ;;  %v3171_v47 = vmul.f32 0.044715, %v3107_v39 }
 0x24e   : > { %v4737_v0 = vsel %vm4719_vm14, %v3868_v59, %v4306_v9  ;;  %v4096_v44 = vsel %vm4078_vm2, %v4059_v54, %v13423_v60  ;;  %v13555_v32 = vrot.slane %v10842_v28, 2  ;;  %v2892_v46 = vadd.f32 %v10867_v56, %v8037_v34 }
 0x24f   : > { %v10925_v42 = vpop.permute.xlu0 %4311  ;;  %v3300_v31 = vmul.f32 0.7978846, %v3236_v48  ;;  %v10950_v14 = vsel %vm4784_vm15, %v4737_v0, %v4562_v26  ;;  %v3235_v9 = vadd.f32 %v3171_v47, %v2877_v17  ;;  %v3775_v59 = vrot.slane %v10198_v29, 6 }
 0x250   : > { %v4310_v41 = vpop.permute.xlu1 %4309  ;;  %v10932_v12 = vpop.f32.mrb[58].mxu0  ;;  %4617 = vrot.lane.b32.xlu1 %v4096_v44, %s8595_s8  ;;  %v4097_v16 = vsel %vm4078_vm2, %v13555_v32, %v4059_v54  ;;  %13556 = vst [vmem:[#allocation82_spill] sm:$0xff] %v10950_v14  ;;  %v10955_v24 = vsel %vm4784_vm15, %v4736_v23, %v4560_v36  ;;  %v2887_v44 = vadd.f32 %v10867_v56, %v2886_v45  ;;  %v13557_v17 = vrot.slane %v10816_v30, 1 }
 0x251   : > { %v10941_v7 = vpop.f32.mrb[59].mxu0  ;;  %4615 = vrot.lane.b32.xlu0 %v4097_v16, %s8595_s8  ;;  %v8373_v60 = vpop.eup %8372  ;;  %v10960_v34 = vmul.f32 %v3423_v37, %v10854_v61  ;;  %v3046_v0 = vmul.f32 %v2892_v46, %v2892_v46  ;;  %8376 = vtanh.f32 %v3300_v31  ;;  %v3299_v36 = vmul.f32 0.7978846, %v3235_v9 }
 0x252   : > { %v3580_v29 = vsel %vm1564_vm1, %v13557_v17, %v3549_v38  ;;  %v3426_v26 = vadd.f32 1.0, %v8373_v60  ;;  %v3045_v23 = vmul.f32 %v2887_v44, %v2887_v44  ;;  %v13559_v16 = vrot.slane %v10876_v10, 1 }
 0x253   : > { %v4564_v48 = vpop.permute.xlu0 %4563  ;;  %v3110_v45 = vmul.f32 %v3046_v0, %v2892_v46  ;;  %v10967_v32 = vmax.f32 %v10816_v30, %v3580_v29  ;;  %v3776_v37 = vrot.slane %v10238_v53, 6  ;;  %8378 = vtanh.f32 %v3299_v36 }
 0x254   : > { %v4566_v39 = vpop.permute.xlu1 %4565  ;;  %v8375_v47 = vpop.eup %8374  ;;  %v3579_v61 = vsel %vm1564_vm1, %v3549_v38, %v13559_v16  ;;  %v3867_v60 = vsel %vm3821_vm7, %v3774_v57, %v3775_v59  ;;  %v3109_v31 = vmul.f32 %v3045_v23, %v2887_v44  ;;  %v3551_v30 = vrot.slane %v10960_v34, 1 }
 0x255   : > { %13558 = vst [vmem:[#allocation83_spill] sm:$0xff] %v10967_v32  ;;  %v3425_v54 = vadd.f32 1.0, %v8375_v47  ;;  %v4738_v0 = vsel %vm4719_vm14, %v3867_v60, %v10870_v21  ;;  %v3174_v29 = vmul.f32 0.044715, %v3110_v45  ;;  %4365 = vrot.lane.b32.xlu1 %v10967_v32, %s8594_s29  ;;  %v10986_v38 = vmax.f32 %v10887_v58, %v3579_v61 }
 0x256   : > { %v10991_v57 = vmul.f32 %v3426_v26, %v10872_v5  ;;  %v10993_v36 = vmul.f32 0.5, %v2892_v46  ;;  %v3173_v23 = vmul.f32 0.044715, %v3109_v31  ;;  %v3866_v47 = vsel %vm3821_vm7, %v3775_v59, %v3776_v37 }
 0x257   : > { %v10978_v17 = vpop.permute.xlu0 %4315  ;;  %13560 = vst [vmem:[#allocation84_spill] sm:$0xff] %v10986_v38  ;;  %v11000_v21 = vmul.f32 %v3425_v54, %v10874_v35  ;;  %v3238_v45 = vadd.f32 %v3174_v29, %v2892_v46  ;;  %4367 = vrot.lane.b32.xlu0 %v10986_v38, %s8594_s29  ;;  %v3777_v58 = vrot.slane %v10240_v1, 6  ;;  %v4061_v5 = vrot.slane %v10967_v32, 2 }
 0x258   : > { %v10976_v9 = vpop.permute.xlu1 %4313  ;;  %v10988_v53 = vpop.f32.mrb[60].mxu0  ;;  %v3237_v26 = vadd.f32 %v3173_v23, %v2887_v44  ;;  %v4739_v61 = vsel %vm4719_vm14, %v3866_v47, %v4310_v41  ;;  %v4062_v59 = vrot.slane %v10986_v38, 2  ;;  %v13561_v46 = vrot.slane %v10909_v50, 2 }
 0x259   : > { %v10997_v16 = vpop.f32.mrb[61].mxu0  ;;  %v3302_v35 = vmul.f32 0.7978846, %v3238_v45  ;;  %v2902_v1 = vadd.f32 %v10867_v56, %v10932_v12  ;;  %v11018_v29 = vsel %vm4784_vm15, %v4739_v61, %v4566_v39  ;;  %v11023_v47 = vsel %vm4784_vm15, %v4738_v0, %v4564_v48 }
 0x25a   : > { %v4095_v54 = vsel %vm4078_vm2, %v13561_v46, %v4061_v5  ;;  %13562 = vst [vmem:[#allocation85_spill] sm:$0xff] %v11018_v29  ;;  %v3301_v41 = vmul.f32 0.7978846, %v3237_v26  ;;  %v4094_v23 = vsel %vm4078_vm2, %v4061_v5, %v4062_v59  ;;  %13563 = vst [vmem:[#allocation86_spill] sm:$0xff] %v11023_v47  ;;  %v2897_v45 = vadd.f32 %v10867_v56, %v10941_v7 }
 0x25b   : > { %v11009_v31 = vpop.permute.xlu0 %4567  ;;  %8380 = vtanh.f32 %v3302_v35  ;;  %v11027_v8 = vmul.f32 0.5, %v2887_v44  ;;  %v4190_v46 = vsel %vm3997_vm3, 0.0, %v4094_v23  ;;  %4619 = vrot.lane.b32.xlu0 %v4095_v54, %s8595_s8  ;;  %v3048_v12 = vmul.f32 %v2902_v1, %v2902_v1  ;;  %v8377_v38 = vpop.eup %8376 }
 0x25c   : > { %v4570_v60 = vpop.permute.xlu1 %4569  ;;  %8382 = vtanh.f32 %v3301_v41  ;;  %v3865_v5 = vsel %vm3821_vm7, %v3776_v37, %v3777_v58  ;;  %4621 = vrot.lane.b32.xlu1 %v4190_v46, %s8595_s8  ;;  %v3047_v48 = vmul.f32 %v2897_v45, %v2897_v45  ;;  %v13564_v26 = vrot.slane %v10876_v10, 1 }
 0x25d   : > { %v3112_v44 = vmul.f32 %v3048_v12, %v2902_v1  ;;  %v13565_v35 = vrot.slane %v10928_v33, 1  ;;  %v3778_v37 = vrot.slane %v10292_v3, 6  ;;  %v8379_v41 = vpop.eup %8378  ;;  %v3553_v23 = vrot.slane %v11000_v21, 1 }
 0x25e   : > { %v3578_v61 = vsel %vm1564_vm1, %v13564_v26, %v3551_v30  ;;  %v3111_v46 = vmul.f32 %v3047_v48, %v2897_v45  ;;  %v3428_v26 = vadd.f32 1.0, %v8377_v38  ;;  %v4740_v50 = vsel %vm4719_vm14, %v3865_v5, %v10925_v42 }
 0x25f   : > { %v11036_v7 = vpop.permute.xlu0 %4319  ;;  %v3577_v54 = vsel %vm1564_vm1, %v3551_v30, %v13565_v35  ;;  %v11049_v39 = vmax.f32 %v10876_v10, %v3578_v61  ;;  %v11058_v28 = vmul.f32 0.5, %v2902_v1  ;;  %v3176_v30 = vmul.f32 0.044715, %v3112_v44 }
 0x260   : > { %v11034_v0 = vpop.permute.xlu1 %4317  ;;  %v11052_v12 = vmax.f32 %v10960_v34, %v3577_v54  ;;  %v11054_v32 = vpop.f32.mrb[62].mxu0  ;;  %v3427_v35 = vadd.f32 1.0, %v8379_v41  ;;  %v11062_v29 = vmul.f32 0.5, %v2897_v45  ;;  %v3175_v48 = vmul.f32 0.044715, %v3111_v46 }
 0x261   : > { %v11060_v3 = vpop.f32.mrb[63].mxu0  ;;  %4369 = vrot.lane.b32.xlu1 %v11049_v39, %s8594_s29  ;;  %v4063_v10 = vrot.slane %v11049_v39, 2  ;;  %v3240_v38 = vadd.f32 %v3176_v30, %v2902_v1  ;;  %v3864_v5 = vsel %vm3821_vm7, %v3777_v58, %v3778_v37  ;;  %v3779_v44 = vrot.slane %v10294_v62, 6 }
 0x262   : > { %4371 = vrot.lane.b32.xlu0 %v11052_v12, %s8594_s29  ;;  %v4064_v61 = vrot.slane %v11052_v12, 2  ;;  %v3239_v54 = vadd.f32 %v3175_v48, %v2897_v45  ;;  %v4741_v41 = vsel %vm4719_vm14, %v3864_v5, %v10976_v9  ;;  %v2912_v47 = vadd.f32 %v10867_v56, %v10988_v53 }
 0x263   : > { %v11071_v42 = vpop.permute.xlu0 %4571  ;;  %v4093_v46 = vsel %vm4078_vm2, %v4062_v59, %v4063_v10  ;;  %v11084_v14 = vmul.f32 %v3428_v26, %v10920_v22  ;;  %v3304_v1 = vmul.f32 0.7978846, %v3240_v38  ;;  %v11089_v62 = vsel %vm4784_vm15, %v4741_v41, %v4570_v60 }
 0x264   : > { %v4092_v58 = vsel %vm4078_vm2, %v4063_v10, %v4064_v61  ;;  %v11092_v45 = vmul.f32 %v3427_v35, %v10934_v43  ;;  %v3303_v9 = vmul.f32 0.7978846, %v3239_v54  ;;  %v3050_v59 = vmul.f32 %v2912_v47, %v2912_v47 }
 0x265   : > { %v11069_v34 = vpop.permute.xlu1 %4573  ;;  %4625 = vrot.lane.b32.xlu1 %v4092_v58, %s8595_s8  ;;  %v11098_v22 = vsel %vm4784_vm15, %v4740_v50, %v11009_v31  ;;  %v8381_v26 = vpop.eup %8380  ;;  %8384 = vtanh.f32 %v3304_v1  ;;  %v2907_v60 = vadd.f32 %v10867_v56, %v10997_v16  ;;  %v13566_v43 = vrot.slane %v10928_v33, 1 }
 0x266   : > { %4623 = vrot.lane.b32.xlu0 %v4093_v46, %s8595_s8  ;;  %v13567_v35 = vrot.slane %v10991_v57, 1  ;;  %v8383_v50 = vpop.eup %8382  ;;  %8386 = vtanh.f32 %v3303_v9  ;;  %v3863_v31 = vsel %vm3821_vm7, %v3778_v37, %v3779_v44  ;;  %v3114_v38 = vmul.f32 %v3050_v59, %v2912_v47 }
 0x267   : > { %v3576_v30 = vsel %vm1564_vm1, %v13566_v43, %v3553_v23  ;;  %v3430_v5 = vadd.f32 1.0, %v8381_v26  ;;  %v3429_v54 = vadd.f32 1.0, %v8383_v50  ;;  %v3049_v41 = vmul.f32 %v2907_v60, %v2907_v60 }
 0x268   : > { %v3575_v48 = vsel %vm1564_vm1, %v3553_v23, %v13567_v35  ;;  %v11117_v16 = vmax.f32 %v10928_v33, %v3576_v30  ;;  %v4742_v23 = vsel %vm4719_vm14, %v3863_v31, %v10978_v17  ;;  %v3178_v58 = vmul.f32 0.044715, %v3114_v38 }
 0x269   : > { %v11100_v53 = vpop.permute.xlu1 %4321  ;;  %v11120_v46 = vmax.f32 %v11000_v21, %v3575_v48  ;;  %v3780_v37 = vrot.slane %v10336_v25, 6  ;;  %v3555_v33 = vrot.slane %v11092_v45, 1  ;;  %v3113_v59 = vmul.f32 %v3049_v41, %v2907_v60 }
 0x26a   : > { %v11112_v10 = vpop.permute.xlu0 %4323  ;;  %4373 = vrot.lane.b32.xlu1 %v11117_v16, %s8594_s29  ;;  %v3781_v21 = vrot.slane %v10338_v27, 6  ;;  %v4065_v26 = vrot.slane %v11117_v16, 2  ;;  %v11137_v17 = vmul.f32 0.5, %v2912_v47  ;;  %v3242_v30 = vadd.f32 %v3178_v58, %v2912_v47 }
 0x26b   : > { %4375 = vrot.lane.b32.xlu0 %v11120_v46, %s8594_s29  ;;  %v11139_v35 = vmul.f32 0.5, %v2907_v60  ;;  %v4066_v25 = vrot.slane %v11120_v46, 2  ;;  %v11143_v48 = vmul.f32 %v3430_v5, %v10993_v36  ;;  %v11146_v50 = vmul.f32 %v3429_v54, %v11027_v8 }
 0x26c   : > { %v3177_v31 = vmul.f32 0.044715, %v3113_v59  ;;  %v3862_v27 = vsel %vm3821_vm7, %v3779_v44, %v3780_v37  ;;  %v3306_v38 = vmul.f32 0.7978846, %v3242_v30  ;;  %v4091_v58 = vsel %vm4078_vm2, %v4064_v61, %v4065_v26 }
 0x26d   : > { %v11128_v9 = vpop.permute.xlu1 %4577  ;;  %v4743_v41 = vsel %vm4719_vm14, %v3862_v27, %v11034_v0  ;;  %v4090_v47 = vsel %vm4078_vm2, %v4065_v26, %v4066_v25  ;;  %v3861_v8 = vsel %vm3821_vm7, %v3780_v37, %v3781_v21  ;;  %v11165_v0 = vadd.f32 %v10867_v56, %v11054_v32 }
 0x26e   : > { %v11135_v43 = vpop.permute.xlu0 %4575  ;;  %v3241_v36 = vadd.f32 %v3177_v31, %v2907_v60  ;;  %4629 = vrot.lane.b32.xlu1 %v4090_v47, %s8595_s8  ;;  %8388 = vtanh.f32 %v3306_v38  ;;  %v11171_v61 = vsel %vm4784_vm15, %v4743_v41, %v11069_v34  ;;  %v11175_v60 = vsel %vm4784_vm15, %v4742_v23, %v11071_v42 }
 0x26f   : > { %4627 = vrot.lane.b32.xlu0 %v4091_v58, %s8595_s8  ;;  %v11179_v5 = vadd.f32 %v10867_v56, %v11060_v3  ;;  %v8385_v54 = vpop.eup %8384  ;;  %v3052_v32 = vmul.f32 %v11165_v0, %v11165_v0  ;;  %v13568_v59 = vrot.slane %v10991_v57, 1  ;;  %v3782_v34 = vrot.slane %v10387_v11, 6 }
 0x270   : > { %v3305_v37 = vmul.f32 0.7978846, %v3241_v36  ;;  %v8387_v30 = vpop.eup %8386  ;;  %v3558_v42 = vrot.slane %v11143_v48, 1  ;;  %v3432_v23 = vadd.f32 1.0, %v8385_v54  ;;  %v13569_v41 = vrot.slane %v11084_v14, 1 }
 0x271   : > { %v11156_v1 = vpop.permute.xlu1 %4325  ;;  %v3574_v26 = vsel %vm1564_vm1, %v13568_v59, %v3555_v33  ;;  %v3051_v56 = vmul.f32 %v11179_v5, %v11179_v5  ;;  %v3431_v27 = vadd.f32 1.0, %v8387_v30  ;;  %v3116_v38 = vmul.f32 %v3052_v32, %v11165_v0 }
 0x272   : > { %v11167_v44 = vpop.permute.xlu0 %4327  ;;  %v11192_v3 = vmax.f32 %v10991_v57, %v3574_v26  ;;  %8390 = vtanh.f32 %v3305_v37  ;;  %v3573_v11 = vsel %vm1564_vm1, %v3555_v33, %v13569_v41  ;;  %v11204_v58 = vmul.f32 %v3432_v23, %v11058_v28 }
 0x273   : > { %v3910_v57 = vsel %vm3717_vm4, 0.0, %v3861_v8  ;;  %v3115_v36 = vmul.f32 %v3051_v56, %v11179_v5  ;;  %v11212_v54 = vmax.f32 %v11092_v45, %v3573_v11  ;;  %v3557_v37 = vrot.slane %v11146_v50, 1 }
 0x274   : > { %4377 = vrot.lane.b32.xlu1 %v11192_v3, %s8594_s29  ;;  %v4744_v33 = vsel %vm4719_vm14, %v3910_v57, %v11036_v7  ;;  %v3180_v32 = vmul.f32 0.044715, %v3116_v38  ;;  %v3860_v28 = vsel %vm3821_vm7, %v3781_v21, %v3782_v34  ;;  %v4067_v26 = vrot.slane %v11192_v3, 2 }
 0x275   : > { %v11194_v31 = vpop.permute.xlu1 %4581  ;;  %v3179_v59 = vmul.f32 0.044715, %v3115_v36  ;;  %4379 = vrot.lane.b32.xlu0 %v11212_v54, %s8594_s29  ;;  %v4745_v8 = vsel %vm4719_vm14, %v3860_v28, %v11100_v53  ;;  %v4068_v45 = vrot.slane %v11212_v54, 2  ;;  %v3495_v23 = vmul.f32 %v3431_v27, %v11062_v29 }
 0x276   : > { %v11201_v47 = vpop.permute.xlu0 %4579  ;;  %v3244_v7 = vadd.f32 %v3180_v32, %v11165_v0  ;;  %v3783_v56 = vrot.slane %v10400_v20, 6  ;;  %v11232_v21 = vsel %vm4784_vm15, %v4745_v8, %v11128_v9  ;;  %v3560_v53 = vrot.slane %v11204_v58, 1 }
 0x277   : > { %v3243_v41 = vadd.f32 %v3179_v59, %v11179_v5  ;;  %v4088_v11 = vsel %vm4078_vm2, %v4067_v26, %v4068_v45  ;;  %v4089_v29 = vsel %vm4078_vm2, %v4066_v25, %v4067_v26  ;;  %v11245_v20 = vsel %vm4784_vm15, %v4744_v33, %v11135_v43  ;;  %v4849_v59 = vld [vmem:[%s13367_s3] sm:$0xff] }
 0x278   : > { %v3308_v27 = vmul.f32 0.7978846, %v3244_v7  ;;  %4633 = vrot.lane.b32.xlu1 %v4088_v11, %s8595_s8  ;;  %v13570_v9 = vrot.slane %v11084_v14, 1  ;;  %v3571_v36 = vsel %vm1564_vm1, %v3557_v37, %v3558_v42  ;;  %v8389_v32 = vpop.eup %8388  ;;  %v13430_v33 = vrot.slane %v10435_v6, 6 }
 0x279   : > { %v11225_v30 = vpop.permute.xlu1 %4329  ;;  %v3307_v28 = vmul.f32 0.7978846, %v3243_v41  ;;  %4631 = vrot.lane.b32.xlu0 %v4089_v29, %s8595_s8  ;;  %v11260_v43 = vmax.f32 %v11146_v50, %v3571_v36  ;;  %v3559_v26 = vrot.slane %v3495_v23, 1  ;;  %v3434_v7 = vadd.f32 1.0, %v8389_v32  ;;  %v4851_v36 = vld [vmem:[%s13367_s3 + $0x10] sm:$0xff] }
 0x27a   : > { %v11234_v38 = vpop.permute.xlu0 %4331  ;;  %v3572_v57 = vsel %vm1564_vm1, %v13570_v9, %v3557_v37  ;;  %v4850_v37 = vld [vmem:[%s13367_s3 + $0x8] sm:$0xff]  ;;  %8392 = vtanh.f32 %v3308_v27 }
 0x27b   : > { %v11257_v25 = vmax.f32 %v11084_v14, %v3572_v57  ;;  %v3859_v14 = vsel %vm3821_vm7, %v3782_v34, %v3783_v56  ;;  %8394 = vtanh.f32 %v3307_v28  ;;  %v4070_v11 = vrot.slane %v11260_v43, 2 }
 0x27c   : > { %v8391_v29 = vpop.eup %8390  ;;  %v11279_v9 = vmul.f32 %v3434_v7, %v11137_v17  ;;  %v4746_v57 = vsel %vm4719_vm14, %v3859_v14, %v11112_v10  ;;  %v3858_v34 = vsel %vm3821_vm7, %v3783_v56, %v13430_v33  ;;  %v8186_v27 = vpack.c.bf16 %v4850_v37, %v4849_v59  ;;  %v4852_v17 = vld [vmem:[%s13367_s3 + $0x18] sm:$0xff] }
 0x27d   : > { %v11269_v8 = vpop.permute.xlu1 %4585  ;;  %v4069_v41 = vrot.slane %v11257_v25, 2  ;;  %4381 = vrot.lane.b32.xlu1 %v11257_v25, %s8594_s29  ;;  %v3433_v32 = vadd.f32 1.0, %v8391_v29  ;;  %4383 = vrot.lane.b32.xlu0 %v11260_v43, %s8594_s29  ;;  %v4747_v10 = vsel %vm4719_vm14, %v3858_v34, %v11156_v1  ;;  %v11312_v14 = vsel %vm4784_vm15, %v4746_v57, %v11201_v47  ;;  %v4853_v1 = vld [vmem:[%s13367_s3 + $0x20] sm:$0xff] }
 0x27e   : > { %v11273_v50 = vpop.permute.xlu0 %4583  ;;  %v13432_v59 = vrot.slane %v11279_v9, 1  ;;  %8187 = vmatprep.subr.bf16.mxu1 %v8186_v27  ;;  %v11308_v7 = vsel %vm4784_vm15, %v4747_v10, %v11194_v31  ;;  %v3570_v31 = vsel %vm1564_vm1, %v3558_v42, %v3559_v26  ;;  %v3569_v47 = vsel %vm1564_vm1, %v3559_v26, %v3560_v53  ;;  %v4855_v42 = vld [vmem:[%s13367_s3 + $0x30] sm:$0xff]  ;;  %v4856_v26 = vld [vmem:[%s13367_s3 + $0x38] sm:$0xff] }
 0x27f   : > { %v4086_v28 = vsel %vm4078_vm2, %v4069_v41, %v4070_v11  ;;  %v4087_v56 = vsel %vm4078_vm2, %v4068_v45, %v4069_v41  ;;  %v4854_v45 = vld [vmem:[%s13367_s3 + $0x28] sm:$0xff]  ;;  %v3497_v29 = vmul.f32 %v3433_v32, %v11139_v35  ;;  %8189 = vmatpush3.bf16.msra.mxu1 %v8186_v27  ;;  %v8190_v57 = vpack.c.bf16 %v4852_v17, %v4851_v36 }
 0x280   : > { %v4198_v37 = vsel %vm4005_vm5, 0.0, %v4086_v28  ;;  %v13431_v10 = vrot.slane %v10446_v4, 6  ;;  %v11336_v35 = vmax.f32 %v11143_v48, %v3570_v31  ;;  %v11338_v27 = vmax.f32 %v3495_v23, %v3569_v47 }
 0x281   : > { %v11320_v41 = vpop.permute.xlu1 %4333  ;;  %4637 = vrot.lane.b32.xlu1 %v4198_v37, %s8595_s8  ;;  %v13429_v32 = vrot.slane %v10475_v13, 6  ;;  %v3561_v36 = vrot.slane %v3497_v29, 1  ;;  %4635 = vrot.lane.b32.xlu0 %v4087_v56, %s8595_s8  ;;  %v8194_v17 = vpack.c.bf16 %v4854_v45, %v4853_v1  ;;  %v8198_v45 = vpack.c.bf16 %v4856_v26, %v4855_v42 }
 0x282   : > { %v11331_v34 = vpop.permute.xlu0 %4335  ;;  %8191 = vmatprep.subr.bf16.mxu1 %v8190_v57  ;;  %v4071_v23 = vrot.slane %v11336_v35, 2  ;;  %v4072_v28 = vrot.slane %v11338_v27, 2  ;;  %v2988_v26 = vmul.f32 0.5, %v11165_v0 }
 0x283   : > { %v3856_v48 = vsel %vm3821_vm7, %v13431_v10, %v13429_v32  ;;  %8193 = vmatpush3.bf16.msra.mxu1 %v8190_v57  ;;  %v3568_v56 = vsel %vm1564_vm1, %v3560_v53, %v3561_v36  ;;  %v3567_v1 = vsel %vm1564_vm1, %v3561_v36, %v13432_v59 }
 0x284   : > { %v4749_v37 = vsel %vm4719_vm14, %v3856_v48, %v11225_v30  ;;  %v8393_v47 = vpop.eup %8392  ;;  %v4084_v30 = vsel %vm4078_vm2, %v4071_v23, %v4072_v28  ;;  %v4085_v57 = vsel %vm4078_vm2, %v4070_v11, %v4071_v23  ;;  %8195 = vmatprep.subr.bf16.mxu1 %v8194_v17  ;;  %v11384_v32 = vmax.f32 %v11204_v58, %v3568_v56  ;;  %v4857_v11 = vld [vmem:[%s13367_s3 + $0x40] sm:$0xff] }
 0x285   : > { %4385 = vrot.lane.b32.xlu1 %v11336_v35, %s8594_s29  ;;  %v11376_v53 = vsel %vm4784_vm15, %v4749_v37, %v11269_v8  ;;  %v8395_v42 = vpop.eup %8394  ;;  %v3436_v36 = vadd.f32 1.0, %v8393_v47  ;;  %4387 = vrot.lane.b32.xlu0 %v11338_v27, %s8594_s29  ;;  %v11386_v33 = vmax.f32 %v3497_v29, %v3567_v1  ;;  %v4858_v8 = vld [vmem:[%s13367_s3 + $0x48] sm:$0xff]  ;;  %v2987_v23 = vmul.f32 0.5, %v11179_v5 }
 0x286   : > { %v11366_v31 = vpop.permute.xlu0 %4587  ;;  %v3435_v0 = vadd.f32 1.0, %v8395_v42  ;;  %v4073_v47 = vrot.slane %v11384_v32, 2  ;;  %v8202_v29 = vpack.c.bf16 %v4858_v8, %v4857_v11  ;;  %v4859_v42 = vld [vmem:[%s13367_s3 + $0x50] sm:$0xff] }
 0x287   : > { %v3500_v37 = vmul.f32 %v3436_v36, %v2988_v26  ;;  %8197 = vmatpush3.bf16.msra.mxu1 %v8194_v17  ;;  %v4074_v58 = vrot.slane %v11386_v33, 2  ;;  %v13571_v36 = vrot.slane %v9770_v51, 1 }
 0x288   : > { %v11378_v48 = vpop.permute.xlu1 %4589  ;;  %v3499_v56 = vmul.f32 %v3435_v0, %v2987_v23  ;;  %8199 = vmatprep.subr.bf16.mxu1 %v8198_v45  ;;  %v4083_v17 = vsel %vm4078_vm2, %v4072_v28, %v4073_v47  ;;  %v13572_v28 = vrot.slane %v11279_v9, 1 }
 0x289   : > { %4641 = vrot.lane.b32.xlu1 %v4084_v30, %s8595_s8  ;;  %v3564_v59 = vrot.slane %v3500_v37, 1  ;;  %4639 = vrot.lane.b32.xlu0 %v4085_v57, %s8595_s8  ;;  %v4082_v5 = vsel %vm4078_vm2, %v4073_v47, %v4074_v58  ;;  %v4860_v30 = vld [vmem:[%s13367_s3 + $0x58] sm:$0xff] }
 0x28a   : > { %v11400_v10 = vpop.permute.xlu0 %4339  ;;  %v3563_v26 = vrot.slane %v3499_v56, 1  ;;  %v8206_v23 = vpack.c.bf16 %v4860_v30, %v4859_v42 }
 0x28b   : > { %v3628_v57 = vsel %vm1564_vm1, %v3564_v59, %v13571_v36  ;;  %8201 = vmatpush3.bf16.msra.mxu1 %v8198_v45 }
 0x28c   : > { %v11398_v1 = vpop.permute.xlu1 %4337  ;;  %v11417_v11 = vmax.f32 %v3500_v37, %v3628_v57  ;;  %8203 = vmatprep.subr.bf16.mxu1 %v8202_v29  ;;  %v3566_v8 = vsel %vm1564_vm1, %v13572_v28, %v3563_v26  ;;  %v3565_v45 = vsel %vm1564_vm1, %v3563_v26, %v3564_v59  ;;  %v13573_v57 = vrot.slane %v9804_v19, 6 }
 0x28d   : > { %4389 = vrot.lane.b32.xlu1 %v11384_v32, %s8594_s29  ;;  %4391 = vrot.lane.b32.xlu0 %v11386_v33, %s8594_s29  ;;  %v11432_v51 = vmax.f32 %v11279_v9, %v3566_v8  ;;  %v11436_v37 = vmax.f32 %v3499_v56, %v3565_v45  ;;  %vm4868_vm1 = vcmask 785408  }
 0x28e   : > { %v11427_v47 = vpop.permute.xlu0 %4591  ;;  %v13433_v36 = vrot.slane %v11417_v11, 6  ;;  %v4077_v30 = vrot.slane %v11417_v11, 2 }
 0x28f   : > { %8205 = vmatpush3.bf16.msra.mxu1 %v8202_v29  ;;  %v4075_v42 = vrot.slane %v11432_v51, 2  ;;  %v4076_v9 = vrot.slane %v11436_v37, 2 }
 0x290   : > { %v11425_v0 = vpop.permute.xlu1 %4593  ;;  %8207 = vmatprep.subr.bf16.mxu1 %v8206_v23  ;;  %v3885_v59 = vsel %vm3821_vm7, %v13433_v36, %v13573_v57  ;;  %v13576_v57 = vld [vmem:[#allocation37_spill] sm:$0xff] }
 0x291   : > { %4645 = vrot.lane.b32.xlu1 %v4082_v5, %s8595_s8  ;;  %4643 = vrot.lane.b32.xlu0 %v4083_v17, %s8595_s8  ;;  %v4081_v29 = vsel %vm4078_vm2, %v4074_v58, %v4075_v42  ;;  %v3886_v26 = vsel %vm3693_vm6, 0.0, %v3885_v59  ;;  %v4080_v28 = vsel %vm4078_vm2, %v4075_v42, %v4076_v9  ;;  %v4079_v17 = vsel %vm4078_vm2, %v4076_v9, %v4077_v30  ;;  %v13578_v59 = vld [vmem:[#allocation38_spill] sm:$0xff] }
 0x292   : > { %v11455_v5 = vpop.permute.xlu0 %4343  ;;  %v4720_v8 = vsel %vm4719_vm14, %v3886_v26, %v10482_v55  ;;  %v4721_v58 = vsel %vm4719_vm14, %v9897_v15, %v10490_v63  ;;  %v13577_v55 = vld [vmem:[#allocation21_spill] sm:$0xff]  ;;  %v13580_v63 = vld [vmem:[#allocation10_spill] sm:$0xff] }
 0x293   : > { %13574 = vst [vmem:[#allocation87_spill] sm:$0xff] %v11455_v5  ;;  %8209 = vmatpush3.bf16.msra.mxu1 %v8206_v23  ;;  %v4785_v45 = vsel %vm4784_vm15, %v4720_v8, %v10531_v52  ;;  %v4722_v23 = vsel %vm4719_vm14, %v13577_v55, %v13576_v57  ;;  %v4786_v52 = vsel %vm4784_vm15, %v4721_v58, %v13578_v59  ;;  %v13579_v26 = vld [vmem:[#allocation45_spill] sm:$0xff]  ;;  %vm3701_vm10 = vcmp.lt.s32.totalorder %v13580_v63, 2  ;;  %v13583_v58 = vld [vmem:[#allocation42_spill] sm:$0xff]  ;;  %v13584_v55 = vld [vmem:[#allocation27_spill] sm:$0xff] }
 0x294   : > { %v11450_v56 = vpop.permute.xlu1 %4341  ;;  %8071 = vmatprep.mubr.msk.f32.mxu1 %vm4868_vm1, %v4785_v45  ;;  %v4787_v15 = vsel %vm4784_vm15, %v4722_v23, %v13579_v26  ;;  %v13581_v8 = vld [vmem:[#allocation41_spill] sm:$0xff]  ;;  %v13582_v45 = vld [vmem:[#allocation24_spill] sm:$0xff]  ;;  %v13585_v59 = vld [vmem:[#allocation43_spill] sm:$0xff] }
 0x295   : > { %4393 = vrot.lane.b32.xlu1 %v11432_v51, %s8594_s29  ;;  %4647 = vrot.lane.b32.xlu0 %v4081_v29, %s8595_s8  ;;  %v4723_v57 = vsel %vm4719_vm14, %v13582_v45, %v13581_v8  ;;  %v4724_v29 = vsel %vm4719_vm14, %v13584_v55, %v13583_v58  ;;  %v13586_v23 = vld [vmem:[#allocation34_spill] sm:$0xff]  ;;  %v13590_v8 = vld [vmem:[#allocation31_spill] sm:$0xff]  ;;  %v13591_v45 = vld [vmem:[#allocation48_spill] sm:$0xff] }
 0x296   : > { %v11479_v9 = vpop.permute.xlu0 %4595  ;;  %8072 = vmatmul.mubr.msk.f32.vlgmr.msra.gmra.mrb[0].mxu1 %vm4868_vm1, %v4786_v52  ;;  %v4788_v36 = vsel %vm4784_vm15, %v4723_v57, %v13585_v59  ;;  %v3894_v26 = vsel %vm3701_vm10, 0.0, %v13586_v23  ;;  %v4726_v58 = vsel %vm4719_vm14, %v13592_v40, %v13591_v45  ;;  %v13593_v55 = vld [vmem:[#allocation50_spill] sm:$0xff]  ;;  %v13438_v23 = vrot.slane %v11049_v39, 6  ;;  %v13594_v63 = vld [vmem:[#allocation49_spill] sm:$0xff]  ;;  %v13600_v45 = vld [vmem:[#allocation55_spill] sm:$0xff] }
 0x297   : > { %8074 = vmatprep.mubr.msk.f32.mxu1 %vm4868_vm1, %v4787_v15  ;;  %v13589_v15 = vld [vmem:[#allocation47_spill] sm:$0xff]  ;;  %v4789_v57 = vsel %vm4784_vm15, %v4724_v29, %v13593_v55  ;;  %v3807_v40 = vrot.slane %v11052_v12, 6  ;;  %v13599_v29 = vrot.slane %v9804_v19, 2  ;;  %v3811_v19 = vrot.slane %v11212_v54, 6 }
 0x298   : > { %v11471_v42 = vpop.permute.xlu1 %4597 }
 0x299   : > { %13575 = vst [vmem:[#allocation88_spill] sm:$0xff] %v11471_v42  ;;  %4649 = vrot.lane.b32.xlu1 %v4080_v28, %s8595_s8  ;;  %4395 = vrot.lane.b32.xlu0 %v11436_v37, %s8594_s29  ;;  %v4725_v28 = vsel %vm4719_vm14, %v13590_v8, %v13589_v15  ;;  %v13596_v42 = vld [vmem:[#allocation33_spill] sm:$0xff]  ;;  %v13597_v8 = vld [vmem:[#allocation54_spill] sm:$0xff]  ;;  %v11538_v12 = vsel %vm3821_vm7, %v13438_v23, %v3807_v40 }
 0x29a   : > { %8075 = vmatmul.mubr.msk.f32.gmra.mrb[2].mxu1 %vm4868_vm1, %v4788_v36  ;;  %v4790_v49 = vsel %vm4784_vm15, %v4725_v28, %v13594_v63  ;;  %v4728_v5 = vsel %vm4719_vm14, %v3894_v26, %v13597_v8  ;;  %v13598_v36 = vld [vmem:[#allocation17_spill] sm:$0xff]  ;;  %v4142_v63 = vsel %vm4078_vm2, %v4077_v30, %v13599_v29  ;;  %v3808_v28 = vrot.slane %v11117_v16, 6 }
 0x29b   : > { %v11510_v59 = vpop.permute.xlu0 %4347  ;;  %8077 = vmatprep.mubr.msk.f32.mxu1 %vm4868_vm1, %v4789_v57  ;;  %vm4013_vm8 = vcmp.ge.s32.totalorder %v13598_v36, 62  ;;  %v3812_v30 = vrot.slane %v11257_v25, 6  ;;  %v3814_v8 = vrot.slane %v11336_v35, 6  ;;  %v3816_v29 = vrot.slane %v11384_v32, 6  ;;  %v13615_v36 = vld [vmem:[#allocation68_spill] sm:$0xff] }
 0x29c   : > { %v11499_v52 = vpop.permute.xlu1 %4345  ;;  %v11552_v57 = vsel %vm3821_vm7, %v3807_v40, %v3808_v28  ;;  %v4206_v54 = vsel %vm4013_vm8, 0.0, %v4142_v63  ;;  %v3815_v40 = vrot.slane %v11338_v27, 6  ;;  %v13602_v63 = vld [vmem:[#allocation62_spill] sm:$0xff]  ;;  %v13603_v32 = vrot.slane %v13587_v18, 6 }
 0x29d   : > { %13588 = vst [vmem:[#allocation37_spill] sm:$0xff] %v11499_v52  ;;  %v13595_v52 = vld [vmem:[#allocation52_spill] sm:$0xff]  ;;  %4397 = vrot.lane.b32.xlu1 %v11417_v11, %s8594_s29  ;;  %4651 = vrot.lane.b32.xlu0 %v4079_v17, %s8595_s8  ;;  %s7530_s29 = sshll.u32 %s274_s15, 4  ;;  %s13324_s29 = int_to_ptr.vmem [resolvable:$true] %s7530_s29 }
 0x29e   : > { %v4727_v15 = vsel %vm4719_vm14, %v13596_v42, %v13595_v52  ;;  %v3809_v42 = vrot.slane %v11120_v46, 6  ;;  %v3810_v52 = vrot.slane %v11192_v3, 6  ;;  %v13601_v46 = vld [vmem:[#allocation56_spill] sm:$0xff]  ;;  %8078 = vmatmul.mubr.msk.f32.gmra.mrb[4].mxu1 %vm4868_vm1, %v4790_v49  ;;  %v11596_v27 = vsel %vm3821_vm7, %v3814_v8, %v3815_v40  ;;  %s8528_s19 = scalar_lea.vmem %s13324_s29, 128  ;;  %p8535_p0 = scmp.lt.s32.totalorder %s13324_s29, %s8533_s20 }
 0x29f   : > { %v4792_v16 = vsel %vm4784_vm15, %v4727_v15, %v13600_v45  ;;  %v4791_v17 = vsel %vm4784_vm15, %v4726_v58, %v13601_v46  ;;  %v11548_v55 = vpop.permute.xlu0 %4599  ;;  %v11571_v58 = vsel %vm3821_vm7, %v3811_v19, %v3812_v30  ;;  %v3813_v15 = vrot.slane %v11260_v43, 6  ;;  %p8529_p11 = scmp.ne.s32.totalorder %s13324_s29, %s8528_s19  ;;  %p8536_p1 = scmp.lt.s32.totalorder %s8534_s21, %s8528_s19 }
 0x2a0   : > { %v11532_v26 = vpop.permute.xlu1 %4601  ;;  %v11556_v3 = vsel %vm3821_vm7, %v3808_v28, %v3809_v42  ;;  %8080 = vmatprep.mubr.msk.f32.mxu1 %vm4868_vm1, %v4791_v17  ;;  %v11563_v25 = vsel %vm3821_vm7, %v3809_v42, %v3810_v52  ;;  %v11567_v49 = vsel %vm3821_vm7, %v3810_v52, %v3811_v19  ;;  %v4793_v28 = vsel %vm4784_vm15, %v4728_v5, %v13602_v63  ;;  %v13609_v63 = vld [vmem:[#allocation26_spill] sm:$0xff] }
 0x2a1   : > { %4653 = vrot.lane.b32.xlu1 %v4206_v54, %s8595_s8  ;;  %v3817_v42 = vrot.slane %v11386_v33, 6  ;;  %v3818_v52 = vrot.slane %v11432_v51, 6  ;;  %v3819_v19 = vrot.slane %v11436_v37, 6  ;;  %v11588_v43 = vsel %vm3821_vm7, %v3812_v30, %v3813_v15  ;;  %v13604_v51 = vld [vmem:[#allocation22_spill] sm:$0xff]  ;;  %v13606_v30 = vld [vmem:[#allocation25_spill] sm:$0xff]  ;;  %p8530_p12 = pnand %p8529_p11, %p8678_p5  ;;  %p8537_p2 = por %p8536_p1, %p8535_p0 }
 0x2a2   : > { %8081 = vmatmul.mubr.msk.f32.gmra.mrb[6].mxu1 %vm4868_vm1, %v4792_v16  ;;  %v11592_v35 = vsel %vm3821_vm7, %v3813_v15, %v3814_v8  ;;  %v11600_v33 = vsel %vm3821_vm7, %v3815_v40, %v3816_v29  ;;  %v13605_v37 = vrot.slane %v13604_v51, 6  ;;  %v3768_v16 = vrot.slane %v13606_v30, 6  ;;  %v13607_v15 = vld [vmem:[#allocation58_spill] sm:$0xff]  ;;  %v13608_v8 = vld [vmem:[#allocation35_spill] sm:$0xff]  ;;  %v13614_v30 = vld [vmem:[#allocation61_spill] sm:$0xff] }
 0x2a3   : > { %8083 = vmatprep.mubr.msk.f32.mxu1 %vm4868_vm1, %v4793_v28  ;;  %v11614_v17 = vsel %vm3821_vm7, %v3816_v29, %v3817_v42  ;;  %v11618_v54 = vsel %vm3821_vm7, %v3817_v42, %v3818_v52  ;;  %v4729_v40 = vsel %vm4719_vm14, %v13608_v8, %v13607_v15  ;;  %v11626_v51 = vsel %vm3821_vm7, %v3818_v52, %v3819_v19  ;;  %v13617_v8 = vld [vmem:[#allocation28_spill] sm:$0xff]  ;;  %p8531_p13 = pneg %p8530_p12 }
 0x2a4   : > { %v11584_v45 = vpop.permute.xlu1 %4349  ;;  %v3875_v5 = vsel %vm3821_vm7, %v13605_v37, %v13603_v32  ;;  %v11610_v46 = vpop.permute.xlu0 %4351  ;;  %v3769_v32 = vrot.slane %v13609_v63, 6  ;;  %13610 = vst [vmem:[#allocation21_spill] sm:$0xff] %v11626_v51  ;;  %v13611_v28 = vrot.slane %v11417_v11, 6  ;;  %v13613_v37 = vld [vmem:[#allocation59_spill] sm:$0xff]  ;;  %v4794_v23 = vsel %vm4784_vm15, %v4729_v40, %v13614_v30 }
 0x2a5   : > { %v4730_v42 = vsel %vm4719_vm14, %v3875_v5, %v13613_v37  ;;  %v13616_v52 = vrot.slane %v13587_v18, 6  ;;  %v3770_v63 = vrot.slane %v13617_v8, 6  ;;  %v13620_v18 = vld [vmem:[#allocation64_spill] sm:$0xff]  ;;  %v13621_v30 = vld [vmem:[#allocation67_spill] sm:$0xff]  ;;  %v13622_v8 = vld [vmem:[#allocation74_spill] sm:$0xff]  ;;  %p8538_p3 = pnand %p8537_p2, %p8531_p13 }
 0x2a6   : > { %v11632_v29 = vsel %vm3821_vm7, %v3819_v19, %v13611_v28  ;;  %v4795_v15 = vsel %vm4784_vm15, %v4730_v42, %v13615_v36  ;;  %8084 = vmatmul.mubr.msk.f32.gmra.mrb[8].mxu1 %vm4868_vm1, %v4794_v23  ;;  %v13618_v28 = vld [vmem:[#allocation63_spill] sm:$0xff]  ;;  %v3873_v36 = vsel %vm3821_vm7, %v3768_v16, %v3769_v32  ;;  %v13619_v23 = vld [vmem:[#allocation29_spill] sm:$0xff] }
 0x2a7   : > { %13612 = vst [vmem:[#allocation38_spill] sm:$0xff] %v11632_v29  ;;  %v3874_v11 = vsel %vm3821_vm7, %v13616_v52, %v3768_v16  ;;  %8086 = vmatprep.mubr.msk.f32.mxu1 %vm4868_vm1, %v4795_v15  ;;  %v3771_v37 = vrot.slane %v13619_v23, 6  ;;  %v4732_v42 = vsel %vm4719_vm14, %v3873_v36, %v13620_v18  ;;  %v3872_v29 = vsel %vm3821_vm7, %v3769_v32, %v3770_v63 }
 0x2a8   : > { %v11647_v19 = vpop.permute.xlu1 %4605  ;;  %v11649_v5 = vpop.permute.xlu0 %4603  ;;  %v4731_v40 = vsel %vm4719_vm14, %v3874_v11, %v13618_v28  ;;  %v4797_v15 = vsel %vm4784_vm15, %v4732_v42, %v13622_v8  ;;  %v13623_v11 = vld [vmem:[#allocation69_spill] sm:$0xff]  ;;  %v13627_v8 = vld [vmem:[#allocation30_spill] sm:$0xff] }
 0x2a9   : > { %v4796_v52 = vsel %vm4784_vm15, %v4731_v40, %v13621_v30  ;;  %v4733_v16 = vsel %vm4719_vm14, %v3872_v29, %v13623_v11  ;;  %v3871_v28 = vsel %vm3821_vm7, %v3770_v63, %v3771_v37  ;;  %v13624_v40 = vld [vmem:[#allocation70_spill] sm:$0xff]  ;;  %v13625_v42 = vld [vmem:[#allocation73_spill] sm:$0xff]  ;;  %v13628_v29 = vrot.slane %v13627_v8, 6 }
 0x2aa   : > { %8087 = vmatmul.mubr.msk.f32.gmra.mrb[10].mxu1 %vm4868_vm1, %v4796_v52  ;;  %v4734_v18 = vsel %vm4719_vm14, %v3871_v28, %v13624_v40  ;;  %v4798_v30 = vsel %vm4784_vm15, %v4733_v16, %v13625_v42  ;;  %v13626_v52 = vld [vmem:[#allocation79_spill] sm:$0xff]  ;;  %v13630_v16 = vld [vmem:[#allocation78_spill] sm:$0xff] }
 0x2ab   : > { %8089 = vmatprep.mubr.msk.f32.mxu1 %vm4868_vm1, %v4797_v15  ;;  %v4799_v32 = vsel %vm4784_vm15, %v4734_v18, %v13626_v52  ;;  %v3870_v63 = vsel %vm3821_vm7, %v3771_v37, %v13628_v29  ;;  %v13629_v15 = vld [vmem:[#allocation75_spill] sm:$0xff]  ;;  %v13631_v42 = vld [vmem:[#allocation82_spill] sm:$0xff]  ;;  %v13633_v52 = vld [vmem:[#allocation85_spill] sm:$0xff] }
 0x2ac   : > { %v11670_v36 = vpop.permute.xlu1 %4353  ;;  %v4735_v11 = vsel %vm4719_vm14, %v3870_v63, %v13629_v15 }
 0x2ad   : > { %v11672_v23 = vpop.permute.xlu0 %4355  ;;  %v4800_v40 = vsel %vm4784_vm15, %v4735_v11, %v13630_v16  ;;  %v13637_v16 = vld [vmem:[#allocation39_spill] sm:$0xff] }
 0x2ae   : > { %8090 = vmatmul.mubr.msk.f32.gmra.mrb[12].mxu1 %vm4868_vm1, %v4798_v30  ;;  %v13632_v30 = vld [vmem:[#allocation86_spill] sm:$0xff] }
 0x2af   : > { %8092 = vmatprep.mubr.msk.f32.mxu1 %vm4868_vm1, %v4799_v32 }
 0x2b0   : > { %v11688_v51 = vpop.permute.xlu1 %4609 }
 0x2b1   : > { %v11690_v28 = vpop.permute.xlu0 %4607 }
 0x2b2   : > { %8093 = vmatmul.mubr.msk.f32.gmra.mrb[14].mxu1 %vm4868_vm1, %v4800_v40  ;;  %v3788_v40 = vrot.slane %v13637_v16, 6 }
 0x2b3   : > { %8095 = vmatprep.mubr.msk.f32.mxu1 %vm4868_vm1, %v10955_v24 }
 0x2b4   : > { %v11697_v18 = vpop.permute.xlu1 %4357 }
 0x2b5   : > { %v11699_v37 = vpop.permute.xlu0 %4359 }
 0x2b6   : > { %8096 = vmatmul.mubr.msk.f32.gmra.mrb[16].mxu1 %vm4868_vm1, %v13631_v42  ;;  %v13638_v42 = vld [vmem:[#allocation40_spill] sm:$0xff] }
 0x2b7   : > { %8098 = vmatprep.mubr.msk.f32.mxu1 %vm4868_vm1, %v13632_v30  ;;  %v3789_v30 = vrot.slane %v13638_v42, 6  ;;  %v13642_v42 = vld [vmem:[#allocation46_spill] sm:$0xff] }
 0x2b8   : > { %v11707_v32 = vpop.permute.xlu1 %4613 }
 0x2ba   : > { %8099 = vmatmul.mubr.msk.f32.gmra.mrb[18].mxu1 %vm4868_vm1, %v13633_v52  ;;  %v11709_v8 = vpop.permute.xlu0 %4611 }
 0x2bb   : > { %8101 = vmatprep.mubr.msk.f32.mxu1 %vm4868_vm1, %v11098_v22  ;;  %v13635_v22 = vrot.slane %v10435_v6, 6  ;;  %v13639_v6 = vrot.slane %v10475_v13, 6 }
 0x2be   : > { %8102 = vmatmul.mubr.msk.f32.gmra.mrb[20].mxu1 %vm4868_vm1, %v11089_v62  ;;  %v11715_v24 = vpop.permute.xlu1 %4361  ;;  %v11719_v29 = vpop.permute.xlu0 %4363  ;;  %v13634_v62 = vrot.slane %v10446_v4, 6 }
 0x2bf   : > { %8104 = vmatprep.mubr.msk.f32.mxu1 %vm4868_vm1, %v11175_v60  ;;  %v13636_v60 = vld [vmem:[#allocation36_spill] sm:$0xff] }
 0x2c0   : > { %v3787_v11 = vrot.slane %v13636_v60, 6 }
 0x2c2   : > { %8105 = vmatmul.mubr.msk.f32.gmra.mrb[22].mxu1 %vm4868_vm1, %v11171_v61  ;;  %v11725_v63 = vpop.permute.xlu1 %4617  ;;  %v3857_v61 = vsel %vm3821_vm7, %v13635_v22, %v13634_v62  ;;  %v13640_v62 = vld [vmem:[#allocation16_spill] sm:$0xff]  ;;  %v3854_v13 = vsel %vm3821_vm7, %v3787_v11, %v3788_v40 }
 0x2c3   : > { %8107 = vmatprep.mubr.msk.f32.mxu1 %vm4868_vm1, %v11245_v20  ;;  %v11727_v15 = vpop.permute.xlu0 %4615  ;;  %v4748_v20 = vsel %vm4719_vm14, %v3857_v61, %v11167_v44  ;;  %v3855_v44 = vsel %vm3821_vm7, %v13639_v6, %v3787_v11  ;;  %vm3725_vm9 = vcmp.lt.s32.totalorder %v13640_v62, 2  ;;  %v13643_v6 = vld [vmem:[#allocation51_spill] sm:$0xff] }
 0x2c4   : > { %v4750_v52 = vsel %vm4719_vm14, %v3855_v44, %v11234_v38  ;;  %v4751_v38 = vsel %vm4719_vm14, %v3854_v13, %v11320_v41  ;;  %v3792_v44 = vrot.slane %v13643_v6, 6 }
 0x2c5   : > { %v4815_v22 = vsel %vm4784_vm15, %v4750_v52, %v11366_v31  ;;  %v3791_v31 = vrot.slane %v13642_v42, 6 }
 0x2c6   : > { %8108 = vmatmul.mubr.msk.f32.gmra.mrb[24].mxu1 %vm4868_vm1, %v11232_v21 }
 0x2c7   : > { %8110 = vmatprep.mubr.msk.f32.mxu1 %vm4868_vm1, %v11312_v14  ;;  %v11744_v21 = vpop.permute.xlu1 %4365  ;;  %v4813_v14 = vsel %vm4784_vm15, %v4748_v20, %v11273_v50  ;;  %v3853_v50 = vsel %vm3821_vm7, %v3788_v40, %v3789_v30 }
 0x2c8   : > { %v3918_v16 = vsel %vm3725_vm9, 0.0, %v3853_v50 }
 0x2c9   : > { %v11748_v4 = vpop.permute.xlu0 %4367 }
 0x2ca   : > { %8111 = vmatmul.mubr.msk.f32.gmra.mrb[26].mxu1 %vm4868_vm1, %v11308_v7  ;;  %v13641_v7 = vld [vmem:[#allocation44_spill] sm:$0xff] }
 0x2cb   : > { %8113 = vmatprep.mubr.msk.f32.mxu1 %vm4868_vm1, %v4813_v14  ;;  %v3790_v60 = vrot.slane %v13641_v7, 6  ;;  %v4752_v14 = vsel %vm4719_vm14, %v3918_v16, %v11331_v34  ;;  %v3850_v7 = vsel %vm3821_vm7, %v3791_v31, %v3792_v44 }
 0x2cc   : > { %v4817_v11 = vsel %vm4784_vm15, %v4752_v14, %v11427_v47  ;;  %v13644_v47 = vld [vmem:[#allocation53_spill] sm:$0xff]  ;;  %v13647_v14 = vld [vmem:[#allocation87_spill] sm:$0xff] }
 0x2cd   : > { %v11764_v61 = vpop.permute.xlu0 %4619  ;;  %v3852_v40 = vsel %vm3821_vm7, %v3789_v30, %v3790_v60  ;;  %v3793_v50 = vrot.slane %v13644_v47, 6 }
 0x2ce   : > { %8114 = vmatmul.mubr.msk.f32.gmra.mrb[28].mxu1 %vm4868_vm1, %v11376_v53  ;;  %v11771_v20 = vpop.permute.xlu1 %4621  ;;  %v4816_v53 = vsel %vm4784_vm15, %v4751_v38, %v11378_v48  ;;  %v4753_v34 = vsel %vm4719_vm14, %v3852_v40, %v11398_v1  ;;  %v3851_v48 = vsel %vm3821_vm7, %v3790_v60, %v3791_v31  ;;  %v13645_v1 = vld [vmem:[#allocation57_spill] sm:$0xff]  ;;  %v13648_v31 = vld [vmem:[#allocation88_spill] sm:$0xff] }
 0x2cf   : > { %8116 = vmatprep.mubr.msk.f32.mxu1 %vm4868_vm1, %v4815_v22  ;;  %v4754_v22 = vsel %vm4719_vm14, %v3851_v48, %v11400_v10  ;;  %v4818_v30 = vsel %vm4784_vm15, %v4753_v34, %v11425_v0  ;;  %v3794_v38 = vrot.slane %v13645_v1, 6  ;;  %v4755_v10 = vsel %vm4719_vm14, %v3850_v7, %v11450_v56  ;;  %v13649_v40 = vld [vmem:[#allocation65_spill] sm:$0xff]  ;;  %v13650_v34 = vld [vmem:[#allocation66_spill] sm:$0xff] }
 0x2d0   : > { %v4819_v13 = vsel %vm4784_vm15, %v4754_v22, %v11479_v9  ;;  %v3849_v0 = vsel %vm3821_vm7, %v3792_v44, %v3793_v50  ;;  %v13646_v9 = vld [vmem:[#allocation60_spill] sm:$0xff]  ;;  %v3796_v6 = vrot.slane %v13649_v40, 6  ;;  %v3797_v48 = vrot.slane %v13650_v34, 6  ;;  %v13651_v22 = vld [vmem:[#allocation37_spill] sm:$0xff] }
 0x2d1   : > { %v3795_v42 = vrot.slane %v13646_v9, 6  ;;  %v3848_v56 = vsel %vm3821_vm7, %v3793_v50, %v3794_v38  ;;  %v13653_v9 = vld [vmem:[#allocation71_spill] sm:$0xff] }
 0x2d2   : > { %8117 = vmatmul.mubr.msk.f32.gmra.mrb[30].mxu1 %vm4868_vm1, %v4816_v53  ;;  %v4756_v53 = vsel %vm4719_vm14, %v3849_v0, %v13647_v14  ;;  %v3845_v50 = vsel %vm3821_vm7, %v3796_v6, %v3797_v48  ;;  %v3798_v14 = vrot.slane %v13653_v9, 6 }
 0x2d3   : > { %v11787_v41 = vpop.permute.xlu1 %4369  ;;  %8119 = vmatprep.mubr.msk.f32.mxu1 %vm4868_vm1, %v4817_v11  ;;  %v4820_v11 = vsel %vm4784_vm15, %v4755_v10, %v13648_v31  ;;  %v4821_v47 = vsel %vm4784_vm15, %v4756_v53, %v11548_v55  ;;  %v13652_v10 = vld [vmem:[#allocation18_spill] sm:$0xff]  ;;  %v13654_v53 = vld [vmem:[#allocation72_spill] sm:$0xff] }
 0x2d4   : > { %v11789_v52 = vpop.permute.xlu0 %4371  ;;  %vm3733_vm11 = vcmp.lt.s32.totalorder %v13652_v10, 2  ;;  %v3799_v31 = vrot.slane %v13654_v53, 6 }
 0x2d6   : > { %8120 = vmatmul.mubr.msk.f32.gmra.mrb[32].mxu1 %vm4868_vm1, %v4818_v30  ;;  %v4757_v30 = vsel %vm4719_vm14, %v3848_v56, %v13651_v22 }
 0x2d7   : > { %v11807_v16 = vpop.permute.xlu1 %4625  ;;  %8122 = vmatprep.mubr.msk.f32.mxu1 %vm4868_vm1, %v4819_v13  ;;  %v3847_v13 = vsel %vm3821_vm7, %v3794_v38, %v3795_v42  ;;  %v4822_v1 = vsel %vm4784_vm15, %v4757_v30, %v11532_v26  ;;  %v3846_v38 = vsel %vm3821_vm7, %v3795_v42, %v3796_v6  ;;  %v3926_v26 = vsel %vm3733_vm11, 0.0, %v3845_v50  ;;  %v13655_v6 = vld [vmem:[#allocation76_spill] sm:$0xff] }
 0x2d8   : > { %v11809_v60 = vpop.permute.xlu0 %4623  ;;  %v4758_v55 = vsel %vm4719_vm14, %v3847_v13, %v11510_v59  ;;  %v4759_v59 = vsel %vm4719_vm14, %v3846_v38, %v11584_v45  ;;  %v3844_v45 = vsel %vm3821_vm7, %v3797_v48, %v3798_v14 }
 0x2d9   : > { %v4823_v0 = vsel %vm4784_vm15, %v4758_v55, %v11649_v5  ;;  %v4760_v5 = vsel %vm4719_vm14, %v3926_v26, %v11610_v46  ;;  %v4824_v40 = vsel %vm4784_vm15, %v4759_v59, %v11647_v19  ;;  %v4761_v56 = vsel %vm4719_vm14, %v3844_v45, %v11670_v36  ;;  %v13656_v19 = vld [vmem:[#allocation77_spill] sm:$0xff]  ;;  %v13657_v55 = vld [vmem:[#allocation80_spill] sm:$0xff]  ;;  %v13661_v45 = vld [vmem:[#allocation19_spill] sm:$0xff] }
 0x2da   : > { %8123 = vmatmul.mubr.msk.f32.gmra.mrb[34].mxu1 %vm4868_vm1, %v4820_v11  ;;  %v4825_v42 = vsel %vm4784_vm15, %v4760_v5, %v11690_v28  ;;  %v3843_v46 = vsel %vm3821_vm7, %v3798_v14, %v3799_v31  ;;  %v3801_v22 = vrot.slane %v13656_v19, 6  ;;  %v4826_v30 = vsel %vm4784_vm15, %v4761_v56, %v11688_v51  ;;  %v13659_v14 = vld [vmem:[#allocation83_spill] sm:$0xff]  ;;  %v13660_v26 = vld [vmem:[#allocation84_spill] sm:$0xff] }
 0x2db   : > { %8125 = vmatprep.mubr.msk.f32.mxu1 %vm4868_vm1, %v4821_v47  ;;  %v3800_v47 = vrot.slane %v13655_v6, 6  ;;  %v4762_v28 = vsel %vm4719_vm14, %v3843_v46, %v11672_v23  ;;  %v3804_v59 = vrot.slane %v13659_v14, 6  ;;  %v3805_v53 = vrot.slane %v13660_v26, 6 }
 0x2dc   : > { %v11828_v44 = vpop.permute.xlu1 %4373  ;;  %v4827_v48 = vsel %vm4784_vm15, %v4762_v28, %v11709_v8  ;;  %vm3741_vm12 = vcmp.lt.s32.totalorder %v13661_v45, 2 }
 0x2dd   : > { %v11835_v7 = vpop.permute.xlu0 %4375  ;;  %v3842_v36 = vsel %vm3821_vm7, %v3799_v31, %v3800_v47  ;;  %v3841_v51 = vsel %vm3821_vm7, %v3800_v47, %v3801_v22  ;;  %v3837_v6 = vsel %vm3821_vm7, %v3804_v59, %v3805_v53 }
 0x2de   : > { %8126 = vmatmul.mubr.msk.f32.gmra.mrb[36].mxu1 %vm4868_vm1, %v4822_v1  ;;  %v3802_v1 = vrot.slane %v13657_v55, 6  ;;  %v4763_v23 = vsel %vm4719_vm14, %v3842_v36, %v11697_v18  ;;  %v4764_v8 = vsel %vm4719_vm14, %v3841_v51, %v11699_v37 }
 0x2df   : > { %8128 = vmatprep.mubr.msk.f32.mxu1 %vm4868_vm1, %v4823_v0  ;;  %v13658_v0 = vld [vmem:[#allocation81_spill] sm:$0xff]  ;;  %v4828_v9 = vsel %vm4784_vm15, %v4763_v23, %v11707_v32  ;;  %v4829_v31 = vsel %vm4784_vm15, %v4764_v8, %v11727_v15 }
 0x2e0   : > { %v11854_v11 = vpop.permute.xlu1 %4629  ;;  %v3803_v38 = vrot.slane %v13658_v0, 6  ;;  %v3840_v18 = vsel %vm3821_vm7, %v3801_v22, %v3802_v1 }
 0x2e1   : > { %v4628_v34 = vpop.permute.xlu0 %4627  ;;  %v4765_v37 = vsel %vm4719_vm14, %v3840_v18, %v11715_v24 }
 0x2e2   : > { %8129 = vmatmul.mubr.msk.f32.gmra.mrb[38].mxu1 %vm4868_vm1, %v4824_v40  ;;  %v3839_v32 = vsel %vm3821_vm7, %v3802_v1, %v3803_v38  ;;  %v4830_v15 = vsel %vm4784_vm15, %v4765_v37, %v11725_v63  ;;  %v3838_v24 = vsel %vm3821_vm7, %v3803_v38, %v3804_v59  ;;  %v3934_v63 = vsel %vm3741_vm12, 0.0, %v3837_v6  ;;  %v13665_v6 = vld [vmem:[#allocation38_spill] sm:$0xff] }
 0x2e3   : > { %8131 = vmatprep.mubr.msk.f32.mxu1 %vm4868_vm1, %v4825_v42  ;;  %v4766_v42 = vsel %vm4719_vm14, %v3839_v32, %v11719_v29  ;;  %v4767_v29 = vsel %vm4719_vm14, %v3838_v24, %v11744_v21  ;;  %v4768_v19 = vsel %vm4719_vm14, %v3934_v63, %v11748_v4  ;;  %v4770_v4 = vsel %vm4719_vm14, %v11538_v12, %v11789_v52 }
 0x2e4   : > { %v4831_v47 = vsel %vm4784_vm15, %v4766_v42, %v11764_v61  ;;  %v4832_v22 = vsel %vm4784_vm15, %v4767_v29, %v11771_v20  ;;  %v4833_v61 = vsel %vm4784_vm15, %v4768_v19, %v11809_v60  ;;  %v4835_v60 = vsel %vm4784_vm15, %v4770_v4, %v4628_v34  ;;  %v13667_v29 = vld [vmem:[#allocation6_spill] sm:$0xff]  ;;  %v13668_v19 = vld [vmem:[#allocation7_spill] sm:$0xff]  ;;  %v13671_v4 = vld [vmem:[#allocation8_spill] sm:$0xff] }
 0x2e5   : > { %v4771_v1 = vsel %vm4719_vm14, %v11552_v57, %v11828_v44  ;;  %v6323_v63 = vand.u32 3, %v13667_v29 }
 0x2e6   : > { %v4378_v13 = vpop.permute.xlu1 %4377  ;;  %8132 = vmatmul.mubr.msk.f32.gmra.mrb[40].mxu1 %vm4868_vm1, %v4826_v30  ;;  %v13662_v30 = vrot.slane %v11049_v39, 6  ;;  %v4836_v12 = vsel %vm4784_vm15, %v4771_v1, %v11854_v11 }
 0x2e7   : > { %v4380_v50 = vpop.permute.xlu0 %4379  ;;  %8134 = vmatprep.mubr.msk.f32.mxu1 %vm4868_vm1, %v4827_v48  ;;  %v4773_v23 = vsel %vm4719_vm14, %v11563_v25, %v4378_v13 }
 0x2e8   : > { %v3836_v48 = vsel %vm3821_vm7, %v3805_v53, %v13662_v30  ;;  %v4774_v57 = vsel %vm4719_vm14, %v11567_v49, %v4380_v50  ;;  %v348_v30 = vadd.s32 8, %v8692_v2 }
 0x2e9   : > { %v4769_v21 = vsel %vm4719_vm14, %v3836_v48, %v11787_v41  ;;  %v4772_v41 = vsel %vm4719_vm14, %v11556_v3, %v11835_v7  ;;  %v13663_v3 = vld [vmem:[#allocation20_spill] sm:$0xff]  ;;  %v13670_v48 = vld [vmem:[#allocation11_spill] sm:$0xff] }
 0x2ea   : > { %v4634_v5 = vpop.permute.xlu1 %4633  ;;  %8135 = vmatmul.mubr.msk.f32.gmra.mrb[42].mxu1 %vm4868_vm1, %v4828_v9  ;;  %v4834_v20 = vsel %vm4784_vm15, %v4769_v21, %v11807_v16  ;;  %vm3749_vm7 = vcmp.lt.s32.totalorder %v13663_v3, 2  ;;  %v349_v21 = vadd.s32 16, %v8692_v2 }
 0x2eb   : > { %v4632_v40 = vpop.permute.xlu0 %4631  ;;  %8137 = vmatprep.mubr.msk.f32.mxu1 %vm4868_vm1, %v4829_v31  ;;  %v4838_v44 = vsel %vm4784_vm15, %v4773_v23, %v4634_v5  ;;  %v3942_v25 = vsel %vm3749_vm7, 0.0, %v11588_v43 }
 0x2ec   : > { %v4837_v52 = vsel %vm4784_vm15, %v4772_v41, %v4632_v40  ;;  %v422_v41 = vand.u32 63, %v348_v30 }
 0x2ee   : > { %8138 = vmatmul.mubr.msk.f32.gmra.mrb[44].mxu1 %vm4868_vm1, %v4830_v15 }
 0x2ef   : > { %v4382_v56 = vpop.permute.xlu1 %4381  ;;  %v4384_v46 = vpop.permute.xlu0 %4383  ;;  %8140 = vmatprep.mubr.msk.f32.mxu1 %vm4868_vm1, %v4831_v47 }
 0x2f0   : > { %v4775_v0 = vsel %vm4719_vm14, %v11571_v58, %v4382_v56  ;;  %v4776_v13 = vsel %vm4719_vm14, %v3942_v25, %v4384_v46 }
 0x2f2   : > { %8141 = vmatmul.mubr.msk.f32.gmra.mrb[46].mxu1 %vm4868_vm1, %v4832_v22  ;;  %v6379_v22 = vand.u32 3, %v13668_v19  ;;  %v364_v19 = vadd.s32 136, %v8692_v2 }
 0x2f3   : > { %v4638_v28 = vpop.permute.xlu1 %4637  ;;  %v4636_v36 = vpop.permute.xlu0 %4635  ;;  %8143 = vmatprep.mubr.msk.f32.mxu1 %vm4868_vm1, %v4833_v61  ;;  %v13669_v61 = vld [vmem:[#allocation9_spill] sm:$0xff] }
 0x2f4   : > { %v4839_v7 = vsel %vm4784_vm15, %v4774_v57, %v4636_v36  ;;  %v4840_v49 = vsel %vm4784_vm15, %v4775_v0, %v4638_v28  ;;  %v6435_v28 = vand.u32 3, %v13669_v61  ;;  %v6491_v36 = vand.u32 3, %v13670_v48 }
 0x2f5   : > { %vm7005_vm0 = vcmp.eq.s32.totalorder %v6379_v22, 0  ;;  %v365_v22 = vadd.s32 144, %v8692_v2 }
 0x2f6   : > { %8144 = vmatmul.mubr.msk.f32.gmra.mrb[48].mxu1 %vm4868_vm1, %v4834_v20  ;;  %v6218_v20 = vand.u32 3, %v13671_v4  ;;  %vm7013_vm3 = vcmp.eq.s32.totalorder %v6435_v28, 0  ;;  %vm7021_vm4 = vcmp.eq.s32.totalorder %v6491_v36, 0  ;;  %v366_v28 = vadd.s32 152, %v8692_v2  ;;  %v7406_v4 = vld [vmem:[%s13369_s5] sm:$0xff] }
 0x2f7   : > { %v4386_v55 = vpop.permute.xlu1 %4385  ;;  %v4388_v39 = vpop.permute.xlu0 %4387  ;;  %8146 = vmatprep.mubr.msk.f32.mxu1 %vm4868_vm1, %v4835_v60  ;;  %v13672_v60 = vld [vmem:[#allocation13_spill] sm:$0xff] }
 0x2f8   : > { %v4777_v9 = vsel %vm4719_vm14, %v11592_v35, %v4386_v55  ;;  %v4778_v58 = vsel %vm4719_vm14, %v11596_v27, %v4388_v39  ;;  %v6547_v55 = vand.u32 3, %v13672_v60  ;;  %v13673_v39 = vld [vmem:[#allocation15_spill] sm:$0xff]  ;;  %vm12018_vm5 = vcmp.eq.s32.totalorder %v6218_v20, 0 }
 0x2f9   : > { %v6603_v1 = vand.u32 3, %v13673_v39  ;;  %v368_v39 = vadd.s32 168, %v8692_v2 }
 0x2fa   : > { %8147 = vmatmul.mubr.msk.f32.gmra.mrb[50].mxu1 %vm4868_vm1, %v4836_v12  ;;  %v429_v12 = vand.u32 63, %v349_v21  ;;  %vm7029_vm6 = vcmp.eq.s32.totalorder %v6547_v55, 0  ;;  %v367_v21 = vadd.s32 160, %v8692_v2 }
 0x2fb   : > { %v4642_v16 = vpop.permute.xlu1 %4641  ;;  %v4640_v34 = vpop.permute.xlu0 %4639  ;;  %8149 = vmatprep.mubr.msk.f32.mxu1 %vm4868_vm1, %v4837_v52  ;;  %v350_v52 = vadd.s32 24, %v8692_v2 }
 0x2fc   : > { %v4841_v50 = vsel %vm4784_vm15, %v4776_v13, %v4640_v34  ;;  %v4842_v43 = vsel %vm4784_vm15, %v4777_v9, %v4642_v16  ;;  %v351_v16 = vadd.s32 32, %v8692_v2  ;;  %v13440_v34 = vmov 0.0  }
 0x2fd   : > { %v12027_v25 = vsel %vm7021_vm4, 1.0, %v13440_v34  ;;  %v6225_v13 = vand.u32 3, %v422_v41  ;;  %v534_v41 = vand.u32 63, %v364_v19 }
 0x2fe   : > { %8150 = vmatmul.mubr.msk.f32.gmra.mrb[52].mxu1 %vm4868_vm1, %v4838_v44  ;;  %v12016_v44 = vsel %vm7005_vm0, 1.0, %v13440_v34  ;;  %13679 = vst [vmem:[#allocation24_spill] sm:$0xff] %v12027_v25  ;;  %v443_v9 = vand.u32 63, %v351_v16 }
 0x2ff   : > { %v4390_v11 = vpop.permute.xlu1 %4389  ;;  %v4392_v51 = vpop.permute.xlu0 %4391  ;;  %8152 = vmatprep.mubr.msk.f32.mxu1 %vm4868_vm1, %v4839_v7  ;;  %13674 = vst [vmem:[#allocation45_spill] sm:$0xff] %v12016_v44  ;;  %vm6983_vm10 = vcmp.eq.s32.totalorder %v6225_v13, 0 }
 0x300   : > { %v4779_v53 = vsel %vm4719_vm14, %v11600_v33, %v4390_v11  ;;  %v4780_v31 = vsel %vm4719_vm14, %v11614_v17, %v4392_v51  ;;  %v13664_v33 = vld [vmem:[#allocation21_spill] sm:$0xff]  ;;  %v12023_v11 = vsel %vm7013_vm3, 1.0, %v13440_v34  ;;  %v13678_v51 = vld [vmem:[#allocation10_spill] sm:$0xff] }
 0x301   : > { %13677 = vst [vmem:[#allocation41_spill] sm:$0xff] %v12023_v11  ;;  %v6274_v0 = vand.u32 3, %v13678_v51 }
 0x302   : > { %8153 = vmatmul.mubr.msk.f32.gmra.mrb[54].mxu1 %vm4868_vm1, %v4840_v49  ;;  %v13680_v49 = vld [vmem:[#allocation12_spill] sm:$0xff] }
 0x303   : > { %v4646_v38 = vpop.permute.xlu1 %4645  ;;  %v4644_v8 = vpop.permute.xlu0 %4643  ;;  %8155 = vmatprep.mubr.msk.f32.mxu1 %vm4868_vm1, %v4841_v50  ;;  %v6330_v50 = vand.u32 3, %v13680_v49  ;;  %vm12046_vm9 = vcmp.eq.s32.totalorder %v6274_v0, 0  ;;  %v548_v0 = vand.u32 63, %v366_v28 }
 0x304   : > { %v4843_v14 = vsel %vm4784_vm15, %v4778_v58, %v4644_v8  ;;  %v4844_v35 = vsel %vm4784_vm15, %v4779_v53, %v4646_v38  ;;  %v6232_v38 = vand.u32 3, %v429_v12  ;;  %v436_v8 = vand.u32 63, %v350_v52 }
 0x305   : > { %v12031_v58 = vsel %vm7029_vm6, 1.0, %v13440_v34  ;;  %vm12068_vm7 = vcmp.eq.s32.totalorder %v6330_v50, 0  ;;  %v541_v12 = vand.u32 63, %v365_v22  ;;  %v369_v52 = vadd.s32 176, %v8692_v2 }
 0x306   : > { %8156 = vmatmul.mubr.msk.f32.gmra.mrb[56].mxu1 %vm4868_vm1, %v4842_v43  ;;  %13681 = vst [vmem:[#allocation42_spill] sm:$0xff] %v12031_v58  ;;  %v13682_v43 = vld [vmem:[#allocation14_spill] sm:$0xff]  ;;  %vm6984_vm8 = vcmp.eq.s32.totalorder %v6232_v38, 0  ;;  %v555_v50 = vand.u32 63, %v367_v21 }
 0x307   : > { %v4394_v59 = vpop.permute.xlu1 %4393  ;;  %v4648_v26 = vpop.permute.xlu0 %4647  ;;  %8158 = vmatprep.mubr.msk.f32.mxu1 %vm4868_vm1, %v4843_v14  ;;  %v12062_v29 = vsel %vm6984_vm8, 1.0, %v13440_v34 }
 0x308   : > { %v4845_v27 = vsel %vm4784_vm15, %v4780_v31, %v4648_v26  ;;  %v4781_v40 = vsel %vm4719_vm14, %v11618_v54, %v4394_v59  ;;  %v13666_v54 = vld [vmem:[#allocation5_spill] sm:$0xff]  ;;  %v352_v26 = vadd.s32 40, %v8692_v2 }
 0x309   : > { %v6267_v46 = vand.u32 3, %v13666_v54 }
 0x30a   : > { %8159 = vmatmul.mubr.msk.f32.gmra.mrb[58].mxu1 %vm4868_vm1, %v4844_v35  ;;  %v353_v35 = vadd.s32 48, %v8692_v2 }
 0x30b   : > { %v4650_v5 = vpop.permute.xlu1 %4649  ;;  %v4396_v18 = vpop.permute.xlu0 %4395  ;;  %8161 = vmatprep.mubr.msk.f32.mxu1 %vm4868_vm1, %v4845_v27  ;;  %vm6989_vm13 = vcmp.eq.s32.totalorder %v6267_v46, 0  ;;  %v356_v27 = vadd.s32 72, %v8692_v2  ;;  %v361_v46 = vadd.s32 112, %v8692_v2 }
 0x30c   : > { %v4846_v37 = vsel %vm4784_vm15, %v4781_v40, %v4650_v5  ;;  %v4782_v17 = vsel %vm4719_vm14, %v13664_v33, %v4396_v18  ;;  %v12010_v23 = vsel %vm6989_vm13, 1.0, %v13440_v34  ;;  %v357_v40 = vadd.s32 80, %v8692_v2 }
 0x30d   : > { %v358_v33 = vadd.s32 88, %v8692_v2  ;;  %v478_v54 = vand.u32 63, %v356_v27  ;;  %v513_v55 = vand.u32 63, %v361_v46 }
 0x30e   : > { %8162 = vmatmul.mubr.msk.f32.gmra.mrb[60].mxu1 %vm4868_vm1, %v4846_v37  ;;  %v6239_v37 = vand.u32 3, %v436_v8  ;;  %v562_v8 = vand.u32 63, %v368_v39 }
 0x30f   : > { %v4398_v32 = vpop.permute.xlu1 %4397  ;;  %v4652_v42 = vpop.permute.xlu0 %4651  ;;  %v492_v61 = vand.u32 63, %v358_v33  ;;  %v6281_v60 = vand.u32 3, %v478_v54  ;;  %v6316_v38 = vand.u32 3, %v513_v55 }
 0x310   : > { %v4847_v15 = vsel %vm4784_vm15, %v4782_v17, %v4652_v42  ;;  %v4783_v47 = vsel %vm4719_vm14, %v13665_v6, %v4398_v32  ;;  %vm6997_vm14 = vcmp.eq.s32.totalorder %v6323_v63, 0  ;;  %v6246_v32 = vand.u32 3, %v443_v9 }
 0x311   : > { %8164 = vmatprep.mubr.msk.f32.mxu1 %vm4868_vm1, %v4847_v15  ;;  %v12013_v57 = vsel %vm6997_vm14, 1.0, %v13440_v34  ;;  %v12053_v42 = vsel %vm12018_vm5, 1.0, %v13440_v34  ;;  %v450_v15 = vand.u32 63, %v352_v26  ;;  %v359_v6 = vadd.s32 96, %v8692_v2 }
 0x312   : > { %v485_v63 = vand.u32 63, %v357_v40  ;;  %vm6985_vm11 = vcmp.eq.s32.totalorder %v6239_v37, 0  ;;  %vm6986_vm12 = vcmp.eq.s32.totalorder %v6246_v32, 0  ;;  %v6295_v51 = vand.u32 3, %v492_v61  ;;  %v12093_v32 = vld [vmem:[%s13368_s4] ss:$0 sm:$0xff] }
 0x313   : > { %v4654_v56 = vpop.permute.xlu1 %4653  ;;  %v6253_v30 = vand.u32 3, %v450_v15  ;;  %v499_v48 = vand.u32 63, %v359_v6  ;;  %v12076_v16 = vsel %vm6985_vm11, 1.0, %v13440_v34  ;;  %v12080_v7 = vsel %vm6986_vm12, 1.0, %v13440_v34 }
 0x314   : > { %v4848_v24 = vsel %vm4784_vm15, %v4783_v47, %v4654_v56  ;;  %v360_v47 = vadd.s32 104, %v8692_v2  ;;  %v12058_v56 = vsel %vm6983_vm10, 1.0, %v13440_v34  ;;  %vm6991_vm0 = vcmp.eq.s32.totalorder %v6281_v60, 0 }
 0x315   : > { %8165 = vmatmul.mubr.msk.f32.gmra.mrb[62].mxu1 %vm4868_vm1, %v4848_v24  ;;  %vm7037_vm1 = vcmp.eq.s32.totalorder %v6603_v1, 0  ;;  %v457_v24 = vand.u32 63, %v353_v35  ;;  %v6288_v1 = vand.u32 3, %v485_v63  ;;  %vm6987_vm13 = vcmp.eq.s32.totalorder %v6253_v30, 0 }
 0x316   : > { %v12035_v59 = vsel %vm7037_vm1, 1.0, %v13440_v34  ;;  %v506_v36 = vand.u32 63, %v360_v47  ;;  %v6302_v13 = vand.u32 3, %v499_v48  ;;  %v6337_v9 = vand.u32 3, %v534_v41 }
 0x317   : > { %13683 = vst [vmem:[#allocation27_spill] sm:$0xff] %v12035_v59  ;;  %v6260_v20 = vand.u32 3, %v457_v24  ;;  %vm6992_vm3 = vcmp.eq.s32.totalorder %v6288_v1, 0  ;;  %v6344_v26 = vand.u32 3, %v541_v12  ;;  %v569_v35 = vand.u32 63, %v369_v52  ;;  %v7407_v1 = vld [vmem:[%s13369_s5 + $0x8] sm:$0xff] }
 0x318   : > { %v6309_v49 = vand.u32 3, %v506_v36  ;;  %v12083_v27 = vsel %vm6987_vm13, 1.0, %v13440_v34  ;;  %v12088_v40 = vsel %vm12046_vm9, 1.0, %v13440_v34  ;;  %vm6993_vm4 = vcmp.eq.s32.totalorder %v6295_v51, 0 }
 0x319   : > { %vm6988_vm14 = vcmp.eq.s32.totalorder %v6260_v20, 0  ;;  %v6351_v37 = vand.u32 3, %v548_v0  ;;  %vm6994_vm5 = vcmp.eq.s32.totalorder %v6302_v13, 0  ;;  %v6358_v15 = vand.u32 3, %v555_v50 }
 0x31a   : > { %v12096_v33 = vsel %vm6988_vm14, 1.0, %v13440_v34  ;;  %vm6995_vm6 = vcmp.eq.s32.totalorder %v6309_v49, 0  ;;  %v12100_v6 = vsel %vm6991_vm0, 1.0, %v13440_v34  ;;  %v12103_v17 = vsel %vm6992_vm3, 1.0, %v13440_v34 }
 0x31b   : > { %vm6996_vm1 = vcmp.eq.s32.totalorder %v6316_v38, 0  ;;  %v6365_v47 = vand.u32 3, %v562_v8  ;;  %v12106_v54 = vsel %vm6993_vm4, 1.0, %v13440_v34  ;;  %vm6999_vm10 = vcmp.eq.s32.totalorder %v6337_v9, 0 }
 0x31c   : > { %vm7000_vm8 = vcmp.eq.s32.totalorder %v6344_v26, 0  ;;  %v6372_v46 = vand.u32 3, %v569_v35  ;;  %v12110_v22 = vsel %vm6994_vm5, 1.0, %v13440_v34  ;;  %v12113_v61 = vsel %vm6995_vm6, 1.0, %v13440_v34 }
 0x31d   : > { %vm7001_vm9 = vcmp.eq.s32.totalorder %v6351_v37, 0  ;;  %v12117_v30 = vsel %vm6996_vm1, 1.0, %v13440_v34  ;;  %v12122_v48 = vsel %vm12068_vm7, 1.0, %v13440_v34  ;;  %vm7002_vm11 = vcmp.eq.s32.totalorder %v6358_v15, 0 }
 0x31e   : > { %v12125_v21 = vsel %vm6999_vm10, 1.0, %v13440_v34  ;;  %v12128_v20 = vsel %vm7000_vm8, 1.0, %v13440_v34  ;;  %vm7003_vm12 = vcmp.eq.s32.totalorder %v6365_v47, 0  ;;  %v12131_v39 = vsel %vm7001_vm9, 1.0, %v13440_v34 }
 0x31f   : > { %vm7004_vm13 = vcmp.eq.s32.totalorder %v6372_v46, 0  ;;  %v13442_v51 = vmov 0.0|0.0   ;;  %v8211_v0 = vpack.c.bf16 %v7407_v1, %v7406_v4  ;;  %v12142_v13 = vadd.s32 200, %v8692_v2 }
 0x320   : > { %8210 = vmatprep.subr.bf16.mxu0 %v13442_v51  ;;  %v12147_v38 = vsel %vm7002_vm11, 1.0, %v13440_v34  ;;  %v12151_v8 = vsel %vm7003_vm12, 1.0, %v13440_v34  ;;  %v12155_v35 = vsel %vm7004_vm13, 1.0, %v13440_v34  ;;  %v12158_v37 = vadd.s32 208, %v8692_v2 }
 0x321   : > { %13688 = vst [vmem:[#allocation43_spill] sm:$0xff] %v12151_v8  ;;  %13689 = vst [vmem:[#allocation34_spill] sm:$0xff] %v12155_v35  ;;  %8212 = vmatpush3.bf16.msra.mxu0 %v8211_v0 }
 0x322   : > { %8213 = vmatprep.subr.bf16.mxu0 %v13442_v51 }
 0x369   : > { %v8073_v24 = vpop.f32.mrb[0].mxu1 }
 0x36a   : > { %v5133_v63 = vadd.f32 %v8073_v24, %v12093_v32  ;;  %v5127_v19 = vpop.f32.mrb[1].mxu1 }
 0x36b   : > { %v5128_v28 = vadd.f32 %v12093_v32, %v5127_v19 }
 0x36c   : > { %v5511_v36 = vmul.f32 %v5133_v63, %v5133_v63  ;;  %v12160_v24 = vmul.f32 0.5, %v5133_v63 }
 0x36d   : > { %v5510_v60 = vmul.f32 %v5128_v28, %v5128_v28  ;;  %v8076_v55 = vpop.f32.mrb[2].mxu1  ;;  %v12162_v19 = vmul.f32 0.5, %v5128_v28 }
 0x36e   : > { %v5575_v41 = vmul.f32 %v5511_v36, %v5133_v63  ;;  %v5143_v12 = vadd.f32 %v8076_v55, %v12093_v32  ;;  %v5137_v52 = vpop.f32.mrb[3].mxu1 }
 0x36f   : > { %v5574_v49 = vmul.f32 %v5510_v60, %v5128_v28  ;;  %v5138_v50 = vadd.f32 %v12093_v32, %v5137_v52 }
 0x370   : > { %v5639_v9 = vmul.f32 0.044715, %v5575_v41  ;;  %v5513_v26 = vmul.f32 %v5143_v12, %v5143_v12  ;;  %v12167_v52 = vmul.f32 0.5, %v5143_v12 }
 0x371   : > { %v5638_v15 = vmul.f32 0.044715, %v5574_v49  ;;  %v5512_v36 = vmul.f32 %v5138_v50, %v5138_v50  ;;  %v8079_v60 = vpop.f32.mrb[4].mxu1  ;;  %v12171_v51 = vmul.f32 0.5, %v5138_v50 }
 0x372   : > { %v5703_v47 = vadd.f32 %v5639_v9, %v5133_v63  ;;  %v5577_v55 = vmul.f32 %v5513_v26, %v5143_v12  ;;  %v5153_v4 = vadd.f32 %v8079_v60, %v12093_v32  ;;  %v5147_v46 = vpop.f32.mrb[5].mxu1 }
 0x373   : > { %v5702_v41 = vadd.f32 %v5638_v15, %v5128_v28  ;;  %v5576_v0 = vmul.f32 %v5512_v36, %v5138_v50  ;;  %v5148_v18 = vadd.f32 %v12093_v32, %v5147_v46 }
 0x374   : > { %v5767_v5 = vmul.f32 0.7978846, %v5703_v47  ;;  %v5641_v31 = vmul.f32 0.044715, %v5577_v55  ;;  %v5515_v49 = vmul.f32 %v5153_v4, %v5153_v4  ;;  %v12175_v14 = vmul.f32 0.5, %v5153_v4 }
 0x375   : > { %v5766_v34 = vmul.f32 0.7978846, %v5702_v41  ;;  %v5640_v63 = vmul.f32 0.044715, %v5576_v0  ;;  %v5514_v9 = vmul.f32 %v5148_v18, %v5148_v18  ;;  %v8082_v26 = vpop.f32.mrb[6].mxu1  ;;  %v12177_v0 = vmul.f32 0.5, %v5148_v18 }
 0x376   : > { %8396 = vtanh.f32 %v5767_v5  ;;  %v5705_v60 = vadd.f32 %v5641_v31, %v5143_v12  ;;  %v5579_v1 = vmul.f32 %v5515_v49, %v5153_v4  ;;  %v5163_v28 = vadd.f32 %v8082_v26, %v12093_v32  ;;  %v5157_v15 = vpop.f32.mrb[7].mxu1 }
 0x377   : > { %8398 = vtanh.f32 %v5766_v34  ;;  %v5704_v36 = vadd.f32 %v5640_v63, %v5138_v50  ;;  %v5578_v46 = vmul.f32 %v5514_v9, %v5148_v18  ;;  %v5158_v47 = vadd.f32 %v12093_v32, %v5157_v15 }
 0x378   : > { %v5769_v55 = vmul.f32 0.7978846, %v5705_v60  ;;  %v5643_v41 = vmul.f32 0.044715, %v5579_v1  ;;  %v5517_v53 = vmul.f32 %v5163_v28, %v5163_v28  ;;  %v12181_v1 = vmul.f32 0.5, %v5163_v28 }
 0x379   : > { %v5768_v59 = vmul.f32 0.7978846, %v5704_v36  ;;  %v5642_v3 = vmul.f32 0.044715, %v5578_v46  ;;  %v5516_v5 = vmul.f32 %v5158_v47, %v5158_v47  ;;  %v8085_v31 = vpop.f32.mrb[8].mxu1  ;;  %v12183_v46 = vmul.f32 0.5, %v5158_v47 }
 0x37a   : > { %8400 = vtanh.f32 %v5769_v55  ;;  %v5707_v12 = vadd.f32 %v5643_v41, %v5153_v4  ;;  %v5581_v49 = vmul.f32 %v5517_v53, %v5163_v28  ;;  %v5173_v34 = vadd.f32 %v8085_v31, %v12093_v32  ;;  %v5167_v50 = vpop.f32.mrb[9].mxu1 }
 0x37b   : > { %8402 = vtanh.f32 %v5768_v59  ;;  %v5706_v63 = vadd.f32 %v5642_v3, %v5148_v18  ;;  %v5580_v9 = vmul.f32 %v5516_v5, %v5158_v47  ;;  %v5168_v26 = vadd.f32 %v12093_v32, %v5167_v50 }
 0x37c   : > { %v5771_v60 = vmul.f32 0.7978846, %v5707_v12  ;;  %v5645_v15 = vmul.f32 0.044715, %v5581_v49  ;;  %v5519_v36 = vmul.f32 %v5173_v34, %v5173_v34  ;;  %v12187_v50 = vmul.f32 0.5, %v5173_v34 }
 0x37d   : > { %v5770_v58 = vmul.f32 0.7978846, %v5706_v63  ;;  %v5644_v45 = vmul.f32 0.044715, %v5580_v9  ;;  %v5518_v55 = vmul.f32 %v5168_v26, %v5168_v26  ;;  %v8088_v4 = vpop.f32.mrb[10].mxu1 }
 0x37e   : > { %8404 = vtanh.f32 %v5771_v60  ;;  %v5709_v53 = vadd.f32 %v5645_v15, %v5163_v28  ;;  %v5583_v41 = vmul.f32 %v5519_v36, %v5173_v34  ;;  %v5183_v59 = vadd.f32 %v8088_v4, %v12093_v32  ;;  %v5177_v3 = vpop.f32.mrb[11].mxu1 }
 0x37f   : > { %8406 = vtanh.f32 %v5770_v58  ;;  %v5708_v18 = vadd.f32 %v5644_v45, %v5158_v47  ;;  %v5582_v5 = vmul.f32 %v5518_v55, %v5168_v26  ;;  %v5178_v31 = vadd.f32 %v12093_v32, %v5177_v3 }
 0x380   : > { %v8397_v12 = vpop.eup %8396  ;;  %v5773_v49 = vmul.f32 0.7978846, %v5709_v53  ;;  %v5647_v63 = vmul.f32 0.044715, %v5583_v41  ;;  %v5521_v25 = vmul.f32 %v5183_v59, %v5183_v59  ;;  %v12189_v60 = vmul.f32 0.5, %v5168_v26 }
 0x381   : > { %v8399_v9 = vpop.eup %8398  ;;  %v5895_v10 = vadd.f32 1.0, %v8397_v12  ;;  %v5772_v11 = vmul.f32 0.7978846, %v5708_v18  ;;  %v5646_v28 = vmul.f32 0.044715, %v5582_v5  ;;  %v8091_v45 = vpop.f32.mrb[12].mxu1  ;;  %v5520_v4 = vmul.f32 %v5178_v31, %v5178_v31 }
 0x382   : > { %v5894_v15 = vadd.f32 1.0, %v8399_v9  ;;  %8408 = vtanh.f32 %v5773_v49  ;;  %v5711_v36 = vadd.f32 %v5647_v63, %v5173_v34  ;;  %v5585_v58 = vmul.f32 %v5521_v25, %v5183_v59  ;;  %v5187_v53 = vpop.f32.mrb[13].mxu1 }
 0x383   : > { %v12192_v47 = vmul.f32 %v5895_v10, %v12160_v24  ;;  %8410 = vtanh.f32 %v5772_v11  ;;  %v5710_v55 = vadd.f32 %v5646_v28, %v5168_v26  ;;  %v12198_v5 = vadd.f32 %v8091_v45, %v12093_v32 }
 0x384   : > { %v8401_v41 = vpop.eup %8400  ;;  %v12195_v3 = vmul.f32 %v5894_v15, %v12162_v19  ;;  %v5775_v18 = vmul.f32 0.7978846, %v5711_v36  ;;  %v5649_v12 = vmul.f32 0.044715, %v5585_v58  ;;  %v5584_v10 = vmul.f32 %v5520_v4, %v5178_v31 }
 0x385   : > { %v8403_v49 = vpop.eup %8402  ;;  %v6023_v25 = vrot.slane %v12192_v47, 2  ;;  %v5897_v34 = vadd.f32 1.0, %v8401_v41  ;;  %v5774_v63 = vmul.f32 0.7978846, %v5710_v55  ;;  %v12201_v24 = vpop.f32.mrb[14].mxu1  ;;  %v12207_v15 = vmul.f32 0.5, %v5183_v59 }
 0x386   : > { %13690 = vst [vmem:[#allocation23_spill] sm:$0xff] %v12195_v3  ;;  %v13448_v11 = vrot.slane %v12195_v3, 2  ;;  %v5896_v26 = vadd.f32 1.0, %v8403_v49  ;;  %8412 = vtanh.f32 %v5775_v18  ;;  %v5713_v9 = vadd.f32 %v5649_v12, %v5183_v59  ;;  %v12204_v19 = vpop.f32.mrb[15].mxu1 }
 0x387   : > { %v5961_v28 = vmul.f32 %v5897_v34, %v12167_v52  ;;  %8414 = vtanh.f32 %v5774_v63  ;;  %v5648_v36 = vmul.f32 0.044715, %v5584_v10  ;;  %v5523_v41 = vmul.f32 %v12198_v5, %v12198_v5 }
 0x388   : > { %v8405_v58 = vpop.eup %8404  ;;  %v6148_v45 = vsel %vm4078_vm2, %v13448_v11, %v6023_v25  ;;  %v5960_v55 = vmul.f32 %v5896_v26, %v12171_v51  ;;  %v5777_v4 = vmul.f32 0.7978846, %v5713_v9  ;;  %v12224_v9 = vmul.f32 0.5, %v5178_v31 }
 0x389   : > { %v8407_v18 = vpop.eup %8406  ;;  %v6150_v12 = vmax.f32 %v12195_v3, %v6148_v45  ;;  %v6025_v52 = vrot.slane %v5961_v28, 2  ;;  %v5899_v49 = vadd.f32 1.0, %v8405_v58  ;;  %v5712_v59 = vadd.f32 %v5648_v36, %v5178_v31  ;;  %v12217_v34 = vpop.f32.mrb[16].mxu1 }
 0x38a   : > { %v6024_v63 = vrot.slane %v5960_v55, 2  ;;  %v5898_v10 = vadd.f32 1.0, %v8407_v18  ;;  %8416 = vtanh.f32 %v5777_v4  ;;  %v5587_v62 = vmul.f32 %v5523_v41, %v12198_v5  ;;  %v12220_v11 = vpop.f32.mrb[17].mxu1 }
 0x38b   : > { %v7174_v51 = vmul.f32 %v12053_v42, %v6150_v12  ;;  %v5963_v26 = vmul.f32 %v5899_v49, %v12175_v14  ;;  %v5776_v44 = vmul.f32 0.7978846, %v5712_v59  ;;  %v12233_v14 = vadd.f32 %v12093_v32, %v5187_v53 }
 0x38c   : > { %v8409_v45 = vpop.eup %8408  ;;  %v6146_v36 = vsel %vm4078_vm2, %v6024_v63, %v6025_v52  ;;  %v6147_v58 = vsel %vm4078_vm2, %v6023_v25, %v6024_v63  ;;  %v5962_v4 = vmul.f32 %v5898_v10, %v12177_v0  ;;  %v5651_v18 = vmul.f32 0.044715, %v5587_v62 }
 0x38d   : > { %v8411_v41 = vpop.eup %8410  ;;  %v6151_v3 = vmax.f32 %v12192_v47, %v6147_v58  ;;  %v6152_v35 = vmax.f32 %v5960_v55, %v6146_v36  ;;  %v6027_v42 = vrot.slane %v5963_v26, 2  ;;  %v12235_v31 = vpop.f32.mrb[18].mxu1  ;;  %v5901_v49 = vadd.f32 1.0, %v8409_v45 }
 0x38e   : > { %v6026_v12 = vrot.slane %v5962_v4, 2  ;;  %v5900_v59 = vadd.f32 1.0, %v8411_v41  ;;  %8418 = vtanh.f32 %v5776_v44  ;;  %v12237_v8 = vpop.f32.mrb[19].mxu1  ;;  %v7238_v25 = vsel %vm4784_vm15, %v7174_v51, 0.0 }
 0x38f   : > { %v7175_v62 = vmul.f32 %v12058_v56, %v6151_v3  ;;  %v7176_v0 = vmul.f32 %v12062_v29, %v6152_v35  ;;  %v5715_v47 = vadd.f32 %v5651_v18, %v12198_v5  ;;  %v5965_v10 = vmul.f32 %v5901_v49, %v12181_v1 }
 0x390   : > { %v8413_v55 = vpop.eup %8412  ;;  %v6144_v53 = vsel %vm4078_vm2, %v6026_v12, %v6027_v42  ;;  %v6145_v63 = vsel %vm4078_vm2, %v6025_v52, %v6026_v12  ;;  %v5964_v44 = vmul.f32 %v5900_v59, %v12183_v46  ;;  %v13691_v51 = vand.u32 3, %v13682_v43 }
 0x391   : > { %v8415_v45 = vpop.eup %8414  ;;  %v7239_v29 = vsel %vm4784_vm15, %v7175_v62, 0.0  ;;  %v7241_v35 = vsel %vm4784_vm15, %v7176_v0, 0.0  ;;  %v6153_v3 = vmax.f32 %v5961_v28, %v6145_v63  ;;  %v6154_v36 = vmax.f32 %v5962_v4, %v6144_v53  ;;  %v12257_v58 = vpop.f32.mrb[20].mxu1 }
 0x392   : > { %vm12251_vm7 = vcmp.eq.s32.totalorder %v13691_v51, 0  ;;  %v7240_v52 = vadd.f32 %v7239_v29, %v7238_v25  ;;  %v6029_v18 = vrot.slane %v5965_v10, 2  ;;  %v6028_v1 = vrot.slane %v5964_v44, 2  ;;  %v12259_v46 = vpop.f32.mrb[21].mxu1 }
 0x393   : > { %v5903_v41 = vadd.f32 1.0, %v8413_v55  ;;  %v7177_v43 = vmul.f32 %v12076_v16, %v6153_v3  ;;  %v7178_v12 = vmul.f32 %v12080_v7, %v6154_v36  ;;  %v5902_v49 = vadd.f32 1.0, %v8415_v45 }
 0x394   : > { %v5779_v59 = vmul.f32 0.7978846, %v5715_v47  ;;  %v8417_v51 = vpop.eup %8416  ;;  %v7242_v62 = vadd.f32 %v7241_v35, %v7240_v52  ;;  %v6142_v28 = vsel %vm4078_vm2, %v6028_v1, %v6029_v18  ;;  %v6143_v4 = vsel %vm4078_vm2, %v6027_v42, %v6028_v1 }
 0x395   : > { %v12268_v25 = vmul.f32 %v5903_v41, %v12187_v50  ;;  %v7243_v0 = vsel %vm4784_vm15, %v7177_v43, 0.0  ;;  %v7245_v55 = vsel %vm4784_vm15, %v7178_v12, 0.0  ;;  %v6155_v16 = vmax.f32 %v5963_v26, %v6143_v4  ;;  %v12272_v7 = vpop.f32.mrb[22].mxu1 }
 0x396   : > { %v6156_v53 = vmax.f32 %v5964_v44, %v6142_v28  ;;  %v7244_v47 = vadd.f32 %v7243_v0, %v7242_v62  ;;  %v5966_v45 = vmul.f32 %v5902_v49, %v12189_v60  ;;  %v5905_v29 = vadd.f32 1.0, %v8417_v51  ;;  %v12276_v35 = vpop.f32.mrb[23].mxu1 }
 0x397   : > { %v6031_v63 = vrot.slane %v12268_v25, 2  ;;  %v7179_v42 = vmul.f32 %v12083_v27, %v6155_v16  ;;  %8420 = vtanh.f32 %v5779_v59  ;;  %v5522_v3 = vmul.f32 %v12233_v14, %v12233_v14 }
 0x398   : > { %v7180_v50 = vmul.f32 %v12096_v33, %v6156_v53  ;;  %v8419_v26 = vpop.eup %8418  ;;  %v7246_v44 = vadd.f32 %v7245_v55, %v7244_v47  ;;  %v6030_v36 = vrot.slane %v5966_v45, 2  ;;  %v12283_v52 = vmul.f32 %v5905_v29, %v12207_v15 }
 0x399   : > { %v5203_v60 = vadd.f32 %v12201_v24, %v12093_v32  ;;  %v7247_v1 = vsel %vm4784_vm15, %v7179_v42, 0.0  ;;  %v5904_v27 = vadd.f32 1.0, %v8419_v26  ;;  %v5586_v33 = vmul.f32 %v5522_v3, %v12233_v14  ;;  %v12290_v43 = vpop.f32.mrb[24].mxu1 }
 0x39a   : > { %v7249_v41 = vsel %vm4784_vm15, %v7180_v50, 0.0  ;;  %v7248_v12 = vadd.f32 %v7247_v1, %v7246_v44  ;;  %v6140_v49 = vsel %vm4078_vm2, %v6030_v36, %v6031_v63  ;;  %v6141_v15 = vsel %vm4078_vm2, %v6029_v18, %v6030_v36  ;;  %v12297_v51 = vpop.f32.mrb[25].mxu1 }
 0x39b   : > { %v13450_v59 = vrot.slane %v12283_v52, 2  ;;  %v6157_v24 = vmax.f32 %v5965_v10, %v6141_v15  ;;  %v6158_v62 = vmax.f32 %v5966_v45, %v6140_v49  ;;  %v5968_v28 = vmul.f32 %v5904_v27, %v12224_v9 }
 0x39c   : > { %v5650_v4 = vmul.f32 0.044715, %v5586_v33  ;;  %v7250_v0 = vadd.f32 %v7249_v41, %v7248_v12  ;;  %v5525_v55 = vmul.f32 %v5203_v60, %v5203_v60  ;;  %v5198_v16 = vadd.f32 %v12093_v32, %v12204_v19 }
 0x39d   : > { %v13694_v53 = vmov 0.0   ;;  %v7181_v18 = vmul.f32 %v12010_v23, %v6157_v24  ;;  %v6032_v29 = vrot.slane %v5968_v28, 2  ;;  %v12309_v10 = vpop.f32.mrb[26].mxu1  ;;  %v13695_v9 = vand.u32 63, %v12142_v13 }
 0x39e   : > { %v12305_v47 = vsel %vm12251_vm7, 1.0, %v13694_v53  ;;  %v5714_v42 = vadd.f32 %v5650_v4, %v12233_v14  ;;  %v5589_v50 = vmul.f32 %v5525_v55, %v5203_v60  ;;  %v5524_v3 = vmul.f32 %v5198_v16, %v5198_v16  ;;  %v12317_v26 = vpop.f32.mrb[27].mxu1 }
 0x39f   : > { %v12313_v45 = vand.u32 3, %v13695_v9  ;;  %v5213_v19 = vadd.f32 %v12217_v34, %v12093_v32  ;;  %v13696_v56 = vand.u32 63, %v12158_v37  ;;  %v7182_v23 = vmul.f32 %v12088_v40, %v6158_v62 }
 0x3a0   : > { %v7251_v36 = vsel %vm4784_vm15, %v7181_v18, 0.0  ;;  %v6138_v13 = vsel %vm4078_vm2, %v6032_v29, %v13450_v59  ;;  %v6139_v1 = vsel %vm4078_vm2, %v6031_v63, %v6032_v29  ;;  %v5778_v33 = vmul.f32 0.7978846, %v5714_v42 }
 0x3a1   : > { %v12321_v44 = vand.u32 3, %v13696_v56  ;;  %v7252_v41 = vadd.f32 %v7251_v36, %v7250_v0  ;;  %v6159_v34 = vmax.f32 %v12268_v25, %v6139_v1  ;;  %v6160_v27 = vmax.f32 %v5968_v28, %v6138_v13  ;;  %v8421_v37 = vpop.eup %8420  ;;  %v12333_v24 = vpop.f32.mrb[28].mxu1 }
 0x3a2   : > { %v5459_v12 = vmul.f32 0.5, %v12198_v5  ;;  %v5653_v49 = vmul.f32 0.044715, %v5589_v50  ;;  %v5588_v40 = vmul.f32 %v5524_v3, %v5198_v16  ;;  %v5527_v15 = vmul.f32 %v5213_v19, %v5213_v19  ;;  %v12338_v0 = vpop.f32.mrb[29].mxu1 }
 0x3a3   : > { %v7253_v62 = vrot.slane %v7252_v41, 4  ;;  %v7183_v4 = vmul.f32 %v12100_v6, %v6159_v34  ;;  %v7184_v55 = vmul.f32 %v12103_v17, %v6160_v27  ;;  %v5458_v63 = vmul.f32 0.5, %v12233_v14 }
 0x3a4   : > { %8422 = vtanh.f32 %v5778_v33  ;;  %v5717_v25 = vadd.f32 %v5653_v49, %v5203_v60  ;;  %v5652_v28 = vmul.f32 0.044715, %v5588_v40  ;;  %v5591_v18 = vmul.f32 %v5527_v15, %v5213_v19 }
 0x3a5   : > { %v7254_v29 = vadd.f32 %v7253_v62, %v7252_v41  ;;  %v7259_v5 = vsel %vm4784_vm15, %v7182_v23, 0.0  ;;  %v7260_v42 = vsel %vm4784_vm15, %v7183_v4, 0.0  ;;  %v5907_v9 = vadd.f32 1.0, %v8421_v37  ;;  %v12342_v36 = vpop.f32.mrb[30].mxu1 }
 0x3a6   : > { %v7261_v50 = vadd.f32 %v7260_v42, %v7259_v5  ;;  %v5781_v3 = vmul.f32 0.7978846, %v5717_v25  ;;  %v5716_v56 = vadd.f32 %v5652_v28, %v5198_v16  ;;  %v5655_v6 = vmul.f32 0.044715, %v5591_v18  ;;  %v12351_v23 = vpop.f32.mrb[31].mxu1 }
 0x3a7   : > { %v7262_v17 = vsel %vm4784_vm15, %v7184_v55, 0.0  ;;  %v12345_v14 = vmul.f32 0.5, %v5203_v60  ;;  %v5208_v13 = vadd.f32 %v12093_v32, %v12220_v11  ;;  %v5223_v1 = vadd.f32 %v12235_v31, %v12093_v32 }
 0x3a8   : > { %v12353_v41 = vadd.f32 %v7262_v17, %v7261_v50  ;;  %8424 = vtanh.f32 %v5781_v3  ;;  %v5780_v34 = vmul.f32 0.7978846, %v5716_v56  ;;  %v5719_v27 = vadd.f32 %v5655_v6, %v5213_v19 }
 0x3a9   : > { %v7255_v33 = vrot.slane %v7254_v29, 2  ;;  %v12355_v37 = vmul.f32 %v5907_v9, %v5459_v12  ;;  %v12357_v49 = vmul.f32 0.5, %v5198_v16  ;;  %v5526_v60 = vmul.f32 %v5208_v13, %v5208_v13  ;;  %v12363_v31 = vpop.f32.mrb[32].mxu1 }
 0x3aa   : > { %8426 = vtanh.f32 %v5780_v34  ;;  %v5783_v40 = vmul.f32 0.7978846, %v5719_v27  ;;  %v5529_v15 = vmul.f32 %v5223_v1, %v5223_v1  ;;  %v12361_v11 = vadd.f32 %v12093_v32, %v12237_v8  ;;  %v12377_v55 = vpop.f32.mrb[33].mxu1 }
 0x3ab   : > { %v5590_v62 = vmul.f32 %v5526_v60, %v5208_v13  ;;  %v12367_v4 = vadd.f32 %v12257_v58, %v12093_v32  ;;  %v12371_v12 = vadd.f32 %v12093_v32, %v12259_v46  ;;  %v12375_v16 = vadd.f32 %v12272_v7, %v12093_v32 }
 0x3ac   : > { %v12379_v25 = vmul.f32 0.5, %v5213_v19  ;;  %8428 = vtanh.f32 %v5783_v40  ;;  %v5593_v8 = vmul.f32 %v5529_v15, %v5223_v1  ;;  %v5528_v28 = vmul.f32 %v12361_v11, %v12361_v11 }
 0x3ad   : > { %v12383_v18 = vadd.f32 %v7255_v33, %v7254_v29  ;;  %v5654_v5 = vmul.f32 0.044715, %v5590_v62  ;;  %v5531_v46 = vmul.f32 %v12367_v4, %v12367_v4  ;;  %v12388_v7 = vmul.f32 0.5, %v5208_v13  ;;  %v12393_v3 = vpop.f32.mrb[34].mxu1 }
 0x3ae   : > { %v8423_v42 = vpop.eup %8422  ;;  %v5657_v9 = vmul.f32 0.044715, %v5593_v8  ;;  %v5592_v19 = vmul.f32 %v5528_v28, %v12361_v11  ;;  %v5530_v50 = vmul.f32 %v12371_v12, %v12371_v12  ;;  %v5533_v17 = vmul.f32 %v12375_v16, %v12375_v16  ;;  %v12398_v34 = vpop.f32.mrb[35].mxu1 }
 0x3af   : > { %13697 = vst [vmem:[#allocation47_spill] sm:$0xff] %v12383_v18  ;;  %v5906_v56 = vadd.f32 1.0, %v8423_v42  ;;  %v5718_v29 = vadd.f32 %v5654_v5, %v5208_v13  ;;  %v5595_v6 = vmul.f32 %v5531_v46, %v12367_v4  ;;  %v12400_v27 = vmul.f32 0.5, %v5223_v1 }
 0x3b0   : > { %v5721_v33 = vadd.f32 %v5657_v9, %v5223_v1  ;;  %v5656_v60 = vmul.f32 0.044715, %v5592_v19  ;;  %v5594_v40 = vmul.f32 %v5530_v50, %v12371_v12  ;;  %v5597_v28 = vmul.f32 %v5533_v17, %v12375_v16 }
 0x3b1   : > { %v5970_v15 = vmul.f32 %v5906_v56, %v5458_v63  ;;  %v5782_v62 = vmul.f32 0.7978846, %v5718_v29  ;;  %v5659_v8 = vmul.f32 0.044715, %v5595_v6  ;;  %v12407_v59 = vadd.f32 %v12093_v32, %v12276_v35  ;;  %v12409_v58 = vpop.f32.mrb[36].mxu1 }
 0x3b2   : > { %v8425_v42 = vpop.eup %8424  ;;  %v5785_v13 = vmul.f32 0.7978846, %v5721_v33  ;;  %v5720_v5 = vadd.f32 %v5656_v60, %v12361_v11  ;;  %v5658_v46 = vmul.f32 0.044715, %v5594_v40  ;;  %13698 = vst [vmem:[#allocation31_spill] sm:$0xff] %v12409_v58  ;;  %v12412_v19 = vpop.f32.mrb[37].mxu1 }
 0x3b3   : > { %v6034_v1 = vrot.slane %v5970_v15, 2  ;;  %v5909_v9 = vadd.f32 1.0, %v8425_v42  ;;  %8430 = vtanh.f32 %v5782_v62  ;;  %v5723_v63 = vadd.f32 %v5659_v8, %v12367_v4  ;;  %13699 = vst [vmem:[#allocation48_spill] sm:$0xff] %v12412_v19 }
 0x3b4   : > { %v8427_v50 = vpop.eup %8426  ;;  %8432 = vtanh.f32 %v5785_v13  ;;  %v5784_v56 = vmul.f32 0.7978846, %v5720_v5  ;;  %v5722_v29 = vadd.f32 %v5658_v46, %v12371_v12  ;;  %v5661_v6 = vmul.f32 0.044715, %v5597_v28 }
 0x3b5   : > { %v13700_v17 = vrot.slane %v12355_v37, 2  ;;  %v13701_v33 = vrot.slane %v12283_v52, 2  ;;  %v12424_v40 = vmul.f32 %v5909_v9, %v12345_v14  ;;  %v5908_v62 = vadd.f32 1.0, %v8427_v50  ;;  %v12427_v5 = vpop.f32.mrb[38].mxu1 }
 0x3b6   : > { %v8429_v8 = vpop.eup %8428  ;;  %8434 = vtanh.f32 %v5784_v56  ;;  %v5787_v28 = vmul.f32 0.7978846, %v5723_v63  ;;  %v5786_v19 = vmul.f32 0.7978846, %v5722_v29  ;;  %v12431_v58 = vpop.f32.mrb[39].mxu1  ;;  %v5464_v9 = vmul.f32 0.5, %v12361_v11 }
 0x3b7   : > { %v6136_v35 = vsel %vm4078_vm2, %v6034_v1, %v13700_v17  ;;  %v6137_v60 = vsel %vm4078_vm2, %v13701_v33, %v6034_v1  ;;  %v13452_v46 = vrot.slane %v12424_v40, 2  ;;  %v5972_v17 = vmul.f32 %v5908_v62, %v12357_v49 }
 0x3b8   : > { %v6161_v42 = vmax.f32 %v12283_v52, %v6137_v60  ;;  %v6162_v13 = vmax.f32 %v5970_v15, %v6136_v35  ;;  %v5911_v18 = vadd.f32 1.0, %v8429_v8  ;;  %8436 = vtanh.f32 %v5787_v28 }
 0x3b9   : > { %v5725_v52 = vadd.f32 %v5661_v6, %v12375_v16  ;;  %v6036_v15 = vrot.slane %v5972_v17, 2  ;;  %8438 = vtanh.f32 %v5786_v19  ;;  %v5532_v63 = vmul.f32 %v12407_v59, %v12407_v59 }
 0x3ba   : > { %v7185_v14 = vmul.f32 %v12106_v54, %v6161_v42  ;;  %v7186_v1 = vmul.f32 %v12110_v22, %v6162_v13  ;;  %v12441_v50 = vmul.f32 %v5911_v18, %v12379_v25  ;;  %v12445_v54 = vadd.f32 %v12290_v43, %v12093_v32  ;;  %v12447_v22 = vpop.f32.mrb[40].mxu1 }
 0x3bb   : > { %v5789_v56 = vmul.f32 0.7978846, %v5725_v52  ;;  %v6134_v19 = vsel %vm4078_vm2, %v6036_v15, %v13452_v46  ;;  %v13702_v6 = vrot.slane %v12355_v37, 2  ;;  %v12459_v18 = vpop.f32.mrb[41].mxu1  ;;  %v5467_v62 = vmul.f32 0.5, %v12367_v4 }
 0x3bc   : > { %v7264_v49 = vsel %vm4784_vm15, %v7185_v14, 0.0  ;;  %v7266_v11 = vsel %vm4784_vm15, %v7186_v1, 0.0  ;;  %v6164_v35 = vmax.f32 %v5972_v17, %v6134_v19  ;;  %v5535_v8 = vmul.f32 %v12445_v54, %v12445_v54 }
 0x3bd   : > { %v7265_v29 = vadd.f32 %v7264_v49, %v12353_v41  ;;  %v6135_v25 = vsel %vm4078_vm2, %v13702_v6, %v6036_v15  ;;  %8440 = vtanh.f32 %v5789_v56  ;;  %v5596_v41 = vmul.f32 %v5532_v63, %v12407_v59  ;;  %v8431_v33 = vpop.eup %8430  ;;  %v12472_v1 = vpop.f32.mrb[42].mxu1 }
 0x3be   : > { %v6163_v43 = vmax.f32 %v12355_v37, %v6135_v25  ;;  %v12468_v42 = vadd.f32 %v12093_v32, %v12297_v51  ;;  %v8433_v13 = vpop.eup %8432  ;;  %v7188_v37 = vmul.f32 %v12117_v30, %v6164_v35  ;;  %v5910_v17 = vadd.f32 1.0, %v8431_v33  ;;  %v12478_v49 = vpop.f32.mrb[43].mxu1 }
 0x3bf   : > { %v7267_v60 = vadd.f32 %v7266_v11, %v7265_v29  ;;  %v5660_v14 = vmul.f32 0.044715, %v5596_v41  ;;  %v5913_v52 = vadd.f32 1.0, %v8433_v13  ;;  %v5466_v15 = vmul.f32 0.5, %v12371_v12 }
 0x3c0   : > { %v7187_v28 = vmul.f32 %v12113_v61, %v6163_v43  ;;  %v5599_v4 = vmul.f32 %v5535_v8, %v12445_v54  ;;  %v5534_v63 = vmul.f32 %v12468_v42, %v12468_v42  ;;  %v8435_v51 = vpop.eup %8434  ;;  %v6039_v61 = vrot.slane %v12441_v50, 2 }
 0x3c1   : > { %v5974_v30 = vmul.f32 %v5910_v17, %v12388_v7  ;;  %v5724_v29 = vadd.f32 %v5660_v14, %v12407_v59  ;;  %v7270_v19 = vsel %vm4784_vm15, %v7188_v37, 0.0  ;;  %v5977_v12 = vmul.f32 %v5913_v52, %v12400_v27  ;;  %v12487_v8 = vpop.f32.mrb[44].mxu1 }
 0x3c2   : > { %v7268_v56 = vsel %vm4784_vm15, %v7187_v28, 0.0  ;;  %v5912_v6 = vadd.f32 1.0, %v8435_v51  ;;  %v8437_v25 = vpop.eup %8436  ;;  %v5663_v41 = vmul.f32 0.044715, %v5599_v4  ;;  %v5598_v33 = vmul.f32 %v5534_v63, %v12468_v42  ;;  %v12489_v14 = vpop.f32.mrb[45].mxu1 }
 0x3c3   : > { %v7269_v11 = vadd.f32 %v7268_v56, %v7267_v60  ;;  %v6038_v43 = vrot.slane %v5974_v30, 2  ;;  %v5788_v35 = vmul.f32 0.7978846, %v5724_v29  ;;  %v8439_v13 = vpop.eup %8438  ;;  %v6041_v46 = vrot.slane %v5977_v12, 2 }
 0x3c4   : > { %v5976_v7 = vmul.f32 %v5912_v6, %v5464_v9  ;;  %v5915_v17 = vadd.f32 1.0, %v8437_v25  ;;  %v13703_v27 = vrot.slane %v12424_v40, 2  ;;  %v5914_v52 = vadd.f32 1.0, %v8439_v13 }
 0x3c5   : > { %v7271_v28 = vadd.f32 %v7270_v19, %v7269_v11  ;;  %v6132_v60 = vsel %vm4078_vm2, %v6038_v43, %v6039_v61  ;;  %8442 = vtanh.f32 %v5788_v35  ;;  %v5469_v11 = vmul.f32 0.5, %v12375_v16  ;;  %v12506_v25 = vpop.f32.mrb[46].mxu1 }
 0x3c6   : > { %v6133_v37 = vsel %vm4078_vm2, %v13703_v27, %v6038_v43  ;;  %v6166_v63 = vmax.f32 %v5974_v30, %v6132_v60  ;;  %v6040_v51 = vrot.slane %v5976_v7, 2  ;;  %v12498_v56 = vmul.f32 %v5915_v17, %v5467_v62  ;;  %v12514_v30 = vpop.f32.mrb[47].mxu1 }
 0x3c7   : > { %v6165_v4 = vmax.f32 %v12424_v40, %v6133_v37  ;;  %v8441_v9 = vpop.eup %8440  ;;  %v5978_v29 = vmul.f32 %v5914_v52, %v5466_v15  ;;  %v5727_v19 = vadd.f32 %v5663_v41, %v12445_v54  ;;  %v12504_v6 = vadd.f32 %v12309_v10, %v12093_v32 }
 0x3c8   : > { %v7190_v40 = vmul.f32 %v12122_v48, %v6166_v63  ;;  %v6130_v62 = vsel %vm4078_vm2, %v6040_v51, %v6041_v46  ;;  %v6131_v15 = vsel %vm4078_vm2, %v6039_v61, %v6040_v51  ;;  %v6043_v10 = vrot.slane %v12498_v56, 2 }
 0x3c9   : > { %v7189_v43 = vmul.f32 %v12013_v57, %v6165_v4  ;;  %v6167_v16 = vmax.f32 %v12441_v50, %v6131_v15  ;;  %v6168_v35 = vmax.f32 %v5976_v7, %v6130_v62  ;;  %v6042_v41 = vrot.slane %v5978_v29, 2  ;;  %v12523_v52 = vpop.f32.mrb[48].mxu1 }
 0x3ca   : > { %v5917_v17 = vadd.f32 1.0, %v8441_v9  ;;  %v5791_v57 = vmul.f32 0.7978846, %v5727_v19  ;;  %v5662_v60 = vmul.f32 0.044715, %v5598_v33  ;;  %v7280_v50 = vsel %vm4784_vm15, %v7190_v40, 0.0 }
 0x3cb   : > { %v7272_v13 = vsel %vm4784_vm15, %v7189_v43, 0.0  ;;  %v7191_v27 = vmul.f32 %v12125_v21, %v6167_v16  ;;  %v7192_v37 = vmul.f32 %v12128_v20, %v6168_v35  ;;  %v6128_v61 = vsel %vm4078_vm2, %v6042_v41, %v6043_v10  ;;  %v12528_v63 = vpop.f32.mrb[49].mxu1 }
 0x3cc   : > { %v7273_v48 = vadd.f32 %v7272_v13, %v7271_v28  ;;  %v6129_v7 = vsel %vm4078_vm2, %v6041_v46, %v6042_v41  ;;  %v6170_v4 = vmax.f32 %v5978_v29, %v6128_v61  ;;  %8444 = vtanh.f32 %v5791_v57 }
 0x3cd   : > { %v7281_v28 = vsel %vm4784_vm15, %v7191_v27, 0.0  ;;  %v6169_v21 = vmax.f32 %v5977_v12, %v6129_v7  ;;  %v12531_v51 = vmul.f32 %v5917_v17, %v5469_v11  ;;  %v7283_v9 = vsel %vm4784_vm15, %v7192_v37, 0.0  ;;  %v12543_v11 = vpop.f32.mrb[50].mxu1 }
 0x3ce   : > { %v7274_v33 = vrot.slane %v7273_v48, 4  ;;  %v7282_v20 = vadd.f32 %v7281_v28, %v7280_v50  ;;  %v5468_v19 = vmul.f32 0.5, %v12407_v59  ;;  %v5726_v43 = vadd.f32 %v5662_v60, %v12468_v42  ;;  %v12545_v41 = vpop.f32.mrb[51].mxu1 }
 0x3cf   : > { %v8443_v40 = vpop.eup %8442  ;;  %v7193_v46 = vmul.f32 %v12131_v39, %v6169_v21  ;;  %v7194_v29 = vmul.f32 %v12147_v38, %v6170_v4  ;;  %v5537_v62 = vmul.f32 %v12504_v6, %v12504_v6  ;;  %v5258_v12 = vadd.f32 %v12093_v32, %v12317_v26 }
 0x3d0   : > { %vm7007_vm14 = vcmp.eq.s32.totalorder %v12313_v45, 0  ;;  %v7275_v15 = vadd.f32 %v7274_v33, %v7273_v48  ;;  %v7284_v16 = vadd.f32 %v7283_v9, %v7282_v20  ;;  %v5916_v59 = vadd.f32 1.0, %v8443_v40 }
 0x3d1   : > { %v5790_v35 = vmul.f32 0.7978846, %v5726_v43  ;;  %v7285_v39 = vsel %vm4784_vm15, %v7193_v46, 0.0  ;;  %v6045_v38 = vrot.slane %v12531_v51, 2  ;;  %v5471_v13 = vmul.f32 0.5, %v12445_v54  ;;  %v12556_v61 = vpop.f32.mrb[52].mxu1 }
 0x3d2   : > { %v5601_v17 = vmul.f32 %v5537_v62, %v12504_v6  ;;  %v7286_v57 = vadd.f32 %v7285_v39, %v7284_v16  ;;  %v5980_v32 = vmul.f32 %v5916_v59, %v5468_v19  ;;  %v5536_v26 = vmul.f32 %v5258_v12, %v5258_v12  ;;  %v12558_v33 = vpop.f32.mrb[53].mxu1 }
 0x3d3   : > { %8446 = vtanh.f32 %v5790_v35  ;;  %v7287_v60 = vsel %vm4784_vm15, %v7194_v29, 0.0  ;;  %v5470_v48 = vmul.f32 0.5, %v12468_v42  ;;  %v12554_v27 = vmul.f32 0.5, %v12504_v6  ;;  %v12566_v42 = vld [vmem:[%s13368_s4] ss:$0 sm:$0xff] }
 0x3d4   : > { %v5665_v37 = vmul.f32 0.044715, %v5601_v17  ;;  %v7276_v50 = vrot.slane %v7275_v15, 2  ;;  %v7288_v7 = vadd.f32 %v7287_v60, %v7286_v57  ;;  %v6044_v4 = vrot.slane %v5980_v32, 2 }
 0x3d5   : > { %v5600_v54 = vmul.f32 %v5536_v26, %v5258_v12  ;;  %v12561_v21 = vmul.f32 0.5, %v5258_v12  ;;  %v5273_v20 = vadd.f32 %v12566_v42, %v12333_v24  ;;  %v374_v9 = vadd.s32 216, %v8692_v2  ;;  %v12580_v59 = vpop.f32.mrb[54].mxu1  ;;  %v13705_v26 = vld [vmem:[#allocation43_spill] sm:$0xff] }
 0x3d6   : > { %v5729_v28 = vadd.f32 %v5665_v37, %v12504_v6  ;;  %v8445_v19 = vpop.eup %8444  ;;  %v6126_v43 = vsel %vm4078_vm2, %v6044_v4, %v6045_v38  ;;  %v6127_v6 = vsel %vm4078_vm2, %v6043_v10, %v6044_v4  ;;  %v5268_v46 = vadd.f32 %v12566_v42, %v12338_v0  ;;  %v12584_v57 = vpop.f32.mrb[55].mxu1  ;;  %v13706_v0 = vld [vmem:[#allocation34_spill] sm:$0xff] }
 0x3d7   : > { %v5664_v40 = vmul.f32 0.044715, %v5600_v54  ;;  %v6171_v29 = vmax.f32 %v12498_v56, %v6127_v6  ;;  %v6172_v62 = vmax.f32 %v5980_v32, %v6126_v43  ;;  %v5919_v16 = vadd.f32 1.0, %v8445_v19 }
 0x3d8   : > { %v5793_v24 = vmul.f32 0.7978846, %v5729_v28  ;;  %vm7008_vm0 = vcmp.eq.s32.totalorder %v12321_v44, 0  ;;  %v5539_v39 = vmul.f32 %v5273_v20, %v5273_v20  ;;  %v375_v17 = vadd.s32 224, %v8692_v2 }
 0x3d9   : > { %v5728_v35 = vadd.f32 %v5664_v40, %v5258_v12  ;;  %v12586_v10 = vadd.f32 %v7276_v50, %v7275_v15  ;;  %v7195_v60 = vmul.f32 %v13705_v26, %v6171_v29  ;;  %v7196_v37 = vmul.f32 %v13706_v0, %v6172_v62 }
 0x3da   : > { %8448 = vtanh.f32 %v5793_v24  ;;  %v12593_v32 = vsel %vm7007_vm14, 1.0, %v13694_v53  ;;  %v5603_v12 = vmul.f32 %v5539_v39, %v5273_v20  ;;  %v604_v44 = vand.u32 63, %v374_v9 }
 0x3db   : > { %13704 = vst [vmem:[#allocation32_spill] sm:$0xff] %v12586_v10  ;;  %v5792_v56 = vmul.f32 0.7978846, %v5728_v35  ;;  %v7289_v4 = vsel %vm4784_vm15, %v7195_v60, 0.0  ;;  %v12596_v54 = vmul.f32 %v5919_v16, %v5471_v13  ;;  %v12599_v15 = vsel %vm7008_vm0, 1.0, %v13694_v53  ;;  %v12605_v35 = vpop.f32.mrb[56].mxu1 }
 0x3dc   : > { %v5538_v50 = vmul.f32 %v5268_v46, %v5268_v46  ;;  %v7290_v19 = vadd.f32 %v7289_v4, %v7288_v7  ;;  %v5667_v43 = vmul.f32 0.044715, %v5603_v12  ;;  %v611_v6 = vand.u32 63, %v375_v17 }
 0x3dd   : > { %v8447_v28 = vpop.eup %8446  ;;  %8450 = vtanh.f32 %v5792_v56  ;;  %v7291_v40 = vsel %vm4784_vm15, %v7196_v37, 0.0  ;;  %v5283_v9 = vadd.f32 %v12566_v42, %v12342_v36  ;;  %v6407_v13 = vand.u32 3, %v604_v44 }
 0x3de   : > { %v5918_v45 = vadd.f32 1.0, %v8447_v28  ;;  %v5602_v29 = vmul.f32 %v5538_v50, %v5268_v46  ;;  %v7292_v62 = vadd.f32 %v7291_v40, %v7290_v19  ;;  %v5731_v24 = vadd.f32 %v5667_v43, %v5273_v20 }
 0x3df   : > { %v376_v16 = vadd.s32 232, %v8692_v2  ;;  %v13453_v39 = vrot.slane %v12596_v54, 2  ;;  %v12608_v26 = vmul.f32 0.5, %v5273_v20  ;;  %v12610_v0 = vmul.f32 0.5, %v5268_v46 }
 0x3e0   : > { %v5982_v7 = vmul.f32 %v5918_v45, %v5470_v48  ;;  %v5666_v17 = vmul.f32 0.044715, %v5602_v29  ;;  %v5795_v60 = vmul.f32 0.7978846, %v5731_v24  ;;  %v6414_v37 = vand.u32 3, %v611_v6  ;;  %v12623_v6 = vpop.f32.mrb[57].mxu1 }
 0x3e1   : > { %v5541_v56 = vmul.f32 %v5283_v9, %v5283_v9  ;;  %v377_v4 = vadd.s32 240, %v8692_v2  ;;  %v618_v44 = vand.u32 63, %v376_v16  ;;  %vm7009_vm3 = vcmp.eq.s32.totalorder %v6407_v13, 0 }
 0x3e2   : > { %v6046_v12 = vrot.slane %v5982_v7, 2  ;;  %v5730_v36 = vadd.f32 %v5666_v17, %v5268_v46  ;;  %8452 = vtanh.f32 %v5795_v60  ;;  %v5278_v28 = vadd.f32 %v12566_v42, %v12351_v23  ;;  %v13707_v60 = vld [vmem:[#allocation45_spill] sm:$0xff] }
 0x3e3   : > { %v5605_v50 = vmul.f32 %v5541_v56, %v5283_v9  ;;  %v625_v43 = vand.u32 63, %v377_v4  ;;  %vm7010_vm4 = vcmp.eq.s32.totalorder %v6414_v37, 0  ;;  %v6421_v16 = vand.u32 3, %v618_v44 }
 0x3e4   : > { %v8449_v48 = vpop.eup %8448  ;;  %v6124_v20 = vsel %vm4078_vm2, %v6046_v12, %v13453_v39  ;;  %v6125_v46 = vsel %vm4078_vm2, %v6045_v38, %v6046_v12  ;;  %v5794_v19 = vmul.f32 0.7978846, %v5730_v36  ;;  %v5540_v24 = vmul.f32 %v5278_v28, %v5278_v28 }
 0x3e5   : > { %v6173_v40 = vmax.f32 %v12531_v51, %v6125_v46  ;;  %v6174_v45 = vmax.f32 %v5982_v7, %v6124_v20  ;;  %v5921_v29 = vadd.f32 1.0, %v8449_v48  ;;  %v5669_v23 = vmul.f32 0.044715, %v5605_v50  ;;  %v12635_v20 = vpop.f32.mrb[58].mxu1 }
 0x3e6   : > { %8454 = vtanh.f32 %v5794_v19  ;;  %v5293_v12 = vadd.f32 %v12566_v42, %v12363_v31  ;;  %v5604_v7 = vmul.f32 %v5540_v24, %v5278_v28  ;;  %v6428_v4 = vand.u32 3, %v625_v43 }
 0x3e7   : > { %v8451_v17 = vpop.eup %8450  ;;  %v7197_v56 = vmul.f32 %v13707_v60, %v6173_v40  ;;  %v12628_v39 = vmul.f32 %v5921_v29, %v12554_v27  ;;  %v5733_v38 = vadd.f32 %v5669_v23, %v5283_v9  ;;  %v7198_v36 = vmul.f32 %v12305_v47, %v6174_v45  ;;  %v12638_v40 = vpop.f32.mrb[59].mxu1 }
 0x3e8   : > { %v5920_v51 = vadd.f32 1.0, %v8451_v17  ;;  %vm7011_vm5 = vcmp.eq.s32.totalorder %v6421_v16, 0  ;;  %v5668_v19 = vmul.f32 0.044715, %v5604_v7  ;;  %vm7012_vm6 = vcmp.eq.s32.totalorder %v6428_v4, 0 }
 0x3e9   : > { %v7293_v50 = vsel %vm4784_vm15, %v7197_v56, 0.0  ;;  %v13454_v48 = vrot.slane %v12628_v39, 2  ;;  %v5797_v44 = vmul.f32 0.7978846, %v5733_v38  ;;  %v12642_v47 = vsel %vm7009_vm3, 1.0, %v13694_v53  ;;  %v13709_v38 = vld [vmem:[#allocation16_spill] sm:$0xff] }
 0x3ea   : > { %v7294_v46 = vadd.f32 %v7293_v50, %v7292_v62  ;;  %v5984_v27 = vmul.f32 %v5920_v51, %v12561_v21  ;;  %v12646_v31 = vsel %vm7010_vm4, 1.0, %v13694_v53  ;;  %v5477_v43 = vmul.f32 0.5, %v5283_v9 }
 0x3eb   : > { %8456 = vtanh.f32 %v5797_v44  ;;  %v12648_v29 = vmul.f32 0.5, %v5278_v28  ;;  %v5732_v62 = vadd.f32 %v5668_v19, %v5278_v28  ;;  %v5543_v23 = vmul.f32 %v5293_v12, %v5293_v12 }
 0x3ec   : > { %v6048_v45 = vrot.slane %v5984_v27, 2  ;;  %v8453_v21 = vpop.eup %8452  ;;  %v7301_v24 = vsel %vm4784_vm15, %v7198_v36, 0.0  ;;  %v12653_v17 = vsel %vm7011_vm5, 1.0, %v13694_v53  ;;  %v12656_v13 = vsel %vm7012_vm6, 1.0, %v13694_v53 }
 0x3ed   : > { %v12660_v37 = vadd.f32 %v12566_v42, %v12377_v55  ;;  %v13708_v28 = vrot.slane %v12596_v54, 2  ;;  %v5923_v16 = vadd.f32 1.0, %v8453_v21  ;;  %v12672_v56 = vadd.f32 %v12566_v42, %v12393_v3 }
 0x3ee   : > { %v6122_v9 = vsel %vm4078_vm2, %v6048_v45, %v13454_v48  ;;  %v13710_v36 = vand.u32 3, %v13709_v38  ;;  %v5796_v4 = vmul.f32 0.7978846, %v5732_v62  ;;  %v5607_v50 = vmul.f32 %v5543_v23, %v5293_v12 }
 0x3ef   : > { %v6123_v60 = vsel %vm4078_vm2, %v13708_v28, %v6048_v45  ;;  %v6176_v7 = vmax.f32 %v5984_v27, %v6122_v9  ;;  %v12682_v19 = vmul.f32 %v5923_v16, %v12608_v26  ;;  %v12684_v45 = vmul.f32 0.5, %v5293_v12 }
 0x3f0   : > { %vm12676_vm1 = vcmp.eq.s32.totalorder %v13710_v36, 0  ;;  %v6175_v51 = vmax.f32 %v12596_v54, %v6123_v60  ;;  %v8455_v44 = vpop.eup %8454  ;;  %v5542_v3 = vmul.f32 %v12660_v37, %v12660_v37  ;;  %v380_v21 = vadd.s32 264, %v8692_v2  ;;  %v12691_v54 = vpop.f32.mrb[60].mxu1 }
 0x3f1   : > { %v7200_v38 = vmul.f32 %v12599_v15, %v6176_v7  ;;  %v5922_v36 = vadd.f32 1.0, %v8455_v44  ;;  %8458 = vtanh.f32 %v5796_v4  ;;  %v7295_v27 = vrot.slane %v7294_v46, 4 }
 0x3f2   : > { %v7199_v28 = vmul.f32 %v12593_v32, %v6175_v51  ;;  %v5671_v26 = vmul.f32 0.044715, %v5607_v50  ;;  %v5606_v23 = vmul.f32 %v5542_v3, %v12660_v37  ;;  %v5545_v32 = vmul.f32 %v12672_v56, %v12672_v56 }
 0x3f3   : > { %v7304_v60 = vsel %vm4784_vm15, %v7200_v38, 0.0  ;;  %v5986_v16 = vmul.f32 %v5922_v36, %v12610_v0  ;;  %v381_v4 = vadd.s32 272, %v8692_v2  ;;  %v646_v62 = vand.u32 63, %v380_v21  ;;  %v12705_v36 = vpop.f32.mrb[61].mxu1 }
 0x3f4   : > { %v7302_v9 = vsel %vm4784_vm15, %v7199_v28, 0.0  ;;  %v5735_v51 = vadd.f32 %v5671_v26, %v5293_v12  ;;  %v5670_v7 = vmul.f32 0.044715, %v5606_v23  ;;  %v5609_v50 = vmul.f32 %v5545_v32, %v12672_v56 }
 0x3f5   : > { %v7303_v15 = vadd.f32 %v7302_v9, %v7301_v24  ;;  %v8457_v44 = vpop.eup %8456  ;;  %v6050_v48 = vrot.slane %v5986_v16, 2  ;;  %v5298_v3 = vadd.f32 %v12566_v42, %v12398_v34  ;;  %v12707_v24 = vadd.f32 %v7295_v27, %v7294_v46 }
 0x3f6   : > { %v5925_v38 = vadd.f32 1.0, %v8457_v44  ;;  %v5799_v10 = vmul.f32 0.7978846, %v5735_v51  ;;  %v5734_v0 = vadd.f32 %v5670_v7, %v12660_v37  ;;  %v13714_v12 = vrot.slane %v12682_v19, 2 }
 0x3f7   : > { %v7305_v28 = vadd.f32 %v7304_v60, %v7303_v15  ;;  %13713 = vst [vmem:[#allocation50_spill] sm:$0xff] %v12707_v24  ;;  %v13715_v23 = vrot.slane %v12628_v39, 2  ;;  %v5673_v34 = vmul.f32 0.044715, %v5609_v50  ;;  %v653_v27 = vand.u32 63, %v381_v4 }
 0x3f8   : > { %v6120_v26 = vsel %vm4078_vm2, %v6050_v48, %v13714_v12  ;;  %v12718_v32 = vmul.f32 %v5925_v38, %v5477_v43  ;;  %8460 = vtanh.f32 %v5799_v10  ;;  %v5798_v15 = vmul.f32 0.7978846, %v5734_v0 }
 0x3f9   : > { %v6121_v21 = vsel %vm4078_vm2, %v13715_v23, %v6050_v48  ;;  %v6178_v60 = vmax.f32 %v5986_v16, %v6120_v26  ;;  %v5737_v46 = vadd.f32 %v5673_v34, %v12672_v56  ;;  %v5544_v51 = vmul.f32 %v5298_v3, %v5298_v3  ;;  %v12732_v26 = vpop.f32.mrb[62].mxu1 }
 0x3fa   : > { %v6177_v9 = vmax.f32 %v12628_v39, %v6121_v21  ;;  %v12726_v48 = vsel %vm12676_vm1, 1.0, %v13694_v53  ;;  %v6449_v50 = vand.u32 3, %v646_v62  ;;  %8462 = vtanh.f32 %v5798_v15  ;;  %v13716_v21 = vld [vmem:[#allocation31_spill] sm:$0xff] }
 0x3fb   : > { %v7202_v44 = vmul.f32 %v12646_v31, %v6178_v60  ;;  %v8459_v39 = vpop.eup %8458  ;;  %v5801_v10 = vmul.f32 0.7978846, %v5737_v46  ;;  %v5608_v16 = vmul.f32 %v5544_v51, %v5298_v3  ;;  %v13456_v4 = vrot.slane %v12718_v32, 2 }
 0x3fc   : > { %v7201_v7 = vmul.f32 %v12642_v47, %v6177_v9  ;;  %v5924_v0 = vadd.f32 1.0, %v8459_v39  ;;  %v5478_v47 = vmul.f32 0.5, %v12660_v37  ;;  %v6456_v55 = vand.u32 3, %v653_v27 }
 0x3fd   : > { %8464 = vtanh.f32 %v5801_v10  ;;  %v5672_v12 = vmul.f32 0.044715, %v5608_v16  ;;  %v7308_v62 = vsel %vm4784_vm15, %v7202_v44, 0.0  ;;  %vm7015_vm10 = vcmp.eq.s32.totalorder %v6449_v50, 0 }
 0x3fe   : > { %v7306_v38 = vsel %vm4784_vm15, %v7201_v7, 0.0  ;;  %v5988_v23 = vmul.f32 %v5924_v0, %v12648_v29  ;;  %v5313_v34 = vadd.f32 %v12566_v42, %v13716_v21  ;;  %v5481_v60 = vmul.f32 0.5, %v12672_v56  ;;  %v13718_v7 = vld [vmem:[#allocation48_spill] sm:$0xff] }
 0x3ff   : > { %v7307_v31 = vadd.f32 %v7306_v38, %v7305_v28  ;;  %v5736_v15 = vadd.f32 %v5672_v12, %v5298_v3  ;;  %v382_v37 = vadd.s32 280, %v8692_v2  ;;  %v12740_v28 = vpop.f32.mrb[63].mxu1  ;;  %v383_v51 = vadd.s32 288, %v8692_v2 }
 0x400   : > { %13717 = vst [vmem:[#allocation49_spill] sm:$0xff] %v12740_v28  ;;  %v6052_v46 = vrot.slane %v5988_v23, 2  ;;  %v5547_v27 = vmul.f32 %v5313_v34, %v5313_v34  ;;  %v5308_v44 = vadd.f32 %v12566_v42, %v13718_v7  ;;  %v12745_v29 = vmul.f32 0.5, %v5298_v3 }
 0x401   : > { %v7309_v9 = vadd.f32 %v7308_v62, %v7307_v31  ;;  %v5800_v50 = vmul.f32 0.7978846, %v5736_v15  ;;  %vm7016_vm8 = vcmp.eq.s32.totalorder %v6456_v55, 0  ;;  %v12748_v39 = vsel %vm7015_vm10, 1.0, %v13694_v53 }
 0x402   : > { %v8461_v56 = vpop.eup %8460  ;;  %v6118_v10 = vsel %vm4078_vm2, %v6052_v46, %v13456_v4  ;;  %v13719_v16 = vrot.slane %v12682_v19, 2  ;;  %v5611_v0 = vmul.f32 %v5547_v27, %v5313_v34  ;;  %v660_v31 = vand.u32 63, %v382_v37 }
 0x403   : > { %v6180_v12 = vmax.f32 %v5988_v23, %v6118_v10  ;;  %v5927_v55 = vadd.f32 1.0, %v8461_v56  ;;  %8466 = vtanh.f32 %v5800_v50  ;;  %v12760_v62 = vsel %vm7016_vm8, 1.0, %v13694_v53 }
 0x404   : > { %v6119_v38 = vsel %vm4078_vm2, %v13719_v16, %v6052_v46  ;;  %v5675_v21 = vmul.f32 0.044715, %v5611_v0  ;;  %v667_v15 = vand.u32 63, %v383_v51  ;;  %v5546_v7 = vmul.f32 %v5308_v44, %v5308_v44  ;;  %v8463_v43 = vpop.eup %8462 }
 0x405   : > { %v6179_v3 = vmax.f32 %v12682_v19, %v6119_v38  ;;  %v7204_v24 = vmul.f32 %v12656_v13, %v6180_v12  ;;  %v12765_v46 = vmul.f32 %v5927_v55, %v12684_v45  ;;  %v5323_v19 = vadd.f32 %v12566_v42, %v12427_v5 }
 0x406   : > { %v5926_v23 = vadd.f32 1.0, %v8463_v43  ;;  %v12769_v37 = vmul.f32 0.5, %v5313_v34  ;;  %v5739_v27 = vadd.f32 %v5675_v21, %v5313_v34  ;;  %v5610_v50 = vmul.f32 %v5546_v7, %v5308_v44 }
 0x407   : > { %v7203_v4 = vmul.f32 %v12653_v17, %v6179_v3  ;;  %v8465_v56 = vpop.eup %8464  ;;  %v6055_v10 = vrot.slane %v12765_v46, 2  ;;  %v12773_v16 = vmul.f32 0.5, %v5308_v44  ;;  %v6463_v17 = vand.u32 3, %v660_v31 }
 0x408   : > { %v5990_v38 = vmul.f32 %v5926_v23, %v5478_v47  ;;  %v5929_v45 = vadd.f32 1.0, %v8465_v56  ;;  %v5803_v0 = vmul.f32 0.7978846, %v5739_v27  ;;  %v7312_v3 = vsel %vm4784_vm15, %v7204_v24, 0.0 }
 0x409   : > { %v7310_v51 = vsel %vm4784_vm15, %v7203_v4, 0.0  ;;  %v5674_v5 = vmul.f32 0.044715, %v5610_v50  ;;  %v6470_v43 = vand.u32 3, %v667_v15  ;;  %v5549_v12 = vmul.f32 %v5323_v19, %v5323_v19 }
 0x40a   : > { %v7311_v13 = vadd.f32 %v7310_v51, %v7309_v9  ;;  %v6054_v34 = vrot.slane %v5990_v38, 2  ;;  %8468 = vtanh.f32 %v5803_v0  ;;  %v12776_v21 = vmul.f32 0.5, %v5323_v19 }
 0x40b   : > { %v5738_v4 = vadd.f32 %v5674_v5, %v5308_v44  ;;  %v5613_v7 = vmul.f32 %v5549_v12, %v5323_v19  ;;  %v384_v28 = vadd.s32 296, %v8692_v2  ;;  %v385_v31 = vadd.s32 304, %v8692_v2  ;;  %v13721_v5 = vld [vmem:[#allocation41_spill] sm:$0xff] }
 0x40c   : > { %v7313_v55 = vadd.f32 %v7312_v3, %v7311_v13  ;;  %v6116_v47 = vsel %vm4078_vm2, %v6054_v34, %v6055_v10  ;;  %v13720_v9 = vrot.slane %v12718_v32, 2  ;;  %v12786_v15 = vmul.f32 %v5929_v45, %v5481_v60 }
 0x40d   : > { %v5318_v23 = vadd.f32 %v12566_v42, %v12431_v58  ;;  %v8467_v27 = vpop.eup %8466  ;;  %v6182_v50 = vmax.f32 %v5990_v38, %v6116_v47  ;;  %v5802_v56 = vmul.f32 0.7978846, %v5738_v4  ;;  %v5677_v51 = vmul.f32 0.044715, %v5613_v7 }
 0x40e   : > { %v6117_v24 = vsel %vm4078_vm2, %v13720_v9, %v6054_v34  ;;  %v5928_v13 = vadd.f32 1.0, %v8467_v27  ;;  %vm7017_vm9 = vcmp.eq.s32.totalorder %v6463_v17, 0  ;;  %v674_v0 = vand.u32 63, %v384_v28 }
 0x40f   : > { %v6181_v44 = vmax.f32 %v12718_v32, %v6117_v24  ;;  %v681_v3 = vand.u32 63, %v385_v31  ;;  %8470 = vtanh.f32 %v5802_v56  ;;  %vm7018_vm11 = vcmp.eq.s32.totalorder %v6470_v43, 0 }
 0x410   : > { %v5741_v34 = vadd.f32 %v5677_v51, %v5323_v19  ;;  %v6057_v60 = vrot.slane %v12786_v15, 2  ;;  %v5992_v45 = vmul.f32 %v5928_v13, %v12745_v29  ;;  %v5548_v58 = vmul.f32 %v5318_v23, %v5318_v23 }
 0x411   : > { %v7205_v12 = vmul.f32 %v13721_v5, %v6181_v44  ;;  %v6477_v9 = vand.u32 3, %v674_v0  ;;  %v7206_v32 = vmul.f32 %v12726_v48, %v6182_v50  ;;  %v12796_v7 = vand.u32 3, %v681_v3  ;;  %v13722_v3 = vld [vmem:[#allocation18_spill] sm:$0xff] }
 0x412   : > { %v5805_v4 = vmul.f32 0.7978846, %v5741_v34  ;;  %v6056_v31 = vrot.slane %v5992_v45, 2  ;;  %v5612_v47 = vmul.f32 %v5548_v58, %v5318_v23  ;;  %v5333_v43 = vadd.f32 %v12566_v42, %v12447_v22 }
 0x413   : > { %v7314_v38 = vsel %vm4784_vm15, %v7205_v12, 0.0  ;;  %v12802_v19 = vsel %vm7017_vm9, 1.0, %v13694_v53  ;;  %v12805_v29 = vsel %vm7018_vm11, 1.0, %v13694_v53  ;;  %v12807_v48 = vmul.f32 0.5, %v5318_v23 }
 0x414   : > { %v7315_v28 = vadd.f32 %v7314_v38, %v7313_v55  ;;  %8472 = vtanh.f32 %v5805_v4  ;;  %v8469_v24 = vpop.eup %8468  ;;  %v6114_v55 = vsel %vm4078_vm2, %v6056_v31, %v6057_v60  ;;  %v6115_v27 = vsel %vm4078_vm2, %v6055_v10, %v6056_v31 }
 0x415   : > { %v5676_v22 = vmul.f32 0.044715, %v5612_v47  ;;  %vm7019_vm12 = vcmp.eq.s32.totalorder %v6477_v9, 0  ;;  %v7322_v17 = vsel %vm4784_vm15, %v7206_v32, 0.0  ;;  %v6183_v44 = vmax.f32 %v12765_v46, %v6115_v27  ;;  %v7408_v32 = vld [vmem:[%s13369_s5 + $0x10] sm:$0xff] }
 0x416   : > { %v6184_v50 = vmax.f32 %v5992_v45, %v6114_v55  ;;  %v5931_v56 = vadd.f32 1.0, %v8469_v24  ;;  %vm7020_vm13 = vcmp.eq.s32.totalorder %v12796_v7, 0  ;;  %v5551_v13 = vmul.f32 %v5333_v43, %v5333_v43 }
 0x417   : > { %v5740_v51 = vadd.f32 %v5676_v22, %v5318_v23  ;;  %v5328_v0 = vadd.f32 %v12566_v42, %v12459_v18  ;;  %v13723_v5 = vand.u32 3, %v13722_v3  ;;  %v7207_v10 = vmul.f32 %v12748_v39, %v6183_v44  ;;  %v7409_v39 = vld [vmem:[%s13369_s5 + $0x18] sm:$0xff] }
 0x418   : > { %v7208_v34 = vmul.f32 %v12760_v62, %v6184_v50  ;;  %v12829_v46 = vmul.f32 %v5931_v56, %v12769_v37  ;;  %v12832_v23 = vsel %vm7019_vm12, 1.0, %v13694_v53  ;;  %v12834_v58 = vmul.f32 0.5, %v5333_v43 }
 0x419   : > { %vm12822_vm7 = vcmp.eq.s32.totalorder %v13723_v5, 0  ;;  %v5804_v45 = vmul.f32 0.7978846, %v5740_v51  ;;  %v5615_v18 = vmul.f32 %v5551_v13, %v5333_v43  ;;  %v5550_v9 = vmul.f32 %v5328_v0, %v5328_v0  ;;  %v8471_v62 = vpop.eup %8470 }
 0x41a   : > { %v7316_v38 = vrot.slane %v7315_v28, 4  ;;  %v7323_v37 = vsel %vm4784_vm15, %v7207_v10, 0.0  ;;  %v7325_v4 = vsel %vm4784_vm15, %v7208_v34, 0.0  ;;  %v5343_v31 = vadd.f32 %v12566_v42, %v12472_v1 }
 0x41b   : > { %v7324_v47 = vadd.f32 %v7323_v37, %v7322_v17  ;;  %v5930_v24 = vadd.f32 1.0, %v8471_v62  ;;  %8474 = vtanh.f32 %v5804_v45  ;;  %v5679_v55 = vmul.f32 0.044715, %v5615_v18 }
 0x41c   : > { %v6059_v27 = vrot.slane %v12829_v46, 2  ;;  %v5614_v22 = vmul.f32 %v5550_v9, %v5328_v0  ;;  %v5553_v44 = vmul.f32 %v5343_v31, %v5343_v31  ;;  %v8214_v50 = vpack.c.bf16 %v7409_v39, %v7408_v32 }
 0x41d   : > { %v7326_v56 = vadd.f32 %v7325_v4, %v7324_v47  ;;  %v5994_v51 = vmul.f32 %v5930_v24, %v12773_v16  ;;  %v5743_v13 = vadd.f32 %v5679_v55, %v5333_v43  ;;  %v388_v3 = vadd.s32 328, %v8692_v2 }
 0x41e   : > { %v8473_v5 = vpop.eup %8472  ;;  %v5678_v10 = vmul.f32 0.044715, %v5614_v22  ;;  %v5617_v34 = vmul.f32 %v5553_v44, %v5343_v31  ;;  %8215 = vmatpush3.bf16.msra.mxu0 %v8214_v50  ;;  %v389_v1 = vadd.s32 336, %v8692_v2  ;;  %v5338_v17 = vadd.f32 %v12566_v42, %v12478_v49 }
 0x41f   : > { %v6058_v45 = vrot.slane %v5994_v51, 2  ;;  %v5933_v18 = vadd.f32 1.0, %v8473_v5  ;;  %v5807_v9 = vmul.f32 0.7978846, %v5743_v13  ;;  %v702_v62 = vand.u32 63, %v388_v3 }
 0x420   : > { %v13726_v32 = vmov 0.0|0.0   ;;  %v12853_v39 = vadd.f32 %v7316_v38, %v7315_v28  ;;  %v12858_v16 = vsel %vm7020_vm13, 1.0, %v13694_v53  ;;  %v5742_v43 = vadd.f32 %v5678_v10, %v5328_v0 }
 0x421   : > { %8216 = vmatprep.subr.bf16.mxu0 %v13726_v32  ;;  %v5681_v37 = vmul.f32 0.044715, %v5617_v34  ;;  %v6112_v49 = vsel %vm4078_vm2, %v6058_v45, %v6059_v27  ;;  %v6113_v4 = vsel %vm4078_vm2, %v6057_v60, %v6058_v45  ;;  %v12869_v28 = vmul.f32 %v5933_v18, %v12776_v21 }
 0x422   : > { %8476 = vtanh.f32 %v5807_v9  ;;  %v6185_v7 = vmax.f32 %v12786_v15, %v6113_v4  ;;  %v6186_v38 = vmax.f32 %v5994_v51, %v6112_v49  ;;  %v5806_v47 = vmul.f32 0.7978846, %v5742_v43 }
 0x423   : > { %v5745_v24 = vadd.f32 %v5681_v37, %v5343_v31  ;;  %v12875_v55 = vsel %vm12822_vm7, 1.0, %v13694_v53  ;;  %v709_v22 = vand.u32 63, %v389_v1  ;;  %v5552_v44 = vmul.f32 %v5338_v17, %v5338_v17 }
 0x424   : > { %v6505_v50 = vand.u32 3, %v702_v62  ;;  %v7209_v13 = vmul.f32 %v12802_v19, %v6185_v7  ;;  %v7210_v60 = vmul.f32 %v12805_v29, %v6186_v38  ;;  %8478 = vtanh.f32 %v5806_v47 }
 0x425   : > { %v5809_v21 = vmul.f32 0.7978846, %v5745_v24  ;;  %v8475_v3 = vpop.eup %8474  ;;  %v5486_v5 = vmul.f32 0.5, %v5328_v0  ;;  %v12879_v15 = vmul.f32 0.5, %v5343_v31  ;;  %v5616_v51 = vmul.f32 %v5552_v44, %v5338_v17 }
 0x426   : > { %v5353_v10 = vadd.f32 %v12566_v42, %v12487_v8  ;;  %v7327_v12 = vsel %vm4784_vm15, %v7209_v13, 0.0  ;;  %v6061_v34 = vrot.slane %v12869_v28, 2  ;;  %v5932_v1 = vadd.f32 1.0, %v8475_v3 }
 0x427   : > { %8480 = vtanh.f32 %v5809_v21  ;;  %v7328_v45 = vadd.f32 %v7327_v12, %v7326_v56  ;;  %v5680_v19 = vmul.f32 0.044715, %v5616_v51  ;;  %v6512_v18 = vand.u32 3, %v709_v22 }
 0x428   : > { %vm7023_vm14 = vcmp.eq.s32.totalorder %v6505_v50, 0  ;;  %v7329_v29 = vsel %vm4784_vm15, %v7210_v60, 0.0  ;;  %v5996_v0 = vmul.f32 %v5932_v1, %v12807_v48  ;;  %v5555_v31 = vmul.f32 %v5353_v10, %v5353_v10 }
 0x429   : > { %v390_v9 = vadd.s32 344, %v8692_v2  ;;  %v7330_v62 = vadd.f32 %v7329_v29, %v7328_v45  ;;  %v12888_v43 = vmul.f32 0.5, %v5338_v17  ;;  %v5744_v8 = vadd.f32 %v5680_v19, %v5338_v17 }
 0x42a   : > { %v5348_v37 = vadd.f32 %v12566_v42, %v12489_v14  ;;  %v6060_v49 = vrot.slane %v5996_v0, 2  ;;  %v5619_v4 = vmul.f32 %v5555_v31, %v5353_v10  ;;  %v391_v56 = vadd.s32 352, %v8692_v2 }
 0x42b   : > { %v716_v7 = vand.u32 63, %v390_v9  ;;  %v5808_v47 = vmul.f32 0.7978846, %v5744_v8  ;;  %vm7024_vm0 = vcmp.eq.s32.totalorder %v6512_v18, 0  ;;  %v12895_v48 = vsel %vm7023_vm14, 1.0, %v13694_v53 }
 0x42c   : > { %v8477_v38 = vpop.eup %8476  ;;  %v5554_v24 = vmul.f32 %v5348_v37, %v5348_v37  ;;  %v6110_v17 = vsel %vm4078_vm2, %v6060_v49, %v6061_v34  ;;  %v6111_v14 = vsel %vm4078_vm2, %v6059_v27, %v6060_v49  ;;  %v5683_v44 = vmul.f32 0.044715, %v5619_v4 }
 0x42d   : > { %v5935_v22 = vadd.f32 1.0, %v8477_v38  ;;  %v6187_v13 = vmax.f32 %v12829_v46, %v6111_v14  ;;  %v6188_v60 = vmax.f32 %v5996_v0, %v6110_v17  ;;  %8482 = vtanh.f32 %v5808_v47 }
 0x42e   : > { %v5618_v50 = vmul.f32 %v5554_v24, %v5348_v37  ;;  %v8479_v21 = vpop.eup %8478  ;;  %v5747_v51 = vadd.f32 %v5683_v44, %v5353_v10  ;;  %v723_v12 = vand.u32 63, %v391_v56  ;;  %v6519_v1 = vand.u32 3, %v716_v7 }
 0x42f   : > { %v12907_v3 = vmul.f32 %v5935_v22, %v12834_v58  ;;  %v7211_v45 = vmul.f32 %v12832_v23, %v6187_v13  ;;  %v7212_v19 = vmul.f32 %v12858_v16, %v6188_v60  ;;  %v5934_v29 = vadd.f32 1.0, %v8479_v21 }
 0x430   : > { %v5682_v27 = vmul.f32 0.044715, %v5618_v50  ;;  %v12913_v46 = vsel %vm7024_vm0, 1.0, %v13694_v53  ;;  %v12915_v0 = vmul.f32 0.5, %v5353_v10  ;;  %v5811_v9 = vmul.f32 0.7978846, %v5747_v51 }
 0x431   : > { %v8481_v31 = vpop.eup %8480  ;;  %v5363_v58 = vadd.f32 %v12566_v42, %v12506_v25  ;;  %v7331_v8 = vsel %vm4784_vm15, %v7211_v45, 0.0  ;;  %v6063_v49 = vrot.slane %v12907_v3, 2  ;;  %v5998_v23 = vmul.f32 %v5934_v29, %v5486_v5 }
 0x432   : > { %v5937_v4 = vadd.f32 1.0, %v8481_v31  ;;  %v7332_v16 = vadd.f32 %v7331_v8, %v7330_v62  ;;  %8484 = vtanh.f32 %v5811_v9  ;;  %v12921_v56 = vmul.f32 0.5, %v5348_v37 }
 0x433   : > { %v5746_v7 = vadd.f32 %v5682_v27, %v5348_v37  ;;  %v7333_v18 = vsel %vm4784_vm15, %v7212_v19, 0.0  ;;  %v6062_v38 = vrot.slane %v5998_v23, 2  ;;  %v6526_v10 = vand.u32 3, %v723_v12  ;;  %v13727_v12 = vld [vmem:[#allocation24_spill] sm:$0xff] }
 0x434   : > { %vm7025_vm3 = vcmp.eq.s32.totalorder %v6519_v1, 0  ;;  %v7334_v47 = vadd.f32 %v7333_v18, %v7332_v16  ;;  %v5557_v17 = vmul.f32 %v5363_v58, %v5363_v58  ;;  %v392_v25 = vadd.s32 360, %v8692_v2 }
 0x435   : > { %v5810_v24 = vmul.f32 0.7978846, %v5746_v7  ;;  %v6108_v14 = vsel %vm4078_vm2, %v6062_v38, %v6063_v49  ;;  %v6109_v5 = vsel %vm4078_vm2, %v6061_v34, %v6062_v38  ;;  %v12932_v62 = vmul.f32 %v5937_v4, %v12879_v15 }
 0x436   : > { %v393_v37 = vadd.s32 368, %v8692_v2  ;;  %v6189_v22 = vmax.f32 %v12869_v28, %v6109_v5  ;;  %v6190_v44 = vmax.f32 %v5998_v23, %v6108_v14  ;;  %v5621_v13 = vmul.f32 %v5557_v17, %v5363_v58 }
 0x437   : > { %8486 = vtanh.f32 %v5810_v24  ;;  %v8483_v60 = vpop.eup %8482  ;;  %vm7026_vm4 = vcmp.eq.s32.totalorder %v6526_v10, 0  ;;  %v730_v50 = vand.u32 63, %v392_v25  ;;  %v5358_v51 = vadd.f32 %v12566_v42, %v12514_v30 }
 0x438   : > { %v737_v21 = vand.u32 63, %v393_v37  ;;  %v7213_v45 = vmul.f32 %v13727_v12, %v6189_v22  ;;  %v5936_v34 = vadd.f32 1.0, %v8483_v60  ;;  %v12941_v15 = vsel %vm7025_vm3, 1.0, %v13694_v53 }
 0x439   : > { %v5685_v19 = vmul.f32 0.044715, %v5621_v13  ;;  %v6065_v28 = vrot.slane %v12932_v62, 2  ;;  %v5556_v29 = vmul.f32 %v5358_v51, %v5358_v51  ;;  %v6533_v27 = vand.u32 3, %v730_v50 }
 0x43a   : > { %v6540_v31 = vand.u32 3, %v737_v21  ;;  %v7335_v9 = vsel %vm4784_vm15, %v7213_v45, 0.0  ;;  %v6000_v8 = vmul.f32 %v5936_v34, %v12888_v43  ;;  %v12948_v30 = vadd.f32 %v12566_v42, %v12523_v52 }
 0x43b   : > { %v5749_v23 = vadd.f32 %v5685_v19, %v5363_v58  ;;  %v12950_v4 = vadd.f32 %v7335_v9, %v7334_v47  ;;  %v12954_v1 = vsel %vm7026_vm4, 1.0, %v13694_v53  ;;  %v12956_v16 = vmul.f32 0.5, %v5363_v58 }
 0x43c   : > { %v5620_v7 = vmul.f32 %v5556_v29, %v5358_v51  ;;  %v8485_v18 = vpop.eup %8484  ;;  %v7214_v38 = vmul.f32 %v12875_v55, %v6190_v44  ;;  %v6064_v24 = vrot.slane %v6000_v8, 2  ;;  %v12959_v43 = vmul.f32 0.5, %v5358_v51  ;;  %v13728_v44 = vld [vmem:[#allocation19_spill] sm:$0xff] }
 0x43d   : > { %v5813_v17 = vmul.f32 0.7978846, %v5749_v23  ;;  %v5939_v25 = vadd.f32 1.0, %v8485_v18  ;;  %vm7027_vm5 = vcmp.eq.s32.totalorder %v6533_v27, 0  ;;  %vm7028_vm6 = vcmp.eq.s32.totalorder %v6540_v31, 0 }
 0x43e   : > { %v5684_v14 = vmul.f32 0.044715, %v5620_v7  ;;  %v6106_v52 = vsel %vm4078_vm2, %v6064_v24, %v6065_v28  ;;  %v6107_v10 = vsel %vm4078_vm2, %v6063_v49, %v6064_v24  ;;  %v5559_v58 = vmul.f32 %v12948_v30, %v12948_v30 }
 0x43f   : > { %8488 = vtanh.f32 %v5813_v17  ;;  %v6191_v55 = vmax.f32 %v12907_v3, %v6107_v10  ;;  %v6192_v47 = vmax.f32 %v6000_v8, %v6106_v52  ;;  %v12969_v5 = vmul.f32 %v5939_v25, %v12915_v0 }
 0x440   : > { %v5748_v37 = vadd.f32 %v5684_v14, %v5358_v51  ;;  %v13729_v13 = vand.u32 3, %v13728_v44  ;;  %v7343_v49 = vsel %vm4784_vm15, %v7214_v38, 0.0  ;;  %v12979_v50 = vsel %vm7027_vm5, 1.0, %v13694_v53 }
 0x441   : > { %v8487_v22 = vpop.eup %8486  ;;  %v5623_v21 = vmul.f32 %v5559_v58, %v12948_v30  ;;  %v5368_v3 = vadd.f32 %v12566_v42, %v12528_v63  ;;  %v7215_v0 = vmul.f32 %v12895_v48, %v6191_v55  ;;  %v7216_v51 = vmul.f32 %v12913_v46, %v6192_v47 }
 0x442   : > { %vm12973_vm1 = vcmp.eq.s32.totalorder %v13729_v13, 0  ;;  %v5938_v12 = vadd.f32 1.0, %v8487_v22  ;;  %v5383_v45 = vadd.f32 %v12566_v42, %v12543_v11  ;;  %v5812_v34 = vmul.f32 0.7978846, %v5748_v37 }
 0x443   : > { %v12990_v19 = vsel %vm7028_vm6, 1.0, %v13694_v53  ;;  %v5687_v29 = vmul.f32 0.044715, %v5623_v21  ;;  %v5558_v27 = vmul.f32 %v5368_v3, %v5368_v3  ;;  %v7344_v9 = vsel %vm4784_vm15, %v7215_v0, 0.0 }
 0x444   : > { %v7346_v8 = vsel %vm4784_vm15, %v7216_v51, 0.0  ;;  %v6067_v63 = vrot.slane %v12969_v5, 2  ;;  %v6002_v48 = vmul.f32 %v5938_v12, %v12921_v56  ;;  %v7345_v46 = vadd.f32 %v7344_v9, %v7343_v49 }
 0x445   : > { %8490 = vtanh.f32 %v5812_v34  ;;  %v5751_v23 = vadd.f32 %v5687_v29, %v12948_v30  ;;  %v5622_v11 = vmul.f32 %v5558_v27, %v5368_v3  ;;  %v5561_v18 = vmul.f32 %v5383_v45, %v5383_v45 }
 0x446   : > { %v6066_v7 = vrot.slane %v6002_v48, 2  ;;  %v396_v31 = vadd.s32 392, %v8692_v2  ;;  %v397_v38 = vadd.s32 400, %v8692_v2  ;;  %v7347_v24 = vadd.f32 %v7346_v8, %v7345_v46 }
 0x447   : > { %v5815_v17 = vmul.f32 0.7978846, %v5751_v23  ;;  %v5686_v25 = vmul.f32 0.044715, %v5622_v11  ;;  %v5378_v14 = vadd.f32 %v12566_v42, %v12545_v41  ;;  %v5625_v10 = vmul.f32 %v5561_v18, %v5383_v45  ;;  %v13025_v11 = vld [vmem:[%s13368_s4] ss:$0 sm:$0xff] }
 0x448   : > { %v6104_v56 = vsel %vm4078_vm2, %v6066_v7, %v6067_v63  ;;  %v6105_v52 = vsel %vm4078_vm2, %v6065_v28, %v6066_v7  ;;  %v758_v58 = vand.u32 63, %v396_v31  ;;  %v7337_v44 = vrot.slane %v12950_v4, 4 }
 0x449   : > { %v8489_v55 = vpop.eup %8488  ;;  %v6193_v47 = vmax.f32 %v12932_v62, %v6105_v52  ;;  %v6194_v37 = vmax.f32 %v6002_v48, %v6104_v56  ;;  %8492 = vtanh.f32 %v5815_v17  ;;  %v5750_v22 = vadd.f32 %v5686_v25, %v5368_v3 }
 0x44a   : > { %v5941_v13 = vadd.f32 1.0, %v8489_v55  ;;  %v5689_v41 = vmul.f32 0.044715, %v5625_v10  ;;  %v765_v42 = vand.u32 63, %v397_v38  ;;  %v5560_v51 = vmul.f32 %v5378_v14, %v5378_v14 }
 0x44b   : > { %v7217_v49 = vmul.f32 %v12941_v15, %v6193_v47  ;;  %v7218_v21 = vmul.f32 %v12954_v1, %v6194_v37  ;;  %v5814_v0 = vmul.f32 0.7978846, %v5750_v22  ;;  %v5495_v28 = vmul.f32 0.5, %v12948_v30 }
 0x44c   : > { %v13015_v62 = vsel %vm12973_vm1, 1.0, %v13694_v53  ;;  %v5753_v12 = vadd.f32 %v5689_v41, %v5383_v45  ;;  %v6561_v34 = vand.u32 3, %v758_v58  ;;  %v5624_v27 = vmul.f32 %v5560_v51, %v5378_v14 }
 0x44d   : > { %v7348_v29 = vsel %vm4784_vm15, %v7217_v49, 0.0  ;;  %8494 = vtanh.f32 %v5814_v0  ;;  %v6568_v9 = vand.u32 3, %v765_v42  ;;  %v13019_v15 = vmul.f32 %v5941_v13, %v12956_v16 }
 0x44e   : > { %v7349_v8 = vadd.f32 %v7348_v29, %v7347_v24  ;;  %v5494_v1 = vmul.f32 0.5, %v5368_v3  ;;  %v5817_v48 = vmul.f32 0.7978846, %v5753_v12  ;;  %v7350_v30 = vsel %vm4784_vm15, %v7218_v21, 0.0 }
 0x44f   : > { %v8491_v46 = vpop.eup %8490  ;;  %v5497_v23 = vmul.f32 0.5, %v5383_v45  ;;  %v5688_v60 = vmul.f32 0.044715, %v5624_v27  ;;  %v5393_v7 = vadd.f32 %v13025_v11, %v12556_v61  ;;  %vm7031_vm10 = vcmp.eq.s32.totalorder %v6561_v34, 0 }
 0x450   : > { %v7351_v18 = vadd.f32 %v7350_v30, %v7349_v8  ;;  %v5940_v31 = vadd.f32 1.0, %v8491_v46  ;;  %8496 = vtanh.f32 %v5817_v48  ;;  %vm7032_vm8 = vcmp.eq.s32.totalorder %v6568_v9, 0 }
 0x451   : > { %v5752_v16 = vadd.f32 %v5688_v60, %v5378_v14  ;;  %v5563_v3 = vmul.f32 %v5393_v7, %v5393_v7  ;;  %v398_v38 = vadd.s32 408, %v8692_v2  ;;  %v6069_v45 = vrot.slane %v13019_v15, 2 }
 0x452   : > { %v6004_v24 = vmul.f32 %v5940_v31, %v12959_v43  ;;  %v399_v17 = vadd.s32 416, %v8692_v2  ;;  %v5388_v25 = vadd.f32 %v13025_v11, %v12558_v33  ;;  %v13035_v61 = vmul.f32 0.5, %v5378_v14 }
 0x453   : > { %v8493_v56 = vpop.eup %8492  ;;  %v5816_v52 = vmul.f32 0.7978846, %v5752_v16  ;;  %v5627_v10 = vmul.f32 %v5563_v3, %v5393_v7  ;;  %v772_v58 = vand.u32 63, %v398_v38  ;;  %v13039_v37 = vsel %vm7031_vm10, 1.0, %v13694_v53 }
 0x454   : > { %v6068_v55 = vrot.slane %v6004_v24, 2  ;;  %v5943_v47 = vadd.f32 1.0, %v8493_v56  ;;  %v13042_v22 = vsel %vm7032_vm8, 1.0, %v13694_v53  ;;  %v779_v13 = vand.u32 63, %v399_v17 }
 0x455   : > { %8498 = vtanh.f32 %v5816_v52  ;;  %v5691_v43 = vmul.f32 0.044715, %v5627_v10  ;;  %v5562_v41 = vmul.f32 %v5388_v25, %v5388_v25  ;;  %v6575_v49 = vand.u32 3, %v772_v58 }
 0x456   : > { %v6102_v33 = vsel %vm4078_vm2, %v6068_v55, %v6069_v45  ;;  %v6103_v14 = vsel %vm4078_vm2, %v6067_v63, %v6068_v55  ;;  %v13050_v42 = vmul.f32 %v5943_v47, %v5495_v28  ;;  %v13053_v27 = vmul.f32 0.5, %v5393_v7 }
 0x457   : > { %v8495_v21 = vpop.eup %8494  ;;  %v6195_v0 = vmax.f32 %v12969_v5, %v6103_v14  ;;  %v6196_v51 = vmax.f32 %v6004_v24, %v6102_v33  ;;  %v5755_v12 = vadd.f32 %v5691_v43, %v5393_v7  ;;  %v5626_v34 = vmul.f32 %v5562_v41, %v5388_v25  ;;  %v13732_v33 = vld [vmem:[#allocation42_spill] sm:$0xff] }
 0x458   : > { %v5942_v29 = vadd.f32 1.0, %v8495_v21  ;;  %v5403_v9 = vadd.f32 %v13025_v11, %v12580_v59  ;;  %v400_v8 = vadd.s32 424, %v8692_v2  ;;  %v6071_v5 = vrot.slane %v13050_v42, 2 }
 0x459   : > { %v7219_v48 = vmul.f32 %v12979_v50, %v6195_v0  ;;  %v7220_v63 = vmul.f32 %v12990_v19, %v6196_v51  ;;  %v5819_v28 = vmul.f32 0.7978846, %v5755_v12  ;;  %v5690_v46 = vmul.f32 0.044715, %v5626_v34 }
 0x45a   : > { %v8497_v30 = vpop.eup %8496  ;;  %v6006_v60 = vmul.f32 %v5942_v29, %v5494_v1  ;;  %v6582_v31 = vand.u32 3, %v779_v13  ;;  %vm7033_vm9 = vcmp.eq.s32.totalorder %v6575_v49, 0  ;;  %v5565_v50 = vmul.f32 %v5403_v9, %v5403_v9 }
 0x45b   : > { %v7352_v7 = vsel %vm4784_vm15, %v7219_v48, 0.0  ;;  %v7354_v16 = vsel %vm4784_vm15, %v7220_v63, 0.0  ;;  %v5945_v3 = vadd.f32 1.0, %v8497_v30  ;;  %8500 = vtanh.f32 %v5819_v28 }
 0x45c   : > { %v7353_v59 = vadd.f32 %v7352_v7, %v7351_v18  ;;  %v6070_v38 = vrot.slane %v6006_v60, 2  ;;  %v5754_v24 = vadd.f32 %v5690_v46, %v5388_v25  ;;  %v401_v19 = vadd.s32 432, %v8692_v2 }
 0x45d   : > { %v13063_v17 = vmul.f32 %v5945_v3, %v5497_v23  ;;  %v786_v56 = vand.u32 63, %v400_v8  ;;  %v5398_v1 = vadd.f32 %v13025_v11, %v12584_v57  ;;  %vm7034_vm11 = vcmp.eq.s32.totalorder %v6582_v31, 0 }
 0x45e   : > { %v7355_v52 = vadd.f32 %v7354_v16, %v7353_v59  ;;  %v6100_v10 = vsel %vm4078_vm2, %v6070_v38, %v6071_v5  ;;  %v6101_v58 = vsel %vm4078_vm2, %v6069_v45, %v6070_v38  ;;  %v5818_v55 = vmul.f32 0.7978846, %v5754_v24 }
 0x45f   : > { %v8499_v18 = vpop.eup %8498  ;;  %v6197_v47 = vmax.f32 %v13019_v15, %v6101_v58  ;;  %v6198_v43 = vmax.f32 %v6006_v60, %v6100_v10  ;;  %v5629_v23 = vmul.f32 %v5565_v50, %v5403_v9  ;;  %v5498_v41 = vmul.f32 0.5, %v5388_v25 }
 0x460   : > { %v5944_v13 = vadd.f32 1.0, %v8499_v18  ;;  %8502 = vtanh.f32 %v5818_v55  ;;  %v13075_v57 = vsel %vm7033_vm9, 1.0, %v13694_v53  ;;  %v793_v0 = vand.u32 63, %v401_v19 }
 0x461   : > { %v7221_v14 = vmul.f32 %v13732_v33, %v6197_v47  ;;  %v5693_v21 = vmul.f32 0.044715, %v5629_v23  ;;  %v5564_v51 = vmul.f32 %v5398_v1, %v5398_v1  ;;  %v6073_v45 = vrot.slane %v13063_v17, 2 }
 0x462   : > { %v6008_v12 = vmul.f32 %v5944_v13, %v13035_v61  ;;  %v13081_v15 = vsel %vm7034_vm11, 1.0, %v13694_v53  ;;  %v6589_v34 = vand.u32 3, %v786_v56  ;;  %v13084_v29 = vmul.f32 0.5, %v5403_v9 }
 0x463   : > { %v7356_v25 = vsel %vm4784_vm15, %v7221_v14, 0.0  ;;  %v5757_v49 = vadd.f32 %v5693_v21, %v5403_v9  ;;  %v5628_v8 = vmul.f32 %v5564_v51, %v5398_v1  ;;  %v7222_v48 = vmul.f32 %v13015_v62, %v6198_v43 }
 0x464   : > { %v13087_v63 = vadd.f32 %v7356_v25, %v7355_v52  ;;  %v6072_v28 = vrot.slane %v6008_v12, 2  ;;  %v5413_v46 = vadd.f32 %v13025_v11, %v12605_v35  ;;  %v13091_v60 = vmul.f32 0.5, %v5398_v1 }
 0x465   : > { %v8501_v30 = vpop.eup %8500  ;;  %v5821_v61 = vmul.f32 0.7978846, %v5757_v49  ;;  %v5692_v31 = vmul.f32 0.044715, %v5628_v8  ;;  %v6596_v7 = vand.u32 3, %v793_v0  ;;  %vm7035_vm12 = vcmp.eq.s32.totalorder %v6589_v34, 0 }
 0x466   : > { %v6098_v9 = vsel %vm4078_vm2, %v6072_v28, %v6073_v45  ;;  %v6099_v62 = vsel %vm4078_vm2, %v6071_v5, %v6072_v28  ;;  %v5947_v16 = vadd.f32 1.0, %v8501_v30  ;;  %v7364_v38 = vsel %vm4784_vm15, %v7222_v48, 0.0 }
 0x467   : > { %v6199_v3 = vmax.f32 %v13050_v42, %v6099_v62  ;;  %v6200_v59 = vmax.f32 %v6008_v12, %v6098_v9  ;;  %8504 = vtanh.f32 %v5821_v61  ;;  %v5756_v35 = vadd.f32 %v5692_v31, %v5398_v1 }
 0x468   : > { %v13102_v24 = vmul.f32 %v5947_v16, %v13053_v27  ;;  %v5567_v50 = vmul.f32 %v5413_v46, %v5413_v46  ;;  %v5408_v19 = vadd.f32 %v13025_v11, %v12623_v6  ;;  %v13110_v42 = vadd.f32 %v13025_v11, %v12635_v20  ;;  %v7410_v6 = vld [vmem:[%s13369_s5 + $0x20] sm:$0xff] }
 0x469   : > { %v7223_v56 = vmul.f32 %v13039_v37, %v6199_v3  ;;  %v7224_v5 = vmul.f32 %v13042_v22, %v6200_v59  ;;  %v5820_v52 = vmul.f32 0.7978846, %v5756_v35  ;;  %vm7036_vm13 = vcmp.eq.s32.totalorder %v6596_v7, 0  ;;  %v7411_v37 = vld [vmem:[%s13369_s5 + $0x28] sm:$0xff] }
 0x46a   : > { %v8503_v10 = vpop.eup %8502  ;;  %v13113_v1 = vsel %vm7035_vm12, 1.0, %v13694_v53  ;;  %v5631_v27 = vmul.f32 %v5567_v50, %v5413_v46  ;;  %v5566_v58 = vmul.f32 %v5408_v19, %v5408_v19  ;;  %v13733_v22 = vld [vmem:[#allocation20_spill] sm:$0xff]  ;;  %v6075_v47 = vrot.slane %v13102_v24, 2 }
 0x46b   : > { %v13734_v55 = vand.u32 3, %v13733_v22  ;;  %v7365_v18 = vsel %vm4784_vm15, %v7223_v56, 0.0  ;;  %v5946_v43 = vadd.f32 1.0, %v8503_v10  ;;  %8506 = vtanh.f32 %v5820_v52 }
 0x46c   : > { %v7366_v23 = vadd.f32 %v7365_v18, %v7364_v38  ;;  %v7367_v13 = vsel %vm4784_vm15, %v7224_v5, 0.0  ;;  %v5695_v33 = vmul.f32 0.044715, %v5631_v27  ;;  %v5630_v14 = vmul.f32 %v5566_v58, %v5408_v19 }
 0x46d   : > { %vm13123_vm7 = vcmp.eq.s32.totalorder %v13734_v55, 0  ;;  %v6010_v21 = vmul.f32 %v5946_v43, %v5498_v41  ;;  %v5569_v0 = vmul.f32 %v13110_v42, %v13110_v42  ;;  %v8217_v51 = vpack.c.bf16 %v7411_v37, %v7410_v6 }
 0x46e   : > { %v404_v12 = vadd.s32 456, %v8692_v2  ;;  %v7368_v34 = vadd.f32 %v7367_v13, %v7366_v23  ;;  %v5759_v25 = vadd.f32 %v5695_v33, %v5413_v46  ;;  %v5694_v49 = vmul.f32 0.044715, %v5630_v14 }
 0x46f   : > { %v405_v8 = vadd.s32 464, %v8692_v2  ;;  %v6074_v48 = vrot.slane %v6010_v21, 2  ;;  %v5633_v28 = vmul.f32 %v5569_v0, %v13110_v42  ;;  %8218 = vmatpush3.bf16.msra.mxu0 %v8217_v51  ;;  %v5418_v61 = vadd.f32 %v13025_v11, %v12638_v40 }
 0x470   : > { %v814_v30 = vand.u32 63, %v404_v12  ;;  %v13139_v41 = vsel %vm7036_vm13, 1.0, %v13694_v53  ;;  %v5823_v31 = vmul.f32 0.7978846, %v5759_v25  ;;  %v5758_v9 = vadd.f32 %v5694_v49, %v5408_v19  ;;  %8219 = vmatprep.subr.bf16.mxu0 %v13726_v32 }
 0x471   : > { %v821_v62 = vand.u32 63, %v405_v8  ;;  %v8505_v16 = vpop.eup %8504  ;;  %v6096_v3 = vsel %vm4078_vm2, %v6074_v48, %v6075_v47  ;;  %v6097_v40 = vsel %vm4078_vm2, %v6073_v45, %v6074_v48  ;;  %v5503_v59 = vmul.f32 0.5, %v5413_v46 }
 0x472   : > { %v5697_v7 = vmul.f32 0.044715, %v5633_v28  ;;  %v6201_v35 = vmax.f32 %v13063_v17, %v6097_v40  ;;  %v6202_v38 = vmax.f32 %v6010_v21, %v6096_v3  ;;  %v5949_v50 = vadd.f32 1.0, %v8505_v16 }
 0x473   : > { %8508 = vtanh.f32 %v5823_v31  ;;  %v5822_v56 = vmul.f32 0.7978846, %v5758_v9  ;;  %v5568_v5 = vmul.f32 %v5418_v61, %v5418_v61  ;;  %v6617_v52 = vand.u32 3, %v814_v30 }
 0x474   : > { %v5761_v32 = vadd.f32 %v5697_v7, %v13110_v42  ;;  %v7225_v10 = vmul.f32 %v13075_v57, %v6201_v35  ;;  %v7226_v27 = vmul.f32 %v13081_v15, %v6202_v38  ;;  %v13155_v58 = vmul.f32 %v5949_v50, %v13084_v29 }
 0x475   : > { %v6624_v45 = vand.u32 3, %v821_v62  ;;  %v8507_v46 = vpop.eup %8506  ;;  %8510 = vtanh.f32 %v5822_v56  ;;  %v5632_v17 = vmul.f32 %v5568_v5, %v5418_v61  ;;  %v5433_v37 = vadd.f32 %v13025_v11, %v12691_v54 }
 0x476   : > { %v5825_v6 = vmul.f32 0.7978846, %v5761_v32  ;;  %v7369_v22 = vsel %vm4784_vm15, %v7225_v10, 0.0  ;;  %v5948_v55 = vadd.f32 1.0, %v8507_v46  ;;  %v5502_v18 = vmul.f32 0.5, %v5408_v19 }
 0x477   : > { %v13163_v57 = vsel %vm13123_vm7, 1.0, %v13694_v53  ;;  %v7370_v15 = vadd.f32 %v7369_v22, %v7368_v34  ;;  %v5696_v29 = vmul.f32 0.044715, %v5632_v17  ;;  %vm7039_vm14 = vcmp.eq.s32.totalorder %v6617_v52, 0 }
 0x478   : > { %8512 = vtanh.f32 %v5825_v6  ;;  %v7371_v43 = vsel %vm4784_vm15, %v7226_v27, 0.0  ;;  %v6077_v23 = vrot.slane %v13155_v58, 2  ;;  %v6012_v13 = vmul.f32 %v5948_v55, %v13091_v60 }
 0x479   : > { %vm7040_vm0 = vcmp.eq.s32.totalorder %v6624_v45, 0  ;;  %v7372_v54 = vadd.f32 %v7371_v43, %v7370_v15  ;;  %v5760_v33 = vadd.f32 %v5696_v29, %v5418_v61  ;;  %v5571_v14 = vmul.f32 %v5433_v37, %v5433_v37 }
 0x47a   : > { %v406_v19 = vadd.s32 472, %v8692_v2  ;;  %v6076_v21 = vrot.slane %v6012_v13, 2  ;;  %v5505_v20 = vmul.f32 0.5, %v13110_v42  ;;  %v13170_v0 = vmul.f32 0.5, %v5418_v61 }
 0x47b   : > { %v5428_v51 = vadd.f32 %v13025_v11, %v12705_v36  ;;  %v5824_v12 = vmul.f32 0.7978846, %v5760_v33  ;;  %v13175_v34 = vsel %vm7039_vm14, 1.0, %v13694_v53  ;;  %v5635_v25 = vmul.f32 %v5571_v14, %v5433_v37  ;;  %v13737_v33 = vld [vmem:[#allocation49_spill] sm:$0xff] }
 0x47c   : > { %v407_v60 = vadd.s32 480, %v8692_v2  ;;  %v6094_v8 = vsel %vm4078_vm2, %v6076_v21, %v6077_v23  ;;  %v6095_v42 = vsel %vm4078_vm2, %v6075_v47, %v6076_v21  ;;  %v13186_v48 = vsel %vm7040_vm0, 1.0, %v13694_v53 }
 0x47d   : > { %v8509_v49 = vpop.eup %8508  ;;  %v828_v36 = vand.u32 63, %v406_v19  ;;  %v6203_v28 = vmax.f32 %v13102_v24, %v6095_v42  ;;  %v6204_v30 = vmax.f32 %v6012_v13, %v6094_v8  ;;  %8514 = vtanh.f32 %v5824_v12  ;;  %v7413_v8 = vld [vmem:[%s13369_s5 + $0x38] sm:$0xff]  ;;  %v13738_v42 = vld [vmem:[#allocation27_spill] sm:$0xff] }
 0x47e   : > { %v5951_v61 = vadd.f32 1.0, %v8509_v49  ;;  %v13189_v31 = vmul.f32 0.5, %v5433_v37  ;;  %v5699_v9 = vmul.f32 0.044715, %v5635_v25  ;;  %v5570_v62 = vmul.f32 %v5428_v51, %v5428_v51 }
 0x47f   : > { %v5443_v16 = vadd.f32 %v13025_v11, %v12732_v26  ;;  %v8511_v3 = vpop.eup %8510  ;;  %v7227_v47 = vmul.f32 %v13113_v1, %v6203_v28  ;;  %v7228_v40 = vmul.f32 %v13139_v41, %v6204_v30  ;;  %v835_v35 = vand.u32 63, %v407_v60 }
 0x480   : > { %v13195_v7 = vmul.f32 %v5951_v61, %v5503_v59  ;;  %v5950_v38 = vadd.f32 1.0, %v8511_v3  ;;  %v5763_v24 = vadd.f32 %v5699_v9, %v5433_v37  ;;  %v5634_v50 = vmul.f32 %v5570_v62, %v5428_v51 }
 0x481   : > { %v408_v56 = vadd.s32 488, %v8692_v2  ;;  %v7373_v5 = vsel %vm4784_vm15, %v7227_v47, 0.0  ;;  %v13200_v10 = vmul.f32 0.5, %v5428_v51  ;;  %v6631_v26 = vand.u32 3, %v828_v36 }
 0x482   : > { %v8513_v32 = vpop.eup %8512  ;;  %v6079_v52 = vrot.slane %v13195_v7, 2  ;;  %v7374_v27 = vadd.f32 %v7373_v5, %v7372_v54  ;;  %v6014_v1 = vmul.f32 %v5950_v38, %v5502_v18  ;;  %v5827_v41 = vmul.f32 0.7978846, %v5763_v24 }
 0x483   : > { %v5953_v45 = vadd.f32 1.0, %v8513_v32  ;;  %v7375_v59 = vsel %vm4784_vm15, %v7228_v40, 0.0  ;;  %v5698_v46 = vmul.f32 0.044715, %v5634_v50  ;;  %v6638_v6 = vand.u32 3, %v835_v35 }
 0x484   : > { %v5573_v17 = vmul.f32 %v5443_v16, %v5443_v16  ;;  %v13203_v37 = vadd.f32 %v7375_v59, %v7374_v27  ;;  %v6078_v22 = vrot.slane %v6014_v1, 2  ;;  %8516 = vtanh.f32 %v5827_v41  ;;  %v13740_v59 = vld [vmem:[#allocation32_spill] sm:$0xff] }
 0x485   : > { %v13205_v55 = vmul.f32 0.5, %v5443_v16  ;;  %v13207_v15 = vmul.f32 %v5953_v45, %v5505_v20  ;;  %v5762_v29 = vadd.f32 %v5698_v46, %v5428_v51  ;;  %vm7041_vm3 = vcmp.eq.s32.totalorder %v6631_v26, 0  ;;  %v13739_v26 = vld [vmem:[#allocation47_spill] sm:$0xff] }
 0x486   : > { %v5637_v43 = vmul.f32 %v5573_v17, %v5443_v16  ;;  %v6092_v18 = vsel %vm4078_vm2, %v6078_v22, %v6079_v52  ;;  %v6093_v13 = vsel %vm4078_vm2, %v6077_v23, %v6078_v22  ;;  %v13214_v54 = vadd.s32 496, %v8692_v2  ;;  %v7412_v23 = vld [vmem:[%s13369_s5 + $0x30] sm:$0xff]  ;;  %v13741_v22 = vld [vmem:[#allocation50_spill] sm:$0xff] }
 0x487   : > { %v5438_v14 = vadd.f32 %v13025_v11, %v13737_v33  ;;  %v8515_v19 = vpop.eup %8514  ;;  %v6205_v21 = vmax.f32 %v13155_v58, %v6093_v13  ;;  %v6206_v20 = vmax.f32 %v6014_v1, %v6092_v18  ;;  %v5826_v12 = vmul.f32 0.7978846, %v5762_v29 }
 0x488   : > { %v5701_v51 = vmul.f32 0.044715, %v5637_v43  ;;  %v5952_v25 = vadd.f32 1.0, %v8515_v19  ;;  %vm7042_vm4 = vcmp.eq.s32.totalorder %v6638_v6, 0  ;;  %v842_v60 = vand.u32 63, %v408_v56 }
 0x489   : > { %v5572_v49 = vmul.f32 %v5438_v14, %v5438_v14  ;;  %v7229_v11 = vmul.f32 %v13738_v42, %v6205_v21  ;;  %v7230_v36 = vmul.f32 %v13163_v57, %v6206_v20  ;;  %8518 = vtanh.f32 %v5826_v12 }
 0x48a   : > { %v5765_v58 = vadd.f32 %v5701_v51, %v5443_v16  ;;  %v6081_v28 = vrot.slane %v13207_v15, 2  ;;  %v6016_v30 = vmul.f32 %v5952_v25, %v13170_v0  ;;  %v13231_v61 = vsel %vm7041_vm3, 1.0, %v13694_v53 }
 0x48b   : > { %v5636_v9 = vmul.f32 %v5572_v49, %v5438_v14  ;;  %v13234_v62 = vsel %vm7042_vm4, 1.0, %v13694_v53  ;;  %v849_v47 = vand.u32 63, %v13214_v54  ;;  %v8220_v40 = vpack.c.bf16 %v7413_v8, %v7412_v23 }
 0x48c   : > { %v5829_v3 = vmul.f32 0.7978846, %v5765_v58  ;;  %v6080_v35 = vrot.slane %v6016_v30, 2  ;;  %v13237_v57 = vmul.f32 0.5, %v5438_v14  ;;  %v13239_v38 = vand.u32 3, %v842_v60 }
 0x48d   : > { %v5700_v16 = vmul.f32 0.044715, %v5636_v9  ;;  %v7377_v0 = vsel %vm4784_vm15, %v7229_v11, 0.0  ;;  %v7385_v24 = vsel %vm4784_vm15, %v7230_v36, 0.0  ;;  %8221 = vmatpush3.bf16.msra.mxu0 %v8220_v40  ;;  %vm8598_vm5 = vmmov 0  }
 0x48e   : > { %8520 = vtanh.f32 %v5829_v3  ;;  %v8517_v50 = vpop.eup %8516  ;;  %v6090_v56 = vsel %vm4078_vm2, %v6080_v35, %v6081_v28  ;;  %v6091_v32 = vsel %vm4078_vm2, %v6079_v52, %v6080_v35  ;;  %8183 = vmatprep.mubr.msk.f32.mxu0 %vm8598_vm5, %v13694_v53  ;;  %v7257_v27 = vrot.slane %v13739_v26, 1 }
 0x48f   : > { %v5764_v5 = vadd.f32 %v5700_v16, %v5438_v14  ;;  %v6207_v1 = vmax.f32 %v13195_v7, %v6091_v32  ;;  %v6208_v45 = vmax.f32 %v6016_v30, %v6090_v56  ;;  %v5955_v41 = vadd.f32 1.0, %v8517_v50 }
 0x490   : > { %v7278_v46 = vrot.slane %v13740_v59, 1  ;;  %v7258_v17 = vadd.f32 %v7257_v27, %v13739_v26  ;;  %v13742_v29 = vrot.slane %v13741_v22, 2  ;;  %v7318_v52 = vrot.slane %v12853_v39, 2 }
 0x491   : > { %v5828_v6 = vmul.f32 0.7978846, %v5764_v5  ;;  %v7231_v18 = vmul.f32 %v13175_v34, %v6207_v1  ;;  %v7232_v13 = vmul.f32 %v13186_v48, %v6208_v45  ;;  %v13261_v33 = vmul.f32 %v5955_v41, %v13189_v31 }
 0x492   : > { %v7298_v43 = vadd.f32 %v13742_v29, %v13741_v22  ;;  %v7279_v7 = vadd.f32 %v7278_v46, %v13740_v59  ;;  %v7319_v19 = vadd.f32 %v7318_v52, %v12853_v39  ;;  %v7338_v21 = vadd.f32 %v7337_v44, %v12950_v4  ;;  %v13744_v22 = vld [vmem:[#allocation23_spill] sm:$0xff] }
 0x493   : > { %8522 = vtanh.f32 %v5828_v6  ;;  %v8519_v20 = vpop.eup %8518  ;;  %v7386_v12 = vsel %vm4784_vm15, %v7231_v18, 0.0  ;;  %v7388_v34 = vsel %vm4784_vm15, %v7232_v13, 0.0  ;;  %v6083_v48 = vrot.slane %v13261_v33, 2 }
 0x494   : > { %v7299_v14 = vrot.slane %v7298_v43, 1  ;;  %v7358_v31 = vrot.slane %v13087_v63, 4  ;;  %v7387_v51 = vadd.f32 %v7386_v12, %v7385_v24  ;;  %v5954_v25 = vadd.f32 1.0, %v8519_v20 }
 0x495   : > { %v7320_v49 = vrot.slane %v7319_v19, 1  ;;  %v7339_v23 = vrot.slane %v7338_v21, 2  ;;  %v7378_v8 = vadd.f32 %v7377_v0, %v13203_v37  ;;  %vm7429_vm6 = vcmask 1041409  }
 0x496   : > { %v7300_v60 = vadd.f32 %v7299_v14, %v7298_v43  ;;  %v7359_v39 = vadd.f32 %v7358_v31, %v13087_v63  ;;  %v7389_v4 = vadd.f32 %v7388_v34, %v7387_v51  ;;  %v6018_v44 = vmul.f32 %v5954_v25, %v13200_v10 }
 0x497   : > { %v7321_v42 = vadd.f32 %v7320_v49, %v7319_v19  ;;  %v7430_v11 = vsel %vm7429_vm6, %v7279_v7, %v7258_v17  ;;  %v7340_v58 = vadd.f32 %v7339_v23, %v7338_v21  ;;  %v7379_v9 = vrot.slane %v7378_v8, 4 }
 0x498   : > { %v8521_v36 = vpop.eup %8520  ;;  %v7360_v30 = vrot.slane %v7359_v39, 2  ;;  %vm7431_vm1 = vcmask 1042434   ;;  %v6082_v3 = vrot.slane %v6018_v44, 2  ;;  %vm7433_vm10 = vcmask 1043459  }
 0x499   : > { %v5957_v40 = vadd.f32 1.0, %v8521_v36  ;;  %v7432_v35 = vsel %vm7431_vm1, %v7300_v60, %v7430_v11  ;;  %v7341_v16 = vrot.slane %v7340_v58, 1  ;;  %v7380_v63 = vadd.f32 %v7379_v9, %v7378_v8  ;;  %v7792_v9 = vld [vmem:[%s13370_s6] ss:$0 sm:$0xff] }
 0x49a   : > { %v7361_v24 = vadd.f32 %v7360_v30, %v7359_v39  ;;  %v7434_v50 = vsel %vm7433_vm10, %v7321_v42, %v7432_v35  ;;  %v6088_v10 = vsel %vm4078_vm2, %v6082_v3, %v6083_v48  ;;  %v6089_v37 = vsel %vm4078_vm2, %v6081_v28, %v6082_v3 }
 0x49b   : > { %v6021_v0 = vmul.f32 %v5957_v40, %v13205_v55  ;;  %vm7435_vm8 = vcmask 1044484   ;;  %v6209_v56 = vmax.f32 %v13207_v15, %v6089_v37  ;;  %v6210_v32 = vmax.f32 %v6018_v44, %v6088_v10  ;;  %v13743_v55 = vld [vmem:[#allocation17_spill] sm:$0xff] }
 0x49c   : > { %v7342_v5 = vadd.f32 %v7341_v16, %v7340_v58  ;;  %v7362_v26 = vrot.slane %v7361_v24, 1  ;;  %v6652_v45 = vand.u32 3, %v849_v47  ;;  %v7381_v41 = vrot.slane %v7380_v63, 2 }
 0x49d   : > { %v8523_v27 = vpop.eup %8522  ;;  %v6085_v1 = vrot.slane %v6021_v0, 2  ;;  %vm7437_vm9 = vcmask 1045509   ;;  %v7233_v59 = vmul.f32 %v13231_v61, %v6209_v56  ;;  %v7234_v46 = vmul.f32 %v13234_v62, %v6210_v32 }
 0x49e   : > { %v5956_v28 = vadd.f32 1.0, %v8523_v27  ;;  %v7363_v6 = vadd.f32 %v7362_v26, %v7361_v24  ;;  %v6659_v17 = vand.u32 3, %v13743_v55  ;;  %v13745_v15 = vrot.slane %v13744_v22, 2 }
 0x49f   : > { %v7382_v43 = vadd.f32 %v7381_v41, %v7380_v63  ;;  %v7436_v52 = vsel %vm7435_vm8, %v7342_v5, %v7434_v50  ;;  %v7390_v54 = vsel %vm4784_vm15, %v7233_v59, 0.0  ;;  %vm7043_vm11 = vcmp.eq.s32.totalorder %v13239_v38, 0 }
 0x4a0   : > { %v6149_v29 = vsel %vm4078_vm2, %v6085_v1, %v13745_v15  ;;  %v6020_v18 = vmul.f32 %v5956_v28, %v13237_v57  ;;  %v7391_v61 = vadd.f32 %v7390_v54, %v7389_v4  ;;  %vm7044_vm12 = vcmp.eq.s32.totalorder %v6652_v45, 0 }
 0x4a1   : > { %v6213_v47 = vmax.f32 %v6021_v0, %v6149_v29  ;;  %v7383_v62 = vrot.slane %v7382_v43, 1  ;;  %v7438_v13 = vsel %vm7437_vm9, %v7363_v6, %v7436_v52  ;;  %v7392_v7 = vsel %vm4784_vm15, %v7234_v46, 0.0 }
 0x4a2   : > { %v6084_v14 = vrot.slane %v6020_v18, 2  ;;  %vm7439_vm13 = vcmask 1046534   ;;  %vm7045_vm7 = vcmp.eq.s32.totalorder %v6659_v17, 0  ;;  %v7393_v19 = vadd.f32 %v7392_v7, %v7391_v61 }
 0x4a3   : > { %v7384_v21 = vadd.f32 %v7383_v62, %v7382_v43  ;;  %v7789_v38 = vsel %vm7043_vm11, 1.0, %v13694_v53  ;;  %v7790_v12 = vsel %vm7044_vm12, 1.0, %v13694_v53  ;;  %v7791_v25 = vsel %vm7045_vm7, 1.0, %v13694_v53 }
 0x4a4   : > { %v6086_v20 = vsel %vm4078_vm2, %v6084_v14, %v6085_v1  ;;  %v6087_v57 = vsel %vm4078_vm2, %v6083_v48, %v6084_v14  ;;  %v7237_v23 = vmul.f32 %v7791_v25, %v6213_v47  ;;  %vm7441_vm2 = vcmask 1047559  }
 0x4a5   : > { %v6211_v34 = vmax.f32 %v13261_v33, %v6087_v57  ;;  %v6212_v31 = vmax.f32 %v6020_v18, %v6086_v20  ;;  %v7440_v51 = vsel %vm7439_vm13, %v7384_v21, %v7438_v13 }
 0x4a6   : > { %v7398_v4 = vsel %vm4784_vm15, %v7237_v23, 0.0 }
 0x4a7   : > { %v7235_v60 = vmul.f32 %v7789_v38, %v6211_v34  ;;  %v7236_v49 = vmul.f32 %v7790_v12, %v6212_v31 }
 0x4a9   : > { %v7394_v39 = vsel %vm4784_vm15, %v7235_v60, 0.0  ;;  %v7396_v2 = vsel %vm4784_vm15, %v7236_v49, 0.0 }
 0x4aa   : > { %v7395_v8 = vadd.f32 %v7394_v39, %v7393_v19 }
 0x4ac   : > { %v7397_v48 = vadd.f32 %v7396_v2, %v7395_v8 }
 0x4ae   : > { %v7399_v44 = vadd.f32 %v7398_v4, %v7397_v48 }
 0x4b0   : > { %v7400_v42 = vrot.slane %v7399_v44, 4 }
 0x4b2   : > { %v7401_v33 = vadd.f32 %v7400_v42, %v7399_v44 }
 0x4b4   : > { %v7402_v11 = vrot.slane %v7401_v33, 2 }
 0x4b6   : > { %v7403_v36 = vadd.f32 %v7402_v11, %v7401_v33 }
 0x4b8   : > { %v7404_v58 = vrot.slane %v7403_v36, 1 }
 0x4ba   : > { %v7405_v53 = vadd.f32 %v7404_v58, %v7403_v36 }
 0x4bc   : > { %v7442_v30 = vsel %vm7441_vm2, %v7405_v53, %v7440_v51 }
 0x4bd   : > { %8184 = vmatmul.mubr.msk.f32.vlgmr.msra.gmra.mrb[64].mxu0 %vm4784_vm15, %v7442_v30 }
 0x590   : > { %v7511_v3 = vpop.f32.mrb[64].mxu0 }
 0x591   : > { %v7512_v40 = vadd.f32 %v7792_v9, %v7511_v3  ;;  %v8185_v35 = vpop.f32.mrb[65].mxu0 }
 0x593   : > { %7515 = vst [vmem:[%s274_s15] sm:$0xff] %v7512_v40 }
 0x594   : > { %8541 = shalt.err (!%p8538_p3)
}
 0x595   : > { %s8542_s22 = scalar_lea.hbm %s13322_s17, 128  ;;  %s8546_s13 = scalar_lea.hbm %s13371_s7, 256 }
 0x596   : > { %p8543_p4 = scmp.ne.s32.totalorder %s13322_s17, %s8542_s22  ;;  %p8547_p9 = scmp.lt.u32.totalorder %s13322_s17, %s13371_s7 }
 0x597   : > { %p8548_p10 = scmp.lt.u32.totalorder %s8546_s13, %s8542_s22  ;;  %p8550_p12 = scmp.lt.u32.totalorder %s8542_s22, %s13322_s17 }
 0x598   : > { %p8544_p7 = pnand %p8543_p4, %p8678_p5 }
 0x599   : > { %p8549_p11 = por %p8548_p10, %p8547_p9 }
 0x59a   : > { %p8545_p8 = pneg %p8544_p7 }
 0x59b   : > { %p8551_p13 = por %p8550_p12, %p8549_p11 }
 0x59d   : > { %p8552_p0 = pnand %p8551_p13, %p8545_p8 }
 0x59f   : > { %8555 = shalt.err (!%p8552_p0)
}
 0x5a0   : > { %8222 = dma.vmem_to_hbm [thread:$0]  (%p8678_p5), %s13324_s29, 128, %s13322_s17, %s7517_s18  }
 0x5a1 PF: > { %p8228_p1 = scmp.ge.s32.totalorder %s8590_s27, 2  ;;  %s7542_s8 = sand.u32 1, %s8578_s24  }
 0x5a2   : > { %s7543_s16 = scalar_lea.sflag [#allocation3], %s7542_s8 }
 0x5a3   : > { %p8225_p2 = pnand %p8228_p1, %p8682_p6 }
 0x5a5   : > { %8573 = dma.done.wait (!%p8225_p2), %s7543_s16, 128  }
 0x5a6   : > { %8575 = vsyncadd (!%p8225_p2), %s7543_s16, 4294967168  ;;  %p17_p3 = scmp.ge.s32.totalorder %s8665_s30, 4   ;;  %s13746_s24 = smov %s8582_s25 }
 0x5a7   : > { %s13747_s25 = smov %s8586_s26  ;;  %s13748_s26 = smov %s8676_s10 }
 0x5a8   : > { %s13749_s27 = smov %s8665_s30  ;;  %19 = sbr.rel (!%p17_p3) target bundleno = 3 (0x3), region = 83 }
 0x5af   :  { %7548 = vsyncpa [#allocation3], 1 }
 0x5b0   :  { %7550 = vsyncpa [#allocation3 + $0x1], 1 }

</bundles_post_ra>
